<compile_context>
chip_gen: v6e
topology: v6e:2x2x1
jax: 0.10.0
libtpu: 0.0.40
codegen_flags: <defaults>
</compile_context>

<pallas_src>
import jax
import jax.numpy as jnp
from jax.experimental import pallas as pl
from jax.experimental.pallas import tpu as pltpu


# ----------------------------------------------------------------------------
# Fused Inception kernel
# ----------------------------------------------------------------------------
def make_inception_kernel(H, W, Cin, Cout):
    C3 = 2 * Cout            # stacked (t2 || t3) / (branch2 || branch3) channels

    def kernel(x_ref, w3_ref, s3_ref, h3_ref,
               w5_ref, s5_ref, h5_ref,
               o_ref, xz_ref, xm_ref, tpad_ref):
        x = x_ref[0].astype(jnp.float32)                       # (H, W, Cin)

        # ---- halos live in VMEM scratch (no HBM padding round-trips) ----------
        xz_ref[...] = jnp.zeros(xz_ref.shape, jnp.float32)           # zero halo
        xm_ref[...] = jnp.full(xm_ref.shape, -jnp.inf, jnp.float32)  # -inf halo
        tpad_ref[...] = jnp.zeros(tpad_ref.shape, jnp.float32)       # zero halo
        xz_ref[1:1 + H, 1:1 + W, :] = x
        xm_ref[1:1 + H, 1:1 + W, :] = x

        # ---- matmul #1: [t2 || t3 || branch1] via shared 3x3 im2col ------------
        # (the 1x1 conv weight sits in the centre-tap rows of the last Cout cols)
        p3 = jnp.concatenate(
            [xz_ref[dy:dy + H, dx:dx + W, :] for dy in range(3) for dx in range(3)],
            axis=-1)                                           # (H, W, 9*Cin)
        t = jax.lax.dot_general(
            p3.reshape(H * W, 9 * Cin).astype(jnp.bfloat16), w3_ref[...],
            (((1,), (0,)), ((), ())), preferred_element_type=jnp.float32)
        t = jnp.maximum(t * s3_ref[...] + h3_ref[...], 0.0)    # (H*W, 3*Cout)
        tpad_ref[2:2 + H, 2:2 + W, :] = t[:, :C3].reshape(H, W, C3)   # [t2 || t3]
        b1 = t[:, C3:].reshape(H, W, Cout)                     # branch1

        # ---- matmul #2: block-diagonal 5x5 convs -> [branch2 || branch3] -------
        p5 = jnp.concatenate(
            [tpad_ref[dy:dy + H, dx:dx + W, :] for dy in range(5) for dx in range(5)],
            axis=-1)                                           # (H, W, 25*2*Cout)
        b23 = jax.lax.dot_general(
            p5.reshape(H * W, 25 * C3).astype(jnp.bfloat16), w5_ref[...],
            (((1,), (0,)), ((), ())), preferred_element_type=jnp.float32)
        b23 = jnp.maximum(b23 * s5_ref[...] + h5_ref[...], 0.0)
        b23 = b23.reshape(H, W, C3)

        # ---- branch4: separable 3x3 stride-1 max pool (-inf halo, PyTorch-like)
        rmax = jnp.maximum(jnp.maximum(xm_ref[:, 0:W, :], xm_ref[:, 1:W + 1, :]),
                           xm_ref[:, 2:W + 2, :])              # (H+2, W, Cin)
        pool = jnp.maximum(jnp.maximum(rmax[0:H], rmax[1:1 + H]), rmax[2:2 + H])

        # ---- single concatenated output store -----------------------------------
        o_ref[0] = jnp.concatenate([b1, b23, pool], axis=-1).astype(o_ref.dtype)

    return kernel


# ----------------------------------------------------------------------------
# Wrappers
# ----------------------------------------------------------------------------
def inception_block_forward_nhwc(x_nhwc, p):
    """Fused InceptionBlock forward, NHWC in / NHWC out (no internal transposes)."""
    B, H, W, Cin = x_nhwc.shape
    Cout = p["W5"].shape[-1] // 2
    Ctot = 3 * Cout + Cin
    kernel = make_inception_kernel(H, W, Cin, Cout)

    def full_spec(a):
        nd = a.ndim
        return pl.BlockSpec(a.shape, lambda b, _nd=nd: (0,) * _nd)

    return pl.pallas_call(
        kernel,
        out_shape=jax.ShapeDtypeStruct((B, H, W, Ctot), jnp.float32),
        grid=(B,),
        in_specs=[
            pl.BlockSpec((1, H, W, Cin), lambda b: (b, 0, 0, 0)),
            full_spec(p["W3"]), full_spec(p["s3"]), full_spec(p["h3"]),
            full_spec(p["W5"]), full_spec(p["s5"]), full_spec(p["h5"]),
        ],
        out_specs=pl.BlockSpec((1, H, W, Ctot), lambda b: (b, 0, 0, 0)),
        scratch_shapes=[
            pltpu.VMEM((H + 2, W + 2, Cin), jnp.float32),       # zero-padded x
            pltpu.VMEM((H + 2, W + 2, Cin), jnp.float32),       # -inf-padded x
            pltpu.VMEM((H + 4, W + 4, 2 * Cout), jnp.float32),  # padded [t2 || t3]
        ],
        compiler_params=pltpu.CompilerParams(
            dimension_semantics=("parallel",)),
    )(x_nhwc, p["W3"], p["s3"], p["h3"], p["W5"], p["s5"], p["h5"])


def inception_block_forward(x_nchw, p):
    """NCHW in / NCHW out to match the PyTorch module (boundary transposes only)."""
    x = jnp.transpose(x_nchw, (0, 2, 3, 1))
    y = inception_block_forward_nhwc(x, p)
    return jnp.transpose(y, (0, 3, 1, 2))


# ----------------------------------------------------------------------------
# Parameters: Conv2d + BatchNorm2d (eval-mode) folded, then packed for the kernel
# ----------------------------------------------------------------------------
def init_conv_bn(key, Cin, Cout, k, eps=1e-5):
    kw, kb, kg, kbt, km, kv = jax.random.split(key, 6)
    fan_in = Cin * k * k
    bound = 1.0 / (fan_in ** 0.5)
    w = jax.random.uniform(kw, (k, k, Cin, Cout), jnp.float32, -bound, bound)
    b = jax.random.uniform(kb, (Cout,), jnp.float32, -bound, bound)
    gamma = jax.random.uniform(kg, (Cout,), jnp.float32, 0.5, 1.5)
    beta = jax.random.uniform(kbt, (Cout,), jnp.float32, -0.5, 0.5)
    mean = jax.random.uniform(km, (Cout,), jnp.float32, -0.1, 0.1)
    var = jax.random.uniform(kv, (Cout,), jnp.float32, 0.5, 1.5)
    scale = gamma / jnp.sqrt(var + eps)          # BN scale
    shift = scale * (b - mean) + beta            # conv bias + BN shift folded
    return w, scale, shift


def init_inception_params(key, Cin, Cout):
    keys = jax.random.split(key, 5)
    return {
        "b1":  init_conv_bn(keys[0], Cin,  Cout, 1),
        "b2a": init_conv_bn(keys[1], Cin,  Cout, 3),
        "b2b": init_conv_bn(keys[2], Cout, Cout, 5),
        "b3a": init_conv_bn(keys[3], Cin,  Cout, 3),
        "b3b": init_conv_bn(keys[4], Cout, Cout, 5),
    }


def prepare_fused_params(raw, Cin, Cout):
    """One-time packing of weights for the fused kernel (done outside the kernel)."""
    w1, s1, h1 = raw["b1"]
    w2a, s2a, h2a = raw["b2a"]
    w2b, s2b, h2b = raw["b2b"]
    w3a, s3a, h3a = raw["b3a"]
    w3b, s3b, h3b = raw["b3b"]

    # Matmul #1 weight (9*Cin, 3*Cout): [w2a || w3a || w1-at-centre-tap].
    W33 = jnp.concatenate([w2a, w3a], axis=-1).reshape(9 * Cin, 2 * Cout)
    W1col = jnp.zeros((9 * Cin, Cout), jnp.float32)
    W1col = W1col.at[4 * Cin:5 * Cin, :].set(w1.reshape(Cin, Cout))  # tap (1,1)
    W3 = jnp.concatenate([W33, W1col], axis=-1).astype(jnp.bfloat16)

    # Matmul #2 weight: block-diagonal over the stacked [t2 || t3] input channels.
    W5 = jnp.zeros((5, 5, 2 * Cout, 2 * Cout), jnp.float32)
    W5 = W5.at[:, :, :Cout, :Cout].set(w2b)
    W5 = W5.at[:, :, Cout:, Cout:].set(w3b)
    W5 = W5.reshape(25 * 2 * Cout, 2 * Cout).astype(jnp.bfloat16)

    row = lambda v: v.reshape(1, -1).astype(jnp.float32)
    return {
        "W3": W3,
        "s3": row(jnp.concatenate([s2a, s3a, s1])),
        "h3": row(jnp.concatenate([h2a, h3a, h1])),
        "W5": W5,
        "s5": row(jnp.concatenate([s2b, s3b])),
        "h5": row(jnp.concatenate([h2b, h3b])),
    }


# ----------------------------------------------------------------------------
# Pure-JAX reference (for numerical sanity check of the fused kernel)
# ----------------------------------------------------------------------------
def _ref_conv_bn_relu(x, w, scale, shift):
    y = jax.lax.conv_general_dilated(
        x, w, window_strides=(1, 1), padding="SAME",
        dimension_numbers=("NHWC", "HWIO", "NHWC"))
    return jnp.maximum(y * scale.reshape(1, 1, 1, -1) + shift.reshape(1, 1, 1, -1), 0.0)


def _ref_maxpool3(x):
    return jax.lax.reduce_window(
        x, -jnp.inf, jax.lax.max,
        window_dimensions=(1, 3, 3, 1), window_strides=(1, 1, 1, 1),
        padding=((0, 0), (1, 1), (1, 1), (0, 0)))


def inception_reference_nchw(x_nchw, raw):
    x = jnp.transpose(x_nchw, (0, 2, 3, 1))
    b1 = _ref_conv_bn_relu(x, *raw["b1"])
    b2 = _ref_conv_bn_relu(_ref_conv_bn_relu(x, *raw["b2a"]), *raw["b2b"])
    b3 = _ref_conv_bn_relu(_ref_conv_bn_relu(x, *raw["b3a"]), *raw["b3b"])
    b4 = _ref_maxpool3(x)
    out = jnp.concatenate([b1, b2, b3, b4], axis=-1)
    return jnp.transpose(out, (0, 3, 1, 2))


# ----------------------------------------------------------------------------
if __name__ == "__main__":
    B, Cin, H, W = 2, 4, 16, 16
    Cout = 8

    key = jax.random.PRNGKey(0)
    kx, kp = jax.random.split(key)
    x = jax.random.normal(kx, (B, Cin, H, W), dtype=jnp.float32)
    raw = init_inception_params(kp, Cin, Cout)
    params = prepare_fused_params(raw, Cin, Cout)

    fwd = jax.jit(inception_block_forward)
    y = jax.block_until_ready(fwd(x, params))

    expected = (B, 3 * Cout + Cin, H, W)
    assert y.shape == expected, (y.shape, expected)
    assert bool(jnp.all(jnp.isfinite(y)))

    # Numerical sanity check against a pure-JAX (f32) reference; the kernel uses
    # bf16 MXU operands with f32 accumulation, so allow a small absolute slack.
    y_ref = jax.block_until_ready(inception_reference_nchw(x, raw))
    max_err = float(jnp.max(jnp.abs(y - y_ref)))
    assert max_err < 8e-2, f"max abs error vs reference too large: {max_err}"

    print("KERNEL_OK")
</pallas_src>

<mosaic_0001>
module attributes {stable_mosaic.version = 11 : i64} {
  func.func @kernel(%arg0: i32, %arg1: memref<1x16x16x4xf32, #tpu.memory_space<vmem>>, %arg2: memref<36x24xbf16, #tpu.memory_space<vmem>>, %arg3: memref<1x24xf32, #tpu.memory_space<vmem>>, %arg4: memref<1x24xf32, #tpu.memory_space<vmem>>, %arg5: memref<400x16xbf16, #tpu.memory_space<vmem>>, %arg6: memref<1x16xf32, #tpu.memory_space<vmem>>, %arg7: memref<1x16xf32, #tpu.memory_space<vmem>>, %arg8: memref<1x16x16x28xf32, #tpu.memory_space<vmem>>, %arg9: memref<18x18x4xf32, #tpu.memory_space<vmem>>, %arg10: memref<18x18x4xf32, #tpu.memory_space<vmem>>, %arg11: memref<20x20x16xf32, #tpu.memory_space<vmem>>) attributes {dimension_semantics = [#tpu.dimension_semantics<parallel>], iteration_bounds = array<i64: 2>, scalar_prefetch = 0 : i64, scratch_operands = 3 : i64, tpu.core_type = #tpu.core_type<tc>, window_params = [{transform_indices = @transform_0, window_bounds = array<i64: 1, 16, 16, 4>}, {pipeline_mode = #tpu.pipeline_mode<synchronous>, transform_indices = @transform_1, window_bounds = array<i64: 36, 24>}, {pipeline_mode = #tpu.pipeline_mode<synchronous>, transform_indices = @transform_2, window_bounds = array<i64: 1, 24>}, {pipeline_mode = #tpu.pipeline_mode<synchronous>, transform_indices = @transform_3, window_bounds = array<i64: 1, 24>}, {pipeline_mode = #tpu.pipeline_mode<synchronous>, transform_indices = @transform_4, window_bounds = array<i64: 400, 16>}, {pipeline_mode = #tpu.pipeline_mode<synchronous>, transform_indices = @transform_5, window_bounds = array<i64: 1, 16>}, {pipeline_mode = #tpu.pipeline_mode<synchronous>, transform_indices = @transform_6, window_bounds = array<i64: 1, 16>}, {transform_indices = @transform_7, window_bounds = array<i64: 1, 16, 16, 28>}]} {
    %c0 = arith.constant 0 : index
    %c0_0 = arith.constant 0 : index
    %c0_1 = arith.constant 0 : index
    %c0_2 = arith.constant 0 : index
    %0 = vector.load %arg1[%c0, %c0_0, %c0_1, %c0_2] : memref<1x16x16x4xf32, #tpu.memory_space<vmem>>, vector<1x16x16x4xf32>
    %1 = vector.shape_cast %0 : vector<1x16x16x4xf32> to vector<16x16x4xf32>
    %cst = arith.constant 0.000000e+00 : f32
    %2 = vector.broadcast %cst : f32 to vector<18x18x4xf32>
    %c0_3 = arith.constant 0 : index
    %c0_4 = arith.constant 0 : index
    %c0_5 = arith.constant 0 : index
    %3 = vector.load %arg9[%c0_3, %c0_4, %c0_5] : memref<18x18x4xf32, #tpu.memory_space<vmem>>, vector<18x18x4xf32>
    tpu.vector_store %arg9[%c0_3, %c0_4, %c0_5], %2 {strides = array<i32>} : memref<18x18x4xf32, #tpu.memory_space<vmem>>, vector<18x18x4xf32>,
    %cst_6 = arith.constant 0xFF800000 : f32
    %4 = vector.broadcast %cst_6 : f32 to vector<18x18x4xf32>
    %c0_7 = arith.constant 0 : index
    %c0_8 = arith.constant 0 : index
    %c0_9 = arith.constant 0 : index
    %5 = vector.load %arg10[%c0_7, %c0_8, %c0_9] : memref<18x18x4xf32, #tpu.memory_space<vmem>>, vector<18x18x4xf32>
    tpu.vector_store %arg10[%c0_7, %c0_8, %c0_9], %4 {strides = array<i32>} : memref<18x18x4xf32, #tpu.memory_space<vmem>>, vector<18x18x4xf32>,
    %cst_10 = arith.constant 0.000000e+00 : f32
    %6 = vector.broadcast %cst_10 : f32 to vector<20x20x16xf32>
    %c0_11 = arith.constant 0 : index
    %c0_12 = arith.constant 0 : index
    %c0_13 = arith.constant 0 : index
    %7 = vector.load %arg11[%c0_11, %c0_12, %c0_13] : memref<20x20x16xf32, #tpu.memory_space<vmem>>, vector<20x20x16xf32>
    tpu.vector_store %arg11[%c0_11, %c0_12, %c0_13], %6 {strides = array<i32>} : memref<20x20x16xf32, #tpu.memory_space<vmem>>, vector<20x20x16xf32>,
    %c1 = arith.constant 1 : index
    %c1_14 = arith.constant 1 : index
    %c0_15 = arith.constant 0 : index
    %8 = vector.load %arg9[%c1, %c1_14, %c0_15] : memref<18x18x4xf32, #tpu.memory_space<vmem>>, vector<16x16x4xf32>
    tpu.vector_store %arg9[%c1, %c1_14, %c0_15], %1 {strides = array<i32>} : memref<18x18x4xf32, #tpu.memory_space<vmem>>, vector<16x16x4xf32>,
    %c1_16 = arith.constant 1 : index
    %c1_17 = arith.constant 1 : index
    %c0_18 = arith.constant 0 : index
    %9 = vector.load %arg10[%c1_16, %c1_17, %c0_18] : memref<18x18x4xf32, #tpu.memory_space<vmem>>, vector<16x16x4xf32>
    tpu.vector_store %arg10[%c1_16, %c1_17, %c0_18], %1 {strides = array<i32>} : memref<18x18x4xf32, #tpu.memory_space<vmem>>, vector<16x16x4xf32>,
    %c0_19 = arith.constant 0 : index
    %c0_20 = arith.constant 0 : index
    %c0_21 = arith.constant 0 : index
    %10 = vector.load %arg9[%c0_19, %c0_20, %c0_21] : memref<18x18x4xf32, #tpu.memory_space<vmem>>, vector<16x16x4xf32>
    %c0_22 = arith.constant 0 : index
    %c1_23 = arith.constant 1 : index
    %c0_24 = arith.constant 0 : index
    %11 = vector.load %arg9[%c0_22, %c1_23, %c0_24] : memref<18x18x4xf32, #tpu.memory_space<vmem>>, vector<16x16x4xf32>
    %c0_25 = arith.constant 0 : index
    %c2 = arith.constant 2 : index
    %c0_26 = arith.constant 0 : index
    %12 = vector.load %arg9[%c0_25, %c2, %c0_26] : memref<18x18x4xf32, #tpu.memory_space<vmem>>, vector<16x16x4xf32>
    %c1_27 = arith.constant 1 : index
    %c0_28 = arith.constant 0 : index
    %c0_29 = arith.constant 0 : index
    %13 = vector.load %arg9[%c1_27, %c0_28, %c0_29] : memref<18x18x4xf32, #tpu.memory_space<vmem>>, vector<16x16x4xf32>
    %c1_30 = arith.constant 1 : index
    %c1_31 = arith.constant 1 : index
    %c0_32 = arith.constant 0 : index
    %14 = vector.load %arg9[%c1_30, %c1_31, %c0_32] : memref<18x18x4xf32, #tpu.memory_space<vmem>>, vector<16x16x4xf32>
    %c1_33 = arith.constant 1 : index
    %c2_34 = arith.constant 2 : index
    %c0_35 = arith.constant 0 : index
    %15 = vector.load %arg9[%c1_33, %c2_34, %c0_35] : memref<18x18x4xf32, #tpu.memory_space<vmem>>, vector<16x16x4xf32>
    %c2_36 = arith.constant 2 : index
    %c0_37 = arith.constant 0 : index
    %c0_38 = arith.constant 0 : index
    %16 = vector.load %arg9[%c2_36, %c0_37, %c0_38] : memref<18x18x4xf32, #tpu.memory_space<vmem>>, vector<16x16x4xf32>
    %c2_39 = arith.constant 2 : index
    %c1_40 = arith.constant 1 : index
    %c0_41 = arith.constant 0 : index
    %17 = vector.load %arg9[%c2_39, %c1_40, %c0_41] : memref<18x18x4xf32, #tpu.memory_space<vmem>>, vector<16x16x4xf32>
    %c2_42 = arith.constant 2 : index
    %c2_43 = arith.constant 2 : index
    %c0_44 = arith.constant 0 : index
    %18 = vector.load %arg9[%c2_42, %c2_43, %c0_44] : memref<18x18x4xf32, #tpu.memory_space<vmem>>, vector<16x16x4xf32>
    %19 = tpu.concatenate %10, %11, %12, %13, %14, %15, %16, %17, %18 in 2 : vector<16x16x4xf32>, vector<16x16x4xf32>, vector<16x16x4xf32>, vector<16x16x4xf32>, vector<16x16x4xf32>, vector<16x16x4xf32>, vector<16x16x4xf32>, vector<16x16x4xf32>, vector<16x16x4xf32> -> vector<16x16x36xf32>
    %20 = vector.shape_cast %19 : vector<16x16x36xf32> to vector<256x36xf32>
    %21 = arith.truncf %20 : vector<256x36xf32> to vector<256x36xbf16>
    %c0_45 = arith.constant 0 : index
    %c0_46 = arith.constant 0 : index
    %22 = vector.load %arg2[%c0_45, %c0_46] : memref<36x24xbf16, #tpu.memory_space<vmem>>, vector<36x24xbf16>
    %cst_47 = arith.constant dense<0.000000e+00> : vector<256x24xf32>
    %23 = tpu.matmul %21, %22, %cst_47 {dimension_numbers = #tpu.dot_dimension_numbers<[1], [0], [0], [1], [0, 0, 1, 1], [], []>} : vector<256x36xbf16>, vector<36x24xbf16>, vector<256x24xf32> -> vector<256x24xf32>
    %c0_48 = arith.constant 0 : index
    %c0_49 = arith.constant 0 : index
    %24 = vector.load %arg3[%c0_48, %c0_49] : memref<1x24xf32, #tpu.memory_space<vmem>>, vector<1x24xf32>
    %25 = vector.broadcast %24 : vector<1x24xf32> to vector<256x24xf32>
    %26 = arith.mulf %23, %25 : vector<256x24xf32>
    %c0_50 = arith.constant 0 : index
    %c0_51 = arith.constant 0 : index
    %27 = vector.load %arg4[%c0_50, %c0_51] : memref<1x24xf32, #tpu.memory_space<vmem>>, vector<1x24xf32>
    %28 = vector.broadcast %27 : vector<1x24xf32> to vector<256x24xf32>
    %29 = arith.addf %26, %28 : vector<256x24xf32>
    %cst_52 = arith.constant 0.000000e+00 : f32
    %30 = vector.broadcast %cst_52 : f32 to vector<256x24xf32>
    %31 = arith.maximumf %29, %30 : vector<256x24xf32>
    %32 = vector.extract_strided_slice %31 {offsets = [0, 0], sizes = [256, 16], strides = [1, 1]} : vector<256x24xf32> to vector<256x16xf32>
    %33 = vector.shape_cast %32 : vector<256x16xf32> to vector<16x16x16xf32>
    %c2_53 = arith.constant 2 : index
    %c2_54 = arith.constant 2 : index
    %c0_55 = arith.constant 0 : index
    %34 = vector.load %arg11[%c2_53, %c2_54, %c0_55] : memref<20x20x16xf32, #tpu.memory_space<vmem>>, vector<16x16x16xf32>
    tpu.vector_store %arg11[%c2_53, %c2_54, %c0_55], %33 {strides = array<i32>} : memref<20x20x16xf32, #tpu.memory_space<vmem>>, vector<16x16x16xf32>,
    %35 = vector.extract_strided_slice %31 {offsets = [0, 16], sizes = [256, 8], strides = [1, 1]} : vector<256x24xf32> to vector<256x8xf32>
    %36 = vector.shape_cast %35 : vector<256x8xf32> to vector<16x16x8xf32>
    %c0_56 = arith.constant 0 : index
    %c0_57 = arith.constant 0 : index
    %c0_58 = arith.constant 0 : index
    %37 = vector.load %arg11[%c0_56, %c0_57, %c0_58] : memref<20x20x16xf32, #tpu.memory_space<vmem>>, vector<16x16x16xf32>
    %c0_59 = arith.constant 0 : index
    %c1_60 = arith.constant 1 : index
    %c0_61 = arith.constant 0 : index
    %38 = vector.load %arg11[%c0_59, %c1_60, %c0_61] : memref<20x20x16xf32, #tpu.memory_space<vmem>>, vector<16x16x16xf32>
    %c0_62 = arith.constant 0 : index
    %c2_63 = arith.constant 2 : index
    %c0_64 = arith.constant 0 : index
    %39 = vector.load %arg11[%c0_62, %c2_63, %c0_64] : memref<20x20x16xf32, #tpu.memory_space<vmem>>, vector<16x16x16xf32>
    %c0_65 = arith.constant 0 : index
    %c3 = arith.constant 3 : index
    %c0_66 = arith.constant 0 : index
    %40 = vector.load %arg11[%c0_65, %c3, %c0_66] : memref<20x20x16xf32, #tpu.memory_space<vmem>>, vector<16x16x16xf32>
    %c0_67 = arith.constant 0 : index
    %c4 = arith.constant 4 : index
    %c0_68 = arith.constant 0 : index
    %41 = vector.load %arg11[%c0_67, %c4, %c0_68] : memref<20x20x16xf32, #tpu.memory_space<vmem>>, vector<16x16x16xf32>
    %c1_69 = arith.constant 1 : index
    %c0_70 = arith.constant 0 : index
    %c0_71 = arith.constant 0 : index
    %42 = vector.load %arg11[%c1_69, %c0_70, %c0_71] : memref<20x20x16xf32, #tpu.memory_space<vmem>>, vector<16x16x16xf32>
    %c1_72 = arith.constant 1 : index
    %c1_73 = arith.constant 1 : index
    %c0_74 = arith.constant 0 : index
    %43 = vector.load %arg11[%c1_72, %c1_73, %c0_74] : memref<20x20x16xf32, #tpu.memory_space<vmem>>, vector<16x16x16xf32>
    %c1_75 = arith.constant 1 : index
    %c2_76 = arith.constant 2 : index
    %c0_77 = arith.constant 0 : index
    %44 = vector.load %arg11[%c1_75, %c2_76, %c0_77] : memref<20x20x16xf32, #tpu.memory_space<vmem>>, vector<16x16x16xf32>
    %c1_78 = arith.constant 1 : index
    %c3_79 = arith.constant 3 : index
    %c0_80 = arith.constant 0 : index
    %45 = vector.load %arg11[%c1_78, %c3_79, %c0_80] : memref<20x20x16xf32, #tpu.memory_space<vmem>>, vector<16x16x16xf32>
    %c1_81 = arith.constant 1 : index
    %c4_82 = arith.constant 4 : index
    %c0_83 = arith.constant 0 : index
    %46 = vector.load %arg11[%c1_81, %c4_82, %c0_83] : memref<20x20x16xf32, #tpu.memory_space<vmem>>, vector<16x16x16xf32>
    %c2_84 = arith.constant 2 : index
    %c0_85 = arith.constant 0 : index
    %c0_86 = arith.constant 0 : index
    %47 = vector.load %arg11[%c2_84, %c0_85, %c0_86] : memref<20x20x16xf32, #tpu.memory_space<vmem>>, vector<16x16x16xf32>
    %c2_87 = arith.constant 2 : index
    %c1_88 = arith.constant 1 : index
    %c0_89 = arith.constant 0 : index
    %48 = vector.load %arg11[%c2_87, %c1_88, %c0_89] : memref<20x20x16xf32, #tpu.memory_space<vmem>>, vector<16x16x16xf32>
    %c2_90 = arith.constant 2 : index
    %c2_91 = arith.constant 2 : index
    %c0_92 = arith.constant 0 : index
    %49 = vector.load %arg11[%c2_90, %c2_91, %c0_92] : memref<20x20x16xf32, #tpu.memory_space<vmem>>, vector<16x16x16xf32>
    %c2_93 = arith.constant 2 : index
    %c3_94 = arith.constant 3 : index
    %c0_95 = arith.constant 0 : index
    %50 = vector.load %arg11[%c2_93, %c3_94, %c0_95] : memref<20x20x16xf32, #tpu.memory_space<vmem>>, vector<16x16x16xf32>
    %c2_96 = arith.constant 2 : index
    %c4_97 = arith.constant 4 : index
    %c0_98 = arith.constant 0 : index
    %51 = vector.load %arg11[%c2_96, %c4_97, %c0_98] : memref<20x20x16xf32, #tpu.memory_space<vmem>>, vector<16x16x16xf32>
    %c3_99 = arith.constant 3 : index
    %c0_100 = arith.constant 0 : index
    %c0_101 = arith.constant 0 : index
    %52 = vector.load %arg11[%c3_99, %c0_100, %c0_101] : memref<20x20x16xf32, #tpu.memory_space<vmem>>, vector<16x16x16xf32>
    %c3_102 = arith.constant 3 : index
    %c1_103 = arith.constant 1 : index
    %c0_104 = arith.constant 0 : index
    %53 = vector.load %arg11[%c3_102, %c1_103, %c0_104] : memref<20x20x16xf32, #tpu.memory_space<vmem>>, vector<16x16x16xf32>
    %c3_105 = arith.constant 3 : index
    %c2_106 = arith.constant 2 : index
    %c0_107 = arith.constant 0 : index
    %54 = vector.load %arg11[%c3_105, %c2_106, %c0_107] : memref<20x20x16xf32, #tpu.memory_space<vmem>>, vector<16x16x16xf32>
    %c3_108 = arith.constant 3 : index
    %c3_109 = arith.constant 3 : index
    %c0_110 = arith.constant 0 : index
    %55 = vector.load %arg11[%c3_108, %c3_109, %c0_110] : memref<20x20x16xf32, #tpu.memory_space<vmem>>, vector<16x16x16xf32>
    %c3_111 = arith.constant 3 : index
    %c4_112 = arith.constant 4 : index
    %c0_113 = arith.constant 0 : index
    %56 = vector.load %arg11[%c3_111, %c4_112, %c0_113] : memref<20x20x16xf32, #tpu.memory_space<vmem>>, vector<16x16x16xf32>
    %c4_114 = arith.constant 4 : index
    %c0_115 = arith.constant 0 : index
    %c0_116 = arith.constant 0 : index
    %57 = vector.load %arg11[%c4_114, %c0_115, %c0_116] : memref<20x20x16xf32, #tpu.memory_space<vmem>>, vector<16x16x16xf32>
    %c4_117 = arith.constant 4 : index
    %c1_118 = arith.constant 1 : index
    %c0_119 = arith.constant 0 : index
    %58 = vector.load %arg11[%c4_117, %c1_118, %c0_119] : memref<20x20x16xf32, #tpu.memory_space<vmem>>, vector<16x16x16xf32>
    %c4_120 = arith.constant 4 : index
    %c2_121 = arith.constant 2 : index
    %c0_122 = arith.constant 0 : index
    %59 = vector.load %arg11[%c4_120, %c2_121, %c0_122] : memref<20x20x16xf32, #tpu.memory_space<vmem>>, vector<16x16x16xf32>
    %c4_123 = arith.constant 4 : index
    %c3_124 = arith.constant 3 : index
    %c0_125 = arith.constant 0 : index
    %60 = vector.load %arg11[%c4_123, %c3_124, %c0_125] : memref<20x20x16xf32, #tpu.memory_space<vmem>>, vector<16x16x16xf32>
    %c4_126 = arith.constant 4 : index
    %c4_127 = arith.constant 4 : index
    %c0_128 = arith.constant 0 : index
    %61 = vector.load %arg11[%c4_126, %c4_127, %c0_128] : memref<20x20x16xf32, #tpu.memory_space<vmem>>, vector<16x16x16xf32>
    %62 = tpu.concatenate %37, %38, %39, %40, %41, %42, %43, %44, %45, %46, %47, %48, %49, %50, %51, %52 in 2 : vector<16x16x16xf32>, vector<16x16x16xf32>, vector<16x16x16xf32>, vector<16x16x16xf32>, vector<16x16x16xf32>, vector<16x16x16xf32>, vector<16x16x16xf32>, vector<16x16x16xf32>, vector<16x16x16xf32>, vector<16x16x16xf32>, vector<16x16x16xf32>, vector<16x16x16xf32>, vector<16x16x16xf32>, vector<16x16x16xf32>, vector<16x16x16xf32>, vector<16x16x16xf32> -> vector<16x16x256xf32>
    %63 = tpu.concatenate %53, %54, %55, %56, %57, %58, %59, %60, %61 in 2 : vector<16x16x16xf32>, vector<16x16x16xf32>, vector<16x16x16xf32>, vector<16x16x16xf32>, vector<16x16x16xf32>, vector<16x16x16xf32>, vector<16x16x16xf32>, vector<16x16x16xf32>, vector<16x16x16xf32> -> vector<16x16x144xf32>
    %64 = tpu.concatenate %62, %63 in 2 : vector<16x16x256xf32>, vector<16x16x144xf32> -> vector<16x16x400xf32>
    %65 = vector.shape_cast %64 : vector<16x16x400xf32> to vector<256x400xf32>
    %66 = arith.truncf %65 : vector<256x400xf32> to vector<256x400xbf16>
    %c0_129 = arith.constant 0 : index
    %c0_130 = arith.constant 0 : index
    %67 = vector.load %arg5[%c0_129, %c0_130] : memref<400x16xbf16, #tpu.memory_space<vmem>>, vector<400x16xbf16>
    %cst_131 = arith.constant dense<0.000000e+00> : vector<256x16xf32>
    %68 = tpu.matmul %66, %67, %cst_131 {dimension_numbers = #tpu.dot_dimension_numbers<[1], [0], [0], [1], [0, 0, 1, 1], [], []>} : vector<256x400xbf16>, vector<400x16xbf16>, vector<256x16xf32> -> vector<256x16xf32>
    %c0_132 = arith.constant 0 : index
    %c0_133 = arith.constant 0 : index
    %69 = vector.load %arg6[%c0_132, %c0_133] : memref<1x16xf32, #tpu.memory_space<vmem>>, vector<1x16xf32>
    %70 = vector.broadcast %69 : vector<1x16xf32> to vector<256x16xf32>
    %71 = arith.mulf %68, %70 : vector<256x16xf32>
    %c0_134 = arith.constant 0 : index
    %c0_135 = arith.constant 0 : index
    %72 = vector.load %arg7[%c0_134, %c0_135] : memref<1x16xf32, #tpu.memory_space<vmem>>, vector<1x16xf32>
    %73 = vector.broadcast %72 : vector<1x16xf32> to vector<256x16xf32>
    %74 = arith.addf %71, %73 : vector<256x16xf32>
    %cst_136 = arith.constant 0.000000e+00 : f32
    %75 = vector.broadcast %cst_136 : f32 to vector<256x16xf32>
    %76 = arith.maximumf %74, %75 : vector<256x16xf32>
    %77 = vector.shape_cast %76 : vector<256x16xf32> to vector<16x16x16xf32>
    %c0_137 = arith.constant 0 : index
    %c0_138 = arith.constant 0 : index
    %c0_139 = arith.constant 0 : index
    %78 = vector.load %arg10[%c0_137, %c0_138, %c0_139] : memref<18x18x4xf32, #tpu.memory_space<vmem>>, vector<18x16x4xf32>
    %c0_140 = arith.constant 0 : index
    %c1_141 = arith.constant 1 : index
    %c0_142 = arith.constant 0 : index
    %79 = vector.load %arg10[%c0_140, %c1_141, %c0_142] : memref<18x18x4xf32, #tpu.memory_space<vmem>>, vector<18x16x4xf32>
    %80 = arith.maximumf %78, %79 : vector<18x16x4xf32>
    %c0_143 = arith.constant 0 : index
    %c2_144 = arith.constant 2 : index
    %c0_145 = arith.constant 0 : index
    %81 = vector.load %arg10[%c0_143, %c2_144, %c0_145] : memref<18x18x4xf32, #tpu.memory_space<vmem>>, vector<18x16x4xf32>
    %82 = arith.maximumf %80, %81 : vector<18x16x4xf32>
    %83 = vector.extract_strided_slice %82 {offsets = [0, 0, 0], sizes = [16, 16, 4], strides = [1, 1, 1]} : vector<18x16x4xf32> to vector<16x16x4xf32>
    %84 = vector.extract_strided_slice %82 {offsets = [1, 0, 0], sizes = [16, 16, 4], strides = [1, 1, 1]} : vector<18x16x4xf32> to vector<16x16x4xf32>
    %85 = arith.maximumf %83, %84 : vector<16x16x4xf32>
    %86 = vector.extract_strided_slice %82 {offsets = [2, 0, 0], sizes = [16, 16, 4], strides = [1, 1, 1]} : vector<18x16x4xf32> to vector<16x16x4xf32>
    %87 = arith.maximumf %85, %86 : vector<16x16x4xf32>
    %88 = tpu.concatenate %36, %77, %87 in 2 : vector<16x16x8xf32>, vector<16x16x16xf32>, vector<16x16x4xf32> -> vector<16x16x28xf32>
    %c0_146 = arith.constant 0 : index
    %c0_147 = arith.constant 0 : index
    %c0_148 = arith.constant 0 : index
    %c0_149 = arith.constant 0 : index
    %89 = vector.load %arg8[%c0_146, %c0_147, %c0_148, %c0_149] : memref<1x16x16x28xf32, #tpu.memory_space<vmem>>, vector<1x16x16x28xf32>
    %90 = vector.shape_cast %89 : vector<1x16x16x28xf32> to vector<16x16x28xf32>
    %91 = vector.shape_cast %88 : vector<16x16x28xf32> to vector<1x16x16x28xf32>
    tpu.vector_store %arg8[%c0_146, %c0_147, %c0_148, %c0_149], %91 {strides = array<i32>} : memref<1x16x16x28xf32, #tpu.memory_space<vmem>>, vector<1x16x16x28xf32>,
    return
  }
  func.func @transform_0(%arg0: i32) -> (i32, i32, i32, i32) {
    %c0_i32 = arith.constant 0 : i32
    %c0_i32_0 = arith.constant 0 : i32
    %c0_i32_1 = arith.constant 0 : i32
    %c0_i32_2 = arith.constant 0 : i32
    return %arg0, %c0_i32, %c0_i32_0, %c0_i32_1 : i32, i32, i32, i32
  }
  func.func @transform_1(%arg0: i32) -> (i32, i32) {
    %c0_i32 = arith.constant 0 : i32
    %c0_i32_0 = arith.constant 0 : i32
    %c0_i32_1 = arith.constant 0 : i32
    return %c0_i32, %c0_i32_0 : i32, i32
  }
  func.func @transform_2(%arg0: i32) -> (i32, i32) {
    %c0_i32 = arith.constant 0 : i32
    %c0_i32_0 = arith.constant 0 : i32
    %c0_i32_1 = arith.constant 0 : i32
    return %c0_i32, %c0_i32_0 : i32, i32
  }
  func.func @transform_3(%arg0: i32) -> (i32, i32) {
    %c0_i32 = arith.constant 0 : i32
    %c0_i32_0 = arith.constant 0 : i32
    %c0_i32_1 = arith.constant 0 : i32
    return %c0_i32, %c0_i32_0 : i32, i32
  }
  func.func @transform_4(%arg0: i32) -> (i32, i32) {
    %c0_i32 = arith.constant 0 : i32
    %c0_i32_0 = arith.constant 0 : i32
    %c0_i32_1 = arith.constant 0 : i32
    return %c0_i32, %c0_i32_0 : i32, i32
  }
  func.func @transform_5(%arg0: i32) -> (i32, i32) {
    %c0_i32 = arith.constant 0 : i32
    %c0_i32_0 = arith.constant 0 : i32
    %c0_i32_1 = arith.constant 0 : i32
    return %c0_i32, %c0_i32_0 : i32, i32
  }
  func.func @transform_6(%arg0: i32) -> (i32, i32) {
    %c0_i32 = arith.constant 0 : i32
    %c0_i32_0 = arith.constant 0 : i32
    %c0_i32_1 = arith.constant 0 : i32
    return %c0_i32, %c0_i32_0 : i32, i32
  }
  func.func @transform_7(%arg0: i32) -> (i32, i32, i32, i32) {
    %c0_i32 = arith.constant 0 : i32
    %c0_i32_0 = arith.constant 0 : i32
    %c0_i32_1 = arith.constant 0 : i32
    %c0_i32_2 = arith.constant 0 : i32
    return %arg0, %c0_i32, %c0_i32_0, %c0_i32_1 : i32, i32, i32, i32
  }
}

</mosaic_0001>

<bundles_post_ra>
// kernel: inception_block_forward.1
= control target key start
LH: loop header
LB: loop body
LE: loop exit
PB: predicated region body
PF: predicated region fallthrough
CT: control target
= control target key end

     0   :  { %12 = vsyncpa [#allocation6], 0  ;;  %s17898_s0 = inlined_call_operand.vmem [shape: f32[2,16,16,4], index: 0, kind: input, shape index: {}]   ;;  %s17899_s1 = inlined_call_operand.vmem [shape: bf16[36,24], index: 1, kind: input, shape index: {}]   ;;  %s17900_s2 = inlined_call_operand.vmem [shape: f32[1,24], index: 2, kind: input, shape index: {}]   ;;  %s17901_s3 = inlined_call_operand.vmem [shape: f32[1,24], index: 3, kind: input, shape index: {}]   ;;  %s17902_s4 = inlined_call_operand.vmem [shape: bf16[400,16], index: 4, kind: input, shape index: {}]   ;;  %s17903_s5 = inlined_call_operand.vmem [shape: f32[1,16], index: 5, kind: input, shape index: {}]   ;;  %s17904_s6 = inlined_call_operand.vmem [shape: f32[1,16], index: 6, kind: input, shape index: {}]   ;;  %s17905_s7 = inlined_call_operand.hbm [shape: f32[2,16,16,28], index: 7, kind: output, shape index: {}]  }
   0x1   :  { %14 = vsyncpa [#allocation6 + $0x1], 0  ;;  %s11097_s24 = smov 0   ;;  %s11099_s25 = smov 0  }
   0x2   :  { %s11101_s26 = smov 0   ;;  %s11103_s27 = smov 0  }
   0x3 LB: > { %s11118_s28 = sadd.s32 4294967295, %s11037_s27   ;;  %s8228_s29 = sadd.s32 4294967294, %s11037_s27   ;;  %s11037_s27 = sphi %s11103_s27, %s19616_s27   ;;  %s11033_s26 = sphi %s11101_s26, %s19615_s26   ;;  %s11029_s25 = sphi %s11099_s25, %s19614_s25   ;;  %s11025_s24 = sphi %s11097_s24, %s19613_s24  }
   0x4   : > { %s11122_s30 = sadd.s32 1, %s11037_s27   ;;  %s179_s8 = sadd.s32 1, %s11033_s26 }
   0x5   : > { %s176_s9 = ssub.s32 %s11037_s27, %s11122_s30  ;;  %p189_p0 = scmp.ne.s32.totalorder %s11033_s26, %s11029_s25 }
   0x6   : > { %p177_p1 = scmp.eq.s32.totalorder %s176_s9, 0  ;;  %p190_p2 = scmp.eq.s32.totalorder %s11118_s28, 1 }
   0x7   : > { %p195_p3 = scmp.ne.s32.totalorder %s11029_s25, %s11025_s24  ;;  %p196_p4 = scmp.eq.s32.totalorder %s8228_s29, 1 }
   0x8   : > { %s11133_s10 = scalar_select %p177_p1, %s11033_s26, %s179_s8  }
   0x9   : > { %p11135_p5 = por %p190_p2, %p189_p0  ;;  %p11139_p6 = por %p196_p4, %p195_p3 }
   0xa   : > { %p8231_p7 = scmp.ge.s32.totalorder %s11037_s27, 1  ;;  %p240_p8 = scmp.lt.s32.totalorder %s11037_s27, 3 }
   0xc   : > { %p241_p9 = pnand %p8231_p7, %p240_p8 }
   0xe   : > { %244 = sbr.rel (%p241_p9) target bundleno = 1904 (0x770), region = 48 }
  0x13   : > { %vm310_vm0 = vcmask 31744   ;;  %vm313_vm1 = vcmask 25600   ;;  %p272_p10 = scmp.lt.s32.totalorder %s11118_s28, 1  ;;  %v17906_v0 = vmov 0.0   ;;  %v11040_v1 = vmov -inf   ;;  %s11041_s18 = smov 4  }
  0x14   : > { %311 = vst.msk [vmem:[#allocation2] sm:$0xff] %vm310_vm0, %v17906_v0  ;;  %312 = vst.msk [vmem:[#allocation2 + $0x8] sm:$0xff] %vm310_vm0, %v17906_v0  ;;  %s11042_s19 = smov 8   ;;  %s11043_s20 = smov 12   ;;  %vm420_vm2 = vcmask 130048   ;;  %vm2208_vm3 = vcmask 1041408  }
  0x15   : > { %314 = vst.msk [vmem:[#allocation2 + $0x10] sm:$0x3] %vm313_vm1, %v17906_v0  ;;  %317 = vst.msk [vmem:[#allocation2 + $0x28] sm:$0x3] %vm313_vm1, %v17906_v0  ;;  %s273_s13 = scalar_select %p272_p10, %s11118_s28, 1  ;;  %vm1893_vm4 = vcmask 64512  }
  0x16   : > { %315 = vst.msk [vmem:[#allocation2 + $0x18] sm:$0xff] %vm310_vm0, %v17906_v0  ;;  %316 = vst.msk [vmem:[#allocation2 + $0x20] sm:$0xff] %vm310_vm0, %v17906_v0  ;;  %s11044_s21 = smov 16   ;;  %s11045_s22 = smov 20   ;;  %vm423_vm5 = vcmask 125952   ;;  %vm1926_vm6 = vcmask 97280  }
  0x17   : > { %318 = vst.msk [vmem:[#allocation2 + $0x30] sm:$0xff] %vm310_vm0, %v17906_v0  ;;  %319 = vst.msk [vmem:[#allocation2 + $0x38] sm:$0xff] %vm310_vm0, %v17906_v0  ;;  %s8304_s14 = sshll.u32 %s273_s13, 8  ;;  %s11046_s23 = smov 24   ;;  %vm1991_vm7 = vcmask 162816   ;;  %vm2024_vm8 = vcmask 195584  }
  0x18   : > { %320 = vst.msk [vmem:[#allocation2 + $0x40] sm:$0x3] %vm313_vm1, %v17906_v0  ;;  %323 = vst.msk [vmem:[#allocation2 + $0x58] sm:$0x3] %vm313_vm1, %v17906_v0  ;;  %s11314_s17 = scalar_lea.vmem %s17898_s0, %s8304_s14  ;;  %s11047_s29 = smov 28   ;;  %vm2057_vm9 = vcmask 228352  }
  0x19   : > { %321 = vst.msk [vmem:[#allocation2 + $0x48] sm:$0xff] %vm310_vm0, %v17906_v0  ;;  %322 = vst.msk [vmem:[#allocation2 + $0x50] sm:$0xff] %vm310_vm0, %v17906_v0  ;;  %v280_v2 = vld [vmem:[%s11314_s17 + $0x10] sm:$0xff]  ;;  %v281_v3 = vld [vmem:[%s11314_s17 + $0x18] sm:$0xff]  ;;  %vm2090_vm10 = vcmask 261120   ;;  %vm2159_vm11 = vcmask 293888  }
  0x1a   : > { %324 = vst.msk [vmem:[#allocation2 + $0x60] sm:$0xff] %vm310_vm0, %v17906_v0  ;;  %325 = vst.msk [vmem:[#allocation2 + $0x68] sm:$0xff] %vm310_vm0, %v17906_v0  ;;  %v278_v4 = vld [vmem:[%s11314_s17] sm:$0xff]  ;;  %v279_v5 = vld [vmem:[%s11314_s17 + $0x8] sm:$0xff]  ;;  %s11052_s14 = smov 96   ;;  %s11053_s15 = smov 112  }
  0x1b   : > { %326 = vst.msk [vmem:[#allocation2 + $0x70] sm:$0x3] %vm313_vm1, %v17906_v0  ;;  %329 = vst.msk [vmem:[#allocation2 + $0x88] sm:$0x3] %vm313_vm1, %v17906_v0  ;;  %v282_v6 = vld [vmem:[%s11314_s17 + $0x20] sm:$0xff]  ;;  %v283_v7 = vld [vmem:[%s11314_s17 + $0x28] sm:$0xff] }
  0x1c   : > { %327 = vst.msk [vmem:[#allocation2 + $0x78] sm:$0xff] %vm310_vm0, %v17906_v0  ;;  %328 = vst.msk [vmem:[#allocation2 + $0x80] sm:$0xff] %vm310_vm0, %v17906_v0  ;;  %v580_v8 = vld [vmem:[#allocation2 + $0x1] sm:$0xff]  ;;  %v581_v9 = vld [vmem:[#allocation2 + $0x9] sm:$0xff]  ;;  %vm5175_vm12 = vcmask 392192   ;;  %vm5208_vm13 = vcmask 523264  }
  0x1d   : > { %330 = vst.msk [vmem:[#allocation2 + $0x90] sm:$0xff] %vm310_vm0, %v17906_v0  ;;  %331 = vst.msk [vmem:[#allocation2 + $0x98] sm:$0xff] %vm310_vm0, %v17906_v0  ;;  %v284_v10 = vld [vmem:[%s11314_s17 + $0x30] sm:$0xff]  ;;  %v8539_v11 = vpack.i.bf16 %v581_v9, %v580_v8  ;;  %v285_v12 = vld [vmem:[%s11314_s17 + $0x38] sm:$0xff]  ;;  %vm5241_vm14 = vcmask 654336   ;;  %vm5274_vm15 = vcmask 785408  }
  0x1e   : > { %332 = vst.msk [vmem:[#allocation2 + $0xa0] sm:$0x3] %vm313_vm1, %v17906_v0  ;;  %335 = vst.msk [vmem:[#allocation2 + $0xb8] sm:$0x3] %vm313_vm1, %v17906_v0  ;;  %v286_v13 = vld [vmem:[%s11314_s17 + $0x40] sm:$0xff]  ;;  %v287_v14 = vld [vmem:[%s11314_s17 + $0x48] sm:$0xff] }
  0x1f   : > { %333 = vst.msk [vmem:[#allocation2 + $0xa8] sm:$0xff] %vm310_vm0, %v17906_v0  ;;  %334 = vst.msk [vmem:[#allocation2 + $0xb0] sm:$0xff] %vm310_vm0, %v17906_v0  ;;  %v288_v15 = vld [vmem:[%s11314_s17 + $0x50] sm:$0xff]  ;;  %v289_v16 = vld [vmem:[%s11314_s17 + $0x58] sm:$0xff]  ;;  %8540 = vrot.lane.b32.xlu0 %v8539_v11, %s11041_s18  ;;  %s8305_s16 = sshll.u32 %s11118_s28, 12 }
  0x20   : > { %336 = vst.msk [vmem:[#allocation2 + $0xc0] sm:$0xff] %vm310_vm0, %v17906_v0  ;;  %337 = vst.msk [vmem:[#allocation2 + $0xc8] sm:$0xff] %vm310_vm0, %v17906_v0  ;;  %v290_v17 = vld [vmem:[%s11314_s17 + $0x60] sm:$0xff]  ;;  %v291_v18 = vld [vmem:[%s11314_s17 + $0x68] sm:$0xff]  ;;  %s17845_s9 = scalar_lea.hbm %s17905_s7, %s8305_s16 }
  0x21   : > { %338 = vst.msk [vmem:[#allocation2 + $0xd0] sm:$0x3] %vm313_vm1, %v17906_v0  ;;  %341 = vst.msk [vmem:[#allocation2 + $0xe8] sm:$0x3] %vm313_vm1, %v17906_v0  ;;  %v292_v19 = vld [vmem:[%s11314_s17 + $0x70] sm:$0xff]  ;;  %v293_v20 = vld [vmem:[%s11314_s17 + $0x78] sm:$0xff] }
  0x22   : > { %339 = vst.msk [vmem:[#allocation2 + $0xd8] sm:$0xff] %vm310_vm0, %v17906_v0  ;;  %340 = vst.msk [vmem:[#allocation2 + $0xe0] sm:$0xff] %vm310_vm0, %v17906_v0  ;;  %v294_v21 = vld [vmem:[%s11314_s17 + $0x80] sm:$0xff]  ;;  %v295_v22 = vld [vmem:[%s11314_s17 + $0x88] sm:$0xff] }
  0x23   : > { %342 = vst.msk [vmem:[#allocation2 + $0xf0] sm:$0xff] %vm310_vm0, %v17906_v0  ;;  %343 = vst.msk [vmem:[#allocation2 + $0xf8] sm:$0xff] %vm310_vm0, %v17906_v0  ;;  %v296_v23 = vld [vmem:[%s11314_s17 + $0x90] sm:$0xff]  ;;  %v297_v24 = vld [vmem:[%s11314_s17 + $0x98] sm:$0xff] }
  0x24   : > { %344 = vst.msk [vmem:[#allocation2 + $0x100] sm:$0x3] %vm313_vm1, %v17906_v0  ;;  %347 = vst.msk [vmem:[#allocation2 + $0x118] sm:$0x3] %vm313_vm1, %v17906_v0  ;;  %v298_v25 = vld [vmem:[%s11314_s17 + $0xa0] sm:$0xff]  ;;  %v299_v26 = vld [vmem:[%s11314_s17 + $0xa8] sm:$0xff] }
  0x25   : > { %345 = vst.msk [vmem:[#allocation2 + $0x108] sm:$0xff] %vm310_vm0, %v17906_v0  ;;  %346 = vst.msk [vmem:[#allocation2 + $0x110] sm:$0xff] %vm310_vm0, %v17906_v0  ;;  %v300_v36 = vld [vmem:[%s11314_s17 + $0xb0] sm:$0xff]  ;;  %v301_v37 = vld [vmem:[%s11314_s17 + $0xb8] sm:$0xff] }
  0x26   : > { %348 = vst.msk [vmem:[#allocation2 + $0x120] sm:$0xff] %vm310_vm0, %v17906_v0  ;;  %349 = vst.msk [vmem:[#allocation2 + $0x128] sm:$0xff] %vm310_vm0, %v17906_v0  ;;  %v302_v51 = vld [vmem:[%s11314_s17 + $0xc0] sm:$0xff]  ;;  %v303_v52 = vld [vmem:[%s11314_s17 + $0xc8] sm:$0xff] }
  0x27   : > { %350 = vst.msk [vmem:[#allocation2 + $0x130] sm:$0x3] %vm313_vm1, %v17906_v0  ;;  %353 = vst.msk [vmem:[#allocation2 + $0x148] sm:$0x3] %vm313_vm1, %v17906_v0  ;;  %v304_v53 = vld [vmem:[%s11314_s17 + $0xd0] sm:$0xff]  ;;  %v305_v54 = vld [vmem:[%s11314_s17 + $0xd8] sm:$0xff] }
  0x28   : > { %351 = vst.msk [vmem:[#allocation2 + $0x138] sm:$0xff] %vm310_vm0, %v17906_v0  ;;  %352 = vst.msk [vmem:[#allocation2 + $0x140] sm:$0xff] %vm310_vm0, %v17906_v0  ;;  %v306_v55 = vld [vmem:[%s11314_s17 + $0xe0] sm:$0xff]  ;;  %v307_v56 = vld [vmem:[%s11314_s17 + $0xe8] sm:$0xff] }
  0x29   : > { %354 = vst.msk [vmem:[#allocation2 + $0x150] sm:$0xff] %vm310_vm0, %v17906_v0  ;;  %355 = vst.msk [vmem:[#allocation2 + $0x158] sm:$0xff] %vm310_vm0, %v17906_v0 }
  0x2a   : > { %356 = vst.msk [vmem:[#allocation2 + $0x160] sm:$0x3] %vm313_vm1, %v17906_v0  ;;  %359 = vst.msk [vmem:[#allocation2 + $0x178] sm:$0x3] %vm313_vm1, %v17906_v0 }
  0x2b   : > { %357 = vst.msk [vmem:[#allocation2 + $0x168] sm:$0xff] %vm310_vm0, %v17906_v0  ;;  %358 = vst.msk [vmem:[#allocation2 + $0x170] sm:$0xff] %vm310_vm0, %v17906_v0 }
  0x2c   : > { %360 = vst.msk [vmem:[#allocation2 + $0x180] sm:$0xff] %vm310_vm0, %v17906_v0  ;;  %361 = vst.msk [vmem:[#allocation2 + $0x188] sm:$0xff] %vm310_vm0, %v17906_v0 }
  0x2d   : > { %362 = vst.msk [vmem:[#allocation2 + $0x190] sm:$0x3] %vm313_vm1, %v17906_v0  ;;  %365 = vst.msk [vmem:[#allocation2 + $0x1a8] sm:$0x3] %vm313_vm1, %v17906_v0 }
  0x2e   : > { %363 = vst.msk [vmem:[#allocation2 + $0x198] sm:$0xff] %vm310_vm0, %v17906_v0  ;;  %364 = vst.msk [vmem:[#allocation2 + $0x1a0] sm:$0xff] %vm310_vm0, %v17906_v0 }
  0x2f   : > { %372 = vst.msk [vmem:[#allocation3 + $0x30] sm:$0xff] %vm310_vm0, %v11040_v1  ;;  %373 = vst.msk [vmem:[#allocation3 + $0x38] sm:$0xff] %vm310_vm0, %v11040_v1 }
  0x30   : > { %374 = vst.msk [vmem:[#allocation3 + $0x40] sm:$0x3] %vm313_vm1, %v11040_v1  ;;  %368 = vst.msk [vmem:[#allocation3 + $0x10] sm:$0x3] %vm313_vm1, %v11040_v1 }
  0x31   : > { %366 = vst.msk [vmem:[#allocation3] sm:$0xff] %vm310_vm0, %v11040_v1  ;;  %367 = vst.msk [vmem:[#allocation3 + $0x8] sm:$0xff] %vm310_vm0, %v11040_v1 }
  0x32   : > { %369 = vst.msk [vmem:[#allocation3 + $0x18] sm:$0xff] %vm310_vm0, %v11040_v1  ;;  %370 = vst.msk [vmem:[#allocation3 + $0x20] sm:$0xff] %vm310_vm0, %v11040_v1 }
  0x33   : > { %371 = vst.msk [vmem:[#allocation3 + $0x28] sm:$0x3] %vm313_vm1, %v11040_v1  ;;  %377 = vst.msk [vmem:[#allocation3 + $0x58] sm:$0x3] %vm313_vm1, %v11040_v1 }
  0x34   : > { %375 = vst.msk [vmem:[#allocation3 + $0x48] sm:$0xff] %vm310_vm0, %v11040_v1  ;;  %376 = vst.msk [vmem:[#allocation3 + $0x50] sm:$0xff] %vm310_vm0, %v11040_v1 }
  0x35   : > { %378 = vst.msk [vmem:[#allocation3 + $0x60] sm:$0xff] %vm310_vm0, %v11040_v1  ;;  %379 = vst.msk [vmem:[#allocation3 + $0x68] sm:$0xff] %vm310_vm0, %v11040_v1 }
  0x36   : > { %380 = vst.msk [vmem:[#allocation3 + $0x70] sm:$0x3] %vm313_vm1, %v11040_v1  ;;  %383 = vst.msk [vmem:[#allocation3 + $0x88] sm:$0x3] %vm313_vm1, %v11040_v1 }
  0x37   : > { %381 = vst.msk [vmem:[#allocation3 + $0x78] sm:$0xff] %vm310_vm0, %v11040_v1  ;;  %382 = vst.msk [vmem:[#allocation3 + $0x80] sm:$0xff] %vm310_vm0, %v11040_v1 }
  0x38   : > { %384 = vst.msk [vmem:[#allocation3 + $0x90] sm:$0xff] %vm310_vm0, %v11040_v1  ;;  %385 = vst.msk [vmem:[#allocation3 + $0x98] sm:$0xff] %vm310_vm0, %v11040_v1 }
  0x39   : > { %386 = vst.msk [vmem:[#allocation3 + $0xa0] sm:$0x3] %vm313_vm1, %v11040_v1  ;;  %389 = vst.msk [vmem:[#allocation3 + $0xb8] sm:$0x3] %vm313_vm1, %v11040_v1 }
  0x3a   : > { %387 = vst.msk [vmem:[#allocation3 + $0xa8] sm:$0xff] %vm310_vm0, %v11040_v1  ;;  %388 = vst.msk [vmem:[#allocation3 + $0xb0] sm:$0xff] %vm310_vm0, %v11040_v1 }
  0x3b   : > { %390 = vst.msk [vmem:[#allocation3 + $0xc0] sm:$0xff] %vm310_vm0, %v11040_v1  ;;  %391 = vst.msk [vmem:[#allocation3 + $0xc8] sm:$0xff] %vm310_vm0, %v11040_v1 }
  0x3c   : > { %392 = vst.msk [vmem:[#allocation3 + $0xd0] sm:$0x3] %vm313_vm1, %v11040_v1  ;;  %395 = vst.msk [vmem:[#allocation3 + $0xe8] sm:$0x3] %vm313_vm1, %v11040_v1 }
  0x3d   : > { %393 = vst.msk [vmem:[#allocation3 + $0xd8] sm:$0xff] %vm310_vm0, %v11040_v1  ;;  %394 = vst.msk [vmem:[#allocation3 + $0xe0] sm:$0xff] %vm310_vm0, %v11040_v1 }
  0x3e   : > { %396 = vst.msk [vmem:[#allocation3 + $0xf0] sm:$0xff] %vm310_vm0, %v11040_v1  ;;  %397 = vst.msk [vmem:[#allocation3 + $0xf8] sm:$0xff] %vm310_vm0, %v11040_v1 }
  0x3f   : > { %398 = vst.msk [vmem:[#allocation3 + $0x100] sm:$0x3] %vm313_vm1, %v11040_v1  ;;  %401 = vst.msk [vmem:[#allocation3 + $0x118] sm:$0x3] %vm313_vm1, %v11040_v1 }
  0x40   : > { %399 = vst.msk [vmem:[#allocation3 + $0x108] sm:$0xff] %vm310_vm0, %v11040_v1  ;;  %400 = vst.msk [vmem:[#allocation3 + $0x110] sm:$0xff] %vm310_vm0, %v11040_v1 }
  0x41   : > { %402 = vst.msk [vmem:[#allocation3 + $0x120] sm:$0xff] %vm310_vm0, %v11040_v1  ;;  %403 = vst.msk [vmem:[#allocation3 + $0x128] sm:$0xff] %vm310_vm0, %v11040_v1 }
  0x42   : > { %404 = vst.msk [vmem:[#allocation3 + $0x130] sm:$0x3] %vm313_vm1, %v11040_v1  ;;  %407 = vst.msk [vmem:[#allocation3 + $0x148] sm:$0x3] %vm313_vm1, %v11040_v1 }
  0x43   : > { %405 = vst.msk [vmem:[#allocation3 + $0x138] sm:$0xff] %vm310_vm0, %v11040_v1  ;;  %406 = vst.msk [vmem:[#allocation3 + $0x140] sm:$0xff] %vm310_vm0, %v11040_v1 }
  0x44   : > { %408 = vst.msk [vmem:[#allocation3 + $0x150] sm:$0xff] %vm310_vm0, %v11040_v1  ;;  %409 = vst.msk [vmem:[#allocation3 + $0x158] sm:$0xff] %vm310_vm0, %v11040_v1 }
  0x45   : > { %410 = vst.msk [vmem:[#allocation3 + $0x160] sm:$0x3] %vm313_vm1, %v11040_v1  ;;  %413 = vst.msk [vmem:[#allocation3 + $0x178] sm:$0x3] %vm313_vm1, %v11040_v1 }
  0x46   : > { %411 = vst.msk [vmem:[#allocation3 + $0x168] sm:$0xff] %vm310_vm0, %v11040_v1  ;;  %412 = vst.msk [vmem:[#allocation3 + $0x170] sm:$0xff] %vm310_vm0, %v11040_v1 }
  0x47   : > { %414 = vst.msk [vmem:[#allocation3 + $0x180] sm:$0xff] %vm310_vm0, %v11040_v1  ;;  %415 = vst.msk [vmem:[#allocation3 + $0x188] sm:$0xff] %vm310_vm0, %v11040_v1 }
  0x48   : > { %416 = vst.msk [vmem:[#allocation3 + $0x190] sm:$0x3] %vm313_vm1, %v11040_v1  ;;  %419 = vst.msk [vmem:[#allocation3 + $0x1a8] sm:$0x3] %vm313_vm1, %v11040_v1 }
  0x49   : > { %417 = vst.msk [vmem:[#allocation3 + $0x198] sm:$0xff] %vm310_vm0, %v11040_v1  ;;  %418 = vst.msk [vmem:[#allocation3 + $0x1a0] sm:$0xff] %vm310_vm0, %v11040_v1 }
  0x4a   : > { %485 = vst.msk [vmem:[#allocation2 + $0x31] sm:$0xff] %vm310_vm0, %v280_v2  ;;  %486 = vst.msk [vmem:[#allocation2 + $0x39] sm:$0xff] %vm310_vm0, %v281_v3 }
  0x4b   : > { %518 = vst.msk [vmem:[#allocation3 + $0x31] sm:$0xff] %vm310_vm0, %v280_v2  ;;  %519 = vst.msk [vmem:[#allocation3 + $0x39] sm:$0xff] %vm310_vm0, %v281_v3 }
  0x4c   : > { %483 = vst.msk [vmem:[#allocation2 + $0x19] sm:$0xff] %vm310_vm0, %v278_v4  ;;  %516 = vst.msk [vmem:[#allocation3 + $0x19] sm:$0xff] %vm310_vm0, %v278_v4 }
  0x4d   : > { %484 = vst.msk [vmem:[#allocation2 + $0x21] sm:$0xff] %vm310_vm0, %v279_v5  ;;  %517 = vst.msk [vmem:[#allocation3 + $0x21] sm:$0xff] %vm310_vm0, %v279_v5 }
  0x4e   : > { %487 = vst.msk [vmem:[#allocation2 + $0x49] sm:$0xff] %vm310_vm0, %v282_v6  ;;  %488 = vst.msk [vmem:[#allocation2 + $0x51] sm:$0xff] %vm310_vm0, %v283_v7 }
  0x4f   : > { %520 = vst.msk [vmem:[#allocation3 + $0x49] sm:$0xff] %vm310_vm0, %v282_v6  ;;  %521 = vst.msk [vmem:[#allocation3 + $0x51] sm:$0xff] %vm310_vm0, %v283_v7 }
  0x50   : > { %489 = vst.msk [vmem:[#allocation2 + $0x61] sm:$0xff] %vm310_vm0, %v284_v10  ;;  %522 = vst.msk [vmem:[#allocation3 + $0x61] sm:$0xff] %vm310_vm0, %v284_v10 }
  0x51   : > { %490 = vst.msk [vmem:[#allocation2 + $0x69] sm:$0xff] %vm310_vm0, %v285_v12  ;;  %523 = vst.msk [vmem:[#allocation3 + $0x69] sm:$0xff] %vm310_vm0, %v285_v12  ;;  %v584_v27 = vld [vmem:[#allocation2 + $0x31] sm:$0xff]  ;;  %v585_v28 = vld [vmem:[#allocation2 + $0x39] sm:$0xff] }
  0x52   : > { %491 = vst.msk [vmem:[#allocation2 + $0x79] sm:$0xff] %vm310_vm0, %v286_v13  ;;  %492 = vst.msk [vmem:[#allocation2 + $0x81] sm:$0xff] %vm310_vm0, %v287_v14  ;;  %v11383_v30 = vpack.i.bf16 %v585_v28, %v584_v27 }
  0x53   : > { %524 = vst.msk [vmem:[#allocation3 + $0x79] sm:$0xff] %vm310_vm0, %v286_v13  ;;  %525 = vst.msk [vmem:[#allocation3 + $0x81] sm:$0xff] %vm310_vm0, %v287_v14  ;;  %v582_v29 = vld [vmem:[#allocation2 + $0x19] sm:$0xff] }
  0x54   : > { %493 = vst.msk [vmem:[#allocation2 + $0x91] sm:$0xff] %vm310_vm0, %v288_v15  ;;  %494 = vst.msk [vmem:[#allocation2 + $0x99] sm:$0xff] %vm310_vm0, %v289_v16  ;;  %v583_v31 = vld [vmem:[#allocation2 + $0x21] sm:$0xff]  ;;  %8550 = vrot.lane.b32.xlu1 %v11383_v30, %s11041_s18 }
  0x55   : > { %526 = vst.msk [vmem:[#allocation3 + $0x91] sm:$0xff] %vm310_vm0, %v288_v15  ;;  %527 = vst.msk [vmem:[#allocation3 + $0x99] sm:$0xff] %vm310_vm0, %v289_v16  ;;  %v586_v32 = vld [vmem:[#allocation2 + $0x49] sm:$0xff]  ;;  %v587_v33 = vld [vmem:[#allocation2 + $0x51] sm:$0xff]  ;;  %v11385_v34 = vpack.i.bf16 %v583_v31, %v582_v29 }
  0x56   : > { %495 = vst.msk [vmem:[#allocation2 + $0xa9] sm:$0xff] %vm310_vm0, %v290_v17  ;;  %528 = vst.msk [vmem:[#allocation3 + $0xa9] sm:$0xff] %vm310_vm0, %v290_v17  ;;  %v11391_v38 = vpack.i.bf16 %v587_v33, %v586_v32  ;;  %v612_v16 = vld [vmem:[#allocation2 + $0x2] sm:$0xff]  ;;  %v613_v17 = vld [vmem:[#allocation2 + $0xa] sm:$0xff] }
  0x57   : > { %496 = vst.msk [vmem:[#allocation2 + $0xb1] sm:$0xff] %vm310_vm0, %v291_v18  ;;  %529 = vst.msk [vmem:[#allocation3 + $0xb1] sm:$0xff] %vm310_vm0, %v291_v18  ;;  %v588_v35 = vld [vmem:[#allocation2 + $0x61] sm:$0xff]  ;;  %8545 = vrot.lane.b32.xlu0 %v11385_v34, %s11041_s18  ;;  %v619_v27 = vld [vmem:[#allocation2 + $0x52] sm:$0xff] }
  0x58   : > { %497 = vst.msk [vmem:[#allocation2 + $0xc1] sm:$0xff] %vm310_vm0, %v292_v19  ;;  %498 = vst.msk [vmem:[#allocation2 + $0xc9] sm:$0xff] %vm310_vm0, %v293_v20  ;;  %v589_v39 = vld [vmem:[#allocation2 + $0x69] sm:$0xff]  ;;  %8555 = vrot.lane.b32.xlu1 %v11391_v38, %s11041_s18  ;;  %v309_v32 = vld [vmem:[%s11314_s17 + $0xf8] sm:$0xff] }
  0x59   : > { %530 = vst.msk [vmem:[#allocation3 + $0xc1] sm:$0xff] %vm310_vm0, %v292_v19  ;;  %531 = vst.msk [vmem:[#allocation3 + $0xc9] sm:$0xff] %vm310_vm0, %v293_v20  ;;  %v11399_v40 = vpack.i.bf16 %v589_v39, %v588_v35  ;;  %v590_v41 = vld [vmem:[#allocation2 + $0x79] sm:$0xff]  ;;  %v591_v42 = vld [vmem:[#allocation2 + $0x81] sm:$0xff]  ;;  %v8619_v19 = vpack.i.bf16 %v613_v17, %v612_v16 }
  0x5a   : > { %499 = vst.msk [vmem:[#allocation2 + $0xd9] sm:$0xff] %vm310_vm0, %v294_v21  ;;  %500 = vst.msk [vmem:[#allocation2 + $0xe1] sm:$0xff] %vm310_vm0, %v295_v22  ;;  %v11403_v46 = vpack.i.bf16 %v591_v42, %v590_v41  ;;  %v614_v20 = vld [vmem:[#allocation2 + $0x1a] sm:$0xff]  ;;  %v620_v28 = vld [vmem:[#allocation2 + $0x62] sm:$0xff] }
  0x5b   : > { %532 = vst.msk [vmem:[#allocation3 + $0xd9] sm:$0xff] %vm310_vm0, %v294_v21  ;;  %533 = vst.msk [vmem:[#allocation3 + $0xe1] sm:$0xff] %vm310_vm0, %v295_v22  ;;  %v592_v43 = vld [vmem:[#allocation2 + $0x91] sm:$0xff]  ;;  %v593_v44 = vld [vmem:[#allocation2 + $0x99] sm:$0xff]  ;;  %8560 = vrot.lane.b32.xlu0 %v11399_v40, %s11041_s18 }
  0x5c   : > { %501 = vst.msk [vmem:[#allocation2 + $0xf1] sm:$0xff] %vm310_vm0, %v296_v23  ;;  %534 = vst.msk [vmem:[#allocation3 + $0xf1] sm:$0xff] %vm310_vm0, %v296_v23  ;;  %v11407_v50 = vpack.i.bf16 %v593_v44, %v592_v43  ;;  %8565 = vrot.lane.b32.xlu1 %v11403_v46, %s11041_s18  ;;  %v615_v21 = vld [vmem:[#allocation2 + $0x22] sm:$0xff]  ;;  %v616_v22 = vld [vmem:[#allocation2 + $0x32] sm:$0xff] }
  0x5d   : > { %502 = vst.msk [vmem:[#allocation2 + $0xf9] sm:$0xff] %vm310_vm0, %v297_v24  ;;  %535 = vst.msk [vmem:[#allocation3 + $0xf9] sm:$0xff] %vm310_vm0, %v297_v24  ;;  %v594_v45 = vld [vmem:[#allocation2 + $0xa9] sm:$0xff]  ;;  %v617_v23 = vld [vmem:[#allocation2 + $0x3a] sm:$0xff]  ;;  %v11467_v24 = vpack.i.bf16 %v615_v21, %v614_v20 }
  0x5e   : > { %503 = vst.msk [vmem:[#allocation2 + $0x109] sm:$0xff] %vm310_vm0, %v298_v25  ;;  %504 = vst.msk [vmem:[#allocation2 + $0x111] sm:$0xff] %vm310_vm0, %v299_v26  ;;  %v595_v47 = vld [vmem:[#allocation2 + $0xb1] sm:$0xff]  ;;  %v622_v33 = vld [vmem:[#allocation2 + $0x7a] sm:$0xff] }
  0x5f   : > { %536 = vst.msk [vmem:[#allocation3 + $0x109] sm:$0xff] %vm310_vm0, %v298_v25  ;;  %537 = vst.msk [vmem:[#allocation3 + $0x111] sm:$0xff] %vm310_vm0, %v299_v26  ;;  %v596_v48 = vld [vmem:[#allocation2 + $0xc1] sm:$0xff]  ;;  %v597_v49 = vld [vmem:[#allocation2 + $0xc9] sm:$0xff]  ;;  %v11429_v57 = vpack.i.bf16 %v595_v47, %v594_v45  ;;  %8570 = vrot.lane.b32.xlu0 %v11407_v50, %s11041_s18  ;;  %v11470_v25 = vpack.i.bf16 %v617_v23, %v616_v22 }
  0x60   : > { %505 = vst.msk [vmem:[#allocation2 + $0x121] sm:$0xff] %vm310_vm0, %v300_v36  ;;  %506 = vst.msk [vmem:[#allocation2 + $0x129] sm:$0xff] %vm310_vm0, %v301_v37  ;;  %v11433_v58 = vpack.i.bf16 %v597_v49, %v596_v48  ;;  %v618_v26 = vld [vmem:[#allocation2 + $0x4a] sm:$0xff]  ;;  %v623_v35 = vld [vmem:[#allocation2 + $0x82] sm:$0xff] }
  0x61   : > { %538 = vst.msk [vmem:[#allocation3 + $0x121] sm:$0xff] %vm310_vm0, %v300_v36  ;;  %539 = vst.msk [vmem:[#allocation3 + $0x129] sm:$0xff] %vm310_vm0, %v301_v37  ;;  %v598_v59 = vld [vmem:[#allocation2 + $0xd9] sm:$0xff]  ;;  %v599_v60 = vld [vmem:[#allocation2 + $0xe1] sm:$0xff]  ;;  %8575 = vrot.lane.b32.xlu1 %v11429_v57, %s11041_s18  ;;  %v11480_v36 = vpack.i.bf16 %v619_v27, %v618_v26  ;;  %v11488_v44 = vpack.i.bf16 %v623_v35, %v622_v33 }
  0x62   : > { %507 = vst.msk [vmem:[#allocation2 + $0x139] sm:$0xff] %vm310_vm0, %v302_v51  ;;  %508 = vst.msk [vmem:[#allocation2 + $0x141] sm:$0xff] %vm310_vm0, %v303_v52  ;;  %v11437_v63 = vpack.i.bf16 %v599_v60, %v598_v59  ;;  %v621_v29 = vld [vmem:[#allocation2 + $0x6a] sm:$0xff]  ;;  %v624_v37 = vld [vmem:[#allocation2 + $0x92] sm:$0xff] }
  0x63   : > { %540 = vst.msk [vmem:[#allocation3 + $0x139] sm:$0xff] %vm310_vm0, %v302_v51  ;;  %541 = vst.msk [vmem:[#allocation3 + $0x141] sm:$0xff] %vm310_vm0, %v303_v52  ;;  %v600_v61 = vld [vmem:[#allocation2 + $0xf1] sm:$0xff]  ;;  %8580 = vrot.lane.b32.xlu0 %v11433_v58, %s11041_s18  ;;  %v625_v39 = vld [vmem:[#allocation2 + $0x9a] sm:$0xff]  ;;  %v11484_v41 = vpack.i.bf16 %v621_v29, %v620_v28 }
  0x64   : > { %509 = vst.msk [vmem:[#allocation2 + $0x151] sm:$0xff] %vm310_vm0, %v304_v53  ;;  %542 = vst.msk [vmem:[#allocation3 + $0x151] sm:$0xff] %vm310_vm0, %v304_v53  ;;  %v601_v62 = vld [vmem:[#allocation2 + $0xf9] sm:$0xff]  ;;  %v308_v31 = vld [vmem:[%s11314_s17 + $0xf0] sm:$0xff]  ;;  %v11492_v45 = vpack.i.bf16 %v625_v39, %v624_v37  ;;  %s11048_s17 = smov 32  }
  0x65   : > { %510 = vst.msk [vmem:[#allocation2 + $0x159] sm:$0xff] %vm310_vm0, %v305_v54  ;;  %543 = vst.msk [vmem:[#allocation3 + $0x159] sm:$0xff] %vm310_vm0, %v305_v54  ;;  %v11441_v1 = vpack.i.bf16 %v601_v62, %v600_v61  ;;  %v602_v2 = vld [vmem:[#allocation2 + $0x109] sm:$0xff]  ;;  %v603_v3 = vld [vmem:[#allocation2 + $0x111] sm:$0xff]  ;;  %8585 = vrot.lane.b32.xlu1 %v11437_v63, %s11041_s18 }
  0x66   : > { %511 = vst.msk [vmem:[#allocation2 + $0x169] sm:$0xff] %vm310_vm0, %v306_v55  ;;  %512 = vst.msk [vmem:[#allocation2 + $0x171] sm:$0xff] %vm310_vm0, %v307_v56  ;;  %v11445_v6 = vpack.i.bf16 %v603_v3, %v602_v2  ;;  %v626_v42 = vld [vmem:[#allocation2 + $0xaa] sm:$0xff]  ;;  %v627_v43 = vld [vmem:[#allocation2 + $0xb2] sm:$0xff] }
  0x67   : > { %544 = vst.msk [vmem:[#allocation3 + $0x169] sm:$0xff] %vm310_vm0, %v306_v55  ;;  %545 = vst.msk [vmem:[#allocation3 + $0x171] sm:$0xff] %vm310_vm0, %v307_v56  ;;  %v604_v4 = vld [vmem:[#allocation2 + $0x121] sm:$0xff]  ;;  %v605_v5 = vld [vmem:[#allocation2 + $0x129] sm:$0xff]  ;;  %8590 = vrot.lane.b32.xlu0 %v11441_v1, %s11041_s18  ;;  %v11496_v52 = vpack.i.bf16 %v627_v43, %v626_v42 }
  0x68   : > { %v11449_v7 = vpack.i.bf16 %v605_v5, %v604_v4  ;;  %513 = vst.msk [vmem:[#allocation2 + $0x181] sm:$0xff] %vm310_vm0, %v308_v31  ;;  %514 = vst.msk [vmem:[#allocation2 + $0x189] sm:$0xff] %vm310_vm0, %v309_v32  ;;  %v628_v47 = vld [vmem:[#allocation2 + $0xc2] sm:$0xff]  ;;  %v629_v48 = vld [vmem:[#allocation2 + $0xca] sm:$0xff] }
  0x69   : > { %v606_v8 = vld [vmem:[#allocation2 + $0x139] sm:$0xff]  ;;  %v607_v9 = vld [vmem:[#allocation2 + $0x141] sm:$0xff]  ;;  %8595 = vrot.lane.b32.xlu1 %v11445_v6, %s11041_s18  ;;  %546 = vst.msk [vmem:[#allocation3 + $0x181] sm:$0xff] %vm310_vm0, %v308_v31  ;;  %547 = vst.msk [vmem:[#allocation3 + $0x189] sm:$0xff] %vm310_vm0, %v309_v32  ;;  %v11500_v55 = vpack.i.bf16 %v629_v48, %v628_v47 }
  0x6a   : > { %v11453_v12 = vpack.i.bf16 %v607_v9, %v606_v8  ;;  %v630_v49 = vld [vmem:[#allocation2 + $0xda] sm:$0xff]  ;;  %v631_v51 = vld [vmem:[#allocation2 + $0xe2] sm:$0xff]  ;;  %v632_v53 = vld [vmem:[#allocation2 + $0xf2] sm:$0xff] }
  0x6b   : > { %v608_v10 = vld [vmem:[#allocation2 + $0x151] sm:$0xff]  ;;  %8600 = vrot.lane.b32.xlu0 %v11449_v7, %s11041_s18  ;;  %v633_v54 = vld [vmem:[#allocation2 + $0xfa] sm:$0xff]  ;;  %v11504_v60 = vpack.i.bf16 %v631_v51, %v630_v49  ;;  %v636_v61 = vld [vmem:[#allocation2 + $0x122] sm:$0xff] }
  0x6c   : > { %v609_v11 = vld [vmem:[#allocation2 + $0x159] sm:$0xff]  ;;  %v634_v56 = vld [vmem:[#allocation2 + $0x10a] sm:$0xff]  ;;  %v11508_v2 = vpack.i.bf16 %v633_v54, %v632_v53  ;;  %v639_v8 = vld [vmem:[#allocation2 + $0x142] sm:$0xff] }
  0x6d   : > { %v11457_v13 = vpack.i.bf16 %v609_v11, %v608_v10  ;;  %v610_v14 = vld [vmem:[#allocation2 + $0x169] sm:$0xff]  ;;  %v611_v15 = vld [vmem:[#allocation2 + $0x171] sm:$0xff]  ;;  %8605 = vrot.lane.b32.xlu1 %v11453_v12, %s11041_s18  ;;  %v638_v5 = vld [vmem:[#allocation2 + $0x13a] sm:$0xff] }
  0x6e   : > { %v11461_v18 = vpack.i.bf16 %v611_v15, %v610_v14  ;;  %v635_v59 = vld [vmem:[#allocation2 + $0x112] sm:$0xff]  ;;  %v637_v62 = vld [vmem:[#allocation2 + $0x12a] sm:$0xff]  ;;  %v641_v10 = vld [vmem:[#allocation2 + $0x15a] sm:$0xff]  ;;  %v11520_v11 = vpack.i.bf16 %v639_v8, %v638_v5 }
  0x6f   : > { %8610 = vrot.lane.b32.xlu0 %v11457_v13, %s11041_s18  ;;  %v11512_v3 = vpack.i.bf16 %v635_v59, %v634_v56  ;;  %v11516_v4 = vpack.i.bf16 %v637_v62, %v636_v61  ;;  %v640_v9 = vld [vmem:[#allocation2 + $0x152] sm:$0xff]  ;;  %v642_v15 = vld [vmem:[#allocation2 + $0x16a] sm:$0xff]  ;;  %v11557_v31 = vld [vmem:[#allocation2 + $0x60] sm:$0xff] }
  0x70   : > { %v11524_v14 = vpack.i.bf16 %v641_v10, %v640_v9  ;;  %v643_v16 = vld [vmem:[#allocation2 + $0x172] sm:$0xff]  ;;  %v11542_v26 = vld [vmem:[#allocation2 + $0x48] sm:$0xff]  ;;  %v11563_v35 = vld [vmem:[#allocation2 + $0x80] sm:$0xff] }
  0x71   : > { %8615 = vrot.lane.b32.xlu1 %v11461_v18, %s11041_s18  ;;  %v11526_v17 = vld [vmem:[#allocation2 + $0x18] sm:$0xff]  ;;  %v11532_v20 = vpack.i.bf16 %v643_v16, %v642_v15  ;;  %v11538_v22 = vld [vmem:[#allocation2 + $0x30] sm:$0xff]  ;;  %v11559_v32 = vld [vmem:[#allocation2 + $0x68] sm:$0xff]  ;;  %s11049_s18 = smov 48  }
  0x72   : > { %v11540_v23 = vld [vmem:[#allocation2 + $0x38] sm:$0xff]  ;;  %v11544_v27 = vld [vmem:[#allocation2 + $0x50] sm:$0xff]  ;;  %v11569_v37 = vpack.i.bf16 %v11559_v32, %v11557_v31  ;;  %v11581_v47 = vld [vmem:[#allocation2 + $0xa8] sm:$0xff] }
  0x73   : > { %8620 = vrot.lane.b32.xlu0 %v8619_v19, %s11042_s19  ;;  %v11528_v19 = vld [vmem:[#allocation2 + $0x20] sm:$0xff]  ;;  %v11550_v28 = vpack.i.bf16 %v11540_v23, %v11538_v22  ;;  %v11555_v29 = vpack.i.bf16 %v11544_v27, %v11542_v26  ;;  %v11561_v33 = vld [vmem:[#allocation2 + $0x78] sm:$0xff]  ;;  %v11577_v42 = vld [vmem:[#allocation2 + $0x90] sm:$0xff]  ;;  %18415 = vst [vmem:[#allocation8_spill] sm:$0xff] %v11581_v47 }
  0x74   : > { %v8699_v21 = vpack.i.bf16 %v11528_v19, %v11526_v17  ;;  %v11575_v39 = vpack.i.bf16 %v11563_v35, %v11561_v33  ;;  %v11579_v43 = vld [vmem:[#allocation2 + $0x98] sm:$0xff]  ;;  %v11583_v48 = vld [vmem:[#allocation2 + $0xb0] sm:$0xff]  ;;  %v11597_v53 = vld [vmem:[#allocation2 + $0xc0] sm:$0xff] }
  0x75   : > { %8625 = vrot.lane.b32.xlu1 %v11467_v24, %s11042_s19  ;;  %v11589_v49 = vpack.i.bf16 %v11579_v43, %v11577_v42  ;;  %v11595_v51 = vpack.i.bf16 %v11583_v48, %v11581_v47  ;;  %18416 = vst [vmem:[#allocation9_spill] sm:$0xff] %v11597_v53  ;;  %v11599_v54 = vld [vmem:[#allocation2 + $0xc8] sm:$0xff]  ;;  %v11601_v56 = vld [vmem:[#allocation2 + $0xd8] sm:$0xff]  ;;  %v11603_v59 = vld [vmem:[#allocation2 + $0xe0] sm:$0xff]  ;;  %v18428_v47 = vmov 0.0  }
  0x76   : > { %18417 = vst [vmem:[#allocation10_spill] sm:$0xff] %v11599_v54  ;;  %18418 = vst [vmem:[#allocation11_spill] sm:$0xff] %v11601_v56  ;;  %v11609_v61 = vpack.i.bf16 %v11599_v54, %v11597_v53  ;;  %v11615_v62 = vpack.i.bf16 %v11603_v59, %v11601_v56  ;;  %v11617_v5 = vld [vmem:[#allocation2 + $0xf0] sm:$0xff]  ;;  %v11619_v8 = vld [vmem:[#allocation2 + $0xf8] sm:$0xff] }
  0x77   : > { %8630 = vrot.lane.b32.xlu0 %v11470_v25, %s11042_s19  ;;  %18419 = vst [vmem:[#allocation12_spill] sm:$0xff] %v11603_v59  ;;  %18420 = vst [vmem:[#allocation13_spill] sm:$0xff] %v11617_v5  ;;  %v11621_v9 = vld [vmem:[#allocation2 + $0x108] sm:$0xff]  ;;  %v11623_v10 = vld [vmem:[#allocation2 + $0x110] sm:$0xff]  ;;  %v11629_v15 = vpack.i.bf16 %v11619_v8, %v11617_v5 }
  0x78   : > { %18421 = vst [vmem:[#allocation14_spill] sm:$0xff] %v11619_v8  ;;  %18422 = vst [vmem:[#allocation15_spill] sm:$0xff] %v11621_v9  ;;  %v11635_v16 = vpack.i.bf16 %v11623_v10, %v11621_v9  ;;  %v11639_v0 = vld [vmem:[#allocation2 + $0x128] sm:$0xff]  ;;  %v11641_v56 = vld [vmem:[#allocation2 + $0x138] sm:$0xff] }
  0x79   : > { %8635 = vrot.lane.b32.xlu1 %v11480_v36, %s11042_s19  ;;  %18423 = vst [vmem:[#allocation16_spill] sm:$0xff] %v11623_v10  ;;  %18425 = vst [vmem:[#allocation18_spill] sm:$0xff] %v11639_v0  ;;  %v11643_v59 = vld [vmem:[#allocation2 + $0x140] sm:$0xff]  ;;  %v11657_v10 = vld [vmem:[#allocation2 + $0x150] sm:$0xff] }
  0x7a   : > { %18426 = vst [vmem:[#allocation19_spill] sm:$0xff] %v11641_v56  ;;  %18427 = vst [vmem:[#allocation20_spill] sm:$0xff] %v11643_v59  ;;  %v11655_v9 = vpack.i.bf16 %v11643_v59, %v11641_v56  ;;  %v11659_v8 = vld [vmem:[#allocation2 + $0x158] sm:$0xff]  ;;  %v11661_v53 = vld [vmem:[#allocation2 + $0x168] sm:$0xff] }
  0x7b   : > { %8640 = vrot.lane.b32.xlu0 %v11484_v41, %s11042_s19  ;;  %v11663_v54 = vld [vmem:[#allocation2 + $0x170] sm:$0xff]  ;;  %421 = vst.msk [vmem:[#allocation4] sm:$0xff] %vm420_vm2, %v18428_v47  ;;  %422 = vst.msk [vmem:[#allocation4 + $0x8] sm:$0xff] %vm420_vm2, %v18428_v47  ;;  %v11749_v56 = vpack.i.bf16 %v11659_v8, %v11657_v10 }
  0x7c   : > { %425 = vst.msk [vmem:[#allocation4 + $0x18] sm:$0xff] %vm420_vm2, %v18428_v47  ;;  %426 = vst.msk [vmem:[#allocation4 + $0x20] sm:$0xff] %vm420_vm2, %v18428_v47  ;;  %v11755_v59 = vpack.i.bf16 %v11663_v54, %v11661_v53 }
  0x7d   : > { %8645 = vrot.lane.b32.xlu1 %v11488_v44, %s11042_s19  ;;  %428 = vst.msk [vmem:[#allocation4 + $0x30] sm:$0xff] %vm420_vm2, %v18428_v47  ;;  %429 = vst.msk [vmem:[#allocation4 + $0x38] sm:$0xff] %vm420_vm2, %v18428_v47 }
  0x7e   : > { %431 = vst.msk [vmem:[#allocation4 + $0x48] sm:$0xff] %vm420_vm2, %v18428_v47  ;;  %432 = vst.msk [vmem:[#allocation4 + $0x50] sm:$0xff] %vm420_vm2, %v18428_v47 }
  0x7f   : > { %8650 = vrot.lane.b32.xlu0 %v11492_v45, %s11042_s19  ;;  %434 = vst.msk [vmem:[#allocation4 + $0x60] sm:$0xff] %vm420_vm2, %v18428_v47  ;;  %435 = vst.msk [vmem:[#allocation4 + $0x68] sm:$0xff] %vm420_vm2, %v18428_v47 }
  0x80   : > { %437 = vst.msk [vmem:[#allocation4 + $0x78] sm:$0xff] %vm420_vm2, %v18428_v47  ;;  %438 = vst.msk [vmem:[#allocation4 + $0x80] sm:$0xff] %vm420_vm2, %v18428_v47 }
  0x81   : > { %8655 = vrot.lane.b32.xlu1 %v11496_v52, %s11042_s19  ;;  %440 = vst.msk [vmem:[#allocation4 + $0x90] sm:$0xff] %vm420_vm2, %v18428_v47  ;;  %441 = vst.msk [vmem:[#allocation4 + $0x98] sm:$0xff] %vm420_vm2, %v18428_v47 }
  0x82   : > { %443 = vst.msk [vmem:[#allocation4 + $0xa8] sm:$0xff] %vm420_vm2, %v18428_v47  ;;  %444 = vst.msk [vmem:[#allocation4 + $0xb0] sm:$0xff] %vm420_vm2, %v18428_v47 }
  0x83   : > { %8660 = vrot.lane.b32.xlu0 %v11500_v55, %s11042_s19  ;;  %446 = vst.msk [vmem:[#allocation4 + $0xc0] sm:$0xff] %vm420_vm2, %v18428_v47  ;;  %447 = vst.msk [vmem:[#allocation4 + $0xc8] sm:$0xff] %vm420_vm2, %v18428_v47 }
  0x84   : > { %449 = vst.msk [vmem:[#allocation4 + $0xd8] sm:$0xff] %vm420_vm2, %v18428_v47  ;;  %450 = vst.msk [vmem:[#allocation4 + $0xe0] sm:$0xff] %vm420_vm2, %v18428_v47 }
  0x85   : > { %8665 = vrot.lane.b32.xlu1 %v11504_v60, %s11042_s19  ;;  %452 = vst.msk [vmem:[#allocation4 + $0xf0] sm:$0xff] %vm420_vm2, %v18428_v47  ;;  %453 = vst.msk [vmem:[#allocation4 + $0xf8] sm:$0xff] %vm420_vm2, %v18428_v47 }
  0x86   : > { %455 = vst.msk [vmem:[#allocation4 + $0x108] sm:$0xff] %vm420_vm2, %v18428_v47  ;;  %456 = vst.msk [vmem:[#allocation4 + $0x110] sm:$0xff] %vm420_vm2, %v18428_v47 }
  0x87   : > { %8670 = vrot.lane.b32.xlu0 %v11508_v2, %s11042_s19  ;;  %458 = vst.msk [vmem:[#allocation4 + $0x120] sm:$0xff] %vm420_vm2, %v18428_v47  ;;  %459 = vst.msk [vmem:[#allocation4 + $0x128] sm:$0xff] %vm420_vm2, %v18428_v47 }
  0x88   : > { %461 = vst.msk [vmem:[#allocation4 + $0x138] sm:$0xff] %vm420_vm2, %v18428_v47  ;;  %462 = vst.msk [vmem:[#allocation4 + $0x140] sm:$0xff] %vm420_vm2, %v18428_v47 }
  0x89   : > { %8675 = vrot.lane.b32.xlu1 %v11512_v3, %s11042_s19  ;;  %464 = vst.msk [vmem:[#allocation4 + $0x150] sm:$0xff] %vm420_vm2, %v18428_v47  ;;  %465 = vst.msk [vmem:[#allocation4 + $0x158] sm:$0xff] %vm420_vm2, %v18428_v47 }
  0x8a   : > { %467 = vst.msk [vmem:[#allocation4 + $0x168] sm:$0xff] %vm420_vm2, %v18428_v47  ;;  %468 = vst.msk [vmem:[#allocation4 + $0x170] sm:$0xff] %vm420_vm2, %v18428_v47 }
  0x8b   : > { %8680 = vrot.lane.b32.xlu0 %v11516_v4, %s11042_s19  ;;  %470 = vst.msk [vmem:[#allocation4 + $0x180] sm:$0xff] %vm420_vm2, %v18428_v47  ;;  %471 = vst.msk [vmem:[#allocation4 + $0x188] sm:$0xff] %vm420_vm2, %v18428_v47 }
  0x8c   : > { %473 = vst.msk [vmem:[#allocation4 + $0x198] sm:$0xff] %vm420_vm2, %v18428_v47  ;;  %474 = vst.msk [vmem:[#allocation4 + $0x1a0] sm:$0xff] %vm420_vm2, %v18428_v47 }
  0x8d   : > { %8685 = vrot.lane.b32.xlu1 %v11520_v11, %s11042_s19  ;;  %476 = vst.msk [vmem:[#allocation4 + $0x1b0] sm:$0xff] %vm420_vm2, %v18428_v47  ;;  %477 = vst.msk [vmem:[#allocation4 + $0x1b8] sm:$0xff] %vm420_vm2, %v18428_v47 }
  0x8e   : > { %479 = vst.msk [vmem:[#allocation4 + $0x1c8] sm:$0xff] %vm420_vm2, %v18428_v47  ;;  %480 = vst.msk [vmem:[#allocation4 + $0x1d0] sm:$0xff] %vm420_vm2, %v18428_v47 }
  0x8f   : > { %8690 = vrot.lane.b32.xlu0 %v11524_v14, %s11042_s19 }
  0x91   : > { %8695 = vrot.lane.b32.xlu1 %v11532_v20, %s11042_s19 }
  0x93   : > { %8700 = vrot.lane.b32.xlu0 %v8699_v21, %s11043_s20  ;;  %v11637_v21 = vld [vmem:[#allocation2 + $0x120] sm:$0xff] }
  0x94   : > { %18424 = vst [vmem:[#allocation17_spill] sm:$0xff] %v11637_v21  ;;  %v11649_v5 = vpack.i.bf16 %v11639_v0, %v11637_v21  ;;  %v674_v21 = vld [vmem:[#allocation2 + $0x180] sm:$0xff]  ;;  %v675_v0 = vld [vmem:[#allocation2 + $0x188] sm:$0xff] }
  0x95   : > { %8705 = vrot.lane.b32.xlu1 %v11550_v28, %s11043_s20  ;;  %v11759_v47 = vpack.i.bf16 %v675_v0, %v674_v21  ;;  %v11783_v0 = vpop.permute.xlu0 %8540 }
  0x97   : > { %8710 = vrot.lane.b32.xlu0 %v11555_v29, %s11043_s20 }
  0x99   : > { %8715 = vrot.lane.b32.xlu1 %v11569_v37, %s11043_s20 }
  0x9b   : > { %8720 = vrot.lane.b32.xlu0 %v11575_v39, %s11043_s20 }
  0x9d   : > { %8725 = vrot.lane.b32.xlu1 %v11589_v49, %s11043_s20 }
  0x9f   : > { %8730 = vrot.lane.b32.xlu0 %v11595_v51, %s11043_s20 }
  0xa1   : > { %8735 = vrot.lane.b32.xlu1 %v11609_v61, %s11043_s20 }
  0xa3   : > { %8740 = vrot.lane.b32.xlu0 %v11615_v62, %s11043_s20 }
  0xa5   : > { %8745 = vrot.lane.b32.xlu1 %v11629_v15, %s11043_s20 }
  0xa7   : > { %8750 = vrot.lane.b32.xlu0 %v11635_v16, %s11043_s20 }
  0xa9   : > { %8755 = vrot.lane.b32.xlu1 %v11649_v5, %s11043_s20 }
  0xab   : > { %8760 = vrot.lane.b32.xlu0 %v11655_v9, %s11043_s20 }
  0xad   : > { %8765 = vrot.lane.b32.xlu1 %v11749_v56, %s11043_s20 }
  0xaf   : > { %8770 = vrot.lane.b32.xlu0 %v11755_v59, %s11043_s20 }
  0xb1   : > { %8775 = vrot.lane.b32.xlu1 %v11759_v47, %s11043_s20  ;;  %s11050_s20 = smov 64  }
  0xb3   : > { %8780 = vrot.lane.b32.xlu0 %v11385_v34, %s11044_s21 }
  0xb5   : > { %8785 = vrot.lane.b32.xlu1 %v11383_v30, %s11044_s21 }
  0xb7   : > { %8790 = vrot.lane.b32.xlu0 %v11391_v38, %s11044_s21  ;;  %v706_v38 = vld [vmem:[#allocation2 + $0x181] sm:$0xff] }
  0xb9   : > { %8795 = vrot.lane.b32.xlu1 %v11399_v40, %s11044_s21  ;;  %v707_v40 = vld [vmem:[#allocation2 + $0x189] sm:$0xff] }
  0xbb   : > { %8800 = vrot.lane.b32.xlu0 %v11403_v46, %s11044_s21 }
  0xbd   : > { %8805 = vrot.lane.b32.xlu1 %v11407_v50, %s11044_s21 }
  0xbf   : > { %8810 = vrot.lane.b32.xlu0 %v11429_v57, %s11044_s21  ;;  %v11803_v57 = vpack.i.bf16 %v707_v40, %v706_v38 }
  0xc1   : > { %8815 = vrot.lane.b32.xlu1 %v11433_v58, %s11044_s21 }
  0xc3   : > { %8820 = vrot.lane.b32.xlu0 %v11437_v63, %s11044_s21 }
  0xc5   : > { %8825 = vrot.lane.b32.xlu1 %v11441_v1, %s11044_s21 }
  0xc6   : > { %v11789_v30 = vpop.permute.xlu1 %8550 }
  0xc7   : > { %8830 = vrot.lane.b32.xlu0 %v11445_v6, %s11044_s21 }
  0xc9   : > { %v11791_v34 = vpop.permute.xlu0 %8545  ;;  %8835 = vrot.lane.b32.xlu1 %v11449_v7, %s11044_s21 }
  0xca   : > { %v11797_v46 = vpop.permute.xlu1 %8555 }
  0xcb   : > { %8840 = vrot.lane.b32.xlu0 %v11453_v12, %s11044_s21 }
  0xcd   : > { %v11799_v50 = vpop.permute.xlu0 %8560  ;;  %8845 = vrot.lane.b32.xlu1 %v11457_v13, %s11044_s21 }
  0xce   : > { %v11807_v58 = vpop.permute.xlu1 %8565 }
  0xcf   : > { %8850 = vrot.lane.b32.xlu0 %v11461_v18, %s11044_s21 }
  0xd1   : > { %v11809_v63 = vpop.permute.xlu0 %8570  ;;  %8855 = vrot.lane.b32.xlu1 %v11803_v57, %s11044_s21 }
  0xd3   : > { %8860 = vrot.lane.b32.xlu0 %v11467_v24, %s11045_s22  ;;  %v11815_v1 = vpop.permute.xlu1 %8575 }
  0xd5   : > { %v11817_v6 = vpop.permute.xlu0 %8580  ;;  %8865 = vrot.lane.b32.xlu1 %v11470_v25, %s11045_s22 }
  0xd7   : > { %8870 = vrot.lane.b32.xlu0 %v11480_v36, %s11045_s22  ;;  %v11823_v7 = vpop.permute.xlu1 %8585 }
  0xd9   : > { %v11825_v12 = vpop.permute.xlu0 %8590  ;;  %8875 = vrot.lane.b32.xlu1 %v11484_v41, %s11045_s22 }
  0xdb   : > { %8880 = vrot.lane.b32.xlu0 %v11488_v44, %s11045_s22  ;;  %v11831_v13 = vpop.permute.xlu1 %8595 }
  0xdd   : > { %v11833_v18 = vpop.permute.xlu0 %8600  ;;  %8885 = vrot.lane.b32.xlu1 %v11492_v45, %s11045_s22 }
  0xdf   : > { %8890 = vrot.lane.b32.xlu0 %v11496_v52, %s11045_s22  ;;  %v11839_v24 = vpop.permute.xlu1 %8605  ;;  %v738_v52 = vld [vmem:[#allocation2 + $0x182] sm:$0xff] }
  0xe1   : > { %v11841_v25 = vpop.permute.xlu0 %8610  ;;  %8895 = vrot.lane.b32.xlu1 %v11500_v55, %s11045_s22  ;;  %v739_v55 = vld [vmem:[#allocation2 + $0x18a] sm:$0xff] }
  0xe3   : > { %8900 = vrot.lane.b32.xlu0 %v11504_v60, %s11045_s22  ;;  %v11847_v36 = vpop.permute.xlu1 %8615 }
  0xe5   : > { %v11849_v41 = vpop.permute.xlu0 %8620  ;;  %8905 = vrot.lane.b32.xlu1 %v11508_v2, %s11045_s22  ;;  %v11869_v2 = vpack.i.bf16 %v739_v55, %v738_v52  ;;  %v773_v55 = vld [vmem:[#allocation2 + $0x31] sm:$0xff] }
  0xe7   : > { %8910 = vrot.lane.b32.xlu0 %v11512_v3, %s11045_s22  ;;  %v11855_v44 = vpop.permute.xlu1 %8625 }
  0xe9   : > { %v11857_v45 = vpop.permute.xlu0 %8630  ;;  %8915 = vrot.lane.b32.xlu1 %v11516_v4, %s11045_s22 }
  0xeb   : > { %8920 = vrot.lane.b32.xlu0 %v11520_v11, %s11045_s22  ;;  %v11863_v60 = vpop.permute.xlu1 %8635 }
  0xed   : > { %v11865_v21 = vpop.permute.xlu0 %8640  ;;  %8925 = vrot.lane.b32.xlu1 %v11524_v14, %s11045_s22 }
  0xef   : > { %8930 = vrot.lane.b32.xlu0 %v11532_v20, %s11045_s22  ;;  %v11873_v3 = vpop.permute.xlu1 %8645 }
  0xf1   : > { %v11875_v4 = vpop.permute.xlu0 %8650  ;;  %8935 = vrot.lane.b32.xlu1 %v11869_v2, %s11045_s22  ;;  %s11051_s22 = smov 80  }
  0xf3   : > { %8940 = vrot.lane.b32.xlu0 %v11550_v28, %s11046_s23  ;;  %v11881_v11 = vpop.permute.xlu1 %8655 }
  0xf5   : > { %v11883_v38 = vpop.permute.xlu0 %8660  ;;  %8945 = vrot.lane.b32.xlu1 %v11555_v29, %s11046_s23 }
  0xf7   : > { %8950 = vrot.lane.b32.xlu0 %v11569_v37, %s11046_s23  ;;  %v11889_v14 = vpop.permute.xlu1 %8665 }
  0xf9   : > { %v11891_v20 = vpop.permute.xlu0 %8670  ;;  %8955 = vrot.lane.b32.xlu1 %v11575_v39, %s11046_s23 }
  0xfa   : > { %18429 = vst [vmem:[#allocation21_spill] sm:$0xff] %v11891_v20 }
  0xfb   : > { %8960 = vrot.lane.b32.xlu0 %v11589_v49, %s11046_s23  ;;  %v11897_v28 = vpop.permute.xlu1 %8675 }
  0xfc   : > { %18430 = vst [vmem:[#allocation22_spill] sm:$0xff] %v11897_v28 }
  0xfd   : > { %v11899_v40 = vpop.permute.xlu0 %8680  ;;  %8965 = vrot.lane.b32.xlu1 %v11595_v51, %s11046_s23 }
  0xfe   : > { %18431 = vst [vmem:[#allocation23_spill] sm:$0xff] %v11899_v40  ;;  %v787_v40 = vld [vmem:[#allocation2 + $0xd9] sm:$0xff] }
  0xff   : > { %8970 = vrot.lane.b32.xlu0 %v11609_v61, %s11046_s23  ;;  %v11905_v29 = vpop.permute.xlu1 %8685 }
 0x100   : > { %18432 = vst [vmem:[#allocation24_spill] sm:$0xff] %v11905_v29 }
 0x101   : > { %v11907_v37 = vpop.permute.xlu0 %8690  ;;  %8975 = vrot.lane.b32.xlu1 %v11615_v62, %s11046_s23  ;;  %v771_v62 = vld [vmem:[#allocation2 + $0x198] sm:$0xff] }
 0x102   : > { %18433 = vst [vmem:[#allocation25_spill] sm:$0xff] %v11907_v37  ;;  %v778_v37 = vld [vmem:[#allocation2 + $0x69] sm:$0xff] }
 0x103   : > { %8980 = vrot.lane.b32.xlu0 %v11629_v15, %s11046_s23  ;;  %v11913_v39 = vpop.permute.xlu1 %8695  ;;  %v772_v15 = vld [vmem:[#allocation2 + $0x1a0] sm:$0xff] }
 0x104   : > { %18434 = vst [vmem:[#allocation26_spill] sm:$0xff] %v11913_v39 }
 0x105   : > { %v11915_v49 = vpop.permute.xlu0 %8700  ;;  %8985 = vrot.lane.b32.xlu1 %v11635_v16, %s11046_s23 }
 0x106   : > { %18435 = vst [vmem:[#allocation27_spill] sm:$0xff] %v11915_v49  ;;  %v774_v49 = vld [vmem:[#allocation2 + $0x39] sm:$0xff] }
 0x107   : > { %8990 = vrot.lane.b32.xlu0 %v11649_v5, %s11046_s23  ;;  %v11921_v51 = vpop.permute.xlu1 %8705  ;;  %v9014_v5 = vpack.i.bf16 %v772_v15, %v771_v62  ;;  %v779_v62 = vld [vmem:[#allocation2 + $0x79] sm:$0xff]  ;;  %v780_v15 = vld [vmem:[#allocation2 + $0x81] sm:$0xff] }
 0x108   : > { %18436 = vst [vmem:[#allocation28_spill] sm:$0xff] %v11921_v51  ;;  %v776_v51 = vld [vmem:[#allocation2 + $0x51] sm:$0xff] }
 0x109   : > { %v11923_v61 = vpop.permute.xlu0 %8710  ;;  %8995 = vrot.lane.b32.xlu1 %v11655_v9, %s11046_s23  ;;  %v775_v9 = vld [vmem:[#allocation2 + $0x49] sm:$0xff] }
 0x10a   : > { %18437 = vst [vmem:[#allocation29_spill] sm:$0xff] %v11923_v61  ;;  %v9019_v61 = vpack.i.bf16 %v774_v49, %v773_v55  ;;  %v782_v49 = vld [vmem:[#allocation2 + $0x99] sm:$0xff] }
 0x10b   : > { %9000 = vrot.lane.b32.xlu0 %v11749_v56, %s11046_s23  ;;  %v11929_v52 = vpop.permute.xlu1 %8715  ;;  %v777_v56 = vld [vmem:[#allocation2 + $0x61] sm:$0xff] }
 0x10c   : > { %18438 = vst [vmem:[#allocation30_spill] sm:$0xff] %v11929_v52  ;;  %v9024_v52 = vpack.i.bf16 %v776_v51, %v775_v9  ;;  %v784_v51 = vld [vmem:[#allocation2 + $0xb1] sm:$0xff] }
 0x10d   : > { %v11931_v16 = vpop.permute.xlu0 %8720  ;;  %9005 = vrot.lane.b32.xlu1 %v11755_v59, %s11046_s23  ;;  %v9029_v59 = vpack.i.bf16 %v778_v37, %v777_v56  ;;  %v786_v37 = vld [vmem:[#allocation2 + $0xc9] sm:$0xff] }
 0x10e   : > { %18439 = vst [vmem:[#allocation31_spill] sm:$0xff] %v11931_v16 }
 0x10f   : > { %9010 = vrot.lane.b32.xlu0 %v11759_v47, %s11046_s23  ;;  %v11937_v39 = vpop.permute.xlu1 %8725  ;;  %v781_v47 = vld [vmem:[#allocation2 + $0x91] sm:$0xff] }
 0x110   : > { %18440 = vst [vmem:[#allocation32_spill] sm:$0xff] %v11937_v39  ;;  %v9034_v39 = vpack.i.bf16 %v780_v15, %v779_v62  ;;  %v790_v15 = vld [vmem:[#allocation2 + $0xf9] sm:$0xff] }
 0x111   : > { %v11939_v29 = vpop.permute.xlu0 %8730  ;;  %9015 = vrot.lane.b32.xlu1 %v9014_v5, %s11046_s23  ;;  %v783_v5 = vld [vmem:[#allocation2 + $0xa9] sm:$0xff] }
 0x112   : > { %18441 = vst [vmem:[#allocation33_spill] sm:$0xff] %v11939_v29  ;;  %v9039_v29 = vpack.i.bf16 %v782_v49, %v781_v47 }
 0x113   : > { %9020 = vrot.lane.b32.xlu0 %v9019_v61, %s11047_s29  ;;  %v11943_v16 = vpop.permute.xlu1 %8735  ;;  %v785_v61 = vld [vmem:[#allocation2 + $0xc1] sm:$0xff] }
 0x114   : > { %18442 = vst [vmem:[#allocation34_spill] sm:$0xff] %v11943_v16  ;;  %v9044_v16 = vpack.i.bf16 %v784_v51, %v783_v5  ;;  %v794_v51 = vld [vmem:[#allocation2 + $0x129] sm:$0xff] }
 0x115   : > { %v11945_v55 = vpop.permute.xlu0 %8740  ;;  %9025 = vrot.lane.b32.xlu1 %v9024_v52, %s11047_s29  ;;  %v788_v52 = vld [vmem:[#allocation2 + $0xe1] sm:$0xff] }
 0x116   : > { %18443 = vst [vmem:[#allocation35_spill] sm:$0xff] %v11945_v55  ;;  %v9049_v55 = vpack.i.bf16 %v786_v37, %v785_v61  ;;  %v9054_v49 = vpack.i.bf16 %v788_v52, %v787_v40  ;;  %v10859_v37 = vld [vmem:[%s17899_s1 + $0x10] ss:$0 sps:$4 sm:$0x33]  }
 0x117   : > { %9030 = vrot.lane.b32.xlu0 %v9029_v59, %s11047_s29  ;;  %v11949_v9 = vpop.permute.xlu1 %8745  ;;  %v789_v59 = vld [vmem:[#allocation2 + $0xf1] sm:$0xff]  ;;  %8481 = vmatprep.subr.msk.bf16.mxu0 %vm2208_vm3, %v10859_v37  ;;  %v2210_v52 = vsel %vm2208_vm3, %v10859_v37, 0 }
 0x118   : > { %18444 = vst [vmem:[#allocation36_spill] sm:$0xff] %v11949_v9  ;;  %v791_v9 = vld [vmem:[#allocation2 + $0x109] sm:$0xff]  ;;  %8438 = vmatpush3.bf16.msra.mxu0 %v2210_v52  ;;  %8482 = vmatprep.subr.msk.bf16.mxu1 %vm2208_vm3, %v10859_v37 }
 0x119   : > { %v11951_v56 = vpop.permute.xlu0 %8750  ;;  %9035 = vrot.lane.b32.xlu1 %v9034_v39, %s11047_s29  ;;  %v792_v39 = vld [vmem:[#allocation2 + $0x111] sm:$0xff]  ;;  %8478 = vmatpush3.bf16.msra.mxu1 %v2210_v52  ;;  %v806_v52 = vld [vmem:[#allocation2 + $0x3a] sm:$0xff] }
 0x11a   : > { %18445 = vst [vmem:[#allocation37_spill] sm:$0xff] %v11951_v56  ;;  %v9059_v56 = vpack.i.bf16 %v790_v15, %v789_v59  ;;  %v797_v15 = vld [vmem:[#allocation2 + $0x151] sm:$0xff] }
 0x11b   : > { %9040 = vrot.lane.b32.xlu0 %v9039_v29, %s11047_s29  ;;  %v11955_v62 = vpop.permute.xlu1 %8755  ;;  %v793_v29 = vld [vmem:[#allocation2 + $0x121] sm:$0xff] }
 0x11c   : > { %18446 = vst [vmem:[#allocation38_spill] sm:$0xff] %v11955_v62  ;;  %v9069_v40 = vpack.i.bf16 %v794_v51, %v793_v29  ;;  %v800_v29 = vld [vmem:[#allocation2 + $0x171] sm:$0xff]  ;;  %v548_v62 = vld [vmem:[#allocation2] sm:$0xff] }
 0x11d   : > { %v11957_v47 = vpop.permute.xlu0 %8760  ;;  %9045 = vrot.lane.b32.xlu1 %v9044_v16, %s11047_s29  ;;  %v795_v16 = vld [vmem:[#allocation2 + $0x139] sm:$0xff] }
 0x11e   : > { %18447 = vst [vmem:[#allocation39_spill] sm:$0xff] %v11957_v47  ;;  %v9064_v47 = vpack.i.bf16 %v792_v39, %v791_v9  ;;  %v10860_v9 = vld [vmem:[%s17899_s1 + $0x8] sm:$0xff]  }
 0x11f   : > { %9050 = vrot.lane.b32.xlu0 %v9049_v55, %s11047_s29  ;;  %v11961_v5 = vpop.permute.xlu1 %8765  ;;  %v796_v55 = vld [vmem:[#allocation2 + $0x141] sm:$0xff]  ;;  %v799_v39 = vld [vmem:[#allocation2 + $0x169] sm:$0xff]  ;;  %8439 = vmatprep.subr.bf16.mxu0 %v10860_v9 }
 0x120   : > { %18448 = vst [vmem:[#allocation40_spill] sm:$0xff] %v11961_v5  ;;  %v798_v5 = vld [vmem:[#allocation2 + $0x159] sm:$0xff]  ;;  %8440 = vmatpush3.bf16.msra.mxu0 %v10860_v9  ;;  %8476 = vmatprep.subr.bf16.mxu1 %v10860_v9 }
 0x121   : > { %v11963_v61 = vpop.permute.xlu0 %8770  ;;  %9055 = vrot.lane.b32.xlu1 %v9054_v49, %s11047_s29  ;;  %v9079_v49 = vpack.i.bf16 %v798_v5, %v797_v15  ;;  %8479 = vmatpush3.bf16.msra.mxu1 %v10860_v9  ;;  %v803_v5 = vld [vmem:[#allocation2 + $0x199] sm:$0xff] }
 0x122   : > { %18449 = vst [vmem:[#allocation41_spill] sm:$0xff] %v11963_v61 }
 0x123   : > { %9060 = vrot.lane.b32.xlu0 %v9059_v56, %s11047_s29  ;;  %v11970_v59 = vpop.permute.xlu1 %8775  ;;  %v9074_v56 = vpack.i.bf16 %v796_v55, %v795_v16  ;;  %v805_v55 = vld [vmem:[#allocation2 + $0x32] sm:$0xff] }
 0x124   : > { %18450 = vst [vmem:[#allocation42_spill] sm:$0xff] %v11970_v59 }
 0x125   : > { %v11972_v61 = vpop.permute.xlu0 %8780  ;;  %9065 = vrot.lane.b32.xlu1 %v9064_v47, %s11047_s29  ;;  %v9084_v47 = vpack.i.bf16 %v800_v29, %v799_v39  ;;  %v808_v39 = vld [vmem:[#allocation2 + $0x52] sm:$0xff] }
 0x126   : > { %18451 = vst [vmem:[#allocation43_spill] sm:$0xff] %v11972_v61  ;;  %v10861_v61 = vld [vmem:[%s17899_s1] sm:$0xff]  }
 0x127   : > { %9070 = vrot.lane.b32.xlu0 %v9069_v40, %s11047_s29  ;;  %v11979_v51 = vpop.permute.xlu1 %8785  ;;  %v804_v40 = vld [vmem:[#allocation2 + $0x1a1] sm:$0xff]  ;;  %8441 = vmatprep.subr.bf16.mxu0 %v10861_v61 }
 0x128   : > { %18452 = vst [vmem:[#allocation44_spill] sm:$0xff] %v11979_v51  ;;  %8442 = vmatpush3.bf16.msra.mxu0 %v10861_v61  ;;  %8477 = vmatprep.subr.bf16.mxu1 %v10861_v61  ;;  %v9094_v9 = vpack.i.bf16 %v804_v40, %v803_v5  ;;  %v812_v5 = vld [vmem:[#allocation2 + $0x82] sm:$0xff] }
 0x129   : > { %v11981_v37 = vpop.permute.xlu0 %8790  ;;  %9075 = vrot.lane.b32.xlu1 %v9074_v56, %s11047_s29  ;;  %8480 = vmatpush3.bf16.msra.mxu1 %v10861_v61  ;;  %v9099_v56 = vpack.i.bf16 %v806_v52, %v805_v55  ;;  %v814_v55 = vld [vmem:[#allocation2 + $0x9a] sm:$0xff] }
 0x12a   : > { %18453 = vst [vmem:[#allocation45_spill] sm:$0xff] %v11981_v37  ;;  %v809_v37 = vld [vmem:[#allocation2 + $0x62] sm:$0xff] }
 0x12b   : > { %9080 = vrot.lane.b32.xlu0 %v9079_v49, %s11047_s29  ;;  %v11988_v16 = vpop.permute.xlu1 %8795  ;;  %v807_v49 = vld [vmem:[#allocation2 + $0x4a] sm:$0xff] }
 0x12c   : > { %18454 = vst [vmem:[#allocation46_spill] sm:$0xff] %v11988_v16  ;;  %v810_v16 = vld [vmem:[#allocation2 + $0x6a] sm:$0xff]  ;;  %v9104_v59 = vpack.i.bf16 %v808_v39, %v807_v49  ;;  %v816_v49 = vld [vmem:[#allocation2 + $0xb2] sm:$0xff] }
 0x12d   : > { %v11990_v15 = vpop.permute.xlu0 %8800  ;;  %9085 = vrot.lane.b32.xlu1 %v9084_v47, %s11047_s29  ;;  %v9109_v61 = vpack.i.bf16 %v810_v16, %v809_v37  ;;  %v811_v47 = vld [vmem:[#allocation2 + $0x7a] sm:$0xff]  ;;  %v818_v37 = vld [vmem:[#allocation2 + $0xca] sm:$0xff] }
 0x12e   : > { %18455 = vst [vmem:[#allocation47_spill] sm:$0xff] %v11990_v15  ;;  %v819_v15 = vld [vmem:[#allocation2 + $0xda] sm:$0xff] }
 0x12f   : > { %9090 = vrot.lane.b32.xlu0 %v11803_v57, %s11047_s29  ;;  %v11995_v29 = vpop.permute.xlu1 %8805  ;;  %v813_v57 = vld [vmem:[#allocation2 + $0x92] sm:$0xff] }
 0x130   : > { %18456 = vst [vmem:[#allocation48_spill] sm:$0xff] %v11995_v29  ;;  %v9114_v29 = vpack.i.bf16 %v812_v5, %v811_v47  ;;  %v822_v5 = vld [vmem:[#allocation2 + $0xfa] sm:$0xff] }
 0x131   : > { %v11997_v51 = vpop.permute.xlu0 %8810  ;;  %9095 = vrot.lane.b32.xlu1 %v9094_v9, %s11047_s29  ;;  %v815_v9 = vld [vmem:[#allocation2 + $0xaa] sm:$0xff] }
 0x132   : > { %18457 = vst [vmem:[#allocation49_spill] sm:$0xff] %v11997_v51  ;;  %v9119_v51 = vpack.i.bf16 %v814_v55, %v813_v57 }
 0x133   : > { %9100 = vrot.lane.b32.xlu0 %v9099_v56, %s11048_s17  ;;  %v12001_v40 = vpop.permute.xlu1 %8815  ;;  %v817_v56 = vld [vmem:[#allocation2 + $0xc2] sm:$0xff] }
 0x134   : > { %18458 = vst [vmem:[#allocation50_spill] sm:$0xff] %v12001_v40  ;;  %v9124_v40 = vpack.i.bf16 %v816_v49, %v815_v9  ;;  %v826_v49 = vld [vmem:[#allocation2 + $0x12a] sm:$0xff] }
 0x135   : > { %v12003_v52 = vpop.permute.xlu0 %8820  ;;  %9105 = vrot.lane.b32.xlu1 %v9104_v59, %s11048_s17  ;;  %v820_v59 = vld [vmem:[#allocation2 + $0xe2] sm:$0xff] }
 0x136   : > { %18459 = vst [vmem:[#allocation51_spill] sm:$0xff] %v12003_v52  ;;  %v9129_v52 = vpack.i.bf16 %v818_v37, %v817_v56  ;;  %v9134_v55 = vpack.i.bf16 %v820_v59, %v819_v15  ;;  %v8543_v15 = vunpack.i.h.bf16 %v11783_v0 }
 0x137   : > { %9110 = vrot.lane.b32.xlu0 %v9109_v61, %s11048_s17  ;;  %v12007_v39 = vpop.permute.xlu1 %8825  ;;  %v821_v61 = vld [vmem:[#allocation2 + $0xf2] sm:$0xff] }
 0x138   : > { %18460 = vst [vmem:[#allocation52_spill] sm:$0xff] %v12007_v39  ;;  %v823_v39 = vld [vmem:[#allocation2 + $0x10a] sm:$0xff] }
 0x139   : > { %v12009_v16 = vpop.permute.xlu0 %8830  ;;  %9115 = vrot.lane.b32.xlu1 %v9114_v29, %s11048_s17  ;;  %v824_v29 = vld [vmem:[#allocation2 + $0x112] sm:$0xff] }
 0x13a   : > { %18461 = vst [vmem:[#allocation53_spill] sm:$0xff] %v12009_v16  ;;  %v9139_v16 = vpack.i.bf16 %v822_v5, %v821_v61  ;;  %v9144_v37 = vpack.i.bf16 %v824_v29, %v823_v39  ;;  %v829_v61 = vld [vmem:[#allocation2 + $0x152] sm:$0xff]  ;;  %v830_v5 = vld [vmem:[#allocation2 + $0x15a] sm:$0xff] }
 0x13b   : > { %9120 = vrot.lane.b32.xlu0 %v9119_v51, %s11048_s17  ;;  %v12013_v47 = vpop.permute.xlu1 %8835  ;;  %v825_v51 = vld [vmem:[#allocation2 + $0x122] sm:$0xff] }
 0x13c   : > { %18462 = vst [vmem:[#allocation54_spill] sm:$0xff] %v12013_v47  ;;  %v827_v47 = vld [vmem:[#allocation2 + $0x13a] sm:$0xff] }
 0x13d   : > { %v12015_v57 = vpop.permute.xlu0 %8840  ;;  %9125 = vrot.lane.b32.xlu1 %v9124_v40, %s11048_s17  ;;  %v828_v40 = vld [vmem:[#allocation2 + $0x142] sm:$0xff] }
 0x13e   : > { %18463 = vst [vmem:[#allocation55_spill] sm:$0xff] %v12015_v57  ;;  %v9149_v57 = vpack.i.bf16 %v826_v49, %v825_v51  ;;  %v9154_v29 = vpack.i.bf16 %v828_v40, %v827_v47  ;;  %v831_v51 = vld [vmem:[#allocation2 + $0x16a] sm:$0xff]  ;;  %v832_v49 = vld [vmem:[#allocation2 + $0x172] sm:$0xff]  ;;  %v8562_v40 = vunpack.i.l.bf16 %v11799_v50 }
 0x13f   : > { %9130 = vrot.lane.b32.xlu0 %v9129_v52, %s11048_s17  ;;  %v12019_v9 = vpop.permute.xlu1 %8845  ;;  %v8542_v52 = vunpack.i.l.bf16 %v11783_v0  ;;  %v9159_v0 = vpack.i.bf16 %v830_v5, %v829_v61  ;;  %v835_v61 = vld [vmem:[#allocation2 + $0x19a] sm:$0xff] }
 0x140   : > { %18464 = vst [vmem:[#allocation56_spill] sm:$0xff] %v12019_v9  ;;  %v549_v9 = vld [vmem:[#allocation2 + $0x8] sm:$0xff] }
 0x141   : > { %v12021_v56 = vpop.permute.xlu0 %8850  ;;  %9135 = vrot.lane.b32.xlu1 %v9134_v55, %s11048_s17  ;;  %v8552_v55 = vunpack.i.l.bf16 %v11789_v30  ;;  %v12040_v28 = vsel %vm310_vm0, %v548_v62, %v8542_v52  ;;  %v8578_v52 = vunpack.i.h.bf16 %v11815_v1 }
 0x142   : > { %18465 = vst [vmem:[#allocation57_spill] sm:$0xff] %v12021_v56  ;;  %v8553_v56 = vunpack.i.h.bf16 %v11789_v30  ;;  %v8548_v30 = vunpack.i.h.bf16 %v11791_v34 }
 0x143   : > { %9140 = vrot.lane.b32.xlu0 %v9139_v16, %s11048_s17  ;;  %v12027_v59 = vpop.permute.xlu1 %8855  ;;  %v8547_v16 = vunpack.i.l.bf16 %v11791_v34  ;;  %v12048_v47 = vsel %vm310_vm0, %v11538_v22, %v8552_v55  ;;  %v9164_v22 = vpack.i.bf16 %v832_v49, %v831_v51  ;;  %v8583_v55 = vunpack.i.h.bf16 %v11817_v6 }
 0x144   : > { %18466 = vst [vmem:[#allocation58_spill] sm:$0xff] %v12027_v59  ;;  %v12037_v59 = vsel %vm310_vm0, %v549_v9, %v8543_v15  ;;  %v8557_v9 = vunpack.i.l.bf16 %v11797_v46  ;;  %v8568_v15 = vunpack.i.h.bf16 %v11807_v58 }
 0x145   : > { %v12031_v39 = vpop.permute.xlu0 %8860  ;;  %9145 = vrot.lane.b32.xlu1 %v9144_v37, %s11048_s17  ;;  %v8563_v37 = vunpack.i.h.bf16 %v11799_v50  ;;  %v12060_v34 = vsel %vm310_vm0, %v11526_v17, %v8547_v16  ;;  %v836_v17 = vld [vmem:[#allocation2 + $0x1a2] sm:$0xff]  ;;  %v12072_v50 = vsel %vm310_vm0, %v11528_v19, %v8548_v30  ;;  %v8582_v19 = vunpack.i.l.bf16 %v11817_v6 }
 0x146   : > { %18467 = vst [vmem:[#allocation59_spill] sm:$0xff] %v12031_v39  ;;  %v8558_v39 = vunpack.i.h.bf16 %v11797_v46  ;;  %v8572_v46 = vunpack.i.l.bf16 %v11809_v63 }
 0x147   : > { %9150 = vrot.lane.b32.xlu0 %v9149_v57, %s11048_s17  ;;  %v12044_v20 = vpop.permute.xlu1 %8865  ;;  %v12052_v57 = vsel %vm310_vm0, %v11540_v23, %v8553_v56  ;;  %v8567_v23 = vunpack.i.l.bf16 %v11807_v58  ;;  %v8573_v56 = vunpack.i.h.bf16 %v11809_v63  ;;  %v8577_v58 = vunpack.i.l.bf16 %v11815_v1 }
 0x148   : > { %v12076_v5 = vsel %vm310_vm0, %v11544_v27, %v8558_v39  ;;  %v12084_v63 = vsel %vm310_vm0, %v11542_v26, %v8557_v9  ;;  %v12096_v1 = vsel %vm310_vm0, %v11557_v31, %v8562_v40  ;;  %v12100_v39 = vsel %vm310_vm0, %v11563_v35, %v8568_v15  ;;  %v18471_v40 = vld [vmem:[#allocation12_spill] sm:$0xff] }
 0x149   : > { %v12056_v62 = vpop.permute.xlu0 %8870  ;;  %9155 = vrot.lane.b32.xlu1 %v9154_v29, %s11048_s17  ;;  %v12088_v29 = vsel %vm310_vm0, %v11559_v32, %v8563_v37  ;;  %v8587_v26 = vunpack.i.l.bf16 %v11823_v7  ;;  %v9174_v32 = vpack.i.bf16 %v836_v17, %v835_v61  ;;  %v12106_v6 = vsel %vm310_vm0, %v11561_v33, %v8567_v23  ;;  %v18469_v33 = vld [vmem:[#allocation10_spill] sm:$0xff]  ;;  %v18470_v37 = vld [vmem:[#allocation9_spill] sm:$0xff] }
 0x14a   : > { %v12110_v51 = vsel %vm310_vm0, %v11579_v43, %v8573_v56  ;;  %v12114_v31 = vsel %vm310_vm0, %v11577_v42, %v8572_v46  ;;  %v12118_v35 = vsel %vm310_vm0, %v11583_v48, %v8578_v52  ;;  %v12128_v30 = vsel %vm310_vm0, %v18469_v33, %v8583_v55  ;;  %v18473_v56 = vld [vmem:[#allocation11_spill] sm:$0xff] }
 0x14b   : > { %9160 = vrot.lane.b32.xlu0 %v9159_v0, %s11048_s17  ;;  %v12080_v16 = vpop.permute.xlu1 %8875  ;;  %v8588_v0 = vunpack.i.h.bf16 %v11823_v7  ;;  %v18468_v7 = vld [vmem:[#allocation8_spill] sm:$0xff]  ;;  %v8593_v43 = vunpack.i.h.bf16 %v11825_v12  ;;  %v8592_v42 = vunpack.i.l.bf16 %v11825_v12  ;;  %v12136_v48 = vsel %vm310_vm0, %v18470_v37, %v8582_v19  ;;  %v18479_v37 = vld [vmem:[#allocation15_spill] sm:$0xff] }
 0x14c   : > { %v12124_v49 = vsel %vm310_vm0, %v18468_v7, %v8577_v58  ;;  %v8598_v15 = vunpack.i.h.bf16 %v11831_v13  ;;  %v12148_v46 = vsel %vm310_vm0, %v18473_v56, %v8587_v26  ;;  %v8603_v12 = vunpack.i.h.bf16 %v11833_v18  ;;  %v18478_v7 = vld [vmem:[#allocation16_spill] sm:$0xff] }
 0x14d   : > { %v12092_v27 = vpop.permute.xlu0 %8880  ;;  %9165 = vrot.lane.b32.xlu1 %v9164_v22, %s11048_s17  ;;  %v8597_v22 = vunpack.i.l.bf16 %v11831_v13  ;;  %v8602_v52 = vunpack.i.l.bf16 %v11833_v18  ;;  %v8608_v61 = vunpack.i.h.bf16 %v11839_v24  ;;  %v8607_v17 = vunpack.i.l.bf16 %v11839_v24  ;;  %v18475_v18 = vld [vmem:[#allocation14_spill] sm:$0xff] }
 0x14e   : > { %v8613_v58 = vunpack.i.h.bf16 %v11841_v25  ;;  %v8612_v13 = vunpack.i.l.bf16 %v11841_v25  ;;  %v18474_v55 = vmov 0.0   ;;  %v12199_v24 = vsel %vm310_vm0, %v18475_v18, %v8593_v43  ;;  %v18476_v25 = vld [vmem:[#allocation13_spill] sm:$0xff] }
 0x14f   : > { %9170 = vrot.lane.b32.xlu0 %v11869_v2, %s11048_s17  ;;  %v12132_v9 = vpop.permute.xlu1 %8885  ;;  %v12140_v2 = vsel %vm310_vm0, %v18471_v40, %v8588_v0  ;;  %424 = vst.msk [vmem:[#allocation4 + $0x10] sm:$0xf] %vm423_vm5, %v18474_v55  ;;  %427 = vst.msk [vmem:[#allocation4 + $0x28] sm:$0xf] %vm423_vm5, %v18474_v55  ;;  %v12203_v19 = vsel %vm310_vm0, %v18476_v25, %v8592_v42  ;;  %v8618_v0 = vunpack.i.h.bf16 %v11847_v36  ;;  %v8617_v26 = vunpack.i.l.bf16 %v11847_v36  ;;  %v18482_v36 = vld [vmem:[#allocation17_spill] sm:$0xff] }
 0x150   : > { %430 = vst.msk [vmem:[#allocation4 + $0x40] sm:$0xf] %vm423_vm5, %v18474_v55  ;;  %433 = vst.msk [vmem:[#allocation4 + $0x58] sm:$0xf] %vm423_vm5, %v18474_v55  ;;  %v12211_v33 = vsel %vm310_vm0, %v18478_v7, %v8598_v15  ;;  %v12215_v40 = vsel %vm310_vm0, %v18479_v37, %v8597_v22  ;;  %v8623_v43 = vunpack.i.h.bf16 %v11849_v41  ;;  %v8622_v56 = vunpack.i.l.bf16 %v11849_v41  ;;  %v18483_v22 = vld [vmem:[#allocation20_spill] sm:$0xff] }
 0x151   : > { %v12144_v23 = vpop.permute.xlu0 %8890  ;;  %9175 = vrot.lane.b32.xlu1 %v9174_v32, %s11048_s17  ;;  %436 = vst.msk [vmem:[#allocation4 + $0x70] sm:$0xf] %vm423_vm5, %v18474_v55  ;;  %439 = vst.msk [vmem:[#allocation4 + $0x88] sm:$0xf] %vm423_vm5, %v18474_v55  ;;  %v12227_v25 = vsel %vm310_vm0, %v18482_v36, %v8602_v52  ;;  %v8628_v15 = vunpack.i.h.bf16 %v11855_v44  ;;  %v8627_v7 = vunpack.i.l.bf16 %v11855_v44  ;;  %v12233_v37 = vsel %vm310_vm0, %v18483_v22, %v8608_v61 }
 0x152   : > { %18472 = vst [vmem:[#allocation8_spill] sm:$0xff] %v12144_v23  ;;  %442 = vst.msk [vmem:[#allocation4 + $0xa0] sm:$0xf] %vm423_vm5, %v18474_v55  ;;  %v12245_v52 = vsel %vm310_vm0, %v11657_v10, %v8612_v13  ;;  %v12253_v44 = vsel %vm310_vm0, %v11661_v53, %v8617_v26  ;;  %v8633_v61 = vunpack.i.h.bf16 %v11857_v45  ;;  %v12261_v10 = vsel %vm1893_vm4, %v12037_v59, %v8623_v43  ;;  %v2580_v26 = vld [vmem:[#allocation4 + $0x2] sm:$0xff] }
 0x153   : > { %445 = vst.msk [vmem:[#allocation4 + $0xb8] sm:$0xf] %vm423_vm5, %v18474_v55  ;;  %448 = vst.msk [vmem:[#allocation4 + $0xd0] sm:$0xf] %vm423_vm5, %v18474_v55  ;;  %v12207_v32 = vpop.permute.xlu1 %8895  ;;  %v8638_v13 = vunpack.i.h.bf16 %v11863_v60  ;;  %v8637_v53 = vunpack.i.l.bf16 %v11863_v60  ;;  %v12277_v36 = vsel %vm1893_vm4, %v12072_v50, %v8628_v15  ;;  %v8643_v59 = vunpack.i.h.bf16 %v11865_v21 }
 0x154   : > { %451 = vst.msk [vmem:[#allocation4 + $0xe8] sm:$0xf] %vm423_vm5, %v18474_v55  ;;  %454 = vst.msk [vmem:[#allocation4 + $0x100] sm:$0xf] %vm423_vm5, %v18474_v55  ;;  %v8648_v60 = vunpack.i.h.bf16 %v11873_v3  ;;  %v8653_v15 = vunpack.i.h.bf16 %v11875_v4 }
 0x155   : > { %457 = vst.msk [vmem:[#allocation4 + $0x118] sm:$0xf] %vm423_vm5, %v18474_v55  ;;  %460 = vst.msk [vmem:[#allocation4 + $0x130] sm:$0xf] %vm423_vm5, %v18474_v55  ;;  %v12219_v42 = vpop.permute.xlu0 %8900  ;;  %v12297_v23 = vsel %vm1893_vm4, %v12076_v5, %v8638_v13  ;;  %v8658_v5 = vunpack.i.h.bf16 %v11881_v11 }
 0x156   : > { %463 = vst.msk [vmem:[#allocation4 + $0x148] sm:$0xf] %vm423_vm5, %v18474_v55  ;;  %466 = vst.msk [vmem:[#allocation4 + $0x160] sm:$0xf] %vm423_vm5, %v18474_v55  ;;  %v2549_v43 = vld [vmem:[#allocation4 + $0x9] sm:$0xff] }
 0x157   : > { %469 = vst.msk [vmem:[#allocation4 + $0x178] sm:$0xf] %vm423_vm5, %v18474_v55  ;;  %472 = vst.msk [vmem:[#allocation4 + $0x190] sm:$0xf] %vm423_vm5, %v18474_v55  ;;  %v2581_v22 = vld [vmem:[#allocation4 + $0xa] sm:$0xff] }
 0x158   : > { %475 = vst.msk [vmem:[#allocation4 + $0x1a8] sm:$0xf] %vm423_vm5, %v18474_v55  ;;  %478 = vst.msk [vmem:[#allocation4 + $0x1c0] sm:$0xf] %vm423_vm5, %v18474_v55 }
 0x159   : > { %481 = vst.msk [vmem:[#allocation4 + $0x1d8] sm:$0xf] %vm423_vm5, %v18474_v55  ;;  %18477 = vst [vmem:[#allocation10_spill] sm:$0xff] %v12207_v32  ;;  %v18481_v55 = vld [vmem:[#allocation18_spill] sm:$0xff]  ;;  %v18484_v32 = vld [vmem:[#allocation19_spill] sm:$0xff] }
 0x15a   : > { %18480 = vst [vmem:[#allocation9_spill] sm:$0xff] %v12219_v42  ;;  %v12223_v18 = vsel %vm310_vm0, %v18481_v55, %v8603_v12  ;;  %v12237_v41 = vsel %vm310_vm0, %v18484_v32, %v8607_v17  ;;  %v12241_v12 = vsel %vm310_vm0, %v11659_v8, %v8613_v58  ;;  %v12249_v55 = vsel %vm310_vm0, %v11663_v54, %v8618_v0  ;;  %v12257_v32 = vpop.permute.xlu1 %8905  ;;  %v2548_v8 = vld [vmem:[#allocation4 + $0x1] sm:$0xff]  ;;  %v2550_v58 = vld [vmem:[#allocation4 + $0x19] sm:$0xff]  ;;  %v12269_v0 = vpop.permute.xlu0 %8910 }
 0x15b   : > { %v8632_v17 = vunpack.i.l.bf16 %v11857_v45  ;;  %18485 = vst [vmem:[#allocation12_spill] sm:$0xff] %v12257_v32  ;;  %v12265_v54 = vsel %vm1893_vm4, %v12040_v28, %v8622_v56  ;;  %18486 = vst [vmem:[#allocation11_spill] sm:$0xff] %v12269_v0  ;;  %v12273_v45 = vsel %vm1893_vm4, %v12060_v34, %v8627_v7  ;;  %v8642_v28 = vunpack.i.l.bf16 %v11865_v21  ;;  %v2551_v56 = vld [vmem:[#allocation4 + $0x21] sm:$0xff] }
 0x15c   : > { %v8647_v0 = vunpack.i.l.bf16 %v11873_v3  ;;  %v9179_v32 = vpack.i.bf16 %v2549_v43, %v2548_v8  ;;  %v9184_v42 = vpack.i.bf16 %v2551_v56, %v2550_v58  ;;  %v12285_v34 = vsel %vm1893_vm4, %v12052_v57, %v8633_v61 }
 0x15d   : > { %v12289_v50 = vsel %vm1893_vm4, %v12048_v47, %v8632_v17  ;;  %v8652_v21 = vunpack.i.l.bf16 %v11875_v4  ;;  %v12301_v3 = vsel %vm1893_vm4, %v12084_v63, %v8637_v53  ;;  %v9189_v47 = vpack.i.bf16 %v2581_v22, %v2580_v26 }
 0x15e   : > { %v12293_v7 = vpop.permute.xlu1 %8915  ;;  %v12303_v57 = vpop.permute.xlu0 %8920  ;;  %9180 = vrot.lane.b32.xlu0 %v9179_v32, %s11044_s21  ;;  %9185 = vrot.lane.b32.xlu1 %v9184_v42, %s11044_s21  ;;  %v12309_v4 = vsel %vm1893_vm4, %v12096_v1, %v8642_v28  ;;  %v12313_v61 = vsel %vm1893_vm4, %v12088_v29, %v8643_v59  ;;  %v8657_v63 = vunpack.i.l.bf16 %v11881_v11  ;;  %v12319_v17 = vsel %vm1893_vm4, %v12100_v39, %v8648_v60  ;;  %v18489_v59 = vld [vmem:[#allocation23_spill] sm:$0xff]  ;;  %v18490_v60 = vld [vmem:[#allocation24_spill] sm:$0xff] }
 0x15f   : > { %v12323_v42 = vsel %vm1893_vm4, %v12106_v6, %v8647_v0  ;;  %v8663_v32 = vunpack.i.h.bf16 %v11883_v38  ;;  %v8662_v1 = vunpack.i.l.bf16 %v11883_v38  ;;  %v12329_v29 = vsel %vm1893_vm4, %v12114_v31, %v8652_v21  ;;  %v18487_v6 = vld [vmem:[#allocation21_spill] sm:$0xff]  ;;  %v18488_v38 = vld [vmem:[#allocation22_spill] sm:$0xff] }
 0x160   : > { %v12333_v8 = vsel %vm1893_vm4, %v12110_v51, %v8653_v15  ;;  %v8668_v11 = vunpack.i.h.bf16 %v11889_v14  ;;  %v8667_v39 = vunpack.i.l.bf16 %v11889_v14  ;;  %v8673_v13 = vunpack.i.h.bf16 %v18487_v6 }
 0x161   : > { %v8672_v53 = vunpack.i.l.bf16 %v18487_v6  ;;  %v8678_v0 = vunpack.i.h.bf16 %v18488_v38  ;;  %v8677_v31 = vunpack.i.l.bf16 %v18488_v38  ;;  %v12348_v51 = vsel %vm1893_vm4, %v12118_v35, %v8658_v5 }
 0x162   : > { %v12337_v58 = vpop.permute.xlu1 %8925  ;;  %v12343_v26 = vpop.permute.xlu0 %8930  ;;  %9190 = vrot.lane.b32.xlu0 %v9189_v47, %s11048_s17  ;;  %v12352_v14 = vsel %vm1893_vm4, %v12124_v49, %v8657_v63  ;;  %v8683_v28 = vunpack.i.h.bf16 %v18489_v59  ;;  %v8682_v43 = vunpack.i.l.bf16 %v18489_v59  ;;  %v12358_v56 = vsel %vm1893_vm4, %v12136_v48, %v8662_v1  ;;  %v18491_v47 = vld [vmem:[#allocation25_spill] sm:$0xff] }
 0x163   : > { %v12362_v22 = vsel %vm1893_vm4, %v12128_v30, %v8663_v32  ;;  %v8688_v15 = vunpack.i.h.bf16 %v18490_v60  ;;  %v8687_v35 = vunpack.i.l.bf16 %v18490_v60  ;;  %v12368_v49 = vsel %vm1893_vm4, %v12140_v2, %v8668_v11  ;;  %v18497_v60 = vld [vmem:[#allocation30_spill] sm:$0xff] }
 0x164   : > { %v12372_v21 = vsel %vm1893_vm4, %v12148_v46, %v8667_v39  ;;  %v8693_v5 = vunpack.i.h.bf16 %v18491_v47  ;;  %v8692_v48 = vunpack.i.l.bf16 %v18491_v47  ;;  %v12380_v30 = vsel %vm1893_vm4, %v12203_v19, %v8672_v53 }
 0x165   : > { %v12384_v32 = vsel %vm1893_vm4, %v12199_v24, %v8673_v13  ;;  %v12388_v2 = vsel %vm1893_vm4, %v12211_v33, %v8678_v0  ;;  %v12392_v46 = vsel %vm1893_vm4, %v12215_v40, %v8677_v31  ;;  %v12398_v11 = vsel %vm1893_vm4, %v12227_v25, %v8682_v43  ;;  %v18493_v24 = vld [vmem:[#allocation26_spill] sm:$0xff]  ;;  %v18494_v13 = vld [vmem:[#allocation27_spill] sm:$0xff]  ;;  %v18495_v0 = vld [vmem:[#allocation28_spill] sm:$0xff] }
 0x166   : > { %v12376_v63 = vpop.permute.xlu1 %8935  ;;  %v12394_v1 = vpop.permute.xlu0 %8940  ;;  %v12402_v19 = vsel %vm1893_vm4, %v12223_v18, %v8683_v28  ;;  %v8698_v39 = vunpack.i.h.bf16 %v18493_v24  ;;  %v8697_v6 = vunpack.i.l.bf16 %v18493_v24  ;;  %v12408_v33 = vsel %vm1893_vm4, %v12233_v37, %v8688_v15 }
 0x167   : > { %18492 = vst [vmem:[#allocation14_spill] sm:$0xff] %v12376_v63  ;;  %v12412_v40 = vsel %vm1893_vm4, %v12237_v41, %v8687_v35  ;;  %v8703_v53 = vunpack.i.h.bf16 %v18494_v13  ;;  %v8702_v25 = vunpack.i.l.bf16 %v18494_v13  ;;  %v12418_v18 = vsel %vm1893_vm4, %v12245_v52, %v8692_v48  ;;  %v18496_v41 = vld [vmem:[#allocation29_spill] sm:$0xff] }
 0x168   : > { %v12422_v38 = vsel %vm1893_vm4, %v12241_v12, %v8693_v5  ;;  %v8708_v31 = vunpack.i.h.bf16 %v18495_v0  ;;  %v8707_v37 = vunpack.i.l.bf16 %v18495_v0  ;;  %v8713_v28 = vunpack.i.h.bf16 %v18496_v41  ;;  %v18498_v5 = vld [vmem:[#allocation31_spill] sm:$0xff] }
 0x169   : > { %v8712_v43 = vunpack.i.l.bf16 %v18496_v41  ;;  %v8718_v15 = vunpack.i.h.bf16 %v18497_v60  ;;  %v8717_v35 = vunpack.i.l.bf16 %v18497_v60  ;;  %v12436_v12 = vsel %vm1893_vm4, %v12249_v55, %v8698_v39  ;;  %v18499_v41 = vld [vmem:[#allocation32_spill] sm:$0xff] }
 0x16a   : > { %v12426_v59 = vpop.permute.xlu1 %8945  ;;  %v12432_v52 = vpop.permute.xlu0 %8950  ;;  %v12440_v47 = vsel %vm1893_vm4, %v12253_v44, %v8697_v6  ;;  %v8723_v48 = vunpack.i.h.bf16 %v18498_v5  ;;  %v8722_v24 = vunpack.i.l.bf16 %v18498_v5  ;;  %v12446_v13 = vsel %vm1926_vm6, %v12265_v54, %v8702_v25  ;;  %v18500_v6 = vld [vmem:[#allocation33_spill] sm:$0xff] }
 0x16b   : > { %v12450_v0 = vsel %vm1926_vm6, %v12261_v10, %v8703_v53  ;;  %v8728_v60 = vunpack.i.h.bf16 %v18499_v41  ;;  %v8727_v55 = vunpack.i.l.bf16 %v18499_v41  ;;  %v12456_v44 = vsel %vm1926_vm6, %v12273_v45, %v8707_v37 }
 0x16c   : > { %v12460_v39 = vsel %vm1926_vm6, %v12277_v36, %v8708_v31  ;;  %v8733_v5 = vunpack.i.h.bf16 %v18500_v6  ;;  %v8732_v54 = vunpack.i.l.bf16 %v18500_v6  ;;  %v12468_v10 = vsel %vm1926_vm6, %v12289_v50, %v8712_v43 }
 0x16d   : > { %v12472_v53 = vsel %vm1926_vm6, %v12285_v34, %v8713_v28  ;;  %v12476_v45 = vsel %vm1926_vm6, %v12301_v3, %v8717_v35  ;;  %v12480_v36 = vsel %vm1926_vm6, %v12297_v23, %v8718_v15  ;;  %v12486_v37 = vsel %vm1926_vm6, %v12309_v4, %v8722_v24  ;;  %v18503_v34 = vld [vmem:[#allocation34_spill] sm:$0xff]  ;;  %v18504_v15 = vld [vmem:[#allocation35_spill] sm:$0xff]  ;;  %v18505_v24 = vld [vmem:[#allocation36_spill] sm:$0xff] }
 0x16e   : > { %v12464_v25 = vpop.permute.xlu1 %8955  ;;  %v12482_v31 = vpop.permute.xlu0 %8960  ;;  %v12490_v50 = vsel %vm1926_vm6, %v12313_v61, %v8723_v48  ;;  %v8738_v28 = vunpack.i.h.bf16 %v18503_v34  ;;  %v8737_v43 = vunpack.i.l.bf16 %v18503_v34  ;;  %v12496_v3 = vsel %vm1926_vm6, %v12323_v42, %v8727_v55  ;;  %v18508_v34 = vld [vmem:[#allocation38_spill] sm:$0xff] }
 0x16f   : > { %18501 = vst [vmem:[#allocation13_spill] sm:$0xff] %v12464_v25  ;;  %18502 = vst [vmem:[#allocation16_spill] sm:$0xff] %v12482_v31  ;;  %v12500_v23 = vsel %vm1926_vm6, %v12319_v17, %v8728_v60  ;;  %v8743_v35 = vunpack.i.h.bf16 %v18504_v15  ;;  %v8742_v4 = vunpack.i.l.bf16 %v18504_v15  ;;  %v12506_v61 = vsel %vm1926_vm6, %v12329_v29, %v8732_v54  ;;  %v18507_v17 = vld [vmem:[#allocation37_spill] sm:$0xff]  ;;  %v18510_v54 = vld [vmem:[#allocation39_spill] sm:$0xff] }
 0x170   : > { %v12510_v48 = vsel %vm1926_vm6, %v12333_v8, %v8733_v5  ;;  %v8748_v41 = vunpack.i.h.bf16 %v18505_v24  ;;  %v8747_v42 = vunpack.i.l.bf16 %v18505_v24  ;;  %v8753_v60 = vunpack.i.h.bf16 %v18507_v17 }
 0x171   : > { %v8752_v6 = vunpack.i.l.bf16 %v18507_v17  ;;  %v8758_v15 = vunpack.i.h.bf16 %v18508_v34  ;;  %v8757_v31 = vunpack.i.l.bf16 %v18508_v34  ;;  %v12524_v8 = vsel %vm1926_vm6, %v12352_v14, %v8737_v43  ;;  %v18512_v43 = vld [vmem:[#allocation41_spill] sm:$0xff] }
 0x172   : > { %v12514_v55 = vpop.permute.xlu1 %8965  ;;  %v12520_v29 = vpop.permute.xlu0 %8970  ;;  %v12528_v5 = vsel %vm1926_vm6, %v12348_v51, %v8738_v28  ;;  %v8763_v24 = vunpack.i.h.bf16 %v18510_v54  ;;  %v12534_v17 = vsel %vm1926_vm6, %v12358_v56, %v8742_v4  ;;  %v12538_v34 = vsel %vm1926_vm6, %v12362_v22, %v8743_v35 }
 0x173   : > { %18506 = vst [vmem:[#allocation15_spill] sm:$0xff] %v12514_v55  ;;  %18509 = vst [vmem:[#allocation18_spill] sm:$0xff] %v12520_v29  ;;  %v8762_v55 = vunpack.i.l.bf16 %v18510_v54  ;;  %v18511_v29 = vld [vmem:[#allocation40_spill] sm:$0xff]  ;;  %v12544_v51 = vsel %vm1926_vm6, %v12372_v21, %v8747_v42  ;;  %v12548_v28 = vsel %vm1926_vm6, %v12368_v49, %v8748_v41  ;;  %v8773_v54 = vunpack.i.h.bf16 %v18512_v43 }
 0x174   : > { %v8768_v25 = vunpack.i.h.bf16 %v18511_v29  ;;  %v8767_v14 = vunpack.i.l.bf16 %v18511_v29  ;;  %v8772_v56 = vunpack.i.l.bf16 %v18512_v43  ;;  %v12556_v22 = vsel %vm1926_vm6, %v12380_v30, %v8752_v6  ;;  %v18517_v29 = vld [vmem:[#allocation44_spill] sm:$0xff] }
 0x175   : > { %v12560_v35 = vsel %vm1926_vm6, %v12384_v32, %v8753_v60  ;;  %v12564_v21 = vsel %vm1926_vm6, %v12392_v46, %v8757_v31  ;;  %v12568_v49 = vsel %vm1926_vm6, %v12388_v2, %v8758_v15  ;;  %v12574_v42 = vsel %vm1926_vm6, %v12398_v11, %v8762_v55  ;;  %v18515_v32 = vld [vmem:[#allocation42_spill] sm:$0xff]  ;;  %v18516_v31 = vld [vmem:[#allocation43_spill] sm:$0xff] }
 0x176   : > { %v12552_v4 = vpop.permute.xlu1 %8975  ;;  %v12570_v41 = vpop.permute.xlu0 %8980  ;;  %v12578_v30 = vsel %vm1926_vm6, %v12402_v19, %v8763_v24  ;;  %v8778_v60 = vunpack.i.h.bf16 %v18515_v32  ;;  %v8777_v6 = vunpack.i.l.bf16 %v18515_v32  ;;  %v12584_v46 = vsel %vm1926_vm6, %v12412_v40, %v8767_v14  ;;  %v18520_v32 = vld [vmem:[#allocation46_spill] sm:$0xff] }
 0x177   : > { %18513 = vst [vmem:[#allocation17_spill] sm:$0xff] %v12552_v4  ;;  %18514 = vst [vmem:[#allocation20_spill] sm:$0xff] %v12570_v41  ;;  %v12588_v2 = vsel %vm1926_vm6, %v12408_v33, %v8768_v25  ;;  %v8783_v15 = vunpack.i.h.bf16 %v18516_v31  ;;  %v8782_v11 = vunpack.i.l.bf16 %v18516_v31  ;;  %v12594_v19 = vsel %vm1926_vm6, %v12418_v18, %v8772_v56  ;;  %v18519_v33 = vld [vmem:[#allocation45_spill] sm:$0xff]  ;;  %v18522_v56 = vld [vmem:[#allocation47_spill] sm:$0xff] }
 0x178   : > { %v12598_v55 = vsel %vm1926_vm6, %v12422_v38, %v8773_v54  ;;  %v8788_v24 = vunpack.i.h.bf16 %v18517_v29  ;;  %v8787_v40 = vunpack.i.l.bf16 %v18517_v29  ;;  %v8793_v25 = vunpack.i.h.bf16 %v18519_v33 }
 0x179   : > { %v8792_v43 = vunpack.i.l.bf16 %v18519_v33  ;;  %v8798_v31 = vunpack.i.h.bf16 %v18520_v32  ;;  %v8797_v41 = vunpack.i.l.bf16 %v18520_v32  ;;  %v12612_v38 = vsel %vm1926_vm6, %v12440_v47, %v8777_v6  ;;  %v18524_v6 = vld [vmem:[#allocation49_spill] sm:$0xff] }
 0x17a   : > { %v12602_v14 = vpop.permute.xlu1 %8985  ;;  %v12608_v18 = vpop.permute.xlu0 %8990  ;;  %v12616_v54 = vsel %vm1926_vm6, %v12436_v12, %v8778_v60  ;;  %v8803_v29 = vunpack.i.h.bf16 %v18522_v56  ;;  %v12622_v33 = vsel %vm420_vm2, %v12446_v13, %v8782_v11  ;;  %v12626_v32 = vsel %vm420_vm2, %v12450_v0, %v8783_v15 }
 0x17b   : > { %18518 = vst [vmem:[#allocation19_spill] sm:$0xff] %v12602_v14  ;;  %18521 = vst [vmem:[#allocation21_spill] sm:$0xff] %v12608_v18  ;;  %v8802_v14 = vunpack.i.l.bf16 %v18522_v56  ;;  %v18523_v18 = vld [vmem:[#allocation48_spill] sm:$0xff]  ;;  %v12632_v12 = vsel %vm420_vm2, %v12456_v44, %v8787_v40  ;;  %v12636_v60 = vsel %vm420_vm2, %v12460_v39, %v8788_v24  ;;  %v8813_v56 = vunpack.i.h.bf16 %v18524_v6 }
 0x17c   : > { %v8808_v4 = vunpack.i.h.bf16 %v18523_v18  ;;  %v8807_v47 = vunpack.i.l.bf16 %v18523_v18  ;;  %v8812_v13 = vunpack.i.l.bf16 %v18524_v6  ;;  %v12644_v0 = vsel %vm420_vm2, %v12468_v10, %v8792_v43  ;;  %v18529_v18 = vld [vmem:[#allocation52_spill] sm:$0xff] }
 0x17d   : > { %v12648_v15 = vsel %vm420_vm2, %v12472_v53, %v8793_v25  ;;  %v12652_v44 = vsel %vm420_vm2, %v12476_v45, %v8797_v41  ;;  %v12656_v39 = vsel %vm420_vm2, %v12480_v36, %v8798_v31  ;;  %v12662_v40 = vsel %vm420_vm2, %v12486_v37, %v8802_v14  ;;  %v18527_v53 = vld [vmem:[#allocation50_spill] sm:$0xff]  ;;  %v18528_v41 = vld [vmem:[#allocation51_spill] sm:$0xff] }
 0x17e   : > { %v12640_v11 = vpop.permute.xlu1 %8995  ;;  %v12658_v24 = vpop.permute.xlu0 %9000  ;;  %v12666_v10 = vsel %vm420_vm2, %v12490_v50, %v8803_v29  ;;  %v8818_v25 = vunpack.i.h.bf16 %v18527_v53  ;;  %v8817_v43 = vunpack.i.l.bf16 %v18527_v53  ;;  %v12672_v45 = vsel %vm420_vm2, %v12496_v3, %v8807_v47  ;;  %v18532_v53 = vld [vmem:[#allocation54_spill] sm:$0xff] }
 0x17f   : > { %18525 = vst [vmem:[#allocation22_spill] sm:$0xff] %v12640_v11  ;;  %18526 = vst [vmem:[#allocation23_spill] sm:$0xff] %v12658_v24  ;;  %v12676_v36 = vsel %vm420_vm2, %v12500_v23, %v8808_v4  ;;  %v8823_v31 = vunpack.i.h.bf16 %v18528_v41  ;;  %v8822_v37 = vunpack.i.l.bf16 %v18528_v41  ;;  %v12682_v50 = vsel %vm420_vm2, %v12506_v61, %v8812_v13  ;;  %v18531_v23 = vld [vmem:[#allocation53_spill] sm:$0xff] }
 0x180   : > { %v12686_v14 = vsel %vm420_vm2, %v12510_v48, %v8813_v56  ;;  %v8828_v29 = vunpack.i.h.bf16 %v18529_v18  ;;  %v8827_v3 = vunpack.i.l.bf16 %v18529_v18  ;;  %v8833_v4 = vunpack.i.h.bf16 %v18531_v23  ;;  %v18534_v18 = vld [vmem:[#allocation55_spill] sm:$0xff] }
 0x181   : > { %v8832_v6 = vunpack.i.l.bf16 %v18531_v23  ;;  %v8838_v41 = vunpack.i.h.bf16 %v18532_v53  ;;  %v8837_v61 = vunpack.i.l.bf16 %v18532_v53  ;;  %v12700_v48 = vsel %vm420_vm2, %v12524_v8, %v8817_v43  ;;  %v18536_v43 = vld [vmem:[#allocation57_spill] sm:$0xff] }
 0x182   : > { %v12690_v47 = vpop.permute.xlu1 %9005  ;;  %v12696_v13 = vpop.permute.xlu0 %9010  ;;  %v12704_v56 = vsel %vm420_vm2, %v12528_v5, %v8818_v25  ;;  %v8842_v24 = vunpack.i.l.bf16 %v18534_v18  ;;  %v12710_v23 = vsel %vm420_vm2, %v12534_v17, %v8822_v37  ;;  %v12714_v53 = vsel %vm420_vm2, %v12538_v34, %v8823_v31 }
 0x183   : > { %18530 = vst [vmem:[#allocation24_spill] sm:$0xff] %v12690_v47  ;;  %18533 = vst [vmem:[#allocation25_spill] sm:$0xff] %v12696_v13  ;;  %v8843_v47 = vunpack.i.h.bf16 %v18534_v18  ;;  %v18535_v13 = vld [vmem:[#allocation56_spill] sm:$0xff]  ;;  %v12720_v5 = vsel %vm420_vm2, %v12544_v51, %v8827_v3  ;;  %v12724_v25 = vsel %vm420_vm2, %v12548_v28, %v8828_v29  ;;  %v8853_v18 = vunpack.i.h.bf16 %v18536_v43 }
 0x184   : > { %v8848_v11 = vunpack.i.h.bf16 %v18535_v13  ;;  %v8847_v8 = vunpack.i.l.bf16 %v18535_v13  ;;  %v8852_v17 = vunpack.i.l.bf16 %v18536_v43  ;;  %v12732_v34 = vsel %vm420_vm2, %v12556_v22, %v8832_v6 }
 0x185   : > { %v12736_v31 = vsel %vm420_vm2, %v12560_v35, %v8833_v4  ;;  %v12740_v51 = vsel %vm420_vm2, %v12564_v21, %v8837_v61  ;;  %v12744_v28 = vsel %vm420_vm2, %v12568_v49, %v8838_v41  ;;  %v12750_v3 = vsel %vm420_vm2, %v12574_v42, %v8842_v24  ;;  %v18538_v35 = vld [vmem:[#allocation58_spill] sm:$0xff]  ;;  %v18539_v41 = vld [vmem:[#allocation59_spill] sm:$0xff] }
 0x186   : > { %v12728_v37 = vpop.permute.xlu1 %9015  ;;  %v12746_v29 = vpop.permute.xlu0 %9020  ;;  %v12754_v22 = vsel %vm420_vm2, %v12578_v30, %v8843_v47  ;;  %v8858_v4 = vunpack.i.h.bf16 %v18538_v35  ;;  %v8857_v6 = vunpack.i.l.bf16 %v18538_v35  ;;  %v12760_v21 = vsel %vm420_vm2, %v12584_v46, %v8847_v8 }
 0x187   : > { %18537 = vst [vmem:[#allocation26_spill] sm:$0xff] %v12728_v37  ;;  %v12764_v49 = vsel %vm420_vm2, %v12588_v2, %v8848_v11  ;;  %v8863_v61 = vunpack.i.h.bf16 %v18539_v41  ;;  %v8862_v42 = vunpack.i.l.bf16 %v18539_v41  ;;  %v12770_v30 = vsel %vm420_vm2, %v12594_v19, %v8852_v17 }
 0x188   : > { %v12774_v24 = vsel %vm420_vm2, %v12598_v55, %v8853_v18  ;;  %v8868_v47 = vunpack.i.h.bf16 %v12044_v20  ;;  %v8867_v46 = vunpack.i.l.bf16 %v12044_v20  ;;  %v8873_v2 = vunpack.i.h.bf16 %v12056_v62 }
 0x189   : > { %v8872_v11 = vunpack.i.l.bf16 %v12056_v62  ;;  %v8878_v8 = vunpack.i.h.bf16 %v12080_v16  ;;  %v8877_v43 = vunpack.i.l.bf16 %v12080_v16  ;;  %v12788_v55 = vsel %vm420_vm2, %v12612_v38, %v8857_v6 }
 0x18a   : > { %v12778_v13 = vpop.permute.xlu1 %9025  ;;  %v12784_v19 = vpop.permute.xlu0 %9030  ;;  %18540 = vst [vmem:[#allocation27_spill] sm:$0xff] %v12788_v55  ;;  %v12792_v18 = vsel %vm420_vm2, %v12616_v54, %v8858_v4  ;;  %v8883_v20 = vunpack.i.h.bf16 %v12092_v27  ;;  %v8882_v17 = vunpack.i.l.bf16 %v12092_v27  ;;  %v12798_v62 = vsel %vm1991_vm7, %v12622_v33, %v8862_v42  ;;  %v18542_v27 = vld [vmem:[#allocation8_spill] sm:$0xff]  ;;  %v18561_v55 = vld [vmem:[#allocation25_spill] sm:$0xff] }
 0x18b   : > { %18541 = vst [vmem:[#allocation28_spill] sm:$0xff] %v12792_v18  ;;  %v12802_v16 = vsel %vm1991_vm7, %v12626_v32, %v8863_v61  ;;  %v8888_v35 = vunpack.i.h.bf16 %v12132_v9  ;;  %v8887_v38 = vunpack.i.l.bf16 %v12132_v9  ;;  %v12808_v54 = vsel %vm1991_vm7, %v12632_v12, %v8867_v46 }
 0x18c   : > { %v12812_v4 = vsel %vm1991_vm7, %v12636_v60, %v8868_v47  ;;  %v8893_v6 = vunpack.i.h.bf16 %v18542_v27  ;;  %v8892_v33 = vunpack.i.l.bf16 %v18542_v27  ;;  %v12820_v32 = vsel %vm1991_vm7, %v12644_v0, %v8872_v11 }
 0x18d   : > { %v12824_v9 = vsel %vm1991_vm7, %v12648_v15, %v8873_v2  ;;  %v12828_v12 = vsel %vm1991_vm7, %v12652_v44, %v8877_v43  ;;  %v12832_v60 = vsel %vm1991_vm7, %v12656_v39, %v8878_v8  ;;  %v12838_v42 = vsel %vm1991_vm7, %v12662_v40, %v8882_v17  ;;  %v18543_v15 = vld [vmem:[#allocation10_spill] sm:$0xff]  ;;  %v18544_v2 = vld [vmem:[#allocation9_spill] sm:$0xff]  ;;  %v18545_v43 = vld [vmem:[#allocation12_spill] sm:$0xff] }
 0x18e   : > { %v12816_v41 = vpop.permute.xlu1 %9035  ;;  %v12834_v61 = vpop.permute.xlu0 %9040  ;;  %v12842_v0 = vsel %vm1991_vm7, %v12666_v10, %v8883_v20  ;;  %v8898_v47 = vunpack.i.h.bf16 %v18543_v15  ;;  %v8897_v46 = vunpack.i.l.bf16 %v18543_v15  ;;  %v12848_v44 = vsel %vm1991_vm7, %v12672_v45, %v8887_v38 }
 0x18f   : > { %v12852_v39 = vsel %vm1991_vm7, %v12676_v36, %v8888_v35  ;;  %v8903_v11 = vunpack.i.h.bf16 %v18544_v2  ;;  %v8902_v40 = vunpack.i.l.bf16 %v18544_v2  ;;  %v12858_v10 = vsel %vm1991_vm7, %v12682_v50, %v8892_v33  ;;  %v18546_v36 = vld [vmem:[#allocation11_spill] sm:$0xff] }
 0x190   : > { %v12862_v8 = vsel %vm1991_vm7, %v12686_v14, %v8893_v6  ;;  %v8908_v45 = vunpack.i.h.bf16 %v18545_v43  ;;  %v8907_v20 = vunpack.i.l.bf16 %v18545_v43  ;;  %v8913_v35 = vunpack.i.h.bf16 %v18546_v36 }
 0x191   : > { %v8912_v38 = vunpack.i.l.bf16 %v18546_v36  ;;  %v8918_v27 = vunpack.i.h.bf16 %v12293_v7  ;;  %v8917_v15 = vunpack.i.l.bf16 %v12293_v7  ;;  %v12876_v14 = vsel %vm1991_vm7, %v12700_v48, %v8897_v46 }
 0x192   : > { %v12866_v17 = vpop.permute.xlu1 %9045  ;;  %v12872_v50 = vpop.permute.xlu0 %9050  ;;  %v12880_v6 = vsel %vm1991_vm7, %v12704_v56, %v8898_v47  ;;  %v8923_v33 = vunpack.i.h.bf16 %v12303_v57  ;;  %v8922_v2 = vunpack.i.l.bf16 %v12303_v57  ;;  %v12886_v43 = vsel %vm1991_vm7, %v12710_v23, %v8902_v40 }
 0x193   : > { %v12890_v7 = vsel %vm1991_vm7, %v12714_v53, %v8903_v11  ;;  %v8928_v36 = vunpack.i.h.bf16 %v12337_v58  ;;  %v8927_v48 = vunpack.i.l.bf16 %v12337_v58  ;;  %v12896_v56 = vsel %vm1991_vm7, %v12720_v5, %v8907_v20 }
 0x194   : > { %18547 = vst [vmem:[#allocation29_spill] sm:$0xff] %v12896_v56  ;;  %v12900_v47 = vsel %vm1991_vm7, %v12724_v25, %v8908_v45  ;;  %v8933_v57 = vunpack.i.h.bf16 %v12343_v26  ;;  %v8932_v23 = vunpack.i.l.bf16 %v12343_v26  ;;  %v12908_v53 = vsel %vm1991_vm7, %v12732_v34, %v8912_v38 }
 0x195   : > { %18548 = vst [vmem:[#allocation30_spill] sm:$0xff] %v12900_v47  ;;  %v12912_v58 = vsel %vm1991_vm7, %v12736_v31, %v8913_v35  ;;  %v12916_v5 = vsel %vm1991_vm7, %v12740_v51, %v8917_v15  ;;  %v12920_v25 = vsel %vm1991_vm7, %v12744_v28, %v8918_v27  ;;  %v12926_v26 = vsel %vm1991_vm7, %v12750_v3, %v8922_v2  ;;  %v18549_v27 = vld [vmem:[#allocation13_spill] sm:$0xff] }
 0x196   : > { %v12904_v46 = vpop.permute.xlu1 %9055  ;;  %v12922_v11 = vpop.permute.xlu0 %9060  ;;  %v12930_v34 = vsel %vm1991_vm7, %v12754_v22, %v8923_v33  ;;  %v8943_v31 = vunpack.i.h.bf16 %v12394_v1  ;;  %v8942_v40 = vunpack.i.l.bf16 %v12394_v1  ;;  %v12936_v51 = vsel %vm1991_vm7, %v12760_v21, %v8927_v48  ;;  %v18550_v33 = vld [vmem:[#allocation16_spill] sm:$0xff] }
 0x197   : > { %v12940_v28 = vsel %vm1991_vm7, %v12764_v49, %v8928_v36  ;;  %v8948_v45 = vunpack.i.h.bf16 %v12426_v59  ;;  %v8947_v3 = vunpack.i.l.bf16 %v12426_v59  ;;  %v12946_v22 = vsel %vm1991_vm7, %v12770_v30, %v8932_v23  ;;  %v18551_v23 = vld [vmem:[#allocation15_spill] sm:$0xff] }
 0x198   : > { %v12950_v20 = vsel %vm1991_vm7, %v12774_v24, %v8933_v57  ;;  %v8953_v1 = vunpack.i.h.bf16 %v12432_v52  ;;  %v8952_v21 = vunpack.i.l.bf16 %v12432_v52  ;;  %v8958_v59 = vunpack.i.h.bf16 %v18549_v27 }
 0x199   : > { %v8957_v15 = vunpack.i.l.bf16 %v18549_v27  ;;  %v8963_v2 = vunpack.i.h.bf16 %v18550_v33  ;;  %v8962_v24 = vunpack.i.l.bf16 %v18550_v33  ;;  %v2025_v36 = vsel %vm2024_vm8, %v12798_v62, %v8942_v40  ;;  %v18552_v40 = vld [vmem:[#allocation18_spill] sm:$0xff] }
 0x19a   : > { %v12954_v35 = vpop.permute.xlu1 %9065  ;;  %v12960_v30 = vpop.permute.xlu0 %9070  ;;  %v2026_v52 = vsel %vm2024_vm8, %v12802_v16, %v8943_v31  ;;  %v2027_v48 = vsel %vm2024_vm8, %v12808_v54, %v8947_v3  ;;  %v2028_v57 = vsel %vm2024_vm8, %v12812_v4, %v8948_v45  ;;  %v8968_v27 = vunpack.i.h.bf16 %v18551_v23 }
 0x19b   : > { %v8967_v49 = vunpack.i.l.bf16 %v18551_v23  ;;  %v12976_v38 = vsel %vm2024_vm8, %v12820_v32, %v8952_v21  ;;  %v12980_v62 = vsel %vm2024_vm8, %v12824_v9, %v8953_v1  ;;  %v8973_v16 = vunpack.i.h.bf16 %v18552_v40  ;;  %v18553_v32 = vld [vmem:[#allocation17_spill] sm:$0xff] }
 0x19c   : > { %v8972_v31 = vunpack.i.l.bf16 %v18552_v40  ;;  %v12988_v4 = vsel %vm2024_vm8, %v12828_v12, %v8957_v15  ;;  %v12992_v45 = vsel %vm2024_vm8, %v12832_v60, %v8958_v59  ;;  %v8978_v3 = vunpack.i.h.bf16 %v18553_v32  ;;  %v18554_v12 = vld [vmem:[#allocation20_spill] sm:$0xff]  ;;  %v18555_v40 = vld [vmem:[#allocation21_spill] sm:$0xff] }
 0x19d   : > { %v8977_v9 = vunpack.i.l.bf16 %v18553_v32  ;;  %v13000_v21 = vsel %vm2024_vm8, %v12838_v42, %v8962_v24  ;;  %v13004_v33 = vsel %vm2024_vm8, %v12842_v0, %v8963_v2  ;;  %v8983_v15 = vunpack.i.h.bf16 %v18554_v12  ;;  %v18556_v24 = vld [vmem:[#allocation22_spill] sm:$0xff] }
 0x19e   : > { %v12984_v54 = vpop.permute.xlu1 %9075  ;;  %v12996_v1 = vpop.permute.xlu0 %9080  ;;  %v8982_v60 = vunpack.i.l.bf16 %v18554_v12  ;;  %v13010_v59 = vsel %vm2024_vm8, %v12848_v44, %v8967_v49  ;;  %v13014_v23 = vsel %vm2024_vm8, %v12852_v39, %v8968_v27  ;;  %v8993_v32 = vunpack.i.h.bf16 %v18555_v40 }
 0x19f   : > { %v8992_v42 = vunpack.i.l.bf16 %v18555_v40  ;;  %v13020_v0 = vsel %vm2024_vm8, %v12858_v10, %v8972_v31  ;;  %v13024_v2 = vsel %vm2024_vm8, %v12862_v8, %v8973_v16  ;;  %v8998_v12 = vunpack.i.h.bf16 %v18556_v24  ;;  %v18557_v10 = vld [vmem:[#allocation23_spill] sm:$0xff] }
 0x1a0   : > { %v8997_v44 = vunpack.i.l.bf16 %v18556_v24  ;;  %v13032_v39 = vsel %vm2024_vm8, %v12876_v14, %v8977_v9  ;;  %v13036_v27 = vsel %vm2024_vm8, %v12880_v6, %v8978_v3  ;;  %v9003_v31 = vunpack.i.h.bf16 %v18557_v10 }
 0x1a1   : > { %v9002_v8 = vunpack.i.l.bf16 %v18557_v10  ;;  %v13044_v40 = vsel %vm2024_vm8, %v12886_v43, %v8982_v60  ;;  %v13048_v24 = vsel %vm2024_vm8, %v12890_v7, %v8983_v15  ;;  %v9023_v6 = vunpack.i.h.bf16 %v12746_v29 }
 0x1a2   : > { %v13028_v49 = vpop.permute.xlu1 %9085  ;;  %v13040_v16 = vpop.permute.xlu0 %9090  ;;  %v9022_v3 = vunpack.i.l.bf16 %v12746_v29  ;;  %v13056_v10 = vsel %vm2024_vm8, %v12908_v53, %v8992_v42  ;;  %v13060_v43 = vsel %vm2024_vm8, %v12912_v58, %v8993_v32  ;;  %v13064_v7 = vsel %vm2024_vm8, %v12916_v5, %v8997_v44  ;;  %v18560_v5 = vld [vmem:[#allocation24_spill] sm:$0xff] }
 0x1a3   : > { %v13068_v15 = vsel %vm2024_vm8, %v12920_v25, %v8998_v12  ;;  %v9028_v60 = vunpack.i.h.bf16 %v12778_v13  ;;  %v9027_v29 = vunpack.i.l.bf16 %v12778_v13  ;;  %v13076_v53 = vsel %vm2024_vm8, %v12926_v26, %v9002_v8 }
 0x1a4   : > { %v13080_v58 = vsel %vm2024_vm8, %v12930_v34, %v9003_v31  ;;  %v9008_v32 = vunpack.i.h.bf16 %v18560_v5  ;;  %v9032_v42 = vunpack.i.l.bf16 %v12784_v19  ;;  %v9007_v12 = vunpack.i.l.bf16 %v18560_v5 }
 0x1a5   : > { %v9033_v44 = vunpack.i.h.bf16 %v12784_v19  ;;  %v9013_v63 = vunpack.i.h.bf16 %v18561_v55  ;;  %v9012_v26 = vunpack.i.l.bf16 %v18561_v55  ;;  %v2058_v8 = vsel %vm2057_vm9, %v2025_v36, %v9022_v3 }
 0x1a6   : > { %v13072_v9 = vpop.permute.xlu1 %9095  ;;  %v9101_v25 = vpop.permute.xlu0 %9100  ;;  %v2059_v34 = vsel %vm2057_vm9, %v2026_v52, %v9023_v6  ;;  %v2060_v31 = vsel %vm2057_vm9, %v2027_v48, %v9027_v29  ;;  %v2062_v19 = vsel %vm2057_vm9, %v12976_v38, %v9032_v42  ;;  %v9038_v52 = vunpack.i.h.bf16 %v12816_v41 }
 0x1a7   : > { %18559 = vst [vmem:[#allocation31_spill] sm:$0xff] %v13072_v9  ;;  %v9103_v13 = vunpack.i.h.bf16 %v9101_v25  ;;  %v9102_v18 = vunpack.i.l.bf16 %v9101_v25  ;;  %v2061_v9 = vsel %vm2057_vm9, %v2028_v57, %v9028_v60  ;;  %v2063_v36 = vsel %vm2057_vm9, %v12980_v62, %v9033_v44 }
 0x1a8   : > { %v9037_v57 = vunpack.i.l.bf16 %v12816_v41  ;;  %vm5307_vm0 = vcmask 916480  }
 0x1a9   : > { %v2091_v47 = vsel %vm2090_vm10, %v2058_v8, %v9102_v18  ;;  %v2092_v5 = vsel %vm2090_vm10, %v2059_v34, %v9103_v13  ;;  %v9043_v18 = vunpack.i.h.bf16 %v12834_v61  ;;  %v13116_v34 = vsel %vm2024_vm8, %v12940_v28, %v9008_v32 }
 0x1aa   : > { %v9106_v37 = vpop.permute.xlu1 %9105  ;;  %v9111_v14 = vpop.permute.xlu0 %9110  ;;  %v2123_v55 = vpack.c.bf16 %v2092_v5, %v2091_v47  ;;  %v13124_v5 = vsel %vm2024_vm8, %v12950_v20, %v9013_v63  ;;  %v9052_v20 = vunpack.i.l.bf16 %v12872_v50 }
 0x1ab   : > { %v9108_v25 = vunpack.i.h.bf16 %v9106_v37  ;;  %v9107_v56 = vunpack.i.l.bf16 %v9106_v37  ;;  %v9113_v48 = vunpack.i.h.bf16 %v9111_v14  ;;  %v9112_v6 = vunpack.i.l.bf16 %v9111_v14 }
 0x1ac   : > { %8443 = vmatprep.mubr.msk.bf16.mxu0 %vm2159_vm11, %v2123_v55  ;;  %v9042_v37 = vunpack.i.l.bf16 %v12834_v61  ;;  %v9047_v14 = vunpack.i.l.bf16 %v12866_v17  ;;  %v2067_v32 = vsel %vm2057_vm9, %v13004_v33, %v9043_v18  ;;  %v9057_v55 = vunpack.i.l.bf16 %v12904_v46 }
 0x1ad   : > { %v2093_v3 = vsel %vm2090_vm10, %v2060_v31, %v9107_v56  ;;  %v2094_v60 = vsel %vm2090_vm10, %v2061_v9, %v9108_v25  ;;  %v2095_v47 = vsel %vm2090_vm10, %v2062_v19, %v9112_v6  ;;  %v2096_v38 = vsel %vm2090_vm10, %v2063_v36, %v9113_v48 }
 0x1ae   : > { %v9116_v62 = vpop.permute.xlu1 %9115  ;;  %v2124_v29 = vpack.c.bf16 %v2094_v60, %v2093_v3  ;;  %v9121_v44 = vpop.permute.xlu0 %9120  ;;  %v2125_v13 = vpack.c.bf16 %v2096_v38, %v2095_v47  ;;  %v13110_v56 = vsel %vm2024_vm8, %v12936_v51, %v9007_v12  ;;  %v9048_v9 = vunpack.i.h.bf16 %v12866_v17 }
 0x1af   : > { %v9118_v42 = vunpack.i.h.bf16 %v9116_v62  ;;  %v9117_v41 = vunpack.i.l.bf16 %v9116_v62  ;;  %v9123_v8 = vunpack.i.h.bf16 %v9121_v44  ;;  %v9122_v61 = vunpack.i.l.bf16 %v9121_v44 }
 0x1b0   : > { %8444 = vmatmul.mubr.msk.bf16.vlgmr.msra.gmra.mxu0 %vm2159_vm11, %v2124_v29  ;;  %v13120_v31 = vsel %vm2024_vm8, %v12946_v22, %v9012_v26  ;;  %v2064_v51 = vsel %vm2057_vm9, %v12988_v4, %v9037_v57  ;;  %v2065_v17 = vsel %vm2057_vm9, %v12992_v45, %v9038_v52  ;;  %v2066_v28 = vsel %vm2057_vm9, %v13000_v21, %v9042_v37 }
 0x1b1   : > { %8447 = vmatprep.mubr.msk.bf16.mxu0 %vm2159_vm11, %v2125_v13  ;;  %v9053_v22 = vunpack.i.h.bf16 %v12872_v50  ;;  %v2068_v63 = vsel %vm2057_vm9, %v13010_v59, %v9047_v14  ;;  %v2097_v4 = vsel %vm2090_vm10, %v2064_v51, %v9117_v41  ;;  %v2098_v26 = vsel %vm2090_vm10, %v2065_v17, %v9118_v42 }
 0x1b2   : > { %v9126_v12 = vpop.permute.xlu1 %9125  ;;  %v9131_v19 = vpop.permute.xlu0 %9130  ;;  %v2069_v45 = vsel %vm2057_vm9, %v13014_v23, %v9048_v9  ;;  %v9058_v21 = vunpack.i.h.bf16 %v12904_v46  ;;  %v2099_v33 = vsel %vm2090_vm10, %v2066_v28, %v9122_v61  ;;  %v2100_v25 = vsel %vm2090_vm10, %v2067_v32, %v9123_v8 }
 0x1b3   : > { %v9063_v59 = vunpack.i.h.bf16 %v12922_v11  ;;  %v9062_v50 = vunpack.i.l.bf16 %v12922_v11  ;;  %v9073_v36 = vunpack.i.h.bf16 %v12960_v30  ;;  %v9072_v52 = vunpack.i.l.bf16 %v12960_v30 }
 0x1b4   : > { %v9128_v48 = vunpack.i.h.bf16 %v9126_v12  ;;  %v9127_v6 = vunpack.i.l.bf16 %v9126_v12  ;;  %v2126_v23 = vpack.c.bf16 %v2098_v26, %v2097_v4  ;;  %v9078_v18 = vunpack.i.h.bf16 %v12984_v54 }
 0x1b5   : > { %v9077_v3 = vunpack.i.l.bf16 %v12984_v54  ;;  %v9082_v60 = vunpack.i.l.bf16 %v12996_v1  ;;  %v2127_v37 = vpack.c.bf16 %v2100_v25, %v2099_v33  ;;  %v2070_v11 = vsel %vm2057_vm9, %v13020_v0, %v9052_v20 }
 0x1b6   : > { %v13151_v57 = vpop.permute.xlu1 %9135  ;;  %v13156_v46 = vpop.permute.xlu0 %9140  ;;  %v2071_v30 = vsel %vm2057_vm9, %v13024_v2, %v9053_v22  ;;  %v9133_v47 = vunpack.i.h.bf16 %v9131_v19  ;;  %v9132_v38 = vunpack.i.l.bf16 %v9131_v19  ;;  %v2072_v62 = vsel %vm2057_vm9, %v13032_v39, %v9057_v55 }
 0x1b7   : > { %v2073_v54 = vsel %vm2057_vm9, %v13036_v27, %v9058_v21  ;;  %v2074_v29 = vsel %vm2057_vm9, %v13044_v40, %v9062_v50  ;;  %v9083_v14 = vunpack.i.h.bf16 %v12996_v1  ;;  %v2075_v0 = vsel %vm2057_vm9, %v13048_v24, %v9063_v59 }
 0x1b8   : > { %8448 = vmatmul.mubr.msk.bf16.gmra.mxu0 %vm2159_vm11, %v2126_v23  ;;  %v2101_v2 = vsel %vm2090_vm10, %v2068_v63, %v9127_v6  ;;  %v2102_v42 = vsel %vm2090_vm10, %v2069_v45, %v9128_v48  ;;  %v2078_v39 = vsel %vm2057_vm9, %v13056_v10, %v9072_v52  ;;  %v2080_v27 = vsel %vm2057_vm9, %v13064_v7, %v9077_v3 }
 0x1b9   : > { %8451 = vmatprep.mubr.msk.bf16.mxu0 %vm2159_vm11, %v2127_v37  ;;  %v2081_v1 = vsel %vm2057_vm9, %v13068_v15, %v9078_v18  ;;  %v2082_v40 = vsel %vm2057_vm9, %v13076_v53, %v9082_v60  ;;  %v2079_v24 = vsel %vm2057_vm9, %v13060_v43, %v9073_v36  ;;  %v2103_v13 = vsel %vm2090_vm10, %v2070_v11, %v9132_v38 }
 0x1ba   : > { %v13175_v41 = vpop.permute.xlu1 %9145  ;;  %v9151_v44 = vpop.permute.xlu0 %9150  ;;  %v2104_v9 = vsel %vm2090_vm10, %v2071_v30, %v9133_v47  ;;  %v2083_v10 = vsel %vm2057_vm9, %v13080_v58, %v9083_v14  ;;  %v9088_v7 = vunpack.i.h.bf16 %v13028_v49  ;;  %v9087_v15 = vunpack.i.l.bf16 %v13028_v49 }
 0x1bb   : > { %v9153_v8 = vunpack.i.h.bf16 %v9151_v44  ;;  %v9152_v61 = vunpack.i.l.bf16 %v9151_v44  ;;  %v2128_v51 = vpack.c.bf16 %v2102_v42, %v2101_v2  ;;  %v9138_v53 = vunpack.i.h.bf16 %v13151_v57  ;;  %v18562_v2 = vld [vmem:[#allocation19_spill] sm:$0xff]  ;;  %v18564_v42 = vld [vmem:[#allocation29_spill] sm:$0xff]  ;;  %v18567_v44 = vld [vmem:[#allocation26_spill] sm:$0xff] }
 0x1bc   : > { %v9137_v17 = vunpack.i.l.bf16 %v13151_v57  ;;  %v2129_v4 = vpack.c.bf16 %v2104_v9, %v2103_v13  ;;  %v9143_v58 = vunpack.i.h.bf16 %v13156_v46  ;;  %v9142_v26 = vunpack.i.l.bf16 %v13156_v46 }
 0x1bd   : > { %v2111_v43 = vsel %vm2090_vm10, %v2078_v39, %v9152_v61  ;;  %v2112_v32 = vsel %vm2090_vm10, %v2079_v24, %v9153_v8  ;;  %v9093_v45 = vunpack.i.h.bf16 %v13040_v16  ;;  %v9092_v21 = vunpack.i.l.bf16 %v13040_v16  ;;  %v18568_v61 = vld [vmem:[#allocation31_spill] sm:$0xff] }
 0x1be   : > { %v9156_v28 = vpop.permute.xlu1 %9155  ;;  %v9161_v63 = vpop.permute.xlu0 %9160  ;;  %v2133_v20 = vpack.c.bf16 %v2112_v32, %v2111_v43  ;;  %v2105_v55 = vsel %vm2090_vm10, %v2072_v62, %v9137_v17  ;;  %v2106_v48 = vsel %vm2090_vm10, %v2073_v54, %v9138_v53  ;;  %v2107_v18 = vsel %vm2090_vm10, %v2074_v29, %v9142_v26  ;;  %v18569_v32 = vld [vmem:[#allocation14_spill] sm:$0xff] }
 0x1bf   : > { %v9158_v22 = vunpack.i.h.bf16 %v9156_v28  ;;  %v9157_v12 = vunpack.i.l.bf16 %v9156_v28  ;;  %v9163_v49 = vunpack.i.h.bf16 %v9161_v63  ;;  %v9162_v19 = vunpack.i.l.bf16 %v9161_v63 }
 0x1c0   : > { %8452 = vmatmul.mubr.msk.bf16.gmra.mxu0 %vm2159_vm11, %v2128_v51  ;;  %8463 = vmatprep.mubr.msk.bf16.mxu1 %vm2159_vm11, %v2133_v20  ;;  %v2108_v3 = vsel %vm2090_vm10, %v2075_v0, %v9143_v58  ;;  %v9068_v37 = vunpack.i.h.bf16 %v12954_v35  ;;  %v9067_v11 = vunpack.i.l.bf16 %v12954_v35  ;;  %v2084_v30 = vsel %vm2057_vm9, %v13110_v56, %v9087_v15 }
 0x1c1   : > { %v2113_v33 = vsel %vm2090_vm10, %v2080_v27, %v9157_v12  ;;  %v2114_v25 = vsel %vm2090_vm10, %v2081_v1, %v9158_v22  ;;  %8455 = vmatprep.mubr.msk.bf16.mxu0 %vm2159_vm11, %v2129_v4  ;;  %v2115_v59 = vsel %vm2090_vm10, %v2082_v40, %v9162_v19  ;;  %v2116_v50 = vsel %vm2090_vm10, %v2083_v10, %v9163_v49  ;;  %v18566_v27 = vld [vmem:[#allocation30_spill] sm:$0xff]  ;;  %v18571_v12 = vld [vmem:[#allocation27_spill] sm:$0xff]  ;;  %v18573_v4 = vld [vmem:[#allocation28_spill] sm:$0xff] }
 0x1c2   : > { %v9166_v36 = vpop.permute.xlu1 %9165  ;;  %v2134_v52 = vpack.c.bf16 %v2114_v25, %v2113_v33  ;;  %v9171_v57 = vpop.permute.xlu0 %9170  ;;  %v2135_v23 = vpack.c.bf16 %v2116_v50, %v2115_v59  ;;  %v2085_v47 = vsel %vm2057_vm9, %v13116_v34, %v9088_v7  ;;  %v2086_v38 = vsel %vm2057_vm9, %v13120_v31, %v9092_v21  ;;  %v2582_v59 = vld [vmem:[#allocation4 + $0x1a] sm:$0xff]  ;;  %v2583_v50 = vld [vmem:[#allocation4 + $0x22] sm:$0xff] }
 0x1c3   : > { %v9168_v6 = vunpack.i.h.bf16 %v9166_v36  ;;  %v9167_v16 = vunpack.i.l.bf16 %v9166_v36  ;;  %v9173_v60 = vunpack.i.h.bf16 %v9171_v57  ;;  %v9172_v46 = vunpack.i.l.bf16 %v9171_v57  ;;  %v2612_v36 = vld [vmem:[#allocation4 + $0x3] sm:$0xff] }
 0x1c4   : > { %8464 = vmatmul.mubr.msk.bf16.vlgmr.msra.gmra.mxu1 %vm2159_vm11, %v2134_v52  ;;  %v2087_v62 = vsel %vm2057_vm9, %v13124_v5, %v9093_v45  ;;  %v9147_v54 = vunpack.i.l.bf16 %v13175_v41  ;;  %v2130_v29 = vpack.c.bf16 %v2106_v48, %v2105_v55  ;;  %v9148_v14 = vunpack.i.h.bf16 %v13175_v41  ;;  %v2613_v48 = vld [vmem:[#allocation4 + $0xb] sm:$0xff]  ;;  %v2615_v57 = vld [vmem:[#allocation4 + $0x23] sm:$0xff] }
 0x1c5   : > { %8467 = vmatprep.mubr.msk.bf16.mxu1 %vm2159_vm11, %v2135_v23  ;;  %v2117_v35 = vsel %vm2090_vm10, %v2084_v30, %v9167_v16  ;;  %v2118_v56 = vsel %vm2090_vm10, %v2085_v47, %v9168_v6  ;;  %v2131_v0 = vpack.c.bf16 %v2108_v3, %v2107_v18  ;;  %v18563_v34 = vunpack.i.l.bf16 %v18562_v2  ;;  %v2614_v16 = vld [vmem:[#allocation4 + $0x1b] sm:$0xff]  ;;  %v2644_v23 = vld [vmem:[#allocation4 + $0x4] sm:$0xff]  ;;  %v2645_v3 = vld [vmem:[#allocation4 + $0xc] sm:$0xff] }
 0x1c6   : > { %v18565_v31 = vunpack.i.h.bf16 %v18562_v2  ;;  %v2119_v1 = vsel %vm2090_vm10, %v2086_v38, %v9172_v46  ;;  %v2120_v40 = vsel %vm2090_vm10, %v2087_v62, %v9173_v60  ;;  %v9176_v41 = vpop.permute.xlu1 %9175  ;;  %v9018_v24 = vunpack.i.h.bf16 %v18567_v44  ;;  %v2646_v46 = vld [vmem:[#allocation4 + $0x1c] sm:$0xff] }
 0x1c7   : > { %v2043_v39 = vsel %vm2024_vm8, %v18564_v42, %v18563_v34  ;;  %v9017_v13 = vunpack.i.l.bf16 %v18567_v44  ;;  %v9098_v10 = vunpack.i.h.bf16 %v18568_v61  ;;  %v9097_v7 = vunpack.i.l.bf16 %v18568_v61  ;;  %v2678_v47 = vld [vmem:[#allocation4 + $0x20] sm:$0xff] }
 0x1c8   : > { %v2044_v5 = vsel %vm2024_vm8, %v18566_v27, %v18565_v31  ;;  %8456 = vmatmul.mubr.msk.bf16.gmra.mxu0 %vm2159_vm11, %v2130_v29  ;;  %v2076_v9 = vsel %vm2057_vm9, %v2043_v39, %v9067_v11  ;;  %v2136_v51 = vpack.c.bf16 %v2118_v56, %v2117_v35  ;;  %v9178_v17 = vunpack.i.h.bf16 %v9176_v41  ;;  %v2677_v11 = vld [vmem:[#allocation4 + $0x18] sm:$0xff]  ;;  %v13275_v62 = vld [vmem:[%s17900_s2] ss:$0 sm:$0xff] }
 0x1c9   : > { %v2077_v8 = vsel %vm2057_vm9, %v2044_v5, %v9068_v37  ;;  %8459 = vmatprep.mubr.msk.bf16.mxu0 %vm2159_vm11, %v2131_v0  ;;  %v2109_v15 = vsel %vm2090_vm10, %v2076_v9, %v9147_v54  ;;  %v9177_v28 = vunpack.i.l.bf16 %v9176_v41  ;;  %v2137_v43 = vpack.c.bf16 %v2120_v40, %v2119_v1  ;;  %v2647_v37 = vld [vmem:[#allocation4 + $0x24] sm:$0xff]  ;;  %v13280_v29 = vld [vmem:[%s17901_s3] ss:$0 sm:$0xff] }
 0x1ca   : > { %v2110_v53 = vsel %vm2090_vm10, %v2077_v8, %v9148_v14  ;;  %v18570_v22 = vunpack.i.l.bf16 %v18569_v32  ;;  %v18572_v20 = vunpack.i.h.bf16 %v18569_v32  ;;  %v9194_v52 = vpack.i.bf16 %v2583_v50, %v2582_v59 }
 0x1cb   : > { %v2132_v21 = vpack.c.bf16 %v2110_v53, %v2109_v15  ;;  %v9199_v6 = vpack.i.bf16 %v2613_v48, %v2612_v36  ;;  %v9204_v18 = vpack.i.bf16 %v2615_v57, %v2614_v16  ;;  %v9209_v60 = vpack.i.bf16 %v2645_v3, %v2644_v23 }
 0x1cc   : > { %v2022_v63 = vsel %vm1991_vm7, %v18571_v12, %v18570_v22  ;;  %v2023_v58 = vsel %vm1991_vm7, %v18573_v4, %v18572_v20  ;;  %8468 = vmatmul.mubr.msk.bf16.gmra.mxu1 %vm2159_vm11, %v2136_v51  ;;  %9195 = vrot.lane.b32.xlu1 %v9194_v52, %s11048_s17  ;;  %v9214_v30 = vpack.i.bf16 %v2647_v37, %v2646_v46 }
 0x1cd   : > { %v2055_v26 = vsel %vm2024_vm8, %v2022_v63, %v9017_v13  ;;  %v2056_v49 = vsel %vm2024_vm8, %v2023_v58, %v9018_v24  ;;  %8471 = vmatprep.mubr.msk.bf16.mxu1 %vm2159_vm11, %v2137_v43  ;;  %9200 = vrot.lane.b32.xlu0 %v9199_v6, %s11049_s18  ;;  %v9219_v38 = vpack.i.bf16 %v2678_v47, %v2677_v11 }
 0x1ce   : > { %v2088_v19 = vsel %vm2057_vm9, %v2055_v26, %v9097_v7  ;;  %v2089_v45 = vsel %vm2057_vm9, %v2056_v49, %v9098_v10 }
 0x1cf   : > { %v2121_v33 = vsel %vm2090_vm10, %v2088_v19, %v9177_v28  ;;  %v2122_v25 = vsel %vm2090_vm10, %v2089_v45, %v9178_v17 }
 0x1d0   : > { %8460 = vmatmul.mubr.msk.bf16.gmra.mxu0 %vm2159_vm11, %v2132_v21  ;;  %v2138_v55 = vpack.c.bf16 %v2122_v25, %v2121_v33  ;;  %9205 = vrot.lane.b32.xlu1 %v9204_v18, %s11049_s18 }
 0x1d1   : > { %9210 = vrot.lane.b32.xlu0 %v9209_v60, %s11050_s20 }
 0x1d4   : > { %8472 = vmatmul.mubr.msk.bf16.gmra.mxu1 %vm2159_vm11, %v2138_v55  ;;  %9215 = vrot.lane.b32.xlu1 %v9214_v30, %s11050_s20 }
 0x1d5   : > { %9220 = vrot.lane.b32.xlu0 %v9219_v38, %s11051_s22 }
 0x270   : > { %v8445_v54 = vpop.f32.mrf.mxu0 }
 0x271   : > { %v2382_v14 = vmul.f32 %v8445_v54, %v13275_v62 }
 0x272   : > { %v2246_v35 = vpop.f32.mrf.mxu0 }
 0x273   : > { %v13284_v56 = vadd.f32 %v13280_v29, %v2382_v14  ;;  %v2380_v0 = vmul.f32 %v13275_v62, %v2246_v35 }
 0x274   : > { %v8446_v2 = vpop.f32.mrf.mxu0 }
 0x275   : > { %18574 = vst [vmem:[#allocation32_spill] sm:$0xff] %v13284_v56  ;;  %v18012_v34 = vmax.f32 %v13284_v56, 0.0  ;;  %v13289_v42 = vadd.f32 %v13280_v29, %v2380_v0  ;;  %v2383_v39 = vmul.f32 %v8446_v2, %v13275_v62 }
 0x276   : > { %v2249_v31 = vpop.f32.mrf.mxu0 }
 0x277   : > { %18575 = vst [vmem:[#allocation33_spill] sm:$0xff] %v13289_v42  ;;  %2486 = vst.msk [vmem:[#allocation4 + $0x4a] sm:$0xff] %vm420_vm2, %v18012_v34  ;;  %v18014_v27 = vmax.f32 %v13289_v42, 0.0  ;;  %v13297_v5 = vadd.f32 %v13280_v29, %v2383_v39  ;;  %v2381_v1 = vmul.f32 %v13275_v62, %v2249_v31 }
 0x278   : > { %v8449_v40 = vpop.f32.mrf.mxu0 }
 0x279   : > { %18576 = vst [vmem:[#allocation34_spill] sm:$0xff] %v13297_v5  ;;  %2484 = vst.msk [vmem:[#allocation4 + $0x32] sm:$0xff] %vm420_vm2, %v18014_v27  ;;  %v18011_v41 = vmax.f32 %v13297_v5, 0.0  ;;  %v13305_v44 = vadd.f32 %v13280_v29, %v2381_v1  ;;  %v2386_v24 = vmul.f32 %v8449_v40, %v13275_v62 }
 0x27a   : > { %v2262_v13 = vpop.f32.mrf.mxu0 }
 0x27b   : > { %18577 = vst [vmem:[#allocation35_spill] sm:$0xff] %v13305_v44  ;;  %2487 = vst.msk [vmem:[#allocation4 + $0x52] sm:$0xff] %vm420_vm2, %v18011_v41  ;;  %v18013_v9 = vmax.f32 %v13305_v44, 0.0  ;;  %v13313_v8 = vadd.f32 %v13280_v29, %v2386_v24  ;;  %v2384_v61 = vmul.f32 %v13275_v62, %v2262_v13 }
 0x27c   : > { %v8450_v10 = vpop.f32.mrf.mxu0 }
 0x27d   : > { %18578 = vst [vmem:[#allocation36_spill] sm:$0xff] %v13313_v8  ;;  %2485 = vst.msk [vmem:[#allocation4 + $0x3a] sm:$0xff] %vm420_vm2, %v18013_v9  ;;  %v18008_v7 = vmax.f32 %v13313_v8, 0.0  ;;  %v13321_v15 = vadd.f32 %v13280_v29, %v2384_v61  ;;  %v2387_v51 = vmul.f32 %v8450_v10, %v13275_v62 }
 0x27e   : > { %v2265_v53 = vpop.f32.mrf.mxu0  ;;  %v2554_v4 = vld [vmem:[#allocation4 + $0x49] sm:$0xff] }
 0x27f   : > { %18579 = vst [vmem:[#allocation37_spill] sm:$0xff] %v13321_v15  ;;  %2490 = vst.msk [vmem:[#allocation4 + $0x7a] sm:$0xff] %vm420_vm2, %v18008_v7  ;;  %v18010_v17 = vmax.f32 %v13321_v15, 0.0  ;;  %v13329_v28 = vadd.f32 %v13280_v29, %v2387_v51  ;;  %v2385_v43 = vmul.f32 %v13275_v62, %v2265_v53  ;;  %v2586_v6 = vld [vmem:[#allocation4 + $0x4a] sm:$0xff] }
 0x280   : > { %v8453_v32 = vpop.f32.mrf.mxu0  ;;  %v2552_v48 = vld [vmem:[#allocation4 + $0x31] sm:$0xff] }
 0x281   : > { %18580 = vst [vmem:[#allocation38_spill] sm:$0xff] %v13329_v28  ;;  %2488 = vst.msk [vmem:[#allocation4 + $0x62] sm:$0xff] %vm420_vm2, %v18010_v17  ;;  %v18007_v22 = vmax.f32 %v13329_v28, 0.0  ;;  %v13337_v12 = vadd.f32 %v13280_v29, %v2385_v43  ;;  %v2390_v63 = vmul.f32 %v8453_v32, %v13275_v62  ;;  %v2584_v31 = vld [vmem:[#allocation4 + $0x32] sm:$0xff]  ;;  %v2745_v8 = vld [vmem:[#allocation4 + $0x4a] sm:$0xff] }
 0x282   : > { %v2278_v20 = vpop.f32.mrf.mxu0  ;;  %v2555_v58 = vld [vmem:[#allocation4 + $0x51] sm:$0xff] }
 0x283   : > { %18581 = vst [vmem:[#allocation39_spill] sm:$0xff] %v13337_v12  ;;  %2491 = vst.msk [vmem:[#allocation4 + $0x82] sm:$0xff] %vm420_vm2, %v18007_v22  ;;  %v18009_v26 = vmax.f32 %v13337_v12, 0.0  ;;  %v13345_v49 = vadd.f32 %v13280_v29, %v2390_v63  ;;  %v2388_v19 = vmul.f32 %v13275_v62, %v2278_v20  ;;  %v9224_v45 = vpack.i.bf16 %v2555_v58, %v2554_v4  ;;  %v2587_v21 = vld [vmem:[#allocation4 + $0x52] sm:$0xff] }
 0x284   : > { %v8454_v33 = vpop.f32.mrf.mxu0  ;;  %v8465_v25 = vpop.f32.mrf.mxu1  ;;  %v2553_v55 = vld [vmem:[#allocation4 + $0x39] sm:$0xff]  ;;  %v9229_v18 = vpack.i.bf16 %v2587_v21, %v2586_v6  ;;  %v2618_v30 = vld [vmem:[#allocation4 + $0x4b] sm:$0xff] }
 0x285   : > { %18582 = vst [vmem:[#allocation40_spill] sm:$0xff] %v13345_v49  ;;  %2489 = vst.msk [vmem:[#allocation4 + $0x6a] sm:$0xff] %vm420_vm2, %v18009_v26  ;;  %v18004_v59 = vmax.f32 %v13345_v49, 0.0  ;;  %v13353_v50 = vadd.f32 %v13280_v29, %v2388_v19  ;;  %v2391_v36 = vmul.f32 %v8454_v33, %v13275_v62  ;;  %v2402_v52 = vmul.f32 %v8465_v25, %v13275_v62  ;;  %v2585_v11 = vld [vmem:[#allocation4 + $0x3a] sm:$0xff]  ;;  %v2650_v1 = vld [vmem:[#allocation4 + $0x4c] sm:$0xff] }
 0x286   : > { %9225 = vrot.lane.b32.xlu1 %v9224_v45, %s11044_s21  ;;  %v2281_v16 = vpop.f32.mrf.mxu0  ;;  %v2326_v57 = vpop.f32.mrf.mxu1  ;;  %v9264_v23 = vpack.i.bf16 %v2553_v55, %v2552_v48  ;;  %v2619_v47 = vld [vmem:[#allocation4 + $0x53] sm:$0xff]  ;;  %v9269_v51 = vpack.i.bf16 %v2585_v11, %v2584_v31  ;;  %v2617_v58 = vld [vmem:[#allocation4 + $0x3b] sm:$0xff] }
 0x287   : > { %18583 = vst [vmem:[#allocation41_spill] sm:$0xff] %v13353_v50  ;;  %2494 = vst.msk [vmem:[#allocation4 + $0xaa] sm:$0xff] %vm420_vm2, %v18004_v59  ;;  %v18006_v3 = vmax.f32 %v13353_v50, 0.0  ;;  %v13363_v60 = vadd.f32 %v13280_v29, %v2391_v36  ;;  %v13366_v46 = vadd.f32 %v13280_v29, %v2402_v52  ;;  %v2389_v37 = vmul.f32 %v13275_v62, %v2281_v16  ;;  %v2651_v40 = vld [vmem:[#allocation4 + $0x54] sm:$0xff]  ;;  %v2649_v31 = vld [vmem:[#allocation4 + $0x3c] sm:$0xff] }
 0x288   : > { %v2400_v38 = vmul.f32 %v13275_v62, %v2326_v57  ;;  %9265 = vrot.lane.b32.xlu0 %v9264_v23, %s11044_s21  ;;  %v8457_v54 = vpop.f32.mrf.mxu0  ;;  %v8466_v14 = vpop.f32.mrf.mxu1  ;;  %v9234_v53 = vpack.i.bf16 %v2619_v47, %v2618_v30  ;;  %v2616_v4 = vld [vmem:[#allocation4 + $0x33] sm:$0xff]  ;;  %v9239_v36 = vpack.i.bf16 %v2651_v40, %v2650_v1 }
 0x289   : > { %18584 = vst [vmem:[#allocation42_spill] sm:$0xff] %v13363_v60  ;;  %18585 = vst [vmem:[#allocation43_spill] sm:$0xff] %v13366_v46  ;;  %v18003_v35 = vmax.f32 %v13363_v60, 0.0  ;;  %v17986_v0 = vmax.f32 %v13366_v46, 0.0  ;;  %v13377_v2 = vadd.f32 %v13280_v29, %v2389_v37  ;;  %v2394_v39 = vmul.f32 %v8457_v54, %v13275_v62  ;;  %v2710_v60 = vld [vmem:[#allocation4 + $0x21] sm:$0xff]  ;;  %v2746_v50 = vld [vmem:[#allocation4 + $0x52] sm:$0xff] }
 0x28a   : > { %2492 = vst.msk [vmem:[#allocation4 + $0x92] sm:$0xff] %vm420_vm2, %v18006_v3  ;;  %9230 = vrot.lane.b32.xlu1 %v9229_v18, %s11048_s17  ;;  %v13382_v24 = vadd.f32 %v13280_v29, %v2400_v38  ;;  %v2403_v13 = vmul.f32 %v8466_v14, %v13275_v62  ;;  %v2294_v61 = vpop.f32.mrf.mxu0  ;;  %v2329_v10 = vpop.f32.mrf.mxu1  ;;  %v9274_v11 = vpack.i.bf16 %v2617_v58, %v2616_v4 }
 0x28b   : > { %18586 = vst [vmem:[#allocation44_spill] sm:$0xff] %v13377_v2  ;;  %2495 = vst.msk [vmem:[#allocation4 + $0xb2] sm:$0xff] %vm420_vm2, %v18003_v35  ;;  %v18005_v43 = vmax.f32 %v13377_v2, 0.0  ;;  %v13393_v32 = vadd.f32 %v13280_v29, %v2394_v39  ;;  %v2392_v63 = vmul.f32 %v13275_v62, %v2294_v61  ;;  %v2401_v20 = vmul.f32 %v13275_v62, %v2329_v10  ;;  %v2648_v39 = vld [vmem:[#allocation4 + $0x34] sm:$0xff] }
 0x28c   : > { %18587 = vst [vmem:[#allocation45_spill] sm:$0xff] %v13382_v24  ;;  %2506 = vst.msk [vmem:[#allocation4 + $0x13a] sm:$0xff] %vm420_vm2, %v17986_v0  ;;  %v17989_v19 = vmax.f32 %v13382_v24, 0.0  ;;  %v13399_v45 = vadd.f32 %v13280_v29, %v2403_v13  ;;  %9270 = vrot.lane.b32.xlu0 %v9269_v51, %s11048_s17  ;;  %v8458_v21 = vpop.f32.mrf.mxu0  ;;  %v8469_v33 = vpop.f32.mrf.mxu1  ;;  %v13402_v25 = vld [vmem:[#allocation4 + $0x64] sm:$0xff]  ;;  %v13404_v55 = vld [vmem:[#allocation4 + $0x6c] sm:$0xff] }
 0x28d   : > { %18588 = vst [vmem:[#allocation46_spill] sm:$0xff] %v13393_v32  ;;  %2493 = vst.msk [vmem:[#allocation4 + $0x9a] sm:$0xff] %vm420_vm2, %v18005_v43  ;;  %v17999_v52 = vmax.f32 %v13393_v32, 0.0  ;;  %v13411_v48 = vadd.f32 %v13280_v29, %v2392_v63  ;;  %v13414_v6 = vadd.f32 %v13280_v29, %v2401_v20  ;;  %v2395_v16 = vmul.f32 %v8458_v21, %v13275_v62  ;;  %v2748_v12 = vld [vmem:[#allocation4 + $0x6a] sm:$0xff] }
 0x28e   : > { %18589 = vst [vmem:[#allocation47_spill] sm:$0xff] %v13399_v45  ;;  %9235 = vrot.lane.b32.xlu1 %v9234_v53, %s11049_s18  ;;  %2504 = vst.msk [vmem:[#allocation4 + $0x122] sm:$0xff] %vm420_vm2, %v17989_v19  ;;  %v17985_v57 = vmax.f32 %v13399_v45, 0.0  ;;  %v2406_v23 = vmul.f32 %v8469_v33, %v13275_v62  ;;  %v2297_v18 = vpop.f32.mrf.mxu0  ;;  %v2342_v37 = vpop.f32.mrf.mxu1  ;;  %v6687_v30 = vpack.c.bf16 %v13404_v55, %v13402_v25 }
 0x28f   : > { %18590 = vst [vmem:[#allocation48_spill] sm:$0xff] %v13411_v48  ;;  %18591 = vst [vmem:[#allocation49_spill] sm:$0xff] %v13414_v6  ;;  %v18002_v47 = vmax.f32 %v13411_v48, 0.0  ;;  %v17988_v38 = vmax.f32 %v13414_v6, 0.0  ;;  %v13431_v54 = vadd.f32 %v13280_v29, %v2395_v16  ;;  %v2393_v14 = vmul.f32 %v13275_v62, %v2297_v18  ;;  %v2709_v48 = vld [vmem:[#allocation4 + $0x19] sm:$0xff] }
 0x290   : > { %2498 = vst.msk [vmem:[#allocation4 + $0xda] sm:$0xff] %vm420_vm2, %v17999_v52  ;;  %2507 = vst.msk [vmem:[#allocation4 + $0x142] sm:$0xff] %vm420_vm2, %v17985_v57  ;;  %v13438_v1 = vadd.f32 %v13280_v29, %v2406_v23  ;;  %v2404_v40 = vmul.f32 %v13275_v62, %v2342_v37  ;;  %9275 = vrot.lane.b32.xlu0 %v9274_v11, %s11049_s18  ;;  %8281 = vmatprep.mubr.msk.bf16.mxu0 %vm420_vm2, %v6687_v30  ;;  %v8461_v13 = vpop.f32.mrf.mxu0  ;;  %v8470_v61 = vpop.f32.mrf.mxu1  ;;  %v2559_v52 = vld [vmem:[#allocation4 + $0x81] sm:$0xff] }
 0x291   : > { %18592 = vst [vmem:[#allocation50_spill] sm:$0xff] %v13431_v54  ;;  %2496 = vst.msk [vmem:[#allocation4 + $0xc2] sm:$0xff] %vm420_vm2, %v18002_v47  ;;  %v17993_v10 = vmax.f32 %v13431_v54, 0.0  ;;  %v13451_v51 = vadd.f32 %v13280_v29, %v2393_v14  ;;  %v2398_v53 = vmul.f32 %v8461_v13, %v13275_v62  ;;  %v2407_v63 = vmul.f32 %v8470_v61, %v13275_v62  ;;  %v2591_v47 = vld [vmem:[#allocation4 + $0x82] sm:$0xff] }
 0x292   : > { %18593 = vst [vmem:[#allocation51_spill] sm:$0xff] %v13438_v1  ;;  %2505 = vst.msk [vmem:[#allocation4 + $0x12a] sm:$0xff] %vm420_vm2, %v17988_v38  ;;  %9240 = vrot.lane.b32.xlu1 %v9239_v36, %s11050_s20  ;;  %v17983_v20 = vmax.f32 %v13438_v1, 0.0  ;;  %v13458_v4 = vadd.f32 %v13280_v29, %v2404_v40  ;;  %v2310_v58 = vpop.f32.mrf.mxu0  ;;  %v2345_v21 = vpop.f32.mrf.mxu1  ;;  %v9279_v33 = vpack.i.bf16 %v2649_v31, %v2648_v39 }
 0x293   : > { %18594 = vst [vmem:[#allocation52_spill] sm:$0xff] %v13451_v51  ;;  %2499 = vst.msk [vmem:[#allocation4 + $0xe2] sm:$0xff] %vm420_vm2, %v17993_v10  ;;  %v18000_v16 = vmax.f32 %v13451_v51, 0.0  ;;  %v13465_v23 = vadd.f32 %v13280_v29, %v2398_v53  ;;  %v13468_v18 = vadd.f32 %v13280_v29, %v2407_v63  ;;  %v2396_v36 = vmul.f32 %v13275_v62, %v2310_v58 }
 0x294   : > { %18595 = vst [vmem:[#allocation53_spill] sm:$0xff] %v13458_v4  ;;  %2510 = vst.msk [vmem:[#allocation4 + $0x16a] sm:$0xff] %vm420_vm2, %v17983_v20  ;;  %v17984_v37 = vmax.f32 %v13458_v4, 0.0  ;;  %v2405_v11 = vmul.f32 %v13275_v62, %v2345_v21  ;;  %9280 = vrot.lane.b32.xlu0 %v9279_v33, %s11050_s20  ;;  %v8462_v30 = vpop.f32.mrf.mxu0  ;;  %v8473_v14 = vpop.f32.mrf.mxu1 }
 0x295   : > { %18596 = vst [vmem:[#allocation54_spill] sm:$0xff] %v13465_v23  ;;  %18597 = vst [vmem:[#allocation55_spill] sm:$0xff] %v13468_v18  ;;  %v17990_v39 = vmax.f32 %v13465_v23, 0.0  ;;  %v17987_v31 = vmax.f32 %v13468_v18, 0.0  ;;  %v13483_v40 = vadd.f32 %v13280_v29, %v2396_v36  ;;  %v2399_v13 = vmul.f32 %v8462_v30, %v13275_v62  ;;  %v2574_v30 = vld [vmem:[#allocation4 + $0x139] sm:$0xff] }
 0x296   : > { %2497 = vst.msk [vmem:[#allocation4 + $0xca] sm:$0xff] %vm420_vm2, %v18000_v16  ;;  %2508 = vst.msk [vmem:[#allocation4 + $0x152] sm:$0xff] %vm420_vm2, %v17984_v37  ;;  %v13490_v61 = vadd.f32 %v13280_v29, %v2405_v11  ;;  %v2410_v53 = vmul.f32 %v8473_v14, %v13275_v62  ;;  %v2313_v63 = vpop.f32.mrf.mxu0  ;;  %v2358_v58 = vpop.f32.mrf.mxu1 }
 0x297   : > { %18598 = vst [vmem:[#allocation56_spill] sm:$0xff] %v13483_v40  ;;  %2502 = vst.msk [vmem:[#allocation4 + $0x10a] sm:$0xff] %vm420_vm2, %v17990_v39  ;;  %v17992_v21 = vmax.f32 %v13483_v40, 0.0  ;;  %v13501_v33 = vadd.f32 %v13280_v29, %v2399_v13  ;;  %v2397_v36 = vmul.f32 %v13275_v62, %v2313_v63  ;;  %v2408_v11 = vmul.f32 %v13275_v62, %v2358_v58  ;;  %v2575_v14 = vld [vmem:[#allocation4 + $0x141] sm:$0xff] }
 0x298   : > { %18599 = vst [vmem:[#allocation57_spill] sm:$0xff] %v13490_v61  ;;  %2511 = vst.msk [vmem:[#allocation4 + $0x172] sm:$0xff] %vm420_vm2, %v17987_v31  ;;  %v17991_v20 = vmax.f32 %v13490_v61, 0.0  ;;  %v13507_v37 = vadd.f32 %v13280_v29, %v2410_v53  ;;  %v8474_v57 = vpop.f32.mrf.mxu1  ;;  %v13509_v0 = vpack.i.bf16 %v2575_v14, %v2574_v30  ;;  %v2572_v53 = vld [vmem:[#allocation4 + $0x121] sm:$0xff] }
 0x299   : > { %18600 = vst [vmem:[#allocation58_spill] sm:$0xff] %v13501_v33  ;;  %v2573_v31 = vld [vmem:[#allocation4 + $0x129] sm:$0xff]  ;;  %2500 = vst.msk [vmem:[#allocation4 + $0xf2] sm:$0xff] %vm420_vm2, %v17992_v21  ;;  %v17995_v13 = vmax.f32 %v13501_v33, 0.0  ;;  %v13516_v63 = vadd.f32 %v13280_v29, %v2397_v36  ;;  %v13519_v58 = vadd.f32 %v13280_v29, %v2408_v11  ;;  %v2411_v38 = vmul.f32 %v8474_v57, %v13275_v62  ;;  %v2606_v21 = vld [vmem:[#allocation4 + $0x13a] sm:$0xff] }
 0x29a   : > { %18601 = vst [vmem:[#allocation59_spill] sm:$0xff] %v13507_v37  ;;  %v2607_v19 = vld [vmem:[#allocation4 + $0x142] sm:$0xff]  ;;  %2509 = vst.msk [vmem:[#allocation4 + $0x15a] sm:$0xff] %vm420_vm2, %v17991_v20  ;;  %v17994_v30 = vmax.f32 %v13507_v37, 0.0  ;;  %9245 = vrot.lane.b32.xlu1 %v13509_v0, %s11044_s21  ;;  %v2361_v14 = vpop.f32.mrf.mxu1  ;;  %v13528_v39 = vpack.i.bf16 %v2573_v31, %v2572_v53  ;;  %v2605_v10 = vld [vmem:[#allocation4 + $0x12a] sm:$0xff] }
 0x29b   : > { %18602 = vst [vmem:[#allocation8_spill] sm:$0xff] %v13516_v63  ;;  %18603 = vst [vmem:[#allocation10_spill] sm:$0xff] %v13519_v58  ;;  %v17996_v57 = vmax.f32 %v13516_v63, 0.0  ;;  %v17997_v36 = vmax.f32 %v13519_v58, 0.0  ;;  %v13536_v11 = vadd.f32 %v13280_v29, %v2411_v38  ;;  %v2409_v20 = vmul.f32 %v13275_v62, %v2361_v14  ;;  %v2604_v53 = vld [vmem:[#allocation4 + $0x122] sm:$0xff]  ;;  %v2769_v42 = vld [vmem:[#allocation4 + $0x16a] sm:$0xff] }
 0x29c   : > { %2503 = vst.msk [vmem:[#allocation4 + $0x112] sm:$0xff] %vm420_vm2, %v17995_v13  ;;  %2514 = vst.msk [vmem:[#allocation4 + $0x19a] sm:$0xff] %vm420_vm2, %v17994_v30  ;;  %9285 = vrot.lane.b32.xlu0 %v13528_v39, %s11044_s21  ;;  %v9249_v31 = vpack.i.bf16 %v2607_v19, %v2606_v21  ;;  %v2638_v14 = vld [vmem:[#allocation4 + $0x13b] sm:$0xff]  ;;  %v2639_v30 = vld [vmem:[#allocation4 + $0x143] sm:$0xff]  ;;  %v9289_v13 = vpack.i.bf16 %v2605_v10, %v2604_v53 }
 0x29d   : > { %18604 = vst [vmem:[#allocation9_spill] sm:$0xff] %v13536_v11  ;;  %2501 = vst.msk [vmem:[#allocation4 + $0xfa] sm:$0xff] %vm420_vm2, %v17996_v57  ;;  %v17998_v62 = vmax.f32 %v13536_v11, 0.0  ;;  %v13552_v38 = vadd.f32 %v13280_v29, %v2409_v20  ;;  %v2636_v21 = vld [vmem:[#allocation4 + $0x123] sm:$0xff]  ;;  %v2637_v57 = vld [vmem:[#allocation4 + $0x12b] sm:$0xff] }
 0x29e   : > { %2512 = vst.msk [vmem:[#allocation4 + $0x182] sm:$0xff] %vm420_vm2, %v17997_v36  ;;  %9250 = vrot.lane.b32.xlu1 %v9249_v31, %s11048_s17  ;;  %v9254_v36 = vpack.i.bf16 %v2639_v30, %v2638_v14  ;;  %v2670_v29 = vld [vmem:[#allocation4 + $0x13c] sm:$0xff]  ;;  %v2671_v20 = vld [vmem:[#allocation4 + $0x144] sm:$0xff]  ;;  %v9294_v10 = vpack.i.bf16 %v2637_v57, %v2636_v21  ;;  %v2669_v53 = vld [vmem:[#allocation4 + $0x12c] sm:$0xff] }
 0x29f   : > { %18605 = vst [vmem:[#allocation12_spill] sm:$0xff] %v13552_v38  ;;  %2515 = vst.msk [vmem:[#allocation4 + $0x1a2] sm:$0xff] %vm420_vm2, %v17998_v62  ;;  %v18001_v19 = vmax.f32 %v13552_v38, 0.0  ;;  %v2668_v31 = vld [vmem:[#allocation4 + $0x124] sm:$0xff]  ;;  %v9259_v62 = vpack.i.bf16 %v2671_v20, %v2670_v29  ;;  %v2622_v20 = vld [vmem:[#allocation4 + $0x7b] sm:$0xff] }
 0x2a0   : > { %9290 = vrot.lane.b32.xlu0 %v9289_v13, %s11048_s17  ;;  %v9299_v16 = vpack.i.bf16 %v2669_v53, %v2668_v31  ;;  %v2558_v13 = vld [vmem:[#allocation4 + $0x79] sm:$0xff]  ;;  %v2557_v30 = vld [vmem:[#allocation4 + $0x69] sm:$0xff]  ;;  %v2567_v3 = vld [vmem:[#allocation4 + $0xe1] sm:$0xff] }
 0x2a1   : > { %2513 = vst.msk [vmem:[#allocation4 + $0x18a] sm:$0xff] %vm420_vm2, %v18001_v19  ;;  %v13567_v14 = vpack.i.bf16 %v2559_v52, %v2558_v13  ;;  %v2556_v19 = vld [vmem:[#allocation4 + $0x61] sm:$0xff]  ;;  %v2589_v21 = vld [vmem:[#allocation4 + $0x6a] sm:$0xff]  ;;  %v2770_v56 = vld [vmem:[#allocation4 + $0x172] sm:$0xff] }
 0x2a2   : > { %9255 = vrot.lane.b32.xlu1 %v9254_v36, %s11049_s18  ;;  %v13571_v57 = vpack.i.bf16 %v2557_v30, %v2556_v19  ;;  %v2590_v36 = vld [vmem:[#allocation4 + $0x7a] sm:$0xff]  ;;  %v2588_v29 = vld [vmem:[#allocation4 + $0x62] sm:$0xff]  ;;  %v2621_v31 = vld [vmem:[#allocation4 + $0x6b] sm:$0xff] }
 0x2a3   : > { %v9349_v52 = vpack.i.bf16 %v2589_v21, %v2588_v29  ;;  %v2654_v13 = vld [vmem:[#allocation4 + $0x7c] sm:$0xff]  ;;  %v2655_v19 = vld [vmem:[#allocation4 + $0x84] sm:$0xff]  ;;  %v2661_v17 = vld [vmem:[#allocation4 + $0xcc] sm:$0xff] }
 0x2a4   : > { %9295 = vrot.lane.b32.xlu0 %v9294_v10, %s11049_s18  ;;  %v2623_v10 = vld [vmem:[#allocation4 + $0x83] sm:$0xff]  ;;  %v9319_v35 = vpack.i.bf16 %v2655_v19, %v2654_v13  ;;  %v2640_v19 = vld [vmem:[#allocation4 + $0x153] sm:$0xff] }
 0x2a5   : > { %v9314_v53 = vpack.i.bf16 %v2623_v10, %v2622_v20  ;;  %v2578_v21 = vld [vmem:[#allocation4 + $0x169] sm:$0xff]  ;;  %v2576_v20 = vld [vmem:[#allocation4 + $0x151] sm:$0xff]  ;;  %v2673_v59 = vld [vmem:[#allocation4 + $0x15c] sm:$0xff] }
 0x2a6   : > { %9260 = vrot.lane.b32.xlu1 %v9259_v62, %s11050_s20  ;;  %v9309_v62 = vpack.i.bf16 %v2591_v47, %v2590_v36  ;;  %v2579_v47 = vld [vmem:[#allocation4 + $0x171] sm:$0xff]  ;;  %v9359_v36 = vpack.i.bf16 %v13404_v55, %v13402_v25  ;;  %v2565_v22 = vld [vmem:[#allocation4 + $0xc9] sm:$0xff]  ;;  %v2665_v1 = vld [vmem:[#allocation4 + $0xfc] sm:$0xff] }
 0x2a7   : > { %v13583_v29 = vpack.i.bf16 %v2579_v47, %v2578_v21  ;;  %v2611_v10 = vld [vmem:[#allocation4 + $0x172] sm:$0xff]  ;;  %v2660_v26 = vld [vmem:[#allocation4 + $0xc4] sm:$0xff] }
 0x2a8   : > { %9300 = vrot.lane.b32.xlu0 %v9299_v16, %s11050_s20  ;;  %v2620_v16 = vld [vmem:[#allocation4 + $0x63] sm:$0xff]  ;;  %v2608_v25 = vld [vmem:[#allocation4 + $0x152] sm:$0xff]  ;;  %v9459_v34 = vpack.i.bf16 %v2661_v17, %v2660_v26 }
 0x2a9   : > { %v9354_v30 = vpack.i.bf16 %v2621_v31, %v2620_v16  ;;  %v2610_v16 = vld [vmem:[#allocation4 + $0x16a] sm:$0xff]  ;;  %v2609_v31 = vld [vmem:[#allocation4 + $0x15a] sm:$0xff] }
 0x2aa   : > { %9305 = vrot.lane.b32.xlu1 %v13567_v14, %s11044_s21  ;;  %v2642_v55 = vld [vmem:[#allocation4 + $0x16b] sm:$0xff]  ;;  %v9369_v13 = vpack.i.bf16 %v2609_v31, %v2608_v25  ;;  %v2675_v21 = vld [vmem:[#allocation4 + $0x174] sm:$0xff] }
 0x2ab   : > { %v2562_v31 = vld [vmem:[#allocation4 + $0xa9] sm:$0xff]  ;;  %v2561_v25 = vld [vmem:[#allocation4 + $0x99] sm:$0xff] }
 0x2ac   : > { %9345 = vrot.lane.b32.xlu0 %v13571_v57, %s11044_s21  ;;  %v2632_v11 = vld [vmem:[#allocation4 + $0xf3] sm:$0xff] }
 0x2ad   : > { %v2664_v18 = vld [vmem:[#allocation4 + $0xf4] sm:$0xff] }
 0x2ae   : > { %9310 = vrot.lane.b32.xlu1 %v9309_v62, %s11048_s17  ;;  %v2577_v62 = vld [vmem:[#allocation4 + $0x159] sm:$0xff]  ;;  %v9504_v4 = vpack.i.bf16 %v2665_v1, %v2664_v18 }
 0x2af   : > { %v2685_v18 = vld [vmem:[#allocation4 + $0x78] sm:$0xff] }
 0x2b0   : > { %9350 = vrot.lane.b32.xlu0 %v9349_v52, %s11048_s17  ;;  %v13587_v52 = vpack.i.bf16 %v2577_v62, %v2576_v20  ;;  %v2672_v20 = vld [vmem:[#allocation4 + $0x154] sm:$0xff] }
 0x2b2   : > { %9315 = vrot.lane.b32.xlu1 %v9314_v53, %s11049_s18  ;;  %v2643_v53 = vld [vmem:[#allocation4 + $0x173] sm:$0xff] }
 0x2b3   : > { %v9334_v47 = vpack.i.bf16 %v2643_v53, %v2642_v55  ;;  %v2560_v55 = vld [vmem:[#allocation4 + $0x91] sm:$0xff] }
 0x2b4   : > { %9355 = vrot.lane.b32.xlu0 %v9354_v30, %s11049_s18  ;;  %v2641_v30 = vld [vmem:[#allocation4 + $0x15b] sm:$0xff]  ;;  %v2595_v53 = vld [vmem:[#allocation4 + $0xb2] sm:$0xff] }
 0x2b5   : > { %v9374_v62 = vpack.i.bf16 %v2641_v30, %v2640_v19  ;;  %v13601_v19 = vpack.i.bf16 %v2561_v25, %v2560_v55  ;;  %v2594_v30 = vld [vmem:[#allocation4 + $0xaa] sm:$0xff]  ;;  %v2659_v25 = vld [vmem:[#allocation4 + $0xb4] sm:$0xff] }
 0x2b6   : > { %9320 = vrot.lane.b32.xlu1 %v9319_v35, %s11050_s20  ;;  %v9329_v35 = vpack.i.bf16 %v2611_v10, %v2610_v16  ;;  %v2563_v16 = vld [vmem:[#allocation4 + $0xb1] sm:$0xff] }
 0x2b8   : > { %9360 = vrot.lane.b32.xlu0 %v9359_v36, %s11050_s20  ;;  %v2674_v36 = vld [vmem:[#allocation4 + $0x16c] sm:$0xff] }
 0x2b9   : > { %v9339_v10 = vpack.i.bf16 %v2675_v21, %v2674_v36  ;;  %v13605_v36 = vpack.i.bf16 %v2595_v53, %v2594_v30  ;;  %v2626_v21 = vld [vmem:[#allocation4 + $0xab] sm:$0xff]  ;;  %v2656_v53 = vld [vmem:[#allocation4 + $0x94] sm:$0xff]  ;;  %v2657_v30 = vld [vmem:[#allocation4 + $0x9c] sm:$0xff] }
 0x2ba   : > { %9325 = vrot.lane.b32.xlu1 %v13583_v29, %s11044_s21 }
 0x2bc   : > { %9365 = vrot.lane.b32.xlu0 %v13587_v52, %s11044_s21 }
 0x2be   : > { %9330 = vrot.lane.b32.xlu1 %v9329_v35, %s11048_s17  ;;  %v9379_v35 = vpack.i.bf16 %v2673_v59, %v2672_v20  ;;  %v2592_v59 = vld [vmem:[#allocation4 + $0x92] sm:$0xff] }
 0x2c0   : > { %9370 = vrot.lane.b32.xlu0 %v9369_v13, %s11048_s17  ;;  %v13597_v13 = vpack.i.bf16 %v2563_v16, %v2562_v31  ;;  %v2625_v16 = vld [vmem:[#allocation4 + $0x9b] sm:$0xff]  ;;  %v2658_v31 = vld [vmem:[#allocation4 + $0xac] sm:$0xff] }
 0x2c1   : > { %v9399_v43 = vpack.i.bf16 %v2659_v25, %v2658_v31  ;;  %v2596_v31 = vld [vmem:[#allocation4 + $0xc2] sm:$0xff] }
 0x2c2   : > { %9335 = vrot.lane.b32.xlu1 %v9334_v47, %s11049_s18  ;;  %v2593_v47 = vld [vmem:[#allocation4 + $0x9a] sm:$0xff] }
 0x2c3   : > { %v13609_v20 = vpack.i.bf16 %v2593_v47, %v2592_v59  ;;  %v9419_v47 = vpack.i.bf16 %v2657_v30, %v2656_v53  ;;  %v2566_v59 = vld [vmem:[#allocation4 + $0xd9] sm:$0xff]  ;;  %v2628_v30 = vld [vmem:[#allocation4 + $0xc3] sm:$0xff] }
 0x2c4   : > { %9375 = vrot.lane.b32.xlu0 %v9374_v62, %s11049_s18  ;;  %v2627_v62 = vld [vmem:[#allocation4 + $0xb3] sm:$0xff]  ;;  %v13617_v7 = vpack.i.bf16 %v2567_v3, %v2566_v59  ;;  %v2630_v25 = vld [vmem:[#allocation4 + $0xdb] sm:$0xff]  ;;  %v13629_v3 = vpop.permute.xlu0 %9180  ;;  %v13635_v59 = vpop.permute.xlu1 %9185 }
 0x2c6   : > { %9340 = vrot.lane.b32.xlu1 %v9339_v10, %s11050_s20  ;;  %v2624_v10 = vld [vmem:[#allocation4 + $0x93] sm:$0xff] }
 0x2c7   : > { %v9414_v55 = vpack.i.bf16 %v2625_v16, %v2624_v10  ;;  %v2598_v16 = vld [vmem:[#allocation4 + $0xda] sm:$0xff] }
 0x2c8   : > { %9380 = vrot.lane.b32.xlu0 %v9379_v35, %s11050_s20  ;;  %v9394_v35 = vpack.i.bf16 %v2627_v62, %v2626_v21  ;;  %v2564_v21 = vld [vmem:[#allocation4 + $0xc1] sm:$0xff]  ;;  %v13638_v41 = vpop.permute.xlu0 %9190  ;;  %v13642_v9 = vpop.permute.xlu1 %9195 }
 0x2c9   : > { %v2599_v62 = vld [vmem:[#allocation4 + $0xe2] sm:$0xff]  ;;  %v13621_v10 = vpack.i.bf16 %v2565_v22, %v2564_v21  ;;  %v2629_v22 = vld [vmem:[#allocation4 + $0xcb] sm:$0xff] }
 0x2ca   : > { %9385 = vrot.lane.b32.xlu1 %v13597_v13, %s11044_s21  ;;  %v2662_v21 = vld [vmem:[#allocation4 + $0xdc] sm:$0xff] }
 0x2cc   : > { %9405 = vrot.lane.b32.xlu0 %v13601_v19, %s11044_s21  ;;  %v13657_v26 = vpop.permute.xlu1 %9205 }
 0x2ce   : > { %9390 = vrot.lane.b32.xlu1 %v13605_v36, %s11048_s17 }
 0x2d0   : > { %9410 = vrot.lane.b32.xlu0 %v13609_v20, %s11048_s17  ;;  %v13668_v58 = vpop.permute.xlu1 %9215 }
 0x2d2   : > { %9395 = vrot.lane.b32.xlu1 %v9394_v35, %s11049_s18  ;;  %v2597_v35 = vld [vmem:[#allocation4 + $0xca] sm:$0xff] }
 0x2d3   : > { %v13631_v53 = vpack.i.bf16 %v2597_v35, %v2596_v31  ;;  %v2571_v31 = vld [vmem:[#allocation4 + $0x111] sm:$0xff] }
 0x2d4   : > { %9415 = vrot.lane.b32.xlu0 %v9414_v55, %s11049_s18  ;;  %v2631_v55 = vld [vmem:[#allocation4 + $0xe3] sm:$0xff] }
 0x2d6   : > { %9400 = vrot.lane.b32.xlu1 %v9399_v43, %s11050_s20  ;;  %v13625_v43 = vpack.i.bf16 %v2599_v62, %v2598_v16  ;;  %v2663_v62 = vld [vmem:[#allocation4 + $0xe4] sm:$0xff]  ;;  %v9454_v16 = vpack.i.bf16 %v2629_v22, %v2628_v30  ;;  %v2568_v30 = vld [vmem:[#allocation4 + $0xf1] sm:$0xff] }
 0x2d7   : > { %v9439_v35 = vpack.i.bf16 %v2663_v62, %v2662_v21  ;;  %v2603_v22 = vld [vmem:[#allocation4 + $0x112] sm:$0xff]  ;;  %v2602_v62 = vld [vmem:[#allocation4 + $0x10a] sm:$0xff] }
 0x2d8   : > { %9420 = vrot.lane.b32.xlu0 %v9419_v47, %s11050_s20  ;;  %v9434_v47 = vpack.i.bf16 %v2631_v55, %v2630_v25  ;;  %v2570_v25 = vld [vmem:[#allocation4 + $0x109] sm:$0xff]  ;;  %v2569_v55 = vld [vmem:[#allocation4 + $0xf9] sm:$0xff]  ;;  %v13655_v17 = vpack.i.bf16 %v2603_v22, %v2602_v62 }
 0x2d9   : > { %v13645_v27 = vpack.i.bf16 %v2571_v31, %v2570_v25  ;;  %v13651_v21 = vpack.i.bf16 %v2569_v55, %v2568_v30  ;;  %v2635_v31 = vld [vmem:[#allocation4 + $0x113] sm:$0xff]  ;;  %v2633_v55 = vld [vmem:[#allocation4 + $0xfb] sm:$0xff] }
 0x2da   : > { %9425 = vrot.lane.b32.xlu1 %v13617_v7, %s11044_s21  ;;  %v2666_v22 = vld [vmem:[#allocation4 + $0x10c] sm:$0xff]  ;;  %v2667_v62 = vld [vmem:[#allocation4 + $0x114] sm:$0xff]  ;;  %v9499_v38 = vpack.i.bf16 %v2633_v55, %v2632_v11 }
 0x2db   : > { %v2522_v11 = vld [vmem:[#allocation4 + $0x48] sm:$0xff] }
 0x2dc   : > { %9445 = vrot.lane.b32.xlu0 %v13621_v10, %s11044_s21  ;;  %v2684_v55 = vld [vmem:[#allocation4 + $0x68] sm:$0xff] }
 0x2de   : > { %9430 = vrot.lane.b32.xlu1 %v13625_v43, %s11048_s17 }
 0x2e0   : > { %9450 = vrot.lane.b32.xlu0 %v13631_v53, %s11048_s17 }
 0x2e2   : > { %9435 = vrot.lane.b32.xlu1 %v9434_v47, %s11049_s18  ;;  %v13647_v47 = vpop.permute.xlu0 %9200 }
 0x2e4   : > { %9455 = vrot.lane.b32.xlu0 %v9454_v16, %s11049_s18  ;;  %v2601_v16 = vld [vmem:[#allocation4 + $0xfa] sm:$0xff] }
 0x2e6   : > { %9440 = vrot.lane.b32.xlu1 %v9439_v35, %s11050_s20  ;;  %v2634_v35 = vld [vmem:[#allocation4 + $0x10b] sm:$0xff]  ;;  %v13663_v30 = vpop.permute.xlu0 %9210 }
 0x2e7   : > { %v9474_v37 = vpack.i.bf16 %v2635_v31, %v2634_v35  ;;  %v2523_v35 = vld [vmem:[#allocation4 + $0x50] sm:$0xff] }
 0x2e8   : > { %9460 = vrot.lane.b32.xlu0 %v9459_v34, %s11050_s20  ;;  %v2600_v34 = vld [vmem:[#allocation4 + $0xf2] sm:$0xff] }
 0x2e9   : > { %v13661_v25 = vpack.i.bf16 %v2601_v16, %v2600_v34  ;;  %v9479_v16 = vpack.i.bf16 %v2667_v62, %v2666_v22  ;;  %v2521_v34 = vld [vmem:[#allocation4 + $0x38] sm:$0xff]  ;;  %v2520_v31 = vld [vmem:[#allocation4 + $0x30] sm:$0xff]  ;;  %v2683_v22 = vld [vmem:[#allocation4 + $0x60] sm:$0xff] }
 0x2ea   : > { %9465 = vrot.lane.b32.xlu1 %v13645_v27, %s11044_s21  ;;  %v13671_v61 = vpop.permute.xlu0 %9220  ;;  %v2686_v62 = vld [vmem:[#allocation4 + $0x80] sm:$0xff]  ;;  %v9514_v1 = vpack.i.bf16 %v2684_v55, %v2683_v22 }
 0x2eb   : > { %v2691_v55 = vld [vmem:[#allocation4 + $0xc0] sm:$0xff] }
 0x2ec   : > { %9490 = vrot.lane.b32.xlu0 %v13651_v21, %s11044_s21  ;;  %v2694_v22 = vld [vmem:[#allocation4 + $0xe0] sm:$0xff] }
 0x2ee   : > { %9470 = vrot.lane.b32.xlu1 %v13655_v17, %s11048_s17 }
 0x2f0   : > { %9495 = vrot.lane.b32.xlu0 %v13661_v25, %s11048_s17 }
 0x2f2   : > { %9475 = vrot.lane.b32.xlu1 %v9474_v37, %s11049_s18  ;;  %v9484_v37 = vpack.i.bf16 %v2521_v34, %v2520_v31  ;;  %v2687_v34 = vld [vmem:[#allocation4 + $0x90] sm:$0xff] }
 0x2f3   : > { %v2690_v31 = vld [vmem:[#allocation4 + $0xb0] sm:$0xff] }
 0x2f4   : > { %9500 = vrot.lane.b32.xlu0 %v9499_v38, %s11049_s18  ;;  %v9509_v38 = vpack.i.bf16 %v2523_v35, %v2522_v11  ;;  %v2689_v35 = vld [vmem:[#allocation4 + $0xa8] sm:$0xff] }
 0x2f5   : > { %v2692_v11 = vld [vmem:[#allocation4 + $0xc8] sm:$0xff] }
 0x2f6   : > { %9480 = vrot.lane.b32.xlu1 %v9479_v16, %s11050_s20  ;;  %v2688_v16 = vld [vmem:[#allocation4 + $0x98] sm:$0xff] }
 0x2f8   : > { %v13674_v45 = vpop.permute.xlu1 %9225  ;;  %9505 = vrot.lane.b32.xlu0 %v9504_v4, %s11050_s20  ;;  %v9519_v4 = vpack.i.bf16 %v2686_v62, %v2685_v18  ;;  %v2693_v62 = vld [vmem:[#allocation4 + $0xd8] sm:$0xff] }
 0x2f9   : > { %v2696_v18 = vld [vmem:[#allocation4 + $0xf8] sm:$0xff] }
 0x2fa   : > { %v13677_v46 = vpop.permute.xlu0 %9265  ;;  %9485 = vrot.lane.b32.xlu1 %v9484_v37, %s11051_s22  ;;  %v9524_v37 = vpack.i.bf16 %v2688_v16, %v2687_v34  ;;  %v2695_v16 = vld [vmem:[#allocation4 + $0xf0] sm:$0xff] }
 0x2fb   : > { %v2698_v34 = vld [vmem:[#allocation4 + $0x110] sm:$0xff] }
 0x2fc   : > { %v13680_v6 = vpop.permute.xlu1 %9230  ;;  %9510 = vrot.lane.b32.xlu0 %v9509_v38, %s11051_s22  ;;  %v9529_v38 = vpack.i.bf16 %v2690_v31, %v2689_v35  ;;  %v2697_v31 = vld [vmem:[#allocation4 + $0x108] sm:$0xff] }
 0x2fd   : > { %v2541_v35 = vld [vmem:[#allocation4 + $0x128] sm:$0xff] }
 0x2fe   : > { %v13683_v24 = vpop.permute.xlu0 %9270  ;;  %9515 = vrot.lane.b32.xlu1 %v9514_v1, %s11051_s22  ;;  %v9534_v1 = vpack.i.bf16 %v2692_v11, %v2691_v55  ;;  %v2543_v11 = vld [vmem:[#allocation4 + $0x140] sm:$0xff] }
 0x2ff   : > { %v2540_v55 = vld [vmem:[#allocation4 + $0x120] sm:$0xff] }
 0x300   : > { %9520 = vrot.lane.b32.xlu0 %v9519_v4, %s11051_s22  ;;  %v13687_v33 = vpop.permute.xlu1 %9235  ;;  %v9539_v4 = vpack.i.bf16 %v2694_v22, %v2693_v62  ;;  %v9554_v22 = vpack.i.bf16 %v2541_v35, %v2540_v55  ;;  %v2704_v62 = vld [vmem:[#allocation4 + $0x158] sm:$0xff]  ;;  %v2707_v55 = vld [vmem:[#allocation4 + $0x180] sm:$0xff] }
 0x302   : > { %9525 = vrot.lane.b32.xlu1 %v9524_v37, %s11051_s22  ;;  %v13690_v23 = vpop.permute.xlu0 %9275  ;;  %v9544_v37 = vpack.i.bf16 %v2696_v18, %v2695_v16  ;;  %v2706_v16 = vld [vmem:[#allocation4 + $0x170] sm:$0xff] }
 0x304   : > { %9530 = vrot.lane.b32.xlu0 %v9529_v38, %s11051_s22  ;;  %v13694_v63 = vpop.permute.xlu1 %9240  ;;  %v9549_v38 = vpack.i.bf16 %v2698_v34, %v2697_v31  ;;  %v2708_v31 = vld [vmem:[#allocation4 + $0x188] sm:$0xff] }
 0x306   : > { %9535 = vrot.lane.b32.xlu1 %v9534_v1, %s11051_s22  ;;  %v13697_v40 = vpop.permute.xlu0 %9280  ;;  %v2542_v1 = vld [vmem:[#allocation4 + $0x138] sm:$0xff] }
 0x307   : > { %v9559_v18 = vpack.i.bf16 %v2543_v11, %v2542_v1  ;;  %v9574_v11 = vpack.i.bf16 %v2708_v31, %v2707_v55  ;;  %v2712_v1 = vld [vmem:[#allocation4 + $0x39] sm:$0xff] }
 0x308   : > { %9540 = vrot.lane.b32.xlu0 %v9539_v4, %s11051_s22  ;;  %v2703_v4 = vld [vmem:[#allocation4 + $0x150] sm:$0xff] }
 0x309   : > { %v9564_v34 = vpack.i.bf16 %v2704_v62, %v2703_v4  ;;  %v2711_v62 = vld [vmem:[#allocation4 + $0x31] sm:$0xff] }
 0x30a   : > { %9545 = vrot.lane.b32.xlu1 %v9544_v37, %s11051_s22  ;;  %v2705_v37 = vld [vmem:[#allocation4 + $0x168] sm:$0xff] }
 0x30b   : > { %v9569_v35 = vpack.i.bf16 %v2706_v16, %v2705_v37  ;;  %v9584_v16 = vpack.i.bf16 %v2712_v1, %v2711_v62  ;;  %v2741_v1 = vld [vmem:[#allocation4 + $0x1a] sm:$0xff]  ;;  %v2742_v62 = vld [vmem:[#allocation4 + $0x22] sm:$0xff] }
 0x30c   : > { %v13700_v54 = vpop.permute.xlu1 %9245  ;;  %9550 = vrot.lane.b32.xlu0 %v9549_v38, %s11051_s22 }
 0x30e   : > { %v13703_v32 = vpop.permute.xlu0 %9285  ;;  %9555 = vrot.lane.b32.xlu1 %v9554_v22, %s11051_s22  ;;  %v9579_v22 = vpack.i.bf16 %v2710_v60, %v2709_v48 }
 0x310   : > { %v13706_v51 = vpop.permute.xlu1 %9250  ;;  %9560 = vrot.lane.b32.xlu0 %v9559_v18, %s11051_s22  ;;  %v2714_v18 = vld [vmem:[#allocation4 + $0x51] sm:$0xff] }
 0x312   : > { %v13709_v38 = vpop.permute.xlu0 %9290  ;;  %9565 = vrot.lane.b32.xlu1 %v9564_v34, %s11051_s22  ;;  %v2713_v34 = vld [vmem:[#allocation4 + $0x49] sm:$0xff] }
 0x313   : > { %v9589_v31 = vpack.i.bf16 %v2714_v18, %v2713_v34  ;;  %v2744_v34 = vld [vmem:[#allocation4 + $0x3a] sm:$0xff] }
 0x314   : > { %v13712_v49 = vpop.permute.xlu1 %9255  ;;  %9570 = vrot.lane.b32.xlu0 %v9569_v35, %s11051_s22 }
 0x316   : > { %v13715_v2 = vpop.permute.xlu0 %9295  ;;  %9575 = vrot.lane.b32.xlu1 %v9574_v11, %s11051_s22 }
 0x318   : > { %v13718_v4 = vpop.permute.xlu1 %9260  ;;  %9580 = vrot.lane.b32.xlu0 %v9579_v22, %s11052_s14 }
 0x31a   : > { %v13721_v37 = vpop.permute.xlu0 %9300  ;;  %9585 = vrot.lane.b32.xlu1 %v9584_v16, %s11052_s14  ;;  %v9659_v16 = vpack.i.bf16 %v2742_v62, %v2741_v1  ;;  %v2750_v1 = vld [vmem:[#allocation4 + $0x82] sm:$0xff] }
 0x31c   : > { %v13724_v60 = vpop.permute.xlu1 %9305  ;;  %9590 = vrot.lane.b32.xlu0 %v9589_v31, %s11052_s14 }
 0x31e   : > { %v13727_v48 = vpop.permute.xlu0 %9345  ;;  %9595 = vrot.lane.b32.xlu1 %v13571_v57, %s11052_s14 }
 0x31f   : > { %18606 = vst [vmem:[#allocation11_spill] sm:$0xff] %v13727_v48  ;;  %v14306_v48 = vld [vmem:[#allocation4 + $0x150] sm:$0xff] }
 0x320   : > { %v13731_v35 = vpop.permute.xlu1 %9310  ;;  %9600 = vrot.lane.b32.xlu0 %v13567_v14, %s11052_s14  ;;  %18741 = vst [vmem:[#allocation175_spill] sm:$0xff] %v14306_v48  ;;  %v9243_v48 = vunpack.i.h.bf16 %v13694_v63 }
 0x321   : > { %18607 = vst [vmem:[#allocation13_spill] sm:$0xff] %v13731_v35 }
 0x322   : > { %v13735_v55 = vpop.permute.xlu0 %9350  ;;  %9605 = vrot.lane.b32.xlu1 %v13601_v19, %s11052_s14 }
 0x323   : > { %18608 = vst [vmem:[#allocation16_spill] sm:$0xff] %v13735_v55  ;;  %v10892_v55 = vld [vmem:[#allocation4 + $0x38] sm:$0xff] }
 0x324   : > { %v13739_v11 = vpop.permute.xlu1 %9315  ;;  %9610 = vrot.lane.b32.xlu0 %v13597_v13, %s11052_s14 }
 0x325   : > { %18609 = vst [vmem:[#allocation15_spill] sm:$0xff] %v13739_v11  ;;  %v10891_v11 = vld [vmem:[#allocation4 + $0x30] sm:$0xff] }
 0x326   : > { %v13743_v22 = vpop.permute.xlu0 %9355  ;;  %9615 = vrot.lane.b32.xlu1 %v13621_v10, %s11052_s14 }
 0x327   : > { %18610 = vst [vmem:[#allocation18_spill] sm:$0xff] %v13743_v22  ;;  %v14296_v22 = vld [vmem:[#allocation4 + $0x158] sm:$0xff] }
 0x328   : > { %v13747_v57 = vpop.permute.xlu1 %9320  ;;  %9620 = vrot.lane.b32.xlu0 %v13617_v7, %s11052_s14  ;;  %v2740_v7 = vld [vmem:[#allocation4 + $0x189] sm:$0xff]  ;;  %18739 = vst [vmem:[#allocation173_spill] sm:$0xff] %v14296_v22 }
 0x329   : > { %18611 = vst [vmem:[#allocation17_spill] sm:$0xff] %v13747_v57  ;;  %v14280_v57 = vld [vmem:[#allocation4 + $0x128] sm:$0xff] }
 0x32a   : > { %v13751_v14 = vpop.permute.xlu0 %9360  ;;  %9625 = vrot.lane.b32.xlu1 %v13651_v21, %s11052_s14  ;;  %v2739_v21 = vld [vmem:[#allocation4 + $0x181] sm:$0xff]  ;;  %18735 = vst [vmem:[#allocation169_spill] sm:$0xff] %v14280_v57  ;;  %v9282_v57 = vunpack.i.l.bf16 %v13697_v40 }
 0x32b   : > { %18612 = vst [vmem:[#allocation20_spill] sm:$0xff] %v13751_v14  ;;  %v14278_v14 = vld [vmem:[#allocation4 + $0x110] sm:$0xff]  ;;  %v14389_v22 = vld [vmem:[#allocation4 + $0x142] sm:$0xff] }
 0x32c   : > { %v13755_v19 = vpop.permute.xlu1 %9325  ;;  %9630 = vrot.lane.b32.xlu0 %v13645_v27, %s11052_s14  ;;  %18734 = vst [vmem:[#allocation168_spill] sm:$0xff] %v14278_v14  ;;  %v3064_v14 = vld [vmem:[#allocation4 + $0x62] sm:$0xff] }
 0x32d   : > { %18613 = vst [vmem:[#allocation21_spill] sm:$0xff] %v13755_v19  ;;  %v14276_v19 = vld [vmem:[#allocation4 + $0x108] sm:$0xff] }
 0x32e   : > { %v13759_v13 = vpop.permute.xlu0 %9365  ;;  %9635 = vrot.lane.b32.xlu1 %v13528_v39, %s11052_s14  ;;  %v9654_v39 = vpack.i.bf16 %v2740_v7, %v2739_v21  ;;  %v2747_v7 = vld [vmem:[#allocation4 + $0x62] sm:$0xff]  ;;  %18733 = vst [vmem:[#allocation167_spill] sm:$0xff] %v14276_v19  ;;  %v3066_v19 = vld [vmem:[#allocation4 + $0x7a] sm:$0xff] }
 0x32f   : > { %18614 = vst [vmem:[#allocation22_spill] sm:$0xff] %v13759_v13  ;;  %v9674_v21 = vpack.i.bf16 %v2748_v12, %v2747_v7  ;;  %v2766_v7 = vld [vmem:[#allocation4 + $0x142] sm:$0xff] }
 0x330   : > { %v13763_v10 = vpop.permute.xlu1 %9330  ;;  %9640 = vrot.lane.b32.xlu0 %v13509_v0, %s11052_s14  ;;  %v2743_v0 = vld [vmem:[#allocation4 + $0x32] sm:$0xff] }
 0x331   : > { %18615 = vst [vmem:[#allocation23_spill] sm:$0xff] %v13763_v10  ;;  %v9232_v10 = vunpack.i.l.bf16 %v13680_v6 }
 0x332   : > { %v13767_v18 = vpop.permute.xlu0 %9370  ;;  %9645 = vrot.lane.b32.xlu1 %v13587_v52, %s11052_s14  ;;  %v9664_v52 = vpack.i.bf16 %v2744_v34, %v2743_v0 }
 0x333   : > { %18616 = vst [vmem:[#allocation24_spill] sm:$0xff] %v13767_v18  ;;  %v10890_v18 = vld [vmem:[#allocation4 + $0x50] sm:$0xff] }
 0x334   : > { %v13771_v27 = vpop.permute.xlu1 %9335  ;;  %9650 = vrot.lane.b32.xlu0 %v13583_v29, %s11052_s14  ;;  %v9669_v29 = vpack.i.bf16 %v2746_v50, %v2745_v8 }
 0x335   : > { %18617 = vst [vmem:[#allocation25_spill] sm:$0xff] %v13771_v27  ;;  %v14261_v27 = vld [vmem:[#allocation4 + $0xf8] sm:$0xff] }
 0x336   : > { %v13775_v31 = vpop.permute.xlu0 %9375  ;;  %9655 = vrot.lane.b32.xlu1 %v9654_v39, %s11052_s14  ;;  %v2749_v39 = vld [vmem:[#allocation4 + $0x7a] sm:$0xff]  ;;  %18731 = vst [vmem:[#allocation165_spill] sm:$0xff] %v14261_v27 }
 0x337   : > { %18618 = vst [vmem:[#allocation19_spill] sm:$0xff] %v13775_v31  ;;  %v10889_v31 = vld [vmem:[#allocation4 + $0x48] sm:$0xff]  ;;  %v14341_v27 = vld [vmem:[#allocation4 + $0x1a0] sm:$0xff] }
 0x338   : > { %v13778_v28 = vpop.permute.xlu1 %9340  ;;  %9660 = vrot.lane.b32.xlu0 %v9659_v16, %s11053_s15  ;;  %v9679_v16 = vpack.i.bf16 %v2750_v1, %v2749_v39  ;;  %18749 = vst [vmem:[#allocation182_spill] sm:$0xff] %v14341_v27  ;;  %v14412_v27 = vld [vmem:[#allocation4 + $0x15a] sm:$0xff] }
 0x339   : > { %18619 = vst [vmem:[#allocation29_spill] sm:$0xff] %v13778_v28  ;;  %v2772_v28 = vld [vmem:[#allocation4 + $0x18a] sm:$0xff] }
 0x33a   : > { %v13781_v15 = vpop.permute.xlu0 %9380  ;;  %9665 = vrot.lane.b32.xlu1 %v9664_v52, %s11053_s15  ;;  %v2764_v52 = vld [vmem:[#allocation4 + $0x12a] sm:$0xff] }
 0x33b   : > { %18620 = vst [vmem:[#allocation30_spill] sm:$0xff] %v13781_v15  ;;  %v14259_v15 = vld [vmem:[#allocation4 + $0xf0] sm:$0xff] }
 0x33c   : > { %v13784_v62 = vpop.permute.xlu1 %9385  ;;  %9670 = vrot.lane.b32.xlu0 %v9669_v29, %s11053_s15  ;;  %18730 = vst [vmem:[#allocation164_spill] sm:$0xff] %v14259_v15  ;;  %v14339_v15 = vld [vmem:[#allocation4 + $0x198] sm:$0xff] }
 0x33d   : > { %18621 = vst [vmem:[#allocation26_spill] sm:$0xff] %v13784_v62  ;;  %v2974_v62 = vld [vmem:[#allocation4 + $0x9c] sm:$0xff]  ;;  %18748 = vst [vmem:[#allocation181_spill] sm:$0xff] %v14339_v15 }
 0x33e   : > { %v13787_v5 = vpop.permute.xlu0 %9405  ;;  %9675 = vrot.lane.b32.xlu1 %v9674_v21, %s11053_s15  ;;  %v2768_v21 = vld [vmem:[#allocation4 + $0x15a] sm:$0xff]  ;;  %v14410_v15 = vld [vmem:[#allocation4 + $0x122] sm:$0xff] }
 0x33f   : > { %18622 = vst [vmem:[#allocation31_spill] sm:$0xff] %v13787_v5  ;;  %v2973_v5 = vld [vmem:[#allocation4 + $0x94] sm:$0xff]  ;;  %18763 = vst [vmem:[#allocation194_spill] sm:$0xff] %v14410_v15  ;;  %v3104_v15 = vld [vmem:[#allocation4 + $0xc3] sm:$0xff] }
 0x340   : > { %v13790_v34 = vpop.permute.xlu1 %9390  ;;  %9680 = vrot.lane.b32.xlu0 %v9679_v16, %s11053_s15  ;;  %v2767_v16 = vld [vmem:[#allocation4 + $0x152] sm:$0xff] }
 0x341   : > { %18623 = vst [vmem:[#allocation14_spill] sm:$0xff] %v13790_v34  ;;  %v9202_v34 = vunpack.i.l.bf16 %v13647_v47 }
 0x342   : > { %v13793_v0 = vpop.permute.xlu0 %9410  ;;  %9685 = vrot.lane.b32.xlu1 %v13609_v20, %s11053_s15  ;;  %v2763_v20 = vld [vmem:[#allocation4 + $0x122] sm:$0xff] }
 0x343   : > { %18624 = vst [vmem:[#allocation27_spill] sm:$0xff] %v13793_v0  ;;  %v2971_v0 = vld [vmem:[#allocation4 + $0x7c] sm:$0xff] }
 0x344   : > { %v13797_v8 = vpop.permute.xlu1 %9395  ;;  %9690 = vrot.lane.b32.xlu0 %v13605_v36, %s11053_s15  ;;  %v9714_v36 = vpack.i.bf16 %v2764_v52, %v2763_v20  ;;  %v9729_v52 = vpack.i.bf16 %v2770_v56, %v2769_v42  ;;  %v2771_v20 = vld [vmem:[#allocation4 + $0x182] sm:$0xff] }
 0x345   : > { %18625 = vst [vmem:[#allocation28_spill] sm:$0xff] %v13797_v8  ;;  %v2811_v42 = vld [vmem:[#allocation4 + $0x64] sm:$0xff] }
 0x346   : > { %v13801_v12 = vpop.permute.xlu0 %9415  ;;  %9695 = vrot.lane.b32.xlu1 %v13631_v53, %s11053_s15  ;;  %v2765_v53 = vld [vmem:[#allocation4 + $0x13a] sm:$0xff] }
 0x347   : > { %18626 = vst [vmem:[#allocation60_spill] sm:$0xff] %v13801_v12 }
 0x348   : > { %v13805_v50 = vpop.permute.xlu1 %9400  ;;  %9700 = vrot.lane.b32.xlu0 %v13625_v43, %s11053_s15  ;;  %v9719_v43 = vpack.i.bf16 %v2766_v7, %v2765_v53  ;;  %v9734_v7 = vpack.i.bf16 %v2772_v28, %v2771_v20  ;;  %v2807_v53 = vld [vmem:[#allocation4 + $0x34] sm:$0xff] }
 0x349   : > { %18627 = vst [vmem:[#allocation61_spill] sm:$0xff] %v13805_v50 }
 0x34a   : > { %v13809_v29 = vpop.permute.xlu0 %9420  ;;  %9705 = vrot.lane.b32.xlu1 %v13661_v25, %s11053_s15  ;;  %v9724_v25 = vpack.i.bf16 %v2768_v21, %v2767_v16  ;;  %v2809_v21 = vld [vmem:[#allocation4 + $0x4c] sm:$0xff]  ;;  %v2810_v16 = vld [vmem:[#allocation4 + $0x54] sm:$0xff] }
 0x34b   : > { %18628 = vst [vmem:[#allocation62_spill] sm:$0xff] %v13809_v29  ;;  %v2806_v29 = vld [vmem:[#allocation4 + $0x24] sm:$0xff]  ;;  %v9749_v28 = vpack.i.bf16 %v2810_v16, %v2809_v21 }
 0x34c   : > { %v13813_v1 = vpop.permute.xlu1 %9425  ;;  %9710 = vrot.lane.b32.xlu0 %v13655_v17, %s11053_s15  ;;  %v2819_v16 = vld [vmem:[#allocation4 + $0xc4] sm:$0xff] }
 0x34d   : > { %18629 = vst [vmem:[#allocation63_spill] sm:$0xff] %v13813_v1  ;;  %v2805_v1 = vld [vmem:[#allocation4 + $0x1c] sm:$0xff] }
 0x34e   : > { %v13817_v39 = vpop.permute.xlu0 %9445  ;;  %9715 = vrot.lane.b32.xlu1 %v9714_v36, %s11053_s15  ;;  %v9739_v36 = vpack.i.bf16 %v2806_v29, %v2805_v1  ;;  %v2813_v29 = vld [vmem:[#allocation4 + $0x7c] sm:$0xff]  ;;  %v2814_v1 = vld [vmem:[#allocation4 + $0x84] sm:$0xff] }
 0x34f   : > { %18630 = vst [vmem:[#allocation64_spill] sm:$0xff] %v13817_v39 }
 0x350   : > { %v13820_v44 = vpop.permute.xlu1 %9430  ;;  %9720 = vrot.lane.b32.xlu0 %v9719_v43, %s11053_s15 }
 0x351   : > { %18631 = vst [vmem:[#allocation65_spill] sm:$0xff] %v13820_v44  ;;  %v2808_v44 = vld [vmem:[#allocation4 + $0x3c] sm:$0xff] }
 0x352   : > { %v13823_v17 = vpop.permute.xlu0 %9450  ;;  %9725 = vrot.lane.b32.xlu1 %v9724_v25, %s11053_s15  ;;  %v9744_v56 = vpack.i.bf16 %v2808_v44, %v2807_v53  ;;  %v2812_v25 = vld [vmem:[#allocation4 + $0x6c] sm:$0xff]  ;;  %v9759_v44 = vpack.i.bf16 %v2814_v1, %v2813_v29  ;;  %v2823_v1 = vld [vmem:[#allocation4 + $0xf4] sm:$0xff] }
 0x353   : > { %18632 = vst [vmem:[#allocation66_spill] sm:$0xff] %v13823_v17  ;;  %v9754_v20 = vpack.i.bf16 %v2812_v25, %v2811_v42  ;;  %v2817_v53 = vld [vmem:[#allocation4 + $0xac] sm:$0xff]  ;;  %v2821_v25 = vld [vmem:[#allocation4 + $0xdc] sm:$0xff] }
 0x354   : > { %v13826_v39 = vpop.permute.xlu1 %9435  ;;  %9730 = vrot.lane.b32.xlu0 %v9729_v52, %s11053_s15  ;;  %v2970_v17 = vld [vmem:[#allocation4 + $0x6c] sm:$0xff] }
 0x355   : > { %18633 = vst [vmem:[#allocation67_spill] sm:$0xff] %v13826_v39 }
 0x356   : > { %v13829_v43 = vpop.permute.xlu0 %9455  ;;  %9735 = vrot.lane.b32.xlu1 %v9734_v7, %s11053_s15  ;;  %v2815_v7 = vld [vmem:[#allocation4 + $0x94] sm:$0xff] }
 0x357   : > { %18634 = vst [vmem:[#allocation68_spill] sm:$0xff] %v13829_v43  ;;  %v2816_v43 = vld [vmem:[#allocation4 + $0x9c] sm:$0xff] }
 0x358   : > { %v13832_v50 = vpop.permute.xlu1 %9440  ;;  %9740 = vrot.lane.b32.xlu0 %v9739_v36, %s11044_s21  ;;  %v9764_v21 = vpack.i.bf16 %v2816_v43, %v2815_v7  ;;  %v2825_v7 = vld [vmem:[#allocation4 + $0x10c] sm:$0xff] }
 0x359   : > { %18635 = vst [vmem:[#allocation69_spill] sm:$0xff] %v13832_v50  ;;  %v2818_v50 = vld [vmem:[#allocation4 + $0xb4] sm:$0xff] }
 0x35a   : > { %v13835_v39 = vpop.permute.xlu0 %9460  ;;  %9745 = vrot.lane.b32.xlu1 %v9744_v56, %s11044_s21  ;;  %v2820_v56 = vld [vmem:[#allocation4 + $0xcc] sm:$0xff]  ;;  %v9769_v42 = vpack.i.bf16 %v2818_v50, %v2817_v53  ;;  %v2827_v53 = vld [vmem:[#allocation4 + $0x124] sm:$0xff] }
 0x35b   : > { %18636 = vst [vmem:[#allocation70_spill] sm:$0xff] %v13835_v39  ;;  %v9774_v29 = vpack.i.bf16 %v2820_v56, %v2819_v16  ;;  %v2829_v56 = vld [vmem:[#allocation4 + $0x13c] sm:$0xff] }
 0x35c   : > { %v13838_v52 = vpop.permute.xlu1 %9465  ;;  %9750 = vrot.lane.b32.xlu0 %v9749_v28, %s11044_s21 }
 0x35d   : > { %18637 = vst [vmem:[#allocation71_spill] sm:$0xff] %v13838_v52  ;;  %v2822_v52 = vld [vmem:[#allocation4 + $0xe4] sm:$0xff] }
 0x35e   : > { %9755 = vrot.lane.b32.xlu1 %v9754_v20, %s11044_s21  ;;  %v13842_v36 = vpop.permute.xlu0 %9490  ;;  %v9779_v43 = vpack.i.bf16 %v2822_v52, %v2821_v25  ;;  %v2831_v25 = vld [vmem:[#allocation4 + $0x154] sm:$0xff] }
 0x35f   : > { %18638 = vst [vmem:[#allocation72_spill] sm:$0xff] %v13842_v36  ;;  %v2824_v36 = vld [vmem:[#allocation4 + $0xfc] sm:$0xff] }
 0x360   : > { %v13844_v39 = vpop.permute.xlu1 %9470  ;;  %9760 = vrot.lane.b32.xlu0 %v9759_v44, %s11044_s21  ;;  %v9784_v50 = vpack.i.bf16 %v2824_v36, %v2823_v1  ;;  %v2833_v1 = vld [vmem:[#allocation4 + $0x16c] sm:$0xff] }
 0x361   : > { %18639 = vst [vmem:[#allocation73_spill] sm:$0xff] %v13844_v39  ;;  %v2826_v39 = vld [vmem:[#allocation4 + $0x114] sm:$0xff] }
 0x362   : > { %9765 = vrot.lane.b32.xlu1 %v9764_v21, %s11044_s21  ;;  %v13848_v28 = vpop.permute.xlu0 %9495  ;;  %v9789_v16 = vpack.i.bf16 %v2826_v39, %v2825_v7  ;;  %v2835_v7 = vld [vmem:[#allocation4 + $0x184] sm:$0xff] }
 0x363   : > { %18640 = vst [vmem:[#allocation74_spill] sm:$0xff] %v13848_v28  ;;  %v2828_v28 = vld [vmem:[#allocation4 + $0x12c] sm:$0xff] }
 0x364   : > { %v13850_v20 = vpop.permute.xlu1 %9475  ;;  %9770 = vrot.lane.b32.xlu0 %v9769_v42, %s11044_s21  ;;  %v9794_v52 = vpack.i.bf16 %v2828_v28, %v2827_v53  ;;  %v2838_v53 = vld [vmem:[#allocation4 + $0x38] sm:$0xff] }
 0x365   : > { %18641 = vst [vmem:[#allocation75_spill] sm:$0xff] %v13850_v20  ;;  %v2830_v20 = vld [vmem:[#allocation4 + $0x144] sm:$0xff] }
 0x366   : > { %9775 = vrot.lane.b32.xlu1 %v9774_v29, %s11044_s21  ;;  %v13854_v44 = vpop.permute.xlu0 %9500  ;;  %v9799_v36 = vpack.i.bf16 %v2830_v20, %v2829_v56  ;;  %v2837_v56 = vld [vmem:[#allocation4 + $0x30] sm:$0xff] }
 0x367   : > { %18642 = vst [vmem:[#allocation76_spill] sm:$0xff] %v13854_v44  ;;  %v2832_v44 = vld [vmem:[#allocation4 + $0x15c] sm:$0xff] }
 0x368   : > { %v13856_v21 = vpop.permute.xlu1 %9480  ;;  %9780 = vrot.lane.b32.xlu0 %v9779_v43, %s11044_s21  ;;  %v9804_v39 = vpack.i.bf16 %v2832_v44, %v2831_v25  ;;  %v9819_v44 = vpack.i.bf16 %v2838_v53, %v2837_v56  ;;  %v2839_v25 = vld [vmem:[#allocation4 + $0x48] sm:$0xff]  ;;  %v2845_v56 = vld [vmem:[#allocation4 + $0x90] sm:$0xff] }
 0x369   : > { %18643 = vst [vmem:[#allocation77_spill] sm:$0xff] %v13856_v21  ;;  %v2834_v21 = vld [vmem:[#allocation4 + $0x174] sm:$0xff] }
 0x36a   : > { %9785 = vrot.lane.b32.xlu1 %v9784_v50, %s11044_s21  ;;  %v13860_v42 = vpop.permute.xlu0 %9505  ;;  %v9809_v28 = vpack.i.bf16 %v2834_v21, %v2833_v1  ;;  %v2841_v1 = vld [vmem:[#allocation4 + $0x60] sm:$0xff] }
 0x36b   : > { %18644 = vst [vmem:[#allocation78_spill] sm:$0xff] %v13860_v42  ;;  %v2836_v42 = vld [vmem:[#allocation4 + $0x18c] sm:$0xff] }
 0x36c   : > { %v13862_v29 = vpop.permute.xlu1 %9485  ;;  %9790 = vrot.lane.b32.xlu0 %v9789_v16, %s11044_s21  ;;  %v9814_v20 = vpack.i.bf16 %v2836_v42, %v2835_v7  ;;  %v2843_v7 = vld [vmem:[#allocation4 + $0x78] sm:$0xff] }
 0x36d   : > { %18645 = vst [vmem:[#allocation79_spill] sm:$0xff] %v13862_v29 }
 0x36e   : > { %9795 = vrot.lane.b32.xlu1 %v9794_v52, %s11044_s21  ;;  %v13866_v43 = vpop.permute.xlu0 %9510  ;;  %v2840_v52 = vld [vmem:[#allocation4 + $0x50] sm:$0xff] }
 0x36f   : > { %18646 = vst [vmem:[#allocation80_spill] sm:$0xff] %v13866_v43  ;;  %v9824_v21 = vpack.i.bf16 %v2840_v52, %v2839_v25  ;;  %v2847_v25 = vld [vmem:[#allocation4 + $0xa8] sm:$0xff] }
 0x370   : > { %v13868_v50 = vpop.permute.xlu1 %9515  ;;  %9800 = vrot.lane.b32.xlu0 %v9799_v36, %s11044_s21  ;;  %v2842_v36 = vld [vmem:[#allocation4 + $0x68] sm:$0xff] }
 0x371   : > { %18647 = vst [vmem:[#allocation81_spill] sm:$0xff] %v13868_v50  ;;  %v9829_v42 = vpack.i.bf16 %v2842_v36, %v2841_v1  ;;  %v2849_v1 = vld [vmem:[#allocation4 + $0xc0] sm:$0xff] }
 0x372   : > { %9805 = vrot.lane.b32.xlu1 %v9804_v39, %s11044_s21  ;;  %v13872_v16 = vpop.permute.xlu0 %9520  ;;  %v2844_v39 = vld [vmem:[#allocation4 + $0x80] sm:$0xff] }
 0x373   : > { %18648 = vst [vmem:[#allocation82_spill] sm:$0xff] %v13872_v16  ;;  %v9834_v53 = vpack.i.bf16 %v2844_v39, %v2843_v7  ;;  %v2851_v7 = vld [vmem:[#allocation4 + $0xd8] sm:$0xff] }
 0x374   : > { %v13874_v29 = vpop.permute.xlu1 %9525  ;;  %9810 = vrot.lane.b32.xlu0 %v9809_v28, %s11044_s21 }
 0x375   : > { %18649 = vst [vmem:[#allocation83_spill] sm:$0xff] %v13874_v29  ;;  %v2846_v29 = vld [vmem:[#allocation4 + $0x98] sm:$0xff] }
 0x376   : > { %9815 = vrot.lane.b32.xlu1 %v9814_v20, %s11044_s21  ;;  %v13878_v50 = vpop.permute.xlu0 %9530  ;;  %v9839_v52 = vpack.i.bf16 %v2846_v29, %v2845_v56  ;;  %v2853_v56 = vld [vmem:[#allocation4 + $0xf0] sm:$0xff] }
 0x377   : > { %18650 = vst [vmem:[#allocation84_spill] sm:$0xff] %v13878_v50  ;;  %v2848_v50 = vld [vmem:[#allocation4 + $0xb0] sm:$0xff] }
 0x378   : > { %v13880_v43 = vpop.permute.xlu1 %9535  ;;  %9820 = vrot.lane.b32.xlu0 %v9819_v44, %s11048_s17  ;;  %v9844_v36 = vpack.i.bf16 %v2848_v50, %v2847_v25  ;;  %v2855_v25 = vld [vmem:[#allocation4 + $0x108] sm:$0xff] }
 0x379   : > { %18651 = vst [vmem:[#allocation85_spill] sm:$0xff] %v13880_v43  ;;  %v2850_v43 = vld [vmem:[#allocation4 + $0xc8] sm:$0xff] }
 0x37a   : > { %9825 = vrot.lane.b32.xlu1 %v9824_v21, %s11048_s17  ;;  %v13884_v28 = vpop.permute.xlu0 %9540  ;;  %v9849_v39 = vpack.i.bf16 %v2850_v43, %v2849_v1  ;;  %v2857_v1 = vld [vmem:[#allocation4 + $0x120] sm:$0xff] }
 0x37b   : > { %18652 = vst [vmem:[#allocation86_spill] sm:$0xff] %v13884_v28  ;;  %v2852_v28 = vld [vmem:[#allocation4 + $0xe0] sm:$0xff] }
 0x37c   : > { %v13886_v20 = vpop.permute.xlu1 %9545  ;;  %9830 = vrot.lane.b32.xlu0 %v9829_v42, %s11048_s17  ;;  %v9854_v29 = vpack.i.bf16 %v2852_v28, %v2851_v7  ;;  %v2859_v7 = vld [vmem:[#allocation4 + $0x138] sm:$0xff] }
 0x37d   : > { %18653 = vst [vmem:[#allocation87_spill] sm:$0xff] %v13886_v20  ;;  %v2854_v20 = vld [vmem:[#allocation4 + $0xf8] sm:$0xff] }
 0x37e   : > { %9835 = vrot.lane.b32.xlu1 %v9834_v53, %s11048_s17  ;;  %v13890_v44 = vpop.permute.xlu0 %9550  ;;  %v9859_v50 = vpack.i.bf16 %v2854_v20, %v2853_v56  ;;  %v2861_v56 = vld [vmem:[#allocation4 + $0x150] sm:$0xff] }
 0x37f   : > { %18654 = vst [vmem:[#allocation88_spill] sm:$0xff] %v13890_v44  ;;  %v2856_v44 = vld [vmem:[#allocation4 + $0x110] sm:$0xff] }
 0x380   : > { %v13892_v21 = vpop.permute.xlu1 %9555  ;;  %9840 = vrot.lane.b32.xlu0 %v9839_v52, %s11048_s17  ;;  %v9864_v43 = vpack.i.bf16 %v2856_v44, %v2855_v25  ;;  %v2863_v25 = vld [vmem:[#allocation4 + $0x168] sm:$0xff] }
 0x381   : > { %18655 = vst [vmem:[#allocation89_spill] sm:$0xff] %v13892_v21  ;;  %v2858_v21 = vld [vmem:[#allocation4 + $0x128] sm:$0xff] }
 0x382   : > { %9845 = vrot.lane.b32.xlu1 %v9844_v36, %s11048_s17  ;;  %v13896_v42 = vpop.permute.xlu0 %9560  ;;  %v9869_v28 = vpack.i.bf16 %v2858_v21, %v2857_v1  ;;  %v2865_v1 = vld [vmem:[#allocation4 + $0x180] sm:$0xff] }
 0x383   : > { %18656 = vst [vmem:[#allocation90_spill] sm:$0xff] %v13896_v42  ;;  %v2860_v42 = vld [vmem:[#allocation4 + $0x140] sm:$0xff] }
 0x384   : > { %v13898_v53 = vpop.permute.xlu1 %9565  ;;  %9850 = vrot.lane.b32.xlu0 %v9849_v39, %s11048_s17  ;;  %v9874_v20 = vpack.i.bf16 %v2860_v42, %v2859_v7  ;;  %v2867_v7 = vld [vmem:[#allocation4 + $0x198] sm:$0xff] }
 0x385   : > { %18657 = vst [vmem:[#allocation91_spill] sm:$0xff] %v13898_v53  ;;  %v2862_v53 = vld [vmem:[#allocation4 + $0x158] sm:$0xff] }
 0x386   : > { %9855 = vrot.lane.b32.xlu1 %v9854_v29, %s11048_s17  ;;  %v13902_v52 = vpop.permute.xlu0 %9570  ;;  %v9879_v44 = vpack.i.bf16 %v2862_v53, %v2861_v56  ;;  %v2869_v56 = vld [vmem:[#allocation4 + $0x31] sm:$0xff] }
 0x387   : > { %18658 = vst [vmem:[#allocation92_spill] sm:$0xff] %v13902_v52  ;;  %v2864_v52 = vld [vmem:[#allocation4 + $0x170] sm:$0xff] }
 0x388   : > { %v13904_v36 = vpop.permute.xlu1 %9575  ;;  %9860 = vrot.lane.b32.xlu0 %v9859_v50, %s11048_s17  ;;  %v9884_v21 = vpack.i.bf16 %v2864_v52, %v2863_v25  ;;  %v2871_v25 = vld [vmem:[#allocation4 + $0x49] sm:$0xff] }
 0x389   : > { %18659 = vst [vmem:[#allocation93_spill] sm:$0xff] %v13904_v36  ;;  %v2866_v36 = vld [vmem:[#allocation4 + $0x188] sm:$0xff] }
 0x38a   : > { %9865 = vrot.lane.b32.xlu1 %v9864_v43, %s11048_s17  ;;  %v13908_v39 = vpop.permute.xlu0 %9580  ;;  %v9889_v42 = vpack.i.bf16 %v2866_v36, %v2865_v1  ;;  %v2873_v1 = vld [vmem:[#allocation4 + $0x61] sm:$0xff] }
 0x38b   : > { %18660 = vst [vmem:[#allocation94_spill] sm:$0xff] %v13908_v39  ;;  %v2868_v39 = vld [vmem:[#allocation4 + $0x1a0] sm:$0xff] }
 0x38c   : > { %v13910_v29 = vpop.permute.xlu1 %9585  ;;  %9870 = vrot.lane.b32.xlu0 %v9869_v28, %s11048_s17  ;;  %v9894_v53 = vpack.i.bf16 %v2868_v39, %v2867_v7  ;;  %v2875_v7 = vld [vmem:[#allocation4 + $0x79] sm:$0xff] }
 0x38d   : > { %18661 = vst [vmem:[#allocation95_spill] sm:$0xff] %v13910_v29  ;;  %v2870_v29 = vld [vmem:[#allocation4 + $0x39] sm:$0xff] }
 0x38e   : > { %9875 = vrot.lane.b32.xlu1 %v9874_v20, %s11048_s17  ;;  %v13914_v50 = vpop.permute.xlu0 %9590  ;;  %v9899_v52 = vpack.i.bf16 %v2870_v29, %v2869_v56  ;;  %v2877_v56 = vld [vmem:[#allocation4 + $0x91] sm:$0xff] }
 0x38f   : > { %18662 = vst [vmem:[#allocation96_spill] sm:$0xff] %v13914_v50  ;;  %v2872_v50 = vld [vmem:[#allocation4 + $0x51] sm:$0xff] }
 0x390   : > { %v13916_v43 = vpop.permute.xlu1 %9595  ;;  %9880 = vrot.lane.b32.xlu0 %v9879_v44, %s11048_s17  ;;  %v9904_v36 = vpack.i.bf16 %v2872_v50, %v2871_v25  ;;  %v2879_v25 = vld [vmem:[#allocation4 + $0xa9] sm:$0xff] }
 0x391   : > { %18663 = vst [vmem:[#allocation97_spill] sm:$0xff] %v13916_v43  ;;  %v2874_v43 = vld [vmem:[#allocation4 + $0x69] sm:$0xff] }
 0x392   : > { %9885 = vrot.lane.b32.xlu1 %v9884_v21, %s11048_s17  ;;  %v13920_v28 = vpop.permute.xlu0 %9600  ;;  %v9909_v39 = vpack.i.bf16 %v2874_v43, %v2873_v1  ;;  %v2881_v1 = vld [vmem:[#allocation4 + $0xc1] sm:$0xff] }
 0x393   : > { %18664 = vst [vmem:[#allocation98_spill] sm:$0xff] %v13920_v28  ;;  %v2876_v28 = vld [vmem:[#allocation4 + $0x81] sm:$0xff] }
 0x394   : > { %v13922_v20 = vpop.permute.xlu1 %9605  ;;  %9890 = vrot.lane.b32.xlu0 %v9889_v42, %s11048_s17  ;;  %v9914_v29 = vpack.i.bf16 %v2876_v28, %v2875_v7  ;;  %v2883_v7 = vld [vmem:[#allocation4 + $0xd9] sm:$0xff] }
 0x395   : > { %18665 = vst [vmem:[#allocation99_spill] sm:$0xff] %v13922_v20  ;;  %v2878_v20 = vld [vmem:[#allocation4 + $0x99] sm:$0xff] }
 0x396   : > { %9895 = vrot.lane.b32.xlu1 %v9894_v53, %s11048_s17  ;;  %v13926_v44 = vpop.permute.xlu0 %9610  ;;  %v9919_v50 = vpack.i.bf16 %v2878_v20, %v2877_v56  ;;  %v2885_v56 = vld [vmem:[#allocation4 + $0xf1] sm:$0xff] }
 0x397   : > { %18666 = vst [vmem:[#allocation100_spill] sm:$0xff] %v13926_v44  ;;  %v2880_v44 = vld [vmem:[#allocation4 + $0xb1] sm:$0xff] }
 0x398   : > { %v13928_v21 = vpop.permute.xlu1 %9615  ;;  %9900 = vrot.lane.b32.xlu0 %v9899_v52, %s11049_s18  ;;  %v9924_v43 = vpack.i.bf16 %v2880_v44, %v2879_v25  ;;  %v2887_v25 = vld [vmem:[#allocation4 + $0x109] sm:$0xff] }
 0x399   : > { %18667 = vst [vmem:[#allocation101_spill] sm:$0xff] %v13928_v21  ;;  %v2882_v21 = vld [vmem:[#allocation4 + $0xc9] sm:$0xff] }
 0x39a   : > { %9905 = vrot.lane.b32.xlu1 %v9904_v36, %s11049_s18  ;;  %v13932_v42 = vpop.permute.xlu0 %9620  ;;  %v9929_v28 = vpack.i.bf16 %v2882_v21, %v2881_v1  ;;  %v2889_v1 = vld [vmem:[#allocation4 + $0x121] sm:$0xff] }
 0x39b   : > { %18668 = vst [vmem:[#allocation102_spill] sm:$0xff] %v13932_v42  ;;  %v2884_v42 = vld [vmem:[#allocation4 + $0xe1] sm:$0xff] }
 0x39c   : > { %v13934_v53 = vpop.permute.xlu1 %9625  ;;  %9910 = vrot.lane.b32.xlu0 %v9909_v39, %s11049_s18  ;;  %v9934_v20 = vpack.i.bf16 %v2884_v42, %v2883_v7  ;;  %v2891_v7 = vld [vmem:[#allocation4 + $0x139] sm:$0xff] }
 0x39d   : > { %18669 = vst [vmem:[#allocation103_spill] sm:$0xff] %v13934_v53  ;;  %v2886_v53 = vld [vmem:[#allocation4 + $0xf9] sm:$0xff] }
 0x39e   : > { %9915 = vrot.lane.b32.xlu1 %v9914_v29, %s11049_s18  ;;  %v13938_v52 = vpop.permute.xlu0 %9630  ;;  %v9939_v44 = vpack.i.bf16 %v2886_v53, %v2885_v56  ;;  %v2893_v56 = vld [vmem:[#allocation4 + $0x151] sm:$0xff] }
 0x39f   : > { %18670 = vst [vmem:[#allocation104_spill] sm:$0xff] %v13938_v52  ;;  %v2888_v52 = vld [vmem:[#allocation4 + $0x111] sm:$0xff] }
 0x3a0   : > { %v13940_v36 = vpop.permute.xlu1 %9635  ;;  %9920 = vrot.lane.b32.xlu0 %v9919_v50, %s11049_s18  ;;  %v9944_v21 = vpack.i.bf16 %v2888_v52, %v2887_v25  ;;  %v2895_v25 = vld [vmem:[#allocation4 + $0x169] sm:$0xff] }
 0x3a1   : > { %18671 = vst [vmem:[#allocation105_spill] sm:$0xff] %v13940_v36  ;;  %v2890_v36 = vld [vmem:[#allocation4 + $0x129] sm:$0xff] }
 0x3a2   : > { %9925 = vrot.lane.b32.xlu1 %v9924_v43, %s11049_s18  ;;  %v13944_v39 = vpop.permute.xlu0 %9640  ;;  %v9949_v42 = vpack.i.bf16 %v2890_v36, %v2889_v1  ;;  %v2897_v1 = vld [vmem:[#allocation4 + $0x181] sm:$0xff] }
 0x3a3   : > { %18672 = vst [vmem:[#allocation106_spill] sm:$0xff] %v13944_v39  ;;  %v2892_v39 = vld [vmem:[#allocation4 + $0x141] sm:$0xff] }
 0x3a4   : > { %v13946_v29 = vpop.permute.xlu1 %9645  ;;  %9930 = vrot.lane.b32.xlu0 %v9929_v28, %s11049_s18  ;;  %v9954_v53 = vpack.i.bf16 %v2892_v39, %v2891_v7  ;;  %v2899_v7 = vld [vmem:[#allocation4 + $0x199] sm:$0xff] }
 0x3a5   : > { %18673 = vst [vmem:[#allocation107_spill] sm:$0xff] %v13946_v29  ;;  %v2894_v29 = vld [vmem:[#allocation4 + $0x159] sm:$0xff] }
 0x3a6   : > { %9935 = vrot.lane.b32.xlu1 %v9934_v20, %s11049_s18  ;;  %v13950_v50 = vpop.permute.xlu0 %9650  ;;  %v9959_v52 = vpack.i.bf16 %v2894_v29, %v2893_v56  ;;  %v2901_v56 = vld [vmem:[#allocation4 + $0x32] sm:$0xff] }
 0x3a7   : > { %18674 = vst [vmem:[#allocation108_spill] sm:$0xff] %v13950_v50  ;;  %v2896_v50 = vld [vmem:[#allocation4 + $0x171] sm:$0xff] }
 0x3a8   : > { %v13952_v43 = vpop.permute.xlu1 %9655  ;;  %9940 = vrot.lane.b32.xlu0 %v9939_v44, %s11049_s18  ;;  %v9964_v36 = vpack.i.bf16 %v2896_v50, %v2895_v25  ;;  %v2903_v25 = vld [vmem:[#allocation4 + $0x4a] sm:$0xff] }
 0x3a9   : > { %18675 = vst [vmem:[#allocation109_spill] sm:$0xff] %v13952_v43  ;;  %v2898_v43 = vld [vmem:[#allocation4 + $0x189] sm:$0xff] }
 0x3aa   : > { %9945 = vrot.lane.b32.xlu1 %v9944_v21, %s11049_s18  ;;  %v13956_v28 = vpop.permute.xlu0 %9660  ;;  %v9969_v39 = vpack.i.bf16 %v2898_v43, %v2897_v1  ;;  %v2905_v1 = vld [vmem:[#allocation4 + $0x62] sm:$0xff] }
 0x3ab   : > { %18676 = vst [vmem:[#allocation110_spill] sm:$0xff] %v13956_v28  ;;  %v2900_v28 = vld [vmem:[#allocation4 + $0x1a1] sm:$0xff] }
 0x3ac   : > { %v13958_v20 = vpop.permute.xlu1 %9665  ;;  %9950 = vrot.lane.b32.xlu0 %v9949_v42, %s11049_s18  ;;  %v9974_v29 = vpack.i.bf16 %v2900_v28, %v2899_v7  ;;  %v2907_v7 = vld [vmem:[#allocation4 + $0x7a] sm:$0xff] }
 0x3ad   : > { %18677 = vst [vmem:[#allocation111_spill] sm:$0xff] %v13958_v20  ;;  %v2902_v20 = vld [vmem:[#allocation4 + $0x3a] sm:$0xff] }
 0x3ae   : > { %9955 = vrot.lane.b32.xlu1 %v9954_v53, %s11049_s18  ;;  %v13962_v44 = vpop.permute.xlu0 %9670  ;;  %v9979_v50 = vpack.i.bf16 %v2902_v20, %v2901_v56  ;;  %v2909_v56 = vld [vmem:[#allocation4 + $0x92] sm:$0xff] }
 0x3af   : > { %18678 = vst [vmem:[#allocation112_spill] sm:$0xff] %v13962_v44  ;;  %v2904_v44 = vld [vmem:[#allocation4 + $0x52] sm:$0xff] }
 0x3b0   : > { %v13964_v21 = vpop.permute.xlu1 %9675  ;;  %9960 = vrot.lane.b32.xlu0 %v9959_v52, %s11049_s18  ;;  %v9984_v43 = vpack.i.bf16 %v2904_v44, %v2903_v25  ;;  %v2911_v25 = vld [vmem:[#allocation4 + $0xaa] sm:$0xff] }
 0x3b1   : > { %18679 = vst [vmem:[#allocation113_spill] sm:$0xff] %v13964_v21  ;;  %v2906_v21 = vld [vmem:[#allocation4 + $0x6a] sm:$0xff] }
 0x3b2   : > { %9965 = vrot.lane.b32.xlu1 %v9964_v36, %s11049_s18  ;;  %v13968_v42 = vpop.permute.xlu0 %9680  ;;  %v9989_v28 = vpack.i.bf16 %v2906_v21, %v2905_v1  ;;  %v2913_v1 = vld [vmem:[#allocation4 + $0xc2] sm:$0xff] }
 0x3b3   : > { %18680 = vst [vmem:[#allocation114_spill] sm:$0xff] %v13968_v42  ;;  %v2908_v42 = vld [vmem:[#allocation4 + $0x82] sm:$0xff] }
 0x3b4   : > { %v13970_v53 = vpop.permute.xlu1 %9685  ;;  %9970 = vrot.lane.b32.xlu0 %v9969_v39, %s11049_s18  ;;  %v9994_v20 = vpack.i.bf16 %v2908_v42, %v2907_v7  ;;  %v2915_v7 = vld [vmem:[#allocation4 + $0xda] sm:$0xff] }
 0x3b5   : > { %18681 = vst [vmem:[#allocation115_spill] sm:$0xff] %v13970_v53  ;;  %v2910_v53 = vld [vmem:[#allocation4 + $0x9a] sm:$0xff] }
 0x3b6   : > { %9975 = vrot.lane.b32.xlu1 %v9974_v29, %s11049_s18  ;;  %v13974_v52 = vpop.permute.xlu0 %9690  ;;  %v9999_v44 = vpack.i.bf16 %v2910_v53, %v2909_v56  ;;  %v2917_v56 = vld [vmem:[#allocation4 + $0xf2] sm:$0xff] }
 0x3b7   : > { %18682 = vst [vmem:[#allocation116_spill] sm:$0xff] %v13974_v52  ;;  %v2912_v52 = vld [vmem:[#allocation4 + $0xb2] sm:$0xff] }
 0x3b8   : > { %v13976_v36 = vpop.permute.xlu1 %9695  ;;  %9980 = vrot.lane.b32.xlu0 %v9979_v50, %s11050_s20  ;;  %v10004_v21 = vpack.i.bf16 %v2912_v52, %v2911_v25  ;;  %v2919_v25 = vld [vmem:[#allocation4 + $0x10a] sm:$0xff] }
 0x3b9   : > { %18683 = vst [vmem:[#allocation117_spill] sm:$0xff] %v13976_v36  ;;  %v2914_v36 = vld [vmem:[#allocation4 + $0xca] sm:$0xff] }
 0x3ba   : > { %9985 = vrot.lane.b32.xlu1 %v9984_v43, %s11050_s20  ;;  %v13980_v39 = vpop.permute.xlu0 %9700  ;;  %v10009_v42 = vpack.i.bf16 %v2914_v36, %v2913_v1  ;;  %v2921_v1 = vld [vmem:[#allocation4 + $0x122] sm:$0xff] }
 0x3bb   : > { %18684 = vst [vmem:[#allocation118_spill] sm:$0xff] %v13980_v39  ;;  %v2916_v39 = vld [vmem:[#allocation4 + $0xe2] sm:$0xff] }
 0x3bc   : > { %v13982_v29 = vpop.permute.xlu1 %9705  ;;  %9990 = vrot.lane.b32.xlu0 %v9989_v28, %s11050_s20  ;;  %v10014_v53 = vpack.i.bf16 %v2916_v39, %v2915_v7  ;;  %v2923_v7 = vld [vmem:[#allocation4 + $0x13a] sm:$0xff] }
 0x3bd   : > { %18685 = vst [vmem:[#allocation119_spill] sm:$0xff] %v13982_v29  ;;  %v2918_v29 = vld [vmem:[#allocation4 + $0xfa] sm:$0xff] }
 0x3be   : > { %9995 = vrot.lane.b32.xlu1 %v9994_v20, %s11050_s20  ;;  %v13986_v50 = vpop.permute.xlu0 %9710  ;;  %v10019_v52 = vpack.i.bf16 %v2918_v29, %v2917_v56  ;;  %v2925_v56 = vld [vmem:[#allocation4 + $0x152] sm:$0xff] }
 0x3bf   : > { %18686 = vst [vmem:[#allocation120_spill] sm:$0xff] %v13986_v50  ;;  %v2920_v50 = vld [vmem:[#allocation4 + $0x112] sm:$0xff] }
 0x3c0   : > { %v13988_v43 = vpop.permute.xlu1 %9715  ;;  %10000 = vrot.lane.b32.xlu0 %v9999_v44, %s11050_s20  ;;  %v10024_v36 = vpack.i.bf16 %v2920_v50, %v2919_v25  ;;  %v2927_v25 = vld [vmem:[#allocation4 + $0x16a] sm:$0xff] }
 0x3c1   : > { %18687 = vst [vmem:[#allocation121_spill] sm:$0xff] %v13988_v43  ;;  %v2922_v43 = vld [vmem:[#allocation4 + $0x12a] sm:$0xff] }
 0x3c2   : > { %10005 = vrot.lane.b32.xlu1 %v10004_v21, %s11050_s20  ;;  %v13992_v28 = vpop.permute.xlu0 %9720  ;;  %v10029_v39 = vpack.i.bf16 %v2922_v43, %v2921_v1  ;;  %v2929_v1 = vld [vmem:[#allocation4 + $0x182] sm:$0xff] }
 0x3c3   : > { %18688 = vst [vmem:[#allocation122_spill] sm:$0xff] %v13992_v28  ;;  %v2924_v28 = vld [vmem:[#allocation4 + $0x142] sm:$0xff] }
 0x3c4   : > { %v13994_v20 = vpop.permute.xlu1 %9725  ;;  %10010 = vrot.lane.b32.xlu0 %v10009_v42, %s11050_s20  ;;  %v10034_v29 = vpack.i.bf16 %v2924_v28, %v2923_v7  ;;  %v2775_v7 = vld [vmem:[#allocation4 + $0x33] sm:$0xff] }
 0x3c5   : > { %18689 = vst [vmem:[#allocation123_spill] sm:$0xff] %v13994_v20  ;;  %v2926_v20 = vld [vmem:[#allocation4 + $0x15a] sm:$0xff] }
 0x3c6   : > { %10015 = vrot.lane.b32.xlu1 %v10014_v53, %s11050_s20  ;;  %v13998_v44 = vpop.permute.xlu0 %9730  ;;  %v10039_v50 = vpack.i.bf16 %v2926_v20, %v2925_v56  ;;  %v2777_v56 = vld [vmem:[#allocation4 + $0x4b] sm:$0xff] }
 0x3c7   : > { %18690 = vst [vmem:[#allocation124_spill] sm:$0xff] %v13998_v44  ;;  %v2928_v44 = vld [vmem:[#allocation4 + $0x172] sm:$0xff] }
 0x3c8   : > { %v14000_v21 = vpop.permute.xlu1 %9735  ;;  %10020 = vrot.lane.b32.xlu0 %v10019_v52, %s11050_s20  ;;  %v10044_v43 = vpack.i.bf16 %v2928_v44, %v2927_v25  ;;  %v2779_v25 = vld [vmem:[#allocation4 + $0x63] sm:$0xff] }
 0x3c9   : > { %18691 = vst [vmem:[#allocation125_spill] sm:$0xff] %v14000_v21  ;;  %v2930_v21 = vld [vmem:[#allocation4 + $0x18a] sm:$0xff] }
 0x3ca   : > { %10025 = vrot.lane.b32.xlu1 %v10024_v36, %s11050_s20  ;;  %v14004_v42 = vpop.permute.xlu0 %9740  ;;  %v10049_v28 = vpack.i.bf16 %v2930_v21, %v2929_v1  ;;  %v2781_v1 = vld [vmem:[#allocation4 + $0x7b] sm:$0xff] }
 0x3cb   : > { %18692 = vst [vmem:[#allocation126_spill] sm:$0xff] %v14004_v42  ;;  %v2932_v42 = vld [vmem:[#allocation4 + $0x1a2] sm:$0xff] }
 0x3cc   : > { %v14006_v53 = vpop.permute.xlu1 %9745  ;;  %10030 = vrot.lane.b32.xlu0 %v10029_v39, %s11050_s20 }
 0x3cd   : > { %18693 = vst [vmem:[#allocation127_spill] sm:$0xff] %v14006_v53  ;;  %v2776_v53 = vld [vmem:[#allocation4 + $0x3b] sm:$0xff] }
 0x3ce   : > { %10035 = vrot.lane.b32.xlu1 %v10034_v29, %s11050_s20  ;;  %v14010_v52 = vpop.permute.xlu0 %9750  ;;  %v2931_v29 = vld [vmem:[#allocation4 + $0x19a] sm:$0xff] }
 0x3cf   : > { %18694 = vst [vmem:[#allocation128_spill] sm:$0xff] %v14010_v52  ;;  %v10054_v20 = vpack.i.bf16 %v2932_v42, %v2931_v29  ;;  %v2783_v29 = vld [vmem:[#allocation4 + $0x93] sm:$0xff] }
 0x3d0   : > { %v14012_v36 = vpop.permute.xlu1 %9755  ;;  %10040 = vrot.lane.b32.xlu0 %v10039_v50, %s11050_s20  ;;  %v10059_v50 = vpack.i.bf16 %v2776_v53, %v2775_v7  ;;  %v2785_v7 = vld [vmem:[#allocation4 + $0xab] sm:$0xff] }
 0x3d1   : > { %18695 = vst [vmem:[#allocation129_spill] sm:$0xff] %v14012_v36  ;;  %v2778_v36 = vld [vmem:[#allocation4 + $0x53] sm:$0xff] }
 0x3d2   : > { %10045 = vrot.lane.b32.xlu1 %v10044_v43, %s11050_s20  ;;  %v14016_v39 = vpop.permute.xlu0 %9760  ;;  %v2780_v43 = vld [vmem:[#allocation4 + $0x6b] sm:$0xff]  ;;  %v10064_v21 = vpack.i.bf16 %v2778_v36, %v2777_v56  ;;  %v2787_v56 = vld [vmem:[#allocation4 + $0xc3] sm:$0xff] }
 0x3d3   : > { %18696 = vst [vmem:[#allocation130_spill] sm:$0xff] %v14016_v39  ;;  %v2782_v39 = vld [vmem:[#allocation4 + $0x83] sm:$0xff]  ;;  %v10069_v42 = vpack.i.bf16 %v2780_v43, %v2779_v25  ;;  %v2789_v43 = vld [vmem:[#allocation4 + $0xdb] sm:$0xff] }
 0x3d4   : > { %v14018_v16 = vpop.permute.xlu1 %9765  ;;  %10050 = vrot.lane.b32.xlu0 %v10049_v28, %s11050_s20  ;;  %v10074_v53 = vpack.i.bf16 %v2782_v39, %v2781_v1  ;;  %v2791_v1 = vld [vmem:[#allocation4 + $0xf3] sm:$0xff] }
 0x3d5   : > { %18697 = vst [vmem:[#allocation131_spill] sm:$0xff] %v14018_v16  ;;  %v2784_v16 = vld [vmem:[#allocation4 + $0x9b] sm:$0xff] }
 0x3d6   : > { %10055 = vrot.lane.b32.xlu1 %v10054_v20, %s11050_s20  ;;  %v14022_v44 = vpop.permute.xlu0 %9770  ;;  %v10079_v36 = vpack.i.bf16 %v2784_v16, %v2783_v29  ;;  %v2793_v29 = vld [vmem:[#allocation4 + $0x10b] sm:$0xff] }
 0x3d7   : > { %18698 = vst [vmem:[#allocation132_spill] sm:$0xff] %v14022_v44  ;;  %v2786_v44 = vld [vmem:[#allocation4 + $0xb3] sm:$0xff] }
 0x3d8   : > { %v14024_v52 = vpop.permute.xlu1 %9775  ;;  %10060 = vrot.lane.b32.xlu0 %v10059_v50, %s11051_s22  ;;  %v10084_v25 = vpack.i.bf16 %v2786_v44, %v2785_v7  ;;  %v2795_v7 = vld [vmem:[#allocation4 + $0x123] sm:$0xff] }
 0x3d9   : > { %18699 = vst [vmem:[#allocation133_spill] sm:$0xff] %v14024_v52  ;;  %v2788_v52 = vld [vmem:[#allocation4 + $0xcb] sm:$0xff] }
 0x3da   : > { %10065 = vrot.lane.b32.xlu1 %v10064_v21, %s11051_s22  ;;  %v14028_v28 = vpop.permute.xlu0 %9780  ;;  %v10089_v39 = vpack.i.bf16 %v2788_v52, %v2787_v56  ;;  %v2797_v56 = vld [vmem:[#allocation4 + $0x13b] sm:$0xff] }
 0x3db   : > { %18700 = vst [vmem:[#allocation134_spill] sm:$0xff] %v14028_v28  ;;  %v2790_v28 = vld [vmem:[#allocation4 + $0xe3] sm:$0xff] }
 0x3dc   : > { %v14030_v20 = vpop.permute.xlu1 %9785  ;;  %10070 = vrot.lane.b32.xlu0 %v10069_v42, %s11051_s22  ;;  %v10094_v16 = vpack.i.bf16 %v2790_v28, %v2789_v43  ;;  %v2799_v43 = vld [vmem:[#allocation4 + $0x153] sm:$0xff] }
 0x3dd   : > { %18701 = vst [vmem:[#allocation135_spill] sm:$0xff] %v14030_v20  ;;  %v2792_v20 = vld [vmem:[#allocation4 + $0xfb] sm:$0xff] }
 0x3de   : > { %10075 = vrot.lane.b32.xlu1 %v10074_v53, %s11051_s22  ;;  %v14034_v50 = vpop.permute.xlu0 %9790  ;;  %v10099_v44 = vpack.i.bf16 %v2792_v20, %v2791_v1  ;;  %v2801_v1 = vld [vmem:[#allocation4 + $0x16b] sm:$0xff] }
 0x3df   : > { %18702 = vst [vmem:[#allocation136_spill] sm:$0xff] %v14034_v50  ;;  %v2794_v50 = vld [vmem:[#allocation4 + $0x113] sm:$0xff] }
 0x3e0   : > { %v14036_v21 = vpop.permute.xlu1 %9795  ;;  %10080 = vrot.lane.b32.xlu0 %v10079_v36, %s11051_s22  ;;  %v10104_v52 = vpack.i.bf16 %v2794_v50, %v2793_v29  ;;  %v2803_v29 = vld [vmem:[#allocation4 + $0x183] sm:$0xff] }
 0x3e1   : > { %18703 = vst [vmem:[#allocation137_spill] sm:$0xff] %v14036_v21  ;;  %v2796_v21 = vld [vmem:[#allocation4 + $0x12b] sm:$0xff] }
 0x3e2   : > { %10085 = vrot.lane.b32.xlu1 %v10084_v25, %s11051_s22  ;;  %v14040_v42 = vpop.permute.xlu0 %9800  ;;  %v10109_v28 = vpack.i.bf16 %v2796_v21, %v2795_v7  ;;  %v2963_v7 = vld [vmem:[#allocation4 + $0x19b] sm:$0xff] }
 0x3e3   : > { %18704 = vst [vmem:[#allocation138_spill] sm:$0xff] %v14040_v42  ;;  %v2798_v42 = vld [vmem:[#allocation4 + $0x143] sm:$0xff] }
 0x3e4   : > { %v14042_v53 = vpop.permute.xlu1 %9805  ;;  %10090 = vrot.lane.b32.xlu0 %v10089_v39, %s11051_s22  ;;  %v10114_v20 = vpack.i.bf16 %v2798_v42, %v2797_v56  ;;  %v10862_v42 = vld [vmem:[%s17902_s4 + $0x78] sm:$0xff]  }
 0x3e5   : > { %18705 = vst [vmem:[#allocation139_spill] sm:$0xff] %v14042_v53  ;;  %v2800_v53 = vld [vmem:[#allocation4 + $0x15b] sm:$0xff]  ;;  %8325 = vmatprep.subr.bf16.mxu1 %v10862_v42  ;;  %v9187_v42 = vunpack.i.l.bf16 %v13635_v59 }
 0x3e6   : > { %10095 = vrot.lane.b32.xlu1 %v10094_v16, %s11051_s22  ;;  %v14046_v36 = vpop.permute.xlu0 %9810  ;;  %v10119_v50 = vpack.i.bf16 %v2800_v53, %v2799_v43  ;;  %v10863_v56 = vld [vmem:[%s17902_s4 + $0x38] sm:$0xff]  }
 0x3e7   : > { %18706 = vst [vmem:[#allocation140_spill] sm:$0xff] %v14046_v36  ;;  %v2802_v36 = vld [vmem:[#allocation4 + $0x173] sm:$0xff]  ;;  %8326 = vmatpush3.bf16.msra.mxu1 %v10863_v56  ;;  %v9188_v56 = vunpack.i.h.bf16 %v13635_v59  ;;  %v10866_v59 = vld [vmem:[%s17902_s4 + $0x68] sm:$0xff]  }
 0x3e8   : > { %v14048_v25 = vpop.permute.xlu1 %9815  ;;  %10100 = vrot.lane.b32.xlu0 %v10099_v44, %s11051_s22  ;;  %v10124_v21 = vpack.i.bf16 %v2802_v36, %v2801_v1  ;;  %v2965_v43 = vld [vmem:[#allocation4 + $0x34] sm:$0xff]  ;;  %v9182_v36 = vunpack.i.l.bf16 %v13629_v3 }
 0x3e9   : > { %18707 = vst [vmem:[#allocation141_spill] sm:$0xff] %v14048_v25  ;;  %v2804_v25 = vld [vmem:[#allocation4 + $0x18b] sm:$0xff] }
 0x3ea   : > { %10105 = vrot.lane.b32.xlu1 %v10104_v52, %s11051_s22  ;;  %v14052_v39 = vpop.permute.xlu0 %9820 }
 0x3eb   : > { %18708 = vst [vmem:[#allocation142_spill] sm:$0xff] %v14052_v39  ;;  %v2964_v39 = vld [vmem:[#allocation4 + $0x1a3] sm:$0xff] }
 0x3ec   : > { %v14054_v16 = vpop.permute.xlu1 %9825  ;;  %10110 = vrot.lane.b32.xlu0 %v10109_v28, %s11051_s22  ;;  %v10129_v28 = vpack.i.bf16 %v2804_v25, %v2803_v29  ;;  %v10865_v25 = vld [vmem:[%s17902_s4 + $0x30] sm:$0xff]   ;;  %v9183_v29 = vunpack.i.h.bf16 %v13629_v3 }
 0x3ed   : > { %18709 = vst [vmem:[#allocation143_spill] sm:$0xff] %v14054_v16  ;;  %v2968_v16 = vld [vmem:[#allocation4 + $0x54] sm:$0xff] }
 0x3ee   : > { %10115 = vrot.lane.b32.xlu1 %v10114_v20, %s11051_s22  ;;  %v14058_v44 = vpop.permute.xlu0 %9830  ;;  %v2966_v20 = vld [vmem:[#allocation4 + $0x3c] sm:$0xff] }
 0x3ef   : > { %18710 = vst [vmem:[#allocation144_spill] sm:$0xff] %v14058_v44  ;;  %v2967_v44 = vld [vmem:[#allocation4 + $0x4c] sm:$0xff] }
 0x3f0   : > { %v14060_v52 = vpop.permute.xlu1 %9835  ;;  %10120 = vrot.lane.b32.xlu0 %v10119_v50, %s11051_s22  ;;  %v2516_v50 = vld [vmem:[#allocation4] sm:$0xff]  ;;  %v10144_v3 = vpack.i.bf16 %v2968_v16, %v2967_v44  ;;  %v9198_v44 = vunpack.i.h.bf16 %v13642_v9 }
 0x3f1   : > { %18711 = vst [vmem:[#allocation145_spill] sm:$0xff] %v14060_v52  ;;  %v10134_v52 = vpack.i.bf16 %v2964_v39, %v2963_v7  ;;  %v10139_v39 = vpack.i.bf16 %v2966_v20, %v2965_v43  ;;  %v2517_v7 = vld [vmem:[#allocation4 + $0x8] sm:$0xff]  ;;  %v5111_v12 = vsel %vm420_vm2, %v2516_v50, %v9182_v36  ;;  %v9197_v43 = vunpack.i.l.bf16 %v13642_v9 }
 0x3f2   : > { %10125 = vrot.lane.b32.xlu1 %v10124_v21, %s11051_s22  ;;  %v14070_v53 = vpop.permute.xlu0 %9840  ;;  %v10864_v21 = vld [vmem:[%s17902_s4 + $0x70] sm:$0xff]   ;;  %v2972_v20 = vld [vmem:[#allocation4 + $0x84] sm:$0xff]  ;;  %v5112_v36 = vsel %vm420_vm2, %v2517_v7, %v9183_v29  ;;  %v9203_v29 = vunpack.i.h.bf16 %v13647_v47  ;;  %v9207_v9 = vunpack.i.l.bf16 %v13657_v26 }
 0x3f3   : > { %18712 = vst [vmem:[#allocation146_spill] sm:$0xff] %v14070_v53  ;;  %v2969_v53 = vld [vmem:[#allocation4 + $0x64] sm:$0xff]  ;;  %8327 = vmatprep.subr.bf16.mxu1 %v10864_v21  ;;  %v10887_v21 = vld [vmem:[#allocation4 + $0x18] sm:$0xff] }
 0x3f4   : > { %v14073_v1 = vpop.permute.xlu1 %9845  ;;  %10130 = vrot.lane.b32.xlu0 %v10129_v28, %s11051_s22  ;;  %v9192_v28 = vunpack.i.l.bf16 %v13638_v41  ;;  %8328 = vmatpush3.bf16.msra.mxu1 %v10865_v25  ;;  %v10867_v50 = vld [vmem:[%s17902_s4 + $0x28] sm:$0xff]   ;;  %v5113_v16 = vsel %vm420_vm2, %v10887_v21, %v9187_v42  ;;  %v10149_v25 = vpack.i.bf16 %v2970_v17, %v2969_v53  ;;  %v10154_v17 = vpack.i.bf16 %v2972_v20, %v2971_v0  ;;  %v10868_v47 = vld [vmem:[%s17902_s4 + $0x60] sm:$0xff]  }
 0x3f5   : > { %18713 = vst [vmem:[#allocation147_spill] sm:$0xff] %v14073_v1  ;;  %8329 = vmatprep.subr.bf16.mxu1 %v10866_v59  ;;  %v2975_v53 = vld [vmem:[#allocation4 + $0xac] sm:$0xff]  ;;  %v9212_v0 = vunpack.i.l.bf16 %v13663_v30  ;;  %v9213_v20 = vunpack.i.h.bf16 %v13663_v30  ;;  %v9217_v30 = vunpack.i.l.bf16 %v13668_v58 }
 0x3f6   : > { %10135 = vrot.lane.b32.xlu1 %v10134_v52, %s11051_s22  ;;  %v14085_v1 = vpop.permute.xlu0 %9850  ;;  %v9193_v52 = vunpack.i.h.bf16 %v13638_v41 }
 0x3f7   : > { %18714 = vst [vmem:[#allocation148_spill] sm:$0xff] %v14085_v1  ;;  %v5143_v1 = vsel %vm2090_vm10, %v5111_v12, %v9192_v28  ;;  %v5145_v12 = vsel %vm2090_vm10, %v5113_v16, %v9197_v43  ;;  %v2976_v28 = vld [vmem:[#allocation4 + $0xb4] sm:$0xff]  ;;  %v10159_v43 = vpack.i.bf16 %v2974_v62, %v2973_v5  ;;  %v9218_v62 = vunpack.i.h.bf16 %v13668_v58 }
 0x3f8   : > { %v14090_v8 = vpop.permute.xlu1 %9855  ;;  %10140 = vrot.lane.b32.xlu0 %v10139_v39, %s11052_s14  ;;  %v10888_v39 = vld [vmem:[#allocation4 + $0x20] sm:$0xff]  ;;  %8330 = vmatpush3.bf16.msra.mxu1 %v10867_v50  ;;  %v5144_v7 = vsel %vm2090_vm10, %v5112_v36, %v9193_v52  ;;  %v2978_v36 = vld [vmem:[#allocation4 + $0xcc] sm:$0xff]  ;;  %v5178_v16 = vsel %vm5175_vm12, %v5145_v12, %v9207_v9  ;;  %v10870_v9 = vld [vmem:[%s17902_s4 + $0x58] sm:$0xff]  }
 0x3f9   : > { %18715 = vst [vmem:[#allocation149_spill] sm:$0xff] %v14090_v8  ;;  %v5114_v8 = vsel %vm420_vm2, %v10888_v39, %v9188_v56  ;;  %v9208_v56 = vunpack.i.h.bf16 %v13657_v26  ;;  %v5176_v26 = vsel %vm5175_vm12, %v5143_v1, %v9202_v34  ;;  %v2977_v50 = vld [vmem:[#allocation4 + $0xc4] sm:$0xff]  ;;  %8331 = vmatprep.subr.bf16.mxu1 %v10868_v47  ;;  %v5177_v21 = vsel %vm5175_vm12, %v5144_v7, %v9203_v29  ;;  %v2981_v1 = vld [vmem:[#allocation4 + $0xf4] sm:$0xff]  ;;  %v2982_v29 = vld [vmem:[#allocation4 + $0xfc] sm:$0xff] }
 0x3fa   : > { %10145 = vrot.lane.b32.xlu1 %v10144_v3, %s11052_s14  ;;  %v14105_v41 = vpop.permute.xlu0 %9860  ;;  %v10869_v3 = vld [vmem:[%s17902_s4 + $0x20] sm:$0xff]   ;;  %v5146_v59 = vsel %vm2090_vm10, %v5114_v8, %v9198_v44  ;;  %v10164_v44 = vpack.i.bf16 %v2976_v28, %v2975_v53  ;;  %v9222_v34 = vunpack.i.l.bf16 %v13671_v61  ;;  %v5209_v53 = vsel %vm5208_vm13, %v5176_v26, %v9212_v0  ;;  %v14153_v28 = vld [vmem:[#allocation4 + $0x114] sm:$0xff] }
 0x3fb   : > { %18716 = vst [vmem:[#allocation150_spill] sm:$0xff] %v14105_v41  ;;  %v2980_v39 = vld [vmem:[#allocation4 + $0xe4] sm:$0xff]  ;;  %v5179_v5 = vsel %vm5175_vm12, %v5146_v59, %v9208_v56  ;;  %v9223_v7 = vunpack.i.h.bf16 %v13671_v61  ;;  %v10169_v12 = vpack.i.bf16 %v2978_v36, %v2977_v50  ;;  %v14151_v56 = vld [vmem:[#allocation4 + $0x10c] sm:$0xff]  ;;  %v14159_v59 = vld [vmem:[#allocation4 + $0x13c] sm:$0xff]  ;;  %v5210_v26 = vsel %vm5208_vm13, %v5177_v21, %v9213_v20 }
 0x3fc   : > { %v14112_v42 = vpop.permute.xlu1 %9865  ;;  %10150 = vrot.lane.b32.xlu0 %v10149_v25, %s11052_s14  ;;  %v2979_v25 = vld [vmem:[#allocation4 + $0xdc] sm:$0xff]  ;;  %8332 = vmatpush3.bf16.msra.mxu1 %v10869_v3  ;;  %v14155_v47 = vld [vmem:[#allocation4 + $0x124] sm:$0xff]  ;;  %v14157_v3 = vld [vmem:[#allocation4 + $0x12c] sm:$0xff]  ;;  %v14184_v20 = vsel %vm5208_vm13, %v5178_v16, %v9217_v30  ;;  %v14187_v21 = vsel %vm5208_vm13, %v5179_v5, %v9218_v62  ;;  %v9228_v16 = vunpack.i.h.bf16 %v13674_v45  ;;  %v9227_v5 = vunpack.i.l.bf16 %v13674_v45 }
 0x3fd   : > { %18717 = vst [vmem:[#allocation151_spill] sm:$0xff] %v14112_v42  ;;  %v14163_v0 = vld [vmem:[#allocation4 + $0x154] sm:$0xff]  ;;  %v14165_v61 = vld [vmem:[#allocation4 + $0x15c] sm:$0xff]  ;;  %v14172_v36 = vld [vmem:[#allocation4 + $0x184] sm:$0xff]  ;;  %8333 = vmatprep.subr.bf16.mxu1 %v10870_v9  ;;  %v14190_v9 = vsel %vm5241_vm14, %v5209_v53, %v9222_v34  ;;  %v10179_v30 = vpack.i.bf16 %v2982_v29, %v2981_v1 }
 0x3fe   : > { %10155 = vrot.lane.b32.xlu1 %v10154_v17, %s11052_s14  ;;  %v14127_v52 = vpop.permute.xlu0 %9870  ;;  %v10871_v17 = vld [vmem:[%s17902_s4 + $0x18] sm:$0xff]   ;;  %v14181_v41 = vld [vmem:[#allocation4 + $0x1a4] sm:$0xff]  ;;  %18722 = vst [vmem:[#allocation156_spill] sm:$0xff] %v14184_v20  ;;  %18723 = vst [vmem:[#allocation157_spill] sm:$0xff] %v14187_v21 }
 0x3ff   : > { %18718 = vst [vmem:[#allocation152_spill] sm:$0xff] %v14127_v52  ;;  %v14170_v50 = vld [vmem:[#allocation4 + $0x174] sm:$0xff]  ;;  %v14177_v52 = vld [vmem:[#allocation4 + $0x18c] sm:$0xff]  ;;  %v14179_v42 = vld [vmem:[#allocation4 + $0x19c] sm:$0xff] }
 0x400   : > { %v14133_v8 = vpop.permute.xlu1 %9875  ;;  %10160 = vrot.lane.b32.xlu0 %v10159_v43, %s11052_s14  ;;  %v14161_v43 = vld [vmem:[#allocation4 + $0x144] sm:$0xff]  ;;  %8334 = vmatpush3.bf16.msra.mxu1 %v10871_v17  ;;  %18724 = vst [vmem:[#allocation158_spill] sm:$0xff] %v14190_v9  ;;  %v14201_v17 = vsel %vm5241_vm14, %v5210_v26, %v9223_v7  ;;  %v10184_v7 = vpack.i.bf16 %v14153_v28, %v14151_v56  ;;  %v14224_v1 = vld [vmem:[#allocation4 + $0x78] sm:$0xff]  ;;  %v9267_v56 = vunpack.i.l.bf16 %v13677_v46 }
 0x401   : > { %18719 = vst [vmem:[#allocation153_spill] sm:$0xff] %v14133_v8  ;;  %v10174_v8 = vpack.i.bf16 %v2980_v39, %v2979_v25  ;;  %v10872_v25 = vld [vmem:[%s17902_s4 + $0x50] sm:$0xff]   ;;  %18725 = vst [vmem:[#allocation159_spill] sm:$0xff] %v14201_v17  ;;  %v14208_v34 = vld [vmem:[#allocation4 + $0x48] sm:$0xff]  ;;  %v10189_v26 = vpack.i.bf16 %v14157_v3, %v14155_v47  ;;  %v9268_v17 = vunpack.i.h.bf16 %v13677_v46  ;;  %v5117_v47 = vsel %vm420_vm2, %v10889_v31, %v9227_v5 }
 0x402   : > { %10165 = vrot.lane.b32.xlu1 %v10164_v44, %s11052_s14  ;;  %v14149_v58 = vpop.permute.xlu0 %9880  ;;  %v14168_v44 = vld [vmem:[#allocation4 + $0x16c] sm:$0xff]  ;;  %v14210_v53 = vld [vmem:[#allocation4 + $0x60] sm:$0xff]  ;;  %v14226_v29 = vld [vmem:[#allocation4 + $0x98] sm:$0xff]  ;;  %8335 = vmatprep.subr.bf16.mxu1 %v10872_v25  ;;  %v5118_v3 = vsel %vm420_vm2, %v10890_v18, %v9228_v16  ;;  %v5115_v31 = vsel %vm420_vm2, %v10891_v11, %v9267_v56  ;;  %v9272_v16 = vunpack.i.l.bf16 %v13683_v24  ;;  %v9238_v11 = vunpack.i.h.bf16 %v13687_v33 }
 0x403   : > { %18720 = vst [vmem:[#allocation154_spill] sm:$0xff] %v14149_v58  ;;  %v10873_v39 = vld [vmem:[%s17902_s4 + $0x10] sm:$0xff]   ;;  %v14214_v9 = vld [vmem:[#allocation4 + $0x80] sm:$0xff]  ;;  %v14241_v45 = vld [vmem:[#allocation4 + $0xa8] sm:$0xff]  ;;  %v5116_v18 = vsel %vm420_vm2, %v10892_v55, %v9268_v17  ;;  %v9273_v55 = vunpack.i.h.bf16 %v13683_v24  ;;  %v9237_v17 = vunpack.i.l.bf16 %v13687_v33  ;;  %v18746_v33 = vpack.i.bf16 %v14161_v43, %v14159_v59 }
 0x404   : > { %v14174_v58 = vpop.permute.xlu1 %9885  ;;  %10170 = vrot.lane.b32.xlu0 %v10169_v12, %s11052_s14  ;;  %v14212_v12 = vld [vmem:[#allocation4 + $0x68] sm:$0xff]  ;;  %v14243_v20 = vld [vmem:[#allocation4 + $0xc0] sm:$0xff]  ;;  %v14247_v21 = vld [vmem:[#allocation4 + $0xd8] sm:$0xff]  ;;  %8336 = vmatpush3.bf16.msra.mxu1 %v10873_v39  ;;  %v9278_v59 = vunpack.i.h.bf16 %v13690_v23  ;;  %v9242_v43 = vunpack.i.l.bf16 %v13694_v63 }
 0x405   : > { %18721 = vst [vmem:[#allocation155_spill] sm:$0xff] %v14174_v58  ;;  %v14192_v58 = vld [vmem:[#allocation4 + $0x50] sm:$0xff]  ;;  %v14245_v25 = vld [vmem:[#allocation4 + $0xc8] sm:$0xff]  ;;  %18728 = vst [vmem:[#allocation162_spill] sm:$0xff] %v14247_v21  ;;  %v5148_v63 = vsel %vm2090_vm10, %v5116_v18, %v9273_v55 }
 0x406   : > { %10175 = vrot.lane.b32.xlu1 %v10174_v8, %s11052_s14  ;;  %v14206_v62 = vpop.permute.xlu0 %9890  ;;  %v14239_v8 = vld [vmem:[#allocation4 + $0x90] sm:$0xff]  ;;  %v14249_v46 = vld [vmem:[#allocation4 + $0xe0] sm:$0xff]  ;;  %v10874_v39 = vld [vmem:[%s17902_s4 + $0x48] sm:$0xff]  }
 0x407   : > { %18726 = vst [vmem:[#allocation160_spill] sm:$0xff] %v14206_v62  ;;  %v14228_v62 = vld [vmem:[#allocation4 + $0xb0] sm:$0xff]  ;;  %18729 = vst [vmem:[#allocation163_spill] sm:$0xff] %v14249_v46  ;;  %v14290_v5 = vld [vmem:[#allocation4 + $0x120] sm:$0xff]  ;;  %8337 = vmatprep.subr.bf16.mxu1 %v10874_v39 }
 0x408   : > { %v14232_v28 = vpop.permute.xlu1 %9895  ;;  %10180 = vrot.lane.b32.xlu0 %v10179_v30, %s11052_s14  ;;  %v10875_v30 = vld [vmem:[%s17902_s4 + $0x8] sm:$0xff]   ;;  %18736 = vst [vmem:[#allocation170_spill] sm:$0xff] %v14290_v5  ;;  %v14310_v39 = vld [vmem:[#allocation4 + $0x170] sm:$0xff]  ;;  %v14319_v56 = vld [vmem:[#allocation4 + $0x180] sm:$0xff]  ;;  %v5147_v5 = vsel %vm2090_vm10, %v5115_v31, %v9272_v16 }
 0x409   : > { %18727 = vst [vmem:[#allocation161_spill] sm:$0xff] %v14232_v28  ;;  %v9233_v28 = vunpack.i.h.bf16 %v13680_v6  ;;  %v14308_v21 = vld [vmem:[#allocation4 + $0x168] sm:$0xff]  ;;  %18743 = vst [vmem:[#allocation177_spill] sm:$0xff] %v14310_v39  ;;  %8338 = vmatpush3.bf16.msra.mxu1 %v10875_v30  ;;  %v10876_v6 = vld [vmem:[%s17902_s4 + $0x40] sm:$0xff]   ;;  %v5149_v30 = vsel %vm2090_vm10, %v5117_v47, %v9232_v10  ;;  %v9277_v47 = vunpack.i.l.bf16 %v13690_v23 }
 0x40a   : > { %10185 = vrot.lane.b32.xlu1 %v10184_v7, %s11052_s14  ;;  %v14274_v13 = vpop.permute.xlu0 %9900  ;;  %v14292_v7 = vld [vmem:[#allocation4 + $0x138] sm:$0xff]  ;;  %18742 = vst [vmem:[#allocation176_spill] sm:$0xff] %v14308_v21  ;;  %v14312_v46 = vld [vmem:[#allocation4 + $0x188] sm:$0xff]  ;;  %18745 = vst [vmem:[#allocation179_spill] sm:$0xff] %v14319_v56  ;;  %8339 = vmatprep.subr.bf16.mxu1 %v10876_v6  ;;  %v5182_v16 = vsel %vm5175_vm12, %v5149_v30, %v9237_v17 }
 0x40b   : > { %18732 = vst [vmem:[#allocation166_spill] sm:$0xff] %v14274_v13  ;;  %18737 = vst [vmem:[#allocation171_spill] sm:$0xff] %v14292_v7  ;;  %v14294_v13 = vld [vmem:[#allocation4 + $0x140] sm:$0xff]  ;;  %v5150_v24 = vsel %vm2090_vm10, %v5118_v3, %v9233_v28  ;;  %v14343_v10 = vld [vmem:[#allocation4 + $0x52] sm:$0xff]  ;;  %v18752_v3 = vpack.i.bf16 %v14165_v61, %v14163_v0 }
 0x40c   : > { %18738 = vst [vmem:[#allocation172_spill] sm:$0xff] %v14294_v13  ;;  %v14301_v35 = vpop.permute.xlu1 %9905  ;;  %10190 = vrot.lane.b32.xlu0 %v10189_v26, %s11052_s14  ;;  %18744 = vst [vmem:[#allocation178_spill] sm:$0xff] %v14312_v46  ;;  %v3065_v28 = vld [vmem:[#allocation4 + $0x6a] sm:$0xff]  ;;  %v14354_v7 = vld [vmem:[#allocation4 + $0x9a] sm:$0xff] }
 0x40d   : > { %18740 = vst [vmem:[#allocation174_spill] sm:$0xff] %v14301_v35  ;;  %v10877_v35 = vld [vmem:[%s17902_s4] sm:$0xff]   ;;  %v14356_v13 = vld [vmem:[#allocation4 + $0xb2] sm:$0xff]  ;;  %v14370_v46 = vld [vmem:[#allocation4 + $0xaa] sm:$0xff] }
 0x40e   : > { %10195 = vrot.lane.b32.xlu1 %v18746_v33, %s11052_s14  ;;  %v14333_v26 = vpop.permute.xlu0 %9910  ;;  %v14352_v33 = vld [vmem:[#allocation4 + $0x4a] sm:$0xff]  ;;  %18750 = vst [vmem:[#allocation183_spill] sm:$0xff] %v14356_v13  ;;  %v14368_v56 = vld [vmem:[#allocation4 + $0x92] sm:$0xff]  ;;  %18754 = vst [vmem:[#allocation186_spill] sm:$0xff] %v14370_v46  ;;  %8340 = vmatpush3.bf16.msra.mxu1 %v10877_v35  ;;  %v18758_v35 = vpack.i.bf16 %v14170_v50, %v14168_v44 }
 0x40f   : > { %18747 = vst [vmem:[#allocation180_spill] sm:$0xff] %v14333_v26  ;;  %v3067_v26 = vld [vmem:[#allocation4 + $0x82] sm:$0xff]  ;;  %18753 = vst [vmem:[#allocation185_spill] sm:$0xff] %v14368_v56  ;;  %v14372_v6 = vld [vmem:[#allocation4 + $0xca] sm:$0xff]  ;;  %v9248_v56 = vunpack.i.h.bf16 %v13700_v54 }
 0x410   : > { %v14362_v21 = vpop.permute.xlu1 %9915  ;;  %10200 = vrot.lane.b32.xlu0 %v18752_v3, %s11052_s14  ;;  %18755 = vst [vmem:[#allocation187_spill] sm:$0xff] %v14372_v6  ;;  %v14374_v31 = vld [vmem:[#allocation4 + $0xe2] sm:$0xff]  ;;  %v14376_v23 = vld [vmem:[#allocation4 + $0xfa] sm:$0xff]  ;;  %v14385_v3 = vld [vmem:[#allocation4 + $0x112] sm:$0xff]  ;;  %v14402_v17 = vpack.i.bf16 %v3067_v26, %v3066_v19  ;;  %v18772_v26 = vpack.i.bf16 %v14177_v52, %v14172_v36  ;;  %v18777_v52 = vpack.i.bf16 %v14181_v41, %v14179_v42 }
 0x411   : > { %18751 = vst [vmem:[#allocation184_spill] sm:$0xff] %v14362_v21  ;;  %v5183_v21 = vsel %vm5175_vm12, %v5150_v24, %v9238_v11  ;;  %v14383_v61 = vld [vmem:[#allocation4 + $0xc2] sm:$0xff]  ;;  %v14387_v39 = vld [vmem:[#allocation4 + $0x12a] sm:$0xff]  ;;  %v14400_v11 = vpack.i.bf16 %v3065_v28, %v3064_v14  ;;  %v14404_v30 = vld [vmem:[#allocation4 + $0xda] sm:$0xff]  ;;  %v9283_v14 = vunpack.i.h.bf16 %v13697_v40  ;;  %v18784_v41 = vpack.i.bf16 %v14192_v58, %v14208_v34 }
 0x412   : > { %18756 = vst [vmem:[#allocation188_spill] sm:$0xff] %v14383_v61  ;;  %18757 = vst [vmem:[#allocation189_spill] sm:$0xff] %v14387_v39  ;;  %10205 = vrot.lane.b32.xlu1 %v18758_v35, %s11052_s14  ;;  %v14396_v18 = vpop.permute.xlu0 %9920  ;;  %v14406_v24 = vld [vmem:[#allocation4 + $0xf2] sm:$0xff]  ;;  %v14408_v0 = vld [vmem:[#allocation4 + $0x10a] sm:$0xff]  ;;  %v5180_v35 = vsel %vm5175_vm12, %v5147_v5, %v9277_v47  ;;  %v14434_v5 = vsel %vm5208_vm13, %v5182_v16, %v9242_v43  ;;  %v14437_v40 = vsel %vm5208_vm13, %v5183_v21, %v9243_v48 }
 0x413   : > { %18759 = vst [vmem:[#allocation190_spill] sm:$0xff] %v14396_v18  ;;  %18760 = vst [vmem:[#allocation191_spill] sm:$0xff] %v14400_v11  ;;  %v14414_v44 = vld [vmem:[#allocation4 + $0x172] sm:$0xff]  ;;  %v14416_v50 = vld [vmem:[#allocation4 + $0x18a] sm:$0xff]  ;;  %v5181_v11 = vsel %vm5175_vm12, %v5148_v63, %v9278_v59  ;;  %v14464_v6 = vsel %vm5208_vm13, %v5180_v35, %v9282_v57 }
 0x414   : > { %18761 = vst [vmem:[#allocation192_spill] sm:$0xff] %v14402_v17  ;;  %18762 = vst [vmem:[#allocation193_spill] sm:$0xff] %v14408_v0  ;;  %v14424_v28 = vld [vmem:[#allocation4 + $0x13a] sm:$0xff]  ;;  %v14426_v55 = vld [vmem:[#allocation4 + $0x1a2] sm:$0xff]  ;;  %v14439_v47 = vpop.permute.xlu1 %9925  ;;  %10210 = vrot.lane.b32.xlu0 %v18772_v26, %s11052_s14 }
 0x415   : > { %18764 = vst [vmem:[#allocation195_spill] sm:$0xff] %v14416_v50  ;;  %18765 = vst [vmem:[#allocation196_spill] sm:$0xff] %v14424_v28  ;;  %v14428_v18 = vld [vmem:[#allocation4 + $0x4b] sm:$0xff]  ;;  %v14430_v17 = vld [vmem:[#allocation4 + $0x53] sm:$0xff]  ;;  %v9288_v28 = vunpack.i.h.bf16 %v13703_v32 }
 0x416   : > { %18766 = vst [vmem:[#allocation197_spill] sm:$0xff] %v14426_v55  ;;  %18767 = vst [vmem:[#allocation198_spill] sm:$0xff] %v14428_v18  ;;  %v14447_v46 = vld [vmem:[#allocation4 + $0x152] sm:$0xff]  ;;  %v14449_v13 = vld [vmem:[#allocation4 + $0x16a] sm:$0xff]  ;;  %10215 = vrot.lane.b32.xlu1 %v18777_v52, %s11052_s14  ;;  %v14472_v36 = vpop.permute.xlu0 %9930 }
 0x417   : > { %18768 = vst [vmem:[#allocation199_spill] sm:$0xff] %v14430_v17  ;;  %18769 = vst [vmem:[#allocation200_spill] sm:$0xff] %v14434_v5  ;;  %v14451_v59 = vld [vmem:[#allocation4 + $0x182] sm:$0xff]  ;;  %v3097_v63 = vld [vmem:[#allocation4 + $0x6b] sm:$0xff] }
 0x418   : > { %18770 = vst [vmem:[#allocation201_spill] sm:$0xff] %v14437_v40  ;;  %18771 = vst [vmem:[#allocation202_spill] sm:$0xff] %v14439_v47  ;;  %v3096_v43 = vld [vmem:[#allocation4 + $0x63] sm:$0xff]  ;;  %v3098_v48 = vld [vmem:[#allocation4 + $0x7b] sm:$0xff]  ;;  %v9247_v47 = vunpack.i.l.bf16 %v13700_v54  ;;  %v14483_v54 = vsel %vm5208_vm13, %v5181_v11, %v9283_v14  ;;  %v9287_v11 = vunpack.i.l.bf16 %v13703_v32  ;;  %v14499_v14 = vpop.permute.xlu1 %9935  ;;  %10220 = vrot.lane.b32.xlu0 %v18784_v41, %s11053_s15 }
 0x419   : > { %18773 = vst [vmem:[#allocation203_spill] sm:$0xff] %v14449_v13  ;;  %18774 = vst [vmem:[#allocation204_spill] sm:$0xff] %v14451_v59  ;;  %v3099_v21 = vld [vmem:[#allocation4 + $0x83] sm:$0xff]  ;;  %v3100_v16 = vld [vmem:[#allocation4 + $0x93] sm:$0xff] }
 0x41a   : > { %v14461_v19 = vld [vmem:[#allocation4 + $0x19a] sm:$0xff]  ;;  %v3102_v40 = vld [vmem:[#allocation4 + $0xab] sm:$0xff]  ;;  %18776 = vst [vmem:[#allocation206_spill] sm:$0xff] %v14464_v6  ;;  %18778 = vst [vmem:[#allocation207_spill] sm:$0xff] %v14472_v36  ;;  %v14519_v13 = vpack.i.bf16 %v3099_v21, %v3098_v48 }
 0x41b   : > { %18775 = vst [vmem:[#allocation205_spill] sm:$0xff] %v14461_v19  ;;  %v3101_v5 = vld [vmem:[#allocation4 + $0x9b] sm:$0xff]  ;;  %v3103_v61 = vld [vmem:[#allocation4 + $0xb3] sm:$0xff]  ;;  %v3105_v39 = vld [vmem:[#allocation4 + $0xcb] sm:$0xff] }
 0x41c   : > { %v14476_v0 = vld [vmem:[#allocation4 + $0xdb] sm:$0xff]  ;;  %v14478_v57 = vld [vmem:[#allocation4 + $0xe3] sm:$0xff]  ;;  %v14480_v35 = vld [vmem:[#allocation4 + $0xf3] sm:$0xff]  ;;  %18780 = vst [vmem:[#allocation209_spill] sm:$0xff] %v14483_v54  ;;  %v14521_v58 = vpack.i.bf16 %v3101_v5, %v3100_v16  ;;  %v14523_v34 = vpack.i.bf16 %v3103_v61, %v3102_v40  ;;  %v18792_v61 = vpack.i.bf16 %v14212_v12, %v14210_v53  ;;  %v14539_v5 = vpop.permute.xlu0 %9940 }
 0x41d   : > { %18779 = vst [vmem:[#allocation208_spill] sm:$0xff] %v14480_v35  ;;  %v14491_v26 = vld [vmem:[#allocation4 + $0xfb] sm:$0xff]  ;;  %v14493_v36 = vld [vmem:[#allocation4 + $0x10b] sm:$0xff]  ;;  %v14495_v6 = vld [vmem:[#allocation4 + $0x113] sm:$0xff] }
 0x41e   : > { %18781 = vst [vmem:[#allocation210_spill] sm:$0xff] %v14491_v26  ;;  %18782 = vst [vmem:[#allocation211_spill] sm:$0xff] %v14493_v36  ;;  %v14509_v54 = vld [vmem:[#allocation4 + $0x123] sm:$0xff]  ;;  %v14511_v59 = vld [vmem:[#allocation4 + $0x12b] sm:$0xff]  ;;  %10225 = vrot.lane.b32.xlu1 %v18792_v61, %s11053_s15 }
 0x41f   : > { %18783 = vst [vmem:[#allocation212_spill] sm:$0xff] %v14499_v14  ;;  %v14513_v50 = vld [vmem:[#allocation4 + $0x13b] sm:$0xff]  ;;  %v14515_v32 = vld [vmem:[#allocation4 + $0x143] sm:$0xff]  ;;  %v14517_v14 = vpack.i.bf16 %v3097_v63, %v3096_v43  ;;  %18788 = vst [vmem:[#allocation216_spill] sm:$0xff] %v14519_v13  ;;  %v9253_v43 = vunpack.i.h.bf16 %v13706_v51  ;;  %v9252_v63 = vunpack.i.l.bf16 %v13706_v51 }
 0x420   : > { %18785 = vst [vmem:[#allocation213_spill] sm:$0xff] %v14513_v50  ;;  %18786 = vst [vmem:[#allocation214_spill] sm:$0xff] %v14515_v32  ;;  %v14525_v41 = vld [vmem:[#allocation4 + $0x153] sm:$0xff]  ;;  %v14527_v52 = vld [vmem:[#allocation4 + $0x15b] sm:$0xff]  ;;  %v14595_v36 = vpop.permute.xlu0 %9950 }
 0x421   : > { %18787 = vst [vmem:[#allocation215_spill] sm:$0xff] %v14517_v14  ;;  %18789 = vst [vmem:[#allocation217_spill] sm:$0xff] %v14521_v58  ;;  %v14529_v42 = vld [vmem:[#allocation4 + $0x16b] sm:$0xff]  ;;  %v10893_v18 = vld [vmem:[#allocation4 + $0x140] sm:$0xff] }
 0x422   : > { %18790 = vst [vmem:[#allocation218_spill] sm:$0xff] %v14523_v34  ;;  %18791 = vst [vmem:[#allocation219_spill] sm:$0xff] %v14529_v42  ;;  %v5138_v17 = vsel %vm420_vm2, %v10893_v18, %v9248_v56  ;;  %v10894_v19 = vld [vmem:[#allocation4 + $0x138] sm:$0xff]  ;;  %v14543_v48 = vld [vmem:[#allocation4 + $0x183] sm:$0xff]  ;;  %v9292_v56 = vunpack.i.l.bf16 %v13709_v38  ;;  %v14548_v18 = vpack.i.bf16 %v3105_v39, %v3104_v15  ;;  %v9293_v15 = vunpack.i.h.bf16 %v13709_v38  ;;  %v14563_v39 = vpop.permute.xlu1 %9945 }
 0x423   : > { %v5137_v55 = vsel %vm420_vm2, %v10894_v19, %v9247_v47  ;;  %18793 = vst [vmem:[#allocation220_spill] sm:$0xff] %v14539_v5  ;;  %v14541_v40 = vld [vmem:[#allocation4 + $0x173] sm:$0xff]  ;;  %18794 = vst [vmem:[#allocation221_spill] sm:$0xff] %v14543_v48  ;;  %v14545_v21 = vld [vmem:[#allocation4 + $0x18b] sm:$0xff]  ;;  %v18801_v19 = vpack.i.bf16 %v14214_v9, %v14224_v1  ;;  %v9257_v38 = vunpack.i.l.bf16 %v13712_v49 }
 0x424   : > { %18795 = vst [vmem:[#allocation222_spill] sm:$0xff] %v14545_v21  ;;  %18796 = vst [vmem:[#allocation223_spill] sm:$0xff] %v14548_v18  ;;  %v14554_v53 = vld [vmem:[#allocation4 + $0x19b] sm:$0xff]  ;;  %v14556_v12 = vld [vmem:[#allocation4 + $0x1a3] sm:$0xff]  ;;  %v5169_v51 = vsel %vm2090_vm10, %v5137_v55, %v9252_v63 }
 0x425   : > { %18797 = vst [vmem:[#allocation224_spill] sm:$0xff] %v14554_v53  ;;  %18798 = vst [vmem:[#allocation225_spill] sm:$0xff] %v14556_v12  ;;  %v14558_v47 = vld [vmem:[#allocation4 + $0x4c] sm:$0xff]  ;;  %v10896_v5 = vld [vmem:[#allocation4 + $0x120] sm:$0xff]  ;;  %10230 = vrot.lane.b32.xlu0 %v18801_v19, %s11053_s15 }
 0x426   : > { %18799 = vst [vmem:[#allocation226_spill] sm:$0xff] %v14558_v47  ;;  %v10895_v16 = vld [vmem:[#allocation4 + $0x128] sm:$0xff]  ;;  %v5135_v34 = vsel %vm420_vm2, %v10896_v5, %v9287_v11  ;;  %18800 = vst [vmem:[#allocation227_spill] sm:$0xff] %v14563_v39  ;;  %v14571_v35 = vld [vmem:[#allocation4 + $0x54] sm:$0xff]  ;;  %v9258_v11 = vunpack.i.h.bf16 %v13712_v49  ;;  %v5170_v39 = vsel %vm2090_vm10, %v5138_v17, %v9253_v43  ;;  %v18808_v49 = vpack.i.bf16 %v14226_v29, %v14239_v8 }
 0x427   : > { %v5136_v61 = vsel %vm420_vm2, %v10895_v16, %v9288_v28  ;;  %18802 = vst [vmem:[#allocation228_spill] sm:$0xff] %v14571_v35  ;;  %v14573_v26 = vld [vmem:[#allocation4 + $0x64] sm:$0xff]  ;;  %v14575_v28 = vld [vmem:[#allocation4 + $0x6c] sm:$0xff]  ;;  %v14583_v1 = vld [vmem:[#allocation4 + $0x7c] sm:$0xff]  ;;  %v5167_v17 = vsel %vm2090_vm10, %v5135_v34, %v9292_v56  ;;  %v9298_v43 = vunpack.i.h.bf16 %v13715_v2  ;;  %v9297_v8 = vunpack.i.l.bf16 %v13715_v2 }
 0x428   : > { %18803 = vst [vmem:[#allocation229_spill] sm:$0xff] %v14573_v26  ;;  %18804 = vst [vmem:[#allocation230_spill] sm:$0xff] %v14575_v28  ;;  %v14585_v19 = vld [vmem:[#allocation4 + $0x84] sm:$0xff]  ;;  %v14587_v16 = vld [vmem:[#allocation4 + $0x94] sm:$0xff]  ;;  %10235 = vrot.lane.b32.xlu1 %v18808_v49, %s11053_s15  ;;  %v5168_v9 = vsel %vm2090_vm10, %v5136_v61, %v9293_v15  ;;  %v18817_v34 = vpack.i.bf16 %v14228_v62, %v14241_v45  ;;  %v5202_v15 = vsel %vm5175_vm12, %v5169_v51, %v9257_v38  ;;  %v14652_v51 = vpop.permute.xlu0 %9960 }
 0x429   : > { %18805 = vst [vmem:[#allocation231_spill] sm:$0xff] %v14583_v1  ;;  %18806 = vst [vmem:[#allocation232_spill] sm:$0xff] %v14585_v19  ;;  %v14601_v50 = vld [vmem:[#allocation4 + $0x9c] sm:$0xff]  ;;  %v14603_v32 = vld [vmem:[#allocation4 + $0xac] sm:$0xff]  ;;  %v5203_v62 = vsel %vm5175_vm12, %v5170_v39, %v9258_v11  ;;  %v9263_v45 = vunpack.i.h.bf16 %v13718_v4  ;;  %v9302_v29 = vunpack.i.l.bf16 %v13721_v37  ;;  %v18824_v26 = vpack.i.bf16 %v14245_v25, %v14243_v20 }
 0x42a   : > { %18807 = vst [vmem:[#allocation233_spill] sm:$0xff] %v14587_v16  ;;  %18809 = vst [vmem:[#allocation234_spill] sm:$0xff] %v14595_v36  ;;  %v14605_v55 = vld [vmem:[#allocation4 + $0xb4] sm:$0xff]  ;;  %v14612_v63 = vld [vmem:[#allocation4 + $0xc4] sm:$0xff]  ;;  %v14619_v36 = vpop.permute.xlu1 %9955  ;;  %10240 = vrot.lane.b32.xlu0 %v18817_v34, %s11053_s15  ;;  %v9262_v34 = vunpack.i.l.bf16 %v13718_v4  ;;  %v5200_v20 = vsel %vm5175_vm12, %v5167_v17, %v9297_v8  ;;  %v5201_v25 = vsel %vm5175_vm12, %v5168_v9, %v9298_v43 }
 0x42b   : > { %18810 = vst [vmem:[#allocation235_spill] sm:$0xff] %v14601_v50  ;;  %18811 = vst [vmem:[#allocation236_spill] sm:$0xff] %v14603_v32  ;;  %v14614_v49 = vld [vmem:[#allocation4 + $0xcc] sm:$0xff]  ;;  %v14616_v5 = vld [vmem:[#allocation4 + $0xdc] sm:$0xff]  ;;  %v9308_v32 = vunpack.i.h.bf16 %v13724_v60  ;;  %v14708_v8 = vsel %vm5208_vm13, %v5200_v20, %v9302_v29 }
 0x42c   : > { %18812 = vst [vmem:[#allocation237_spill] sm:$0xff] %v14605_v55  ;;  %18813 = vst [vmem:[#allocation238_spill] sm:$0xff] %v14612_v63  ;;  %v14631_v48 = vld [vmem:[#allocation4 + $0xe4] sm:$0xff]  ;;  %v14633_v21 = vld [vmem:[#allocation4 + $0xf4] sm:$0xff]  ;;  %10245 = vrot.lane.b32.xlu1 %v18824_v26, %s11053_s15  ;;  %v9303_v26 = vunpack.i.h.bf16 %v13721_v37  ;;  %v9307_v55 = vunpack.i.l.bf16 %v13724_v60  ;;  %v14696_v60 = vsel %vm5208_vm13, %v5202_v15, %v9262_v34 }
 0x42d   : > { %18814 = vst [vmem:[#allocation239_spill] sm:$0xff] %v14614_v49  ;;  %18815 = vst [vmem:[#allocation240_spill] sm:$0xff] %v14616_v5  ;;  %v14635_v61 = vld [vmem:[#allocation4 + $0xfc] sm:$0xff]  ;;  %v14641_v2 = vld [vmem:[#allocation4 + $0x10c] sm:$0xff] }
 0x42e   : > { %18816 = vst [vmem:[#allocation241_spill] sm:$0xff] %v14619_v36  ;;  %18818 = vst [vmem:[#allocation242_spill] sm:$0xff] %v14631_v48  ;;  %v14643_v56 = vld [vmem:[#allocation4 + $0x114] sm:$0xff]  ;;  %v14645_v36 = vld [vmem:[#allocation4 + $0x124] sm:$0xff]  ;;  %v14679_v16 = vpop.permute.xlu1 %9965  ;;  %v14727_v20 = vsel %vm5208_vm13, %v5201_v25, %v9303_v26 }
 0x42f   : > { %18819 = vst [vmem:[#allocation243_spill] sm:$0xff] %v14633_v21  ;;  %18820 = vst [vmem:[#allocation244_spill] sm:$0xff] %v14635_v61  ;;  %v14660_v38 = vld [vmem:[#allocation4 + $0x12c] sm:$0xff]  ;;  %v14662_v28 = vld [vmem:[#allocation4 + $0x13c] sm:$0xff] }
 0x430   : > { %18821 = vst [vmem:[#allocation245_spill] sm:$0xff] %v14641_v2  ;;  %18822 = vst [vmem:[#allocation246_spill] sm:$0xff] %v14643_v56  ;;  %v14664_v47 = vld [vmem:[#allocation4 + $0x144] sm:$0xff]  ;;  %v14673_v4 = vld [vmem:[#allocation4 + $0x15c] sm:$0xff] }
 0x431   : > { %18823 = vst [vmem:[#allocation247_spill] sm:$0xff] %v14645_v36  ;;  %18825 = vst [vmem:[#allocation248_spill] sm:$0xff] %v14652_v51  ;;  %v14671_v51 = vld [vmem:[#allocation4 + $0x154] sm:$0xff]  ;;  %v14675_v11 = vld [vmem:[#allocation4 + $0x16c] sm:$0xff] }
 0x432   : > { %18826 = vst [vmem:[#allocation249_spill] sm:$0xff] %v14660_v38  ;;  %18827 = vst [vmem:[#allocation250_spill] sm:$0xff] %v14662_v28  ;;  %v18833_v17 = vld [vmem:[#allocation163_spill] sm:$0xff]  ;;  %v18834_v9 = vld [vmem:[#allocation162_spill] sm:$0xff] }
 0x433   : > { %18828 = vst [vmem:[#allocation251_spill] sm:$0xff] %v14664_v47  ;;  %18829 = vst [vmem:[#allocation252_spill] sm:$0xff] %v14671_v51  ;;  %v18835_v43 = vpack.i.bf16 %v18833_v17, %v18834_v9  ;;  %v14689_v39 = vld [vmem:[#allocation4 + $0x174] sm:$0xff]  ;;  %v14691_v63 = vld [vmem:[#allocation4 + $0x184] sm:$0xff] }
 0x434   : > { %18830 = vst [vmem:[#allocation253_spill] sm:$0xff] %v14673_v4  ;;  %18831 = vst [vmem:[#allocation254_spill] sm:$0xff] %v14675_v11  ;;  %v14693_v49 = vld [vmem:[#allocation4 + $0x18c] sm:$0xff]  ;;  %v18840_v37 = vld [vmem:[#allocation11_spill] sm:$0xff] }
 0x435   : > { %18832 = vst [vmem:[#allocation255_spill] sm:$0xff] %v14679_v16  ;;  %10250 = vrot.lane.b32.xlu0 %v18835_v43, %s11053_s15  ;;  %18836 = vst [vmem:[#allocation163_spill] sm:$0xff] %v14689_v39  ;;  %v14699_v16 = vsel %vm5208_vm13, %v5203_v62, %v9263_v45  ;;  %v14705_v43 = vld [vmem:[#allocation4 + $0x19c] sm:$0xff]  ;;  %v9348_v21 = vunpack.i.h.bf16 %v18840_v37  ;;  %v9347_v61 = vunpack.i.l.bf16 %v18840_v37  ;;  %v18841_v15 = vld [vmem:[#allocation165_spill] sm:$0xff]  ;;  %v14716_v45 = vpop.permute.xlu0 %9970 }
 0x436   : > { %18837 = vst [vmem:[#allocation162_spill] sm:$0xff] %v14691_v63  ;;  %18838 = vst [vmem:[#allocation256_spill] sm:$0xff] %v14693_v49  ;;  %v18842_v34 = vld [vmem:[#allocation164_spill] sm:$0xff]  ;;  %v14724_v29 = vld [vmem:[#allocation4 + $0x68] sm:$0xff] }
 0x437   : > { %18839 = vst [vmem:[#allocation257_spill] sm:$0xff] %v14705_v43  ;;  %v18843_v62 = vpack.i.bf16 %v18841_v15, %v18842_v34  ;;  %18844 = vst [vmem:[#allocation11_spill] sm:$0xff] %v14716_v45  ;;  %v14720_v9 = vld [vmem:[#allocation4 + $0x1a4] sm:$0xff]  ;;  %v10897_v28 = vld [vmem:[#allocation4 + $0x78] sm:$0xff]  ;;  %v14745_v15 = vpop.permute.xlu1 %9975 }
 0x438   : > { %18845 = vst [vmem:[#allocation165_spill] sm:$0xff] %v14720_v9  ;;  %v14722_v36 = vld [vmem:[#allocation4 + $0x60] sm:$0xff]  ;;  %18847 = vst [vmem:[#allocation258_spill] sm:$0xff] %v14724_v29  ;;  %v14737_v17 = vld [vmem:[#allocation4 + $0x69] sm:$0xff]  ;;  %v5121_v47 = vsel %vm420_vm2, %v10897_v28, %v9307_v55 }
 0x439   : > { %10255 = vrot.lane.b32.xlu1 %v18843_v62, %s11053_s15  ;;  %18846 = vst [vmem:[#allocation164_spill] sm:$0xff] %v14722_v36  ;;  %v14735_v62 = vld [vmem:[#allocation4 + $0x61] sm:$0xff]  ;;  %18849 = vst [vmem:[#allocation260_spill] sm:$0xff] %v14737_v17  ;;  %v18854_v63 = vld [vmem:[#allocation167_spill] sm:$0xff] }
 0x43a   : > { %18848 = vst [vmem:[#allocation259_spill] sm:$0xff] %v14735_v62  ;;  %v14739_v45 = vld [vmem:[#allocation4 + $0x80] sm:$0xff]  ;;  %v18851_v38 = vld [vmem:[#allocation13_spill] sm:$0xff]  ;;  %v14751_v11 = vld [vmem:[#allocation4 + $0x78] sm:$0xff] }
 0x43b   : > { %18850 = vst [vmem:[#allocation261_spill] sm:$0xff] %v14739_v45  ;;  %v10898_v25 = vld [vmem:[#allocation4 + $0x80] sm:$0xff]  ;;  %v9313_v37 = vunpack.i.h.bf16 %v18851_v38  ;;  %v9312_v51 = vunpack.i.l.bf16 %v18851_v38  ;;  %18852 = vst [vmem:[#allocation13_spill] sm:$0xff] %v14745_v15  ;;  %v14757_v28 = vld [vmem:[#allocation4 + $0x98] sm:$0xff]  ;;  %v14778_v15 = vpop.permute.xlu0 %9980 }
 0x43c   : > { %v5122_v26 = vsel %vm420_vm2, %v10898_v25, %v9308_v32  ;;  %v18853_v34 = vld [vmem:[#allocation168_spill] sm:$0xff]  ;;  %18859 = vst [vmem:[#allocation263_spill] sm:$0xff] %v14757_v28  ;;  %v10900_v5 = vld [vmem:[#allocation4 + $0x68] sm:$0xff]  ;;  %v18864_v50 = vld [vmem:[#allocation15_spill] sm:$0xff] }
 0x43d   : > { %v18855_v49 = vpack.i.bf16 %v18853_v34, %v18854_v63  ;;  %18856 = vst [vmem:[#allocation168_spill] sm:$0xff] %v14751_v11  ;;  %v14753_v39 = vld [vmem:[#allocation4 + $0x79] sm:$0xff]  ;;  %v14755_v4 = vld [vmem:[#allocation4 + $0x81] sm:$0xff]  ;;  %v14765_v63 = vld [vmem:[#allocation4 + $0x90] sm:$0xff]  ;;  %v5120_v48 = vsel %vm420_vm2, %v10900_v5, %v9348_v21  ;;  %v9318_v21 = vunpack.i.h.bf16 %v18864_v50  ;;  %v5153_v17 = vsel %vm2090_vm10, %v5121_v47, %v9312_v51  ;;  %v14806_v11 = vpop.permute.xlu1 %9985 }
 0x43e   : > { %18857 = vst [vmem:[#allocation167_spill] sm:$0xff] %v14753_v39  ;;  %18858 = vst [vmem:[#allocation262_spill] sm:$0xff] %v14755_v4  ;;  %v18860_v32 = vld [vmem:[#allocation16_spill] sm:$0xff]  ;;  %v18865_v1 = vld [vmem:[#allocation169_spill] sm:$0xff] }
 0x43f   : > { %10260 = vrot.lane.b32.xlu0 %v18855_v49, %s11053_s15  ;;  %v9353_v55 = vunpack.i.h.bf16 %v18860_v32  ;;  %v9352_v25 = vunpack.i.l.bf16 %v18860_v32  ;;  %18861 = vst [vmem:[#allocation16_spill] sm:$0xff] %v14765_v63  ;;  %v14767_v49 = vld [vmem:[#allocation4 + $0x91] sm:$0xff]  ;;  %v14769_v34 = vld [vmem:[#allocation4 + $0x99] sm:$0xff]  ;;  %v9317_v32 = vunpack.i.l.bf16 %v18864_v50  ;;  %18868 = vst [vmem:[#allocation15_spill] sm:$0xff] %v14778_v15  ;;  %v5154_v50 = vsel %vm2090_vm10, %v5122_v26, %v9313_v37 }
 0x440   : > { %18862 = vst [vmem:[#allocation264_spill] sm:$0xff] %v14767_v49  ;;  %18863 = vst [vmem:[#allocation265_spill] sm:$0xff] %v14769_v34  ;;  %v10899_v2 = vld [vmem:[#allocation4 + $0x60] sm:$0xff]  ;;  %v18866_v38 = vld [vmem:[#allocation170_spill] sm:$0xff] }
 0x441   : > { %v5119_v56 = vsel %vm420_vm2, %v10899_v2, %v9347_v61  ;;  %v18867_v43 = vpack.i.bf16 %v18865_v1, %v18866_v38  ;;  %v14782_v29 = vld [vmem:[#allocation4 + $0x92] sm:$0xff]  ;;  %v14784_v9 = vld [vmem:[#allocation4 + $0x9a] sm:$0xff]  ;;  %v14797_v38 = vld [vmem:[#allocation4 + $0xa9] sm:$0xff]  ;;  %v5152_v51 = vsel %vm2090_vm10, %v5120_v48, %v9353_v55  ;;  %v5186_v49 = vsel %vm5175_vm12, %v5153_v17, %v9317_v32  ;;  %v14838_v48 = vpop.permute.xlu0 %9990 }
 0x442   : > { %18869 = vst [vmem:[#allocation169_spill] sm:$0xff] %v14782_v29  ;;  %18870 = vst [vmem:[#allocation170_spill] sm:$0xff] %v14784_v9  ;;  %v14786_v2 = vld [vmem:[#allocation4 + $0xb0] sm:$0xff]  ;;  %v18878_v1 = vld [vmem:[#allocation172_spill] sm:$0xff]  ;;  %v5151_v47 = vsel %vm2090_vm10, %v5119_v56, %v9352_v25 }
 0x443   : > { %10265 = vrot.lane.b32.xlu1 %v18867_v43, %s11053_s15  ;;  %18871 = vst [vmem:[#allocation266_spill] sm:$0xff] %v14786_v2  ;;  %v14795_v43 = vld [vmem:[#allocation4 + $0xa8] sm:$0xff]  ;;  %18873 = vst [vmem:[#allocation268_spill] sm:$0xff] %v14797_v38  ;;  %v14799_v36 = vld [vmem:[#allocation4 + $0xb1] sm:$0xff] }
 0x444   : > { %18872 = vst [vmem:[#allocation267_spill] sm:$0xff] %v14795_v43  ;;  %18874 = vst [vmem:[#allocation269_spill] sm:$0xff] %v14799_v36  ;;  %v14801_v62 = vld [vmem:[#allocation4 + $0xc9] sm:$0xff]  ;;  %v18879_v39 = vld [vmem:[#allocation171_spill] sm:$0xff] }
 0x445   : > { %18875 = vst [vmem:[#allocation270_spill] sm:$0xff] %v14801_v62  ;;  %v18876_v15 = vld [vmem:[#allocation18_spill] sm:$0xff]  ;;  %v18880_v61 = vpack.i.bf16 %v18878_v1, %v18879_v39  ;;  %v14814_v28 = vld [vmem:[#allocation4 + $0xc1] sm:$0xff]  ;;  %v14825_v39 = vld [vmem:[#allocation4 + $0xd9] sm:$0xff] }
 0x446   : > { %v9357_v5 = vunpack.i.l.bf16 %v18876_v15  ;;  %18877 = vst [vmem:[#allocation18_spill] sm:$0xff] %v14806_v11  ;;  %18881 = vst [vmem:[#allocation172_spill] sm:$0xff] %v14814_v28  ;;  %v14816_v4 = vld [vmem:[#allocation4 + $0xaa] sm:$0xff]  ;;  %v14818_v45 = vld [vmem:[#allocation4 + $0xb2] sm:$0xff]  ;;  %v9358_v37 = vunpack.i.h.bf16 %v18876_v15 }
 0x447   : > { %10270 = vrot.lane.b32.xlu0 %v18880_v61, %s11053_s15  ;;  %18882 = vst [vmem:[#allocation171_spill] sm:$0xff] %v14816_v4  ;;  %18883 = vst [vmem:[#allocation271_spill] sm:$0xff] %v14818_v45  ;;  %v14827_v1 = vld [vmem:[#allocation4 + $0xe1] sm:$0xff]  ;;  %v14829_v61 = vld [vmem:[#allocation4 + $0xf1] sm:$0xff] }
 0x448   : > { %18884 = vst [vmem:[#allocation272_spill] sm:$0xff] %v14825_v39  ;;  %18885 = vst [vmem:[#allocation273_spill] sm:$0xff] %v14827_v1  ;;  %v14831_v63 = vld [vmem:[#allocation4 + $0xf9] sm:$0xff]  ;;  %v18888_v34 = vld [vmem:[#allocation173_spill] sm:$0xff]  ;;  %v5184_v17 = vsel %vm5175_vm12, %v5151_v47, %v9357_v5  ;;  %v5185_v45 = vsel %vm5175_vm12, %v5152_v51, %v9358_v37 }
 0x449   : > { %18886 = vst [vmem:[#allocation274_spill] sm:$0xff] %v14829_v61  ;;  %18887 = vst [vmem:[#allocation275_spill] sm:$0xff] %v14831_v63  ;;  %v18889_v56 = vld [vmem:[#allocation175_spill] sm:$0xff]  ;;  %v14844_v26 = vld [vmem:[#allocation4 + $0xc0] sm:$0xff]  ;;  %v14901_v61 = vpop.permute.xlu0 %10000 }
 0x44a   : > { %v18890_v25 = vpack.i.bf16 %v18888_v34, %v18889_v56  ;;  %18891 = vst [vmem:[#allocation173_spill] sm:$0xff] %v14838_v48  ;;  %18892 = vst [vmem:[#allocation175_spill] sm:$0xff] %v14844_v26  ;;  %v14846_v29 = vld [vmem:[#allocation4 + $0xc8] sm:$0xff]  ;;  %v14852_v9 = vld [vmem:[#allocation4 + $0x111] sm:$0xff]  ;;  %v5187_v34 = vsel %vm5175_vm12, %v5154_v50, %v9318_v21  ;;  %v14865_v48 = vpop.permute.xlu1 %9995 }
 0x44b   : > { %18893 = vst [vmem:[#allocation276_spill] sm:$0xff] %v14846_v29  ;;  %v14850_v32 = vld [vmem:[#allocation4 + $0x109] sm:$0xff]  ;;  %18895 = vst [vmem:[#allocation278_spill] sm:$0xff] %v14852_v9  ;;  %v3029_v2 = vld [vmem:[#allocation4 + $0x1b8] sm:$0xff] }
 0x44c   : > { %10275 = vrot.lane.b32.xlu1 %v18890_v25, %s11053_s15  ;;  %18894 = vst [vmem:[#allocation277_spill] sm:$0xff] %v14850_v32  ;;  %v18896_v56 = vld [vmem:[#allocation17_spill] sm:$0xff]  ;;  %v3028_v43 = vld [vmem:[#allocation4 + $0x1b0] sm:$0xff]  ;;  %v18899_v28 = vld [vmem:[#allocation20_spill] sm:$0xff] }
 0x44d   : > { %v9323_v25 = vunpack.i.h.bf16 %v18896_v56  ;;  %v9322_v15 = vunpack.i.l.bf16 %v18896_v56  ;;  %v14859_v38 = vld [vmem:[#allocation4 + $0x121] sm:$0xff]  ;;  %v14861_v36 = vld [vmem:[#allocation4 + $0x129] sm:$0xff]  ;;  %v9362_v62 = vunpack.i.l.bf16 %v18899_v28  ;;  %18900 = vst [vmem:[#allocation20_spill] sm:$0xff] %v14865_v48  ;;  %v14875_v55 = vld [vmem:[#allocation4 + $0x139] sm:$0xff]  ;;  %v9363_v48 = vunpack.i.h.bf16 %v18899_v28 }
 0x44e   : > { %18897 = vst [vmem:[#allocation17_spill] sm:$0xff] %v14859_v38  ;;  %18898 = vst [vmem:[#allocation279_spill] sm:$0xff] %v14861_v36  ;;  %v18901_v21 = vld [vmem:[#allocation177_spill] sm:$0xff]  ;;  %v18902_v50 = vld [vmem:[#allocation176_spill] sm:$0xff]  ;;  %v14936_v38 = vpop.permute.xlu1 %10005 }
 0x44f   : > { %v18903_v11 = vpack.i.bf16 %v18901_v21, %v18902_v50  ;;  %v14871_v56 = vld [vmem:[#allocation4 + $0xc2] sm:$0xff]  ;;  %v14873_v19 = vld [vmem:[#allocation4 + $0xca] sm:$0xff]  ;;  %18906 = vst [vmem:[#allocation280_spill] sm:$0xff] %v14875_v55  ;;  %v14889_v50 = vld [vmem:[#allocation4 + $0x159] sm:$0xff]  ;;  %v14971_v55 = vpop.permute.xlu0 %10010 }
 0x450   : > { %18904 = vst [vmem:[#allocation177_spill] sm:$0xff] %v14871_v56  ;;  %18905 = vst [vmem:[#allocation176_spill] sm:$0xff] %v14873_v19  ;;  %v14877_v4 = vld [vmem:[#allocation4 + $0x141] sm:$0xff]  ;;  %v14887_v21 = vld [vmem:[#allocation4 + $0x151] sm:$0xff] }
 0x451   : > { %10280 = vrot.lane.b32.xlu0 %v18903_v11, %s11053_s15  ;;  %18907 = vst [vmem:[#allocation281_spill] sm:$0xff] %v14877_v4  ;;  %18908 = vst [vmem:[#allocation282_spill] sm:$0xff] %v14887_v21  ;;  %v14891_v35 = vld [vmem:[#allocation4 + $0xe0] sm:$0xff]  ;;  %v18911_v5 = vld [vmem:[#allocation21_spill] sm:$0xff]  ;;  %v10294_v11 = vpack.i.bf16 %v3029_v2, %v3028_v43 }
 0x452   : > { %18909 = vst [vmem:[#allocation283_spill] sm:$0xff] %v14889_v50  ;;  %18910 = vst [vmem:[#allocation284_spill] sm:$0xff] %v14891_v35  ;;  %v9328_v39 = vunpack.i.h.bf16 %v18911_v5  ;;  %v9327_v47 = vunpack.i.l.bf16 %v18911_v5  ;;  %v18912_v51 = vld [vmem:[#allocation178_spill] sm:$0xff]  ;;  %v18913_v37 = vld [vmem:[#allocation179_spill] sm:$0xff]  ;;  %v14914_v5 = vsel %vm5208_vm13, %v5186_v49, %v9322_v15  ;;  %v14932_v49 = vsel %vm5208_vm13, %v5184_v17, %v9362_v62 }
 0x453   : > { %v18914_v28 = vpack.i.bf16 %v18912_v51, %v18913_v37  ;;  %18915 = vst [vmem:[#allocation21_spill] sm:$0xff] %v14901_v61  ;;  %v14903_v63 = vld [vmem:[#allocation4 + $0xd8] sm:$0xff]  ;;  %v14905_v1 = vld [vmem:[#allocation4 + $0x169] sm:$0xff]  ;;  %v14917_v51 = vsel %vm5208_vm13, %v5187_v34, %v9323_v25  ;;  %v14921_v43 = vld [vmem:[#allocation4 + $0x181] sm:$0xff]  ;;  %v14951_v17 = vsel %vm5208_vm13, %v5185_v45, %v9363_v48 }
 0x454   : > { %18916 = vst [vmem:[#allocation178_spill] sm:$0xff] %v14903_v63  ;;  %18917 = vst [vmem:[#allocation179_spill] sm:$0xff] %v14905_v1  ;;  %v14907_v26 = vld [vmem:[#allocation4 + $0x171] sm:$0xff]  ;;  %v14909_v29 = vld [vmem:[#allocation4 + $0x189] sm:$0xff] }
 0x455   : > { %10285 = vrot.lane.b32.xlu1 %v18914_v28, %s11053_s15  ;;  %18918 = vst [vmem:[#allocation285_spill] sm:$0xff] %v14907_v26  ;;  %18919 = vst [vmem:[#allocation286_spill] sm:$0xff] %v14909_v29  ;;  %v14923_v37 = vld [vmem:[#allocation4 + $0xda] sm:$0xff]  ;;  %v14925_v28 = vld [vmem:[#allocation4 + $0xe2] sm:$0xff] }
 0x456   : > { %18920 = vst [vmem:[#allocation287_spill] sm:$0xff] %v14921_v43  ;;  %18921 = vst [vmem:[#allocation288_spill] sm:$0xff] %v14923_v37  ;;  %v14927_v32 = vld [vmem:[#allocation4 + $0xdb] sm:$0xff]  ;;  %v18924_v15 = vld [vmem:[#allocation22_spill] sm:$0xff] }
 0x457   : > { %18922 = vst [vmem:[#allocation289_spill] sm:$0xff] %v14925_v28  ;;  %18923 = vst [vmem:[#allocation290_spill] sm:$0xff] %v14927_v32  ;;  %v9368_v34 = vunpack.i.h.bf16 %v18924_v15  ;;  %v9367_v25 = vunpack.i.l.bf16 %v18924_v15  ;;  %v18926_v2 = vld [vmem:[#allocation182_spill] sm:$0xff]  ;;  %v18927_v36 = vld [vmem:[#allocation181_spill] sm:$0xff]  ;;  %v15004_v32 = vpop.permute.xlu1 %10015 }
 0x458   : > { %18925 = vst [vmem:[#allocation22_spill] sm:$0xff] %v14936_v38  ;;  %v18928_v9 = vpack.i.bf16 %v18926_v2, %v18927_v36  ;;  %v14942_v56 = vld [vmem:[#allocation4 + $0xe3] sm:$0xff]  ;;  %v14944_v19 = vld [vmem:[#allocation4 + $0x199] sm:$0xff]  ;;  %v14956_v4 = vld [vmem:[#allocation4 + $0xf0] sm:$0xff] }
 0x459   : > { %18929 = vst [vmem:[#allocation182_spill] sm:$0xff] %v14942_v56  ;;  %18930 = vst [vmem:[#allocation181_spill] sm:$0xff] %v14944_v19  ;;  %v14946_v61 = vld [vmem:[#allocation4 + $0x1a1] sm:$0xff]  ;;  %v18932_v15 = vld [vmem:[#allocation23_spill] sm:$0xff]  ;;  %10295 = vrot.lane.b32.xlu1 %v10294_v11, %s11053_s15  ;;  %v18950_v56 = vpack.i.bf16 %v14343_v10, %v14352_v33 }
 0x45a   : > { %10290 = vrot.lane.b32.xlu0 %v18928_v9, %s11053_s15  ;;  %18931 = vst [vmem:[#allocation291_spill] sm:$0xff] %v14946_v61  ;;  %v9332_v53 = vunpack.i.l.bf16 %v18932_v15  ;;  %18933 = vst [vmem:[#allocation292_spill] sm:$0xff] %v14956_v4  ;;  %v14958_v36 = vld [vmem:[#allocation4 + $0xf8] sm:$0xff]  ;;  %v10901_v62 = vld [vmem:[#allocation4 + $0x170] sm:$0xff] }
 0x45b   : > { %18934 = vst [vmem:[#allocation293_spill] sm:$0xff] %v14958_v36  ;;  %v14960_v9 = vld [vmem:[#allocation4 + $0xfa] sm:$0xff]  ;;  %v14967_v45 = vsel %vm420_vm2, %v10901_v62, %v9328_v39  ;;  %v10902_v48 = vld [vmem:[#allocation4 + $0x168] sm:$0xff]  ;;  %18938 = vst [vmem:[#allocation297_spill] sm:$0xff] %v14971_v55  ;;  %v15068_v36 = vpop.permute.xlu1 %10025 }
 0x45c   : > { %18935 = vst [vmem:[#allocation294_spill] sm:$0xff] %v14960_v9  ;;  %v14962_v2 = vld [vmem:[#allocation4 + $0xf3] sm:$0xff]  ;;  %18937 = vst [vmem:[#allocation296_spill] sm:$0xff] %v14967_v45  ;;  %v5141_v21 = vsel %vm420_vm2, %v10902_v48, %v9327_v47  ;;  %v14977_v35 = vld [vmem:[#allocation4 + $0xfb] sm:$0xff] }
 0x45d   : > { %18936 = vst [vmem:[#allocation295_spill] sm:$0xff] %v14962_v2  ;;  %v14975_v63 = vld [vmem:[#allocation4 + $0xf2] sm:$0xff]  ;;  %18940 = vst [vmem:[#allocation299_spill] sm:$0xff] %v14977_v35  ;;  %v18943_v62 = vld [vmem:[#allocation24_spill] sm:$0xff] }
 0x45e   : > { %18939 = vst [vmem:[#allocation298_spill] sm:$0xff] %v14975_v63  ;;  %v14979_v12 = vld [vmem:[#allocation4 + $0x110] sm:$0xff]  ;;  %v9373_v47 = vunpack.i.h.bf16 %v18943_v62  ;;  %v9372_v11 = vunpack.i.l.bf16 %v18943_v62  ;;  %v14989_v45 = vld [vmem:[#allocation4 + $0x108] sm:$0xff]  ;;  %v10903_v43 = vld [vmem:[#allocation4 + $0x158] sm:$0xff]  ;;  %10300 = vrot.lane.b32.xlu0 %v18950_v56, %s11044_s21 }
 0x45f   : > { %18941 = vst [vmem:[#allocation300_spill] sm:$0xff] %v14979_v12  ;;  %v14981_v38 = vld [vmem:[#allocation4 + $0x112] sm:$0xff]  ;;  %18944 = vst [vmem:[#allocation24_spill] sm:$0xff] %v14989_v45  ;;  %v14991_v50 = vld [vmem:[#allocation4 + $0x10a] sm:$0xff]  ;;  %v5140_v29 = vsel %vm420_vm2, %v10903_v43, %v9368_v34  ;;  %v15019_v34 = vsel %vm2090_vm10, %v5141_v21, %v9332_v53 }
 0x460   : > { %18942 = vst [vmem:[#allocation301_spill] sm:$0xff] %v14981_v38  ;;  %18945 = vst [vmem:[#allocation302_spill] sm:$0xff] %v14991_v50  ;;  %v14993_v1 = vld [vmem:[#allocation4 + $0x10b] sm:$0xff]  ;;  %v14995_v26 = vld [vmem:[#allocation4 + $0x113] sm:$0xff]  ;;  %v5172_v10 = vsel %vm2090_vm10, %v5140_v29, %v9373_v47 }
 0x461   : > { %18946 = vst [vmem:[#allocation303_spill] sm:$0xff] %v14993_v1  ;;  %18947 = vst [vmem:[#allocation304_spill] sm:$0xff] %v14995_v26  ;;  %v14997_v37 = vld [vmem:[#allocation4 + $0x128] sm:$0xff]  ;;  %v10904_v62 = vld [vmem:[#allocation4 + $0x150] sm:$0xff] }
 0x462   : > { %18948 = vst [vmem:[#allocation305_spill] sm:$0xff] %v14997_v37  ;;  %v5139_v28 = vsel %vm420_vm2, %v10904_v62, %v9367_v25  ;;  %18949 = vst [vmem:[#allocation306_spill] sm:$0xff] %v15004_v32  ;;  %v15012_v42 = vld [vmem:[#allocation4 + $0x12a] sm:$0xff]  ;;  %v18955_v25 = vld [vmem:[#allocation19_spill] sm:$0xff] }
 0x463   : > { %18951 = vst [vmem:[#allocation307_spill] sm:$0xff] %v15012_v42  ;;  %v15014_v39 = vld [vmem:[#allocation4 + $0x123] sm:$0xff]  ;;  %v15016_v43 = vld [vmem:[#allocation4 + $0x12b] sm:$0xff]  ;;  %18954 = vst [vmem:[#allocation310_spill] sm:$0xff] %v15019_v34  ;;  %v9377_v62 = vunpack.i.l.bf16 %v18955_v25  ;;  %v9378_v53 = vunpack.i.h.bf16 %v18955_v25  ;;  %v15039_v34 = vpop.permute.xlu0 %10020  ;;  %v5171_v4 = vsel %vm2090_vm10, %v5139_v28, %v9372_v11 }
 0x464   : > { %18952 = vst [vmem:[#allocation308_spill] sm:$0xff] %v15014_v39  ;;  %18953 = vst [vmem:[#allocation309_spill] sm:$0xff] %v15016_v43  ;;  %v15026_v33 = vld [vmem:[#allocation4 + $0x120] sm:$0xff]  ;;  %v18961_v21 = vld [vmem:[#allocation191_spill] sm:$0xff] }
 0x465   : > { %18956 = vst [vmem:[#allocation19_spill] sm:$0xff] %v15026_v33  ;;  %v15028_v56 = vld [vmem:[#allocation4 + $0x122] sm:$0xff]  ;;  %10305 = vrot.lane.b32.xlu1 %v18961_v21, %s11044_s21  ;;  %18962 = vst [vmem:[#allocation315_spill] sm:$0xff] %v15039_v34  ;;  %v15047_v2 = vld [vmem:[#allocation4 + $0x138] sm:$0xff]  ;;  %v5205_v39 = vsel %vm5175_vm12, %v5172_v10, %v9378_v53 }
 0x466   : > { %18957 = vst [vmem:[#allocation311_spill] sm:$0xff] %v15028_v56  ;;  %v15030_v55 = vld [vmem:[#allocation4 + $0x140] sm:$0xff]  ;;  %18963 = vst [vmem:[#allocation316_spill] sm:$0xff] %v15047_v2  ;;  %v15053_v25 = vld [vmem:[#allocation4 + $0x158] sm:$0xff] }
 0x467   : > { %18958 = vst [vmem:[#allocation312_spill] sm:$0xff] %v15030_v55  ;;  %v15032_v19 = vld [vmem:[#allocation4 + $0x142] sm:$0xff]  ;;  %v15049_v35 = vld [vmem:[#allocation4 + $0x13a] sm:$0xff]  ;;  %18966 = vst [vmem:[#allocation319_spill] sm:$0xff] %v15053_v25 }
 0x468   : > { %18959 = vst [vmem:[#allocation313_spill] sm:$0xff] %v15032_v19  ;;  %v15034_v61 = vld [vmem:[#allocation4 + $0x13b] sm:$0xff]  ;;  %18964 = vst [vmem:[#allocation317_spill] sm:$0xff] %v15049_v35  ;;  %v15051_v63 = vld [vmem:[#allocation4 + $0x143] sm:$0xff] }
 0x469   : > { %18960 = vst [vmem:[#allocation314_spill] sm:$0xff] %v15034_v61  ;;  %18965 = vst [vmem:[#allocation318_spill] sm:$0xff] %v15051_v63  ;;  %v15055_v9 = vld [vmem:[#allocation4 + $0x15a] sm:$0xff]  ;;  %v18969_v48 = vld [vmem:[#allocation30_spill] sm:$0xff] }
 0x46a   : > { %18967 = vst [vmem:[#allocation320_spill] sm:$0xff] %v15055_v9  ;;  %v9382_v50 = vunpack.i.l.bf16 %v18969_v48  ;;  %v15061_v38 = vld [vmem:[#allocation4 + $0x153] sm:$0xff]  ;;  %v15063_v15 = vld [vmem:[#allocation4 + $0x15b] sm:$0xff]  ;;  %v9383_v26 = vunpack.i.h.bf16 %v18969_v48  ;;  %18973 = vst [vmem:[#allocation323_spill] sm:$0xff] %v15068_v36  ;;  %v5204_v48 = vsel %vm5175_vm12, %v5171_v4, %v9377_v62  ;;  %v15100_v4 = vpop.permute.xlu0 %10030 }
 0x46b   : > { %18970 = vst [vmem:[#allocation30_spill] sm:$0xff] %v15061_v38  ;;  %18971 = vst [vmem:[#allocation321_spill] sm:$0xff] %v15063_v15  ;;  %v15065_v1 = vld [vmem:[#allocation4 + $0x170] sm:$0xff]  ;;  %v18974_v34 = vld [vmem:[#allocation192_spill] sm:$0xff] }
 0x46c   : > { %18972 = vst [vmem:[#allocation322_spill] sm:$0xff] %v15065_v1  ;;  %10310 = vrot.lane.b32.xlu0 %v18974_v34, %s11044_s21  ;;  %v15078_v11 = vld [vmem:[#allocation4 + $0x172] sm:$0xff]  ;;  %v18980_v43 = vld [vmem:[#allocation185_spill] sm:$0xff]  ;;  %v15113_v10 = vsel %vm5208_vm13, %v5204_v48, %v9382_v50  ;;  %v15122_v53 = vsel %vm5208_vm13, %v5205_v39, %v9383_v26  ;;  %v15127_v50 = vpop.permute.xlu1 %10035  ;;  %v15155_v63 = vld [vmem:[#allocation4 + $0x180] sm:$0xff] }
 0x46d   : > { %18975 = vst [vmem:[#allocation324_spill] sm:$0xff] %v15078_v11  ;;  %v15080_v12 = vld [vmem:[#allocation4 + $0x16b] sm:$0xff]  ;;  %v15082_v45 = vld [vmem:[#allocation4 + $0x173] sm:$0xff]  ;;  %v18981_v42 = vpack.i.bf16 %v14354_v7, %v18980_v43  ;;  %18982 = vst [vmem:[#allocation185_spill] sm:$0xff] %v15100_v4 }
 0x46e   : > { %18976 = vst [vmem:[#allocation325_spill] sm:$0xff] %v15080_v12  ;;  %18977 = vst [vmem:[#allocation326_spill] sm:$0xff] %v15082_v45  ;;  %v15091_v56 = vld [vmem:[#allocation4 + $0x150] sm:$0xff]  ;;  %v15108_v36 = vld [vmem:[#allocation4 + $0x168] sm:$0xff] }
 0x46f   : > { %18978 = vst [vmem:[#allocation327_spill] sm:$0xff] %v15091_v56  ;;  %v15093_v47 = vld [vmem:[#allocation4 + $0x152] sm:$0xff]  ;;  %10315 = vrot.lane.b32.xlu1 %v18981_v42, %s11044_s21  ;;  %18983 = vst [vmem:[#allocation329_spill] sm:$0xff] %v15108_v36  ;;  %v15110_v61 = vld [vmem:[#allocation4 + $0x16a] sm:$0xff] }
 0x470   : > { %18979 = vst [vmem:[#allocation328_spill] sm:$0xff] %v15093_v47  ;;  %18984 = vst [vmem:[#allocation330_spill] sm:$0xff] %v15110_v61  ;;  %v18986_v28 = vld [vmem:[#allocation26_spill] sm:$0xff]  ;;  %v18987_v38 = vld [vmem:[#allocation31_spill] sm:$0xff] }
 0x471   : > { %18985 = vst [vmem:[#allocation331_spill] sm:$0xff] %v15113_v10  ;;  %v9388_v29 = vunpack.i.h.bf16 %v18986_v28  ;;  %v9387_v62 = vunpack.i.l.bf16 %v18986_v28  ;;  %v9407_v15 = vunpack.i.l.bf16 %v18987_v38  ;;  %18988 = vst [vmem:[#allocation26_spill] sm:$0xff] %v15127_v50  ;;  %v18989_v48 = vld [vmem:[#allocation183_spill] sm:$0xff]  ;;  %v18990_v7 = vld [vmem:[#allocation186_spill] sm:$0xff]  ;;  %v9408_v26 = vunpack.i.h.bf16 %v18987_v38  ;;  %v15168_v50 = vpop.permute.xlu1 %10045 }
 0x472   : > { %v18991_v10 = vpack.i.bf16 %v18989_v48, %v18990_v7  ;;  %v15133_v42 = vld [vmem:[#allocation4 + $0x188] sm:$0xff]  ;;  %v18994_v39 = vld [vmem:[#allocation14_spill] sm:$0xff]  ;;  %v18995_v28 = vld [vmem:[#allocation27_spill] sm:$0xff] }
 0x473   : > { %18992 = vst [vmem:[#allocation31_spill] sm:$0xff] %v15133_v42  ;;  %v15135_v61 = vld [vmem:[#allocation4 + $0x18a] sm:$0xff]  ;;  %v9393_v43 = vunpack.i.h.bf16 %v18994_v39  ;;  %v9392_v12 = vunpack.i.l.bf16 %v18994_v39  ;;  %v9412_v45 = vunpack.i.l.bf16 %v18995_v28  ;;  %v9413_v1 = vunpack.i.h.bf16 %v18995_v28  ;;  %v18998_v7 = vld [vmem:[#allocation28_spill] sm:$0xff]  ;;  %v19000_v38 = vld [vmem:[#allocation187_spill] sm:$0xff]  ;;  %v15153_v39 = vpop.permute.xlu0 %10040 }
 0x474   : > { %10320 = vrot.lane.b32.xlu0 %v18991_v10, %s11044_s21  ;;  %18993 = vst [vmem:[#allocation183_spill] sm:$0xff] %v15135_v61  ;;  %v15141_v11 = vld [vmem:[#allocation4 + $0x183] sm:$0xff]  ;;  %v15143_v36 = vld [vmem:[#allocation4 + $0x18b] sm:$0xff]  ;;  %v9398_v10 = vunpack.i.h.bf16 %v18998_v7  ;;  %v9397_v48 = vunpack.i.l.bf16 %v18998_v7  ;;  %19003 = vst [vmem:[#allocation27_spill] sm:$0xff] %v15153_v39 }
 0x475   : > { %18996 = vst [vmem:[#allocation186_spill] sm:$0xff] %v15141_v11  ;;  %18997 = vst [vmem:[#allocation14_spill] sm:$0xff] %v15143_v36  ;;  %v18999_v47 = vld [vmem:[#allocation60_spill] sm:$0xff]  ;;  %v19006_v28 = vld [vmem:[#allocation61_spill] sm:$0xff] }
 0x476   : > { %v9417_v9 = vunpack.i.l.bf16 %v18999_v47  ;;  %v19001_v56 = vld [vmem:[#allocation188_spill] sm:$0xff]  ;;  %19004 = vst [vmem:[#allocation28_spill] sm:$0xff] %v15155_v63  ;;  %v9418_v19 = vunpack.i.h.bf16 %v18999_v47  ;;  %v9402_v2 = vunpack.i.l.bf16 %v19006_v28  ;;  %v10905_v33 = vld [vmem:[#allocation4 + $0xa8] sm:$0xff]  ;;  %v10907_v39 = vld [vmem:[#allocation4 + $0x90] sm:$0xff]  ;;  %v19008_v47 = vpack.i.bf16 %v14374_v31, %v14404_v30 }
 0x477   : > { %v19002_v25 = vpack.i.bf16 %v19000_v38, %v19001_v56  ;;  %v15157_v35 = vld [vmem:[#allocation4 + $0x182] sm:$0xff]  ;;  %v5125_v56 = vsel %vm420_vm2, %v10905_v33, %v9387_v62  ;;  %v5123_v37 = vsel %vm420_vm2, %v10907_v39, %v9407_v15  ;;  %19007 = vst [vmem:[#allocation187_spill] sm:$0xff] %v15168_v50  ;;  %v10908_v55 = vld [vmem:[#allocation4 + $0x98] sm:$0xff]  ;;  %v19009_v30 = vpack.i.bf16 %v14376_v23, %v14406_v24  ;;  %v15200_v24 = vpop.permute.xlu1 %10055  ;;  %v10915_v32 = vld [vmem:[#allocation4 + $0xf0] sm:$0xff] }
 0x478   : > { %19005 = vst [vmem:[#allocation60_spill] sm:$0xff] %v15157_v35  ;;  %10330 = vrot.lane.b32.xlu0 %v19008_v47, %s11044_s21  ;;  %v5124_v35 = vsel %vm420_vm2, %v10908_v55, %v9408_v26  ;;  %v5157_v33 = vsel %vm2090_vm10, %v5125_v56, %v9392_v12  ;;  %v5155_v62 = vsel %vm2090_vm10, %v5123_v37, %v9412_v45  ;;  %v15188_v55 = vpop.permute.xlu0 %10050  ;;  %v19012_v26 = vld [vmem:[#allocation63_spill] sm:$0xff]  ;;  %19014 = vst [vmem:[#allocation61_spill] sm:$0xff] %v15200_v24  ;;  %v19021_v7 = vld [vmem:[#allocation189_spill] sm:$0xff] }
 0x479   : > { %10325 = vrot.lane.b32.xlu1 %v19002_v25, %s11044_s21  ;;  %v10906_v25 = vld [vmem:[#allocation4 + $0xb0] sm:$0xff]  ;;  %v5156_v15 = vsel %vm2090_vm10, %v5124_v35, %v9413_v1  ;;  %v5190_v39 = vsel %vm5175_vm12, %v5157_v33, %v9397_v48  ;;  %v5188_v31 = vsel %vm5175_vm12, %v5155_v62, %v9417_v9  ;;  %19010 = vst [vmem:[#allocation188_spill] sm:$0xff] %v15188_v55  ;;  %v9428_v9 = vunpack.i.h.bf16 %v19012_v26  ;;  %v19013_v48 = vld [vmem:[#allocation64_spill] sm:$0xff]  ;;  %v19024_v11 = vld [vmem:[#allocation69_spill] sm:$0xff] }
 0x47a   : > { %v5126_v38 = vsel %vm420_vm2, %v10906_v25, %v9388_v29  ;;  %v5189_v12 = vsel %vm5175_vm12, %v5156_v15, %v9418_v19  ;;  %v15193_v37 = vsel %vm5208_vm13, %v5190_v39, %v9402_v2  ;;  %v19011_v35 = vld [vmem:[#allocation62_spill] sm:$0xff]  ;;  %v9447_v23 = vunpack.i.l.bf16 %v19013_v48  ;;  %v19015_v19 = vld [vmem:[#allocation193_spill] sm:$0xff]  ;;  %v19019_v15 = vld [vmem:[#allocation67_spill] sm:$0xff] }
 0x47b   : > { %v5158_v29 = vsel %vm2090_vm10, %v5126_v38, %v9393_v43  ;;  %v9403_v43 = vunpack.i.h.bf16 %v19006_v28  ;;  %v9422_v1 = vunpack.i.l.bf16 %v19011_v35  ;;  %v9423_v45 = vunpack.i.h.bf16 %v19011_v35  ;;  %v19017_v28 = vld [vmem:[#allocation65_spill] sm:$0xff]  ;;  %v19018_v33 = vld [vmem:[#allocation66_spill] sm:$0xff]  ;;  %v19020_v35 = vld [vmem:[#allocation68_spill] sm:$0xff] }
 0x47c   : > { %v5191_v25 = vsel %vm5175_vm12, %v5158_v29, %v9398_v10  ;;  %v9427_v10 = vunpack.i.l.bf16 %v19012_v26  ;;  %v19016_v56 = vpack.i.bf16 %v14385_v3, %v19015_v19  ;;  %v9448_v2 = vunpack.i.h.bf16 %v19013_v48  ;;  %v19022_v3 = vld [vmem:[#allocation194_spill] sm:$0xff]  ;;  %v15218_v48 = vpop.permute.xlu0 %10060  ;;  %v10909_v61 = vld [vmem:[#allocation4 + $0xd8] sm:$0xff]  ;;  %v19037_v42 = vld [vmem:[#allocation204_spill] sm:$0xff] }
 0x47d   : > { %10335 = vrot.lane.b32.xlu1 %v19009_v30, %s11044_s21  ;;  %v9433_v38 = vunpack.i.h.bf16 %v19017_v28  ;;  %v9432_v47 = vunpack.i.l.bf16 %v19017_v28  ;;  %v9452_v29 = vunpack.i.l.bf16 %v19018_v33  ;;  %v9453_v62 = vunpack.i.h.bf16 %v19018_v33  ;;  %v19061_v34 = vld [vmem:[#allocation156_spill] sm:$0xff] }
 0x47e   : > { %10340 = vrot.lane.b32.xlu0 %v19016_v56, %s11044_s21  ;;  %v9438_v39 = vunpack.i.h.bf16 %v19019_v15  ;;  %v9437_v30 = vunpack.i.l.bf16 %v19019_v15  ;;  %v9457_v26 = vunpack.i.l.bf16 %v19020_v35  ;;  %v19023_v19 = vpack.i.bf16 %v19021_v7, %v19022_v3  ;;  %v10910_v7 = vld [vmem:[#allocation4 + $0xe0] sm:$0xff] }
 0x47f   : > { %v15221_v56 = vsel %vm5208_vm13, %v5191_v25, %v9403_v43  ;;  %v15224_v28 = vsel %vm5208_vm13, %v5188_v31, %v9422_v1  ;;  %v9458_v33 = vunpack.i.h.bf16 %v19020_v35  ;;  %v9442_v36 = vunpack.i.l.bf16 %v19024_v11  ;;  %v15234_v43 = vpop.permute.xlu1 %10065  ;;  %v19025_v31 = vld [vmem:[#allocation196_spill] sm:$0xff]  ;;  %v10912_v35 = vld [vmem:[#allocation4 + $0xc8] sm:$0xff] }
 0x480   : > { %v15229_v15 = vsel %vm5208_vm13, %v5189_v12, %v9423_v45  ;;  %v5129_v63 = vsel %vm420_vm2, %v10909_v61, %v9427_v10  ;;  %v5130_v3 = vsel %vm420_vm2, %v10910_v7, %v9428_v9  ;;  %v19026_v1 = vpack.i.bf16 %v14389_v22, %v19025_v31 }
 0x481   : > { %10345 = vrot.lane.b32.xlu1 %v19023_v19, %s11044_s21  ;;  %v10911_v19 = vld [vmem:[#allocation4 + $0xc0] sm:$0xff]  ;;  %v5128_v12 = vsel %vm420_vm2, %v10912_v35, %v9448_v2  ;;  %v5161_v45 = vsel %vm2090_vm10, %v5129_v63, %v9432_v47  ;;  %v5162_v61 = vsel %vm2090_vm10, %v5130_v3, %v9433_v38  ;;  %v19027_v22 = vpack.i.bf16 %v14412_v27, %v14447_v46  ;;  %v15252_v2 = vpop.permute.xlu0 %10070  ;;  %v19029_v3 = vld [vmem:[#allocation71_spill] sm:$0xff]  ;;  %v19033_v35 = vld [vmem:[#allocation73_spill] sm:$0xff] }
 0x482   : > { %v5127_v25 = vsel %vm420_vm2, %v10911_v19, %v9447_v23  ;;  %10350 = vrot.lane.b32.xlu0 %v19026_v1, %s11044_s21  ;;  %v5160_v9 = vsel %vm2090_vm10, %v5128_v12, %v9453_v62  ;;  %v5194_v23 = vsel %vm5175_vm12, %v5161_v45, %v9437_v30  ;;  %v5195_v7 = vsel %vm5175_vm12, %v5162_v61, %v9438_v39  ;;  %v3092_v30 = vld [vmem:[#allocation4 + $0x1b2] sm:$0xff]  ;;  %v3093_v39 = vld [vmem:[#allocation4 + $0x1ba] sm:$0xff] }
 0x483   : > { %v5159_v10 = vsel %vm2090_vm10, %v5127_v25, %v9452_v29  ;;  %v5193_v63 = vsel %vm5175_vm12, %v5160_v9, %v9458_v33  ;;  %v9443_v38 = vunpack.i.h.bf16 %v19024_v11  ;;  %v15257_v47 = vsel %vm5208_vm13, %v5194_v23, %v9442_v36  ;;  %v19028_v29 = vld [vmem:[#allocation70_spill] sm:$0xff]  ;;  %v19030_v46 = vld [vmem:[#allocation72_spill] sm:$0xff]  ;;  %v15264_v1 = vpop.permute.xlu1 %10075  ;;  %v19031_v11 = vld [vmem:[#allocation203_spill] sm:$0xff] }
 0x484   : > { %v5192_v19 = vsel %vm5175_vm12, %v5159_v10, %v9457_v26  ;;  %v9463_v62 = vunpack.i.h.bf16 %v19028_v29  ;;  %v9462_v26 = vunpack.i.l.bf16 %v19028_v29  ;;  %v9468_v25 = vunpack.i.h.bf16 %v19029_v3  ;;  %v19034_v61 = vld [vmem:[#allocation74_spill] sm:$0xff]  ;;  %v19035_v23 = vld [vmem:[#allocation75_spill] sm:$0xff] }
 0x485   : > { %10355 = vrot.lane.b32.xlu1 %v19027_v22, %s11044_s21  ;;  %v9467_v27 = vunpack.i.l.bf16 %v19029_v3  ;;  %v9493_v31 = vunpack.i.h.bf16 %v19030_v46  ;;  %v19032_v33 = vpack.i.bf16 %v14414_v44, %v19031_v11  ;;  %v9492_v36 = vunpack.i.l.bf16 %v19030_v46  ;;  %v19036_v3 = vld [vmem:[#allocation195_spill] sm:$0xff]  ;;  %v15281_v44 = vpop.permute.xlu0 %10080 }
 0x486   : > { %v9473_v12 = vunpack.i.h.bf16 %v19033_v35  ;;  %v9472_v45 = vunpack.i.l.bf16 %v19033_v35  ;;  %v9498_v10 = vunpack.i.h.bf16 %v19034_v61  ;;  %v9497_v9 = vunpack.i.l.bf16 %v19034_v61  ;;  %19039 = vst [vmem:[#allocation62_spill] sm:$0xff] %v15281_v44  ;;  %v19041_v61 = vld [vmem:[#allocation77_spill] sm:$0xff] }
 0x487   : > { %10360 = vrot.lane.b32.xlu0 %v19032_v33, %s11044_s21  ;;  %v9478_v22 = vunpack.i.h.bf16 %v19035_v23  ;;  %v9477_v29 = vunpack.i.l.bf16 %v19035_v23  ;;  %v19038_v24 = vpack.i.bf16 %v19036_v3, %v19037_v42  ;;  %v10374_v46 = vpack.i.bf16 %v3093_v39, %v3092_v30  ;;  %v19040_v33 = vld [vmem:[#allocation76_spill] sm:$0xff]  ;;  %v10913_v42 = vld [vmem:[#allocation4 + $0x108] sm:$0xff]  ;;  %v10914_v3 = vld [vmem:[#allocation4 + $0x110] sm:$0xff] }
 0x488   : > { %v15284_v11 = vsel %vm5208_vm13, %v5195_v7, %v9443_v38  ;;  %v9503_v35 = vunpack.i.h.bf16 %v19040_v33  ;;  %v9502_v55 = vunpack.i.l.bf16 %v19040_v33  ;;  %v9482_v50 = vunpack.i.l.bf16 %v19041_v61  ;;  %v15297_v7 = vpop.permute.xlu1 %10085  ;;  %v19043_v38 = vld [vmem:[#allocation197_spill] sm:$0xff] }
 0x489   : > { %10365 = vrot.lane.b32.xlu1 %v19038_v24, %s11044_s21  ;;  %v15290_v4 = vsel %vm5208_vm13, %v5192_v19, %v9462_v26  ;;  %v15293_v23 = vsel %vm5208_vm13, %v5193_v63, %v9463_v62  ;;  %v5133_v24 = vsel %vm420_vm2, %v10913_v42, %v9467_v27  ;;  %v5134_v30 = vsel %vm420_vm2, %v10914_v3, %v9468_v25  ;;  %v19044_v39 = vld [vmem:[#allocation205_spill] sm:$0xff]  ;;  %v10916_v26 = vld [vmem:[#allocation4 + $0xf8] sm:$0xff] }
 0x48a   : > { %19042 = vst [vmem:[#allocation63_spill] sm:$0xff] %v15297_v7  ;;  %v19045_v33 = vpack.i.bf16 %v19043_v38, %v19044_v39  ;;  %v5131_v19 = vsel %vm420_vm2, %v10915_v32, %v9492_v36  ;;  %v5132_v63 = vsel %vm420_vm2, %v10916_v26, %v9493_v31  ;;  %v5165_v62 = vsel %vm2090_vm10, %v5133_v24, %v9472_v45  ;;  %v15312_v38 = vpop.permute.xlu0 %10090  ;;  %v19047_v45 = vld [vmem:[#allocation78_spill] sm:$0xff] }
 0x48b   : > { %v5166_v27 = vsel %vm2090_vm10, %v5134_v30, %v9473_v12  ;;  %v5163_v42 = vsel %vm2090_vm10, %v5131_v19, %v9497_v9  ;;  %v5164_v25 = vsel %vm2090_vm10, %v5132_v63, %v9498_v10  ;;  %v5198_v3 = vsel %vm5175_vm12, %v5165_v62, %v9477_v29  ;;  %19046 = vst [vmem:[#allocation64_spill] sm:$0xff] %v15312_v38  ;;  %v19048_v29 = vld [vmem:[#allocation79_spill] sm:$0xff]  ;;  %v19055_v63 = vld [vmem:[#allocation82_spill] sm:$0xff]  ;;  %v19060_v38 = vld [vmem:[#allocation157_spill] sm:$0xff] }
 0x48c   : > { %10370 = vrot.lane.b32.xlu0 %v19045_v33, %s11044_s21  ;;  %v5199_v7 = vsel %vm5175_vm12, %v5166_v27, %v9478_v22  ;;  %v5196_v32 = vsel %vm5175_vm12, %v5163_v42, %v9502_v55  ;;  %v5197_v31 = vsel %vm5175_vm12, %v5164_v25, %v9503_v35  ;;  %v9483_v36 = vunpack.i.h.bf16 %v19041_v61  ;;  %v19050_v30 = vld [vmem:[#allocation199_spill] sm:$0xff]  ;;  %v19051_v55 = vld [vmem:[#allocation198_spill] sm:$0xff]  ;;  %v19053_v35 = vld [vmem:[#allocation80_spill] sm:$0xff] }
 0x48d   : > { %10375 = vrot.lane.b32.xlu1 %v10374_v46, %s11044_s21  ;;  %v15318_v12 = vsel %vm5208_vm13, %v5198_v3, %v9482_v50  ;;  %v9508_v9 = vunpack.i.h.bf16 %v19047_v45  ;;  %v9507_v10 = vunpack.i.l.bf16 %v19047_v45  ;;  %v9488_v24 = vunpack.i.h.bf16 %v19048_v29  ;;  %v15324_v46 = vpop.permute.xlu1 %10095  ;;  %v19054_v33 = vld [vmem:[#allocation81_spill] sm:$0xff]  ;;  %v19056_v42 = vld [vmem:[#allocation83_spill] sm:$0xff] }
 0x48e   : > { %v9487_v22 = vunpack.i.l.bf16 %v19048_v29  ;;  %19049 = vst [vmem:[#allocation193_spill] sm:$0xff] %v15324_v46  ;;  %v19052_v39 = vpack.i.bf16 %v19050_v30, %v19051_v55  ;;  %v9513_v61 = vunpack.i.h.bf16 %v19053_v35  ;;  %v9512_v50 = vunpack.i.l.bf16 %v19053_v35  ;;  %v15340_v45 = vpop.permute.xlu0 %10100  ;;  %v19058_v30 = vld [vmem:[#allocation84_spill] sm:$0xff]  ;;  %v19059_v35 = vld [vmem:[#allocation85_spill] sm:$0xff] }
 0x48f   : > { %v9518_v19 = vunpack.i.h.bf16 %v19054_v33  ;;  %v9517_v26 = vunpack.i.l.bf16 %v19054_v33  ;;  %v9523_v62 = vunpack.i.h.bf16 %v19055_v63  ;;  %v9522_v27 = vunpack.i.l.bf16 %v19055_v63  ;;  %19057 = vst [vmem:[#allocation65_spill] sm:$0xff] %v15340_v45  ;;  %v19077_v45 = vld [vmem:[#allocation92_spill] sm:$0xff] }
 0x490   : > { %10380 = vrot.lane.b32.xlu0 %v19052_v39, %s11048_s17  ;;  %v9528_v25 = vunpack.i.h.bf16 %v19056_v42  ;;  %v9527_v3 = vunpack.i.l.bf16 %v19056_v42  ;;  %v5232_v29 = vsel %vm5208_vm13, %v5199_v7, %v9483_v36  ;;  %v9533_v55 = vunpack.i.h.bf16 %v19058_v30  ;;  %v19063_v36 = vld [vmem:[#allocation209_spill] sm:$0xff] }
 0x491   : > { %10385 = vrot.lane.b32.xlu1 %v14517_v14, %s11048_s17  ;;  %v9532_v39 = vunpack.i.l.bf16 %v19058_v30  ;;  %v9538_v33 = vunpack.i.h.bf16 %v19059_v35  ;;  %v5229_v46 = vsel %vm5208_vm13, %v5196_v32, %v9507_v10  ;;  %v5230_v63 = vsel %vm5208_vm13, %v5197_v31, %v9508_v9  ;;  %v15356_v7 = vpop.permute.xlu1 %10105  ;;  %v19064_v32 = vld [vmem:[#allocation206_spill] sm:$0xff] }
 0x492   : > { %v15350_v42 = vsel %vm5241_vm14, %v19060_v38, %v9488_v24  ;;  %v15354_v44 = vsel %vm5241_vm14, %v19061_v34, %v9487_v22  ;;  %19062 = vst [vmem:[#allocation66_spill] sm:$0xff] %v15356_v7  ;;  %v15362_v30 = vsel %vm5241_vm14, %v19063_v36, %v9513_v61  ;;  %v15366_v31 = vsel %vm5241_vm14, %v19064_v32, %v9512_v50  ;;  %v19065_v38 = vld [vmem:[#allocation201_spill] sm:$0xff]  ;;  %v19066_v34 = vld [vmem:[#allocation200_spill] sm:$0xff] }
 0x493   : > { %v15370_v9 = vsel %vm5241_vm14, %v19065_v38, %v9518_v19  ;;  %v15374_v10 = vsel %vm5241_vm14, %v19066_v34, %v9517_v26  ;;  %v15378_v24 = vsel %vm5241_vm14, %v14951_v17, %v9523_v62  ;;  %v15382_v22 = vsel %vm5241_vm14, %v14932_v49, %v9522_v27  ;;  %v15394_v19 = vpop.permute.xlu0 %10110  ;;  %v19068_v26 = vld [vmem:[#allocation86_spill] sm:$0xff] }
 0x494   : > { %10390 = vrot.lane.b32.xlu0 %v14519_v13, %s11048_s17  ;;  %v15386_v61 = vsel %vm5241_vm14, %v14917_v51, %v9528_v25  ;;  %v15390_v50 = vsel %vm5241_vm14, %v14914_v5, %v9527_v3  ;;  %19067 = vst [vmem:[#allocation67_spill] sm:$0xff] %v15394_v19  ;;  %v15398_v17 = vsel %vm5241_vm14, %v15229_v15, %v9533_v55  ;;  %v9537_v5 = vunpack.i.l.bf16 %v19059_v35  ;;  %v19069_v25 = vld [vmem:[#allocation87_spill] sm:$0xff]  ;;  %v19071_v55 = vld [vmem:[#allocation218_spill] sm:$0xff] }
 0x495   : > { %10395 = vrot.lane.b32.xlu1 %v14521_v58, %s11048_s17  ;;  %v15402_v49 = vsel %vm5241_vm14, %v15224_v28, %v9532_v39  ;;  %v15406_v51 = vsel %vm5241_vm14, %v15221_v56, %v9538_v33  ;;  %v9543_v62 = vunpack.i.h.bf16 %v19068_v26  ;;  %v9542_v27 = vunpack.i.l.bf16 %v19068_v26  ;;  %v15413_v15 = vpop.permute.xlu1 %10115  ;;  %v19072_v28 = vld [vmem:[#allocation88_spill] sm:$0xff]  ;;  %v19073_v33 = vld [vmem:[#allocation89_spill] sm:$0xff]  ;;  %v19074_v38 = vld [vmem:[#allocation90_spill] sm:$0xff] }
 0x496   : > { %v9548_v3 = vunpack.i.h.bf16 %v19069_v25  ;;  %v9547_v36 = vunpack.i.l.bf16 %v19069_v25  ;;  %19070 = vst [vmem:[#allocation68_spill] sm:$0xff] %v15413_v15  ;;  %v9553_v39 = vunpack.i.h.bf16 %v19072_v28  ;;  %v9552_v56 = vunpack.i.l.bf16 %v19072_v28  ;;  %v19075_v19 = vld [vmem:[#allocation91_spill] sm:$0xff] }
 0x497   : > { %v9558_v32 = vunpack.i.h.bf16 %v19073_v33  ;;  %v9557_v35 = vunpack.i.l.bf16 %v19073_v33  ;;  %v9563_v34 = vunpack.i.h.bf16 %v19074_v38  ;;  %v9562_v26 = vunpack.i.l.bf16 %v19074_v38  ;;  %v15427_v15 = vpop.permute.xlu0 %10120  ;;  %v19078_v33 = vld [vmem:[#allocation94_spill] sm:$0xff] }
 0x498   : > { %10400 = vrot.lane.b32.xlu0 %v19071_v55, %s11048_s17  ;;  %v9568_v7 = vunpack.i.h.bf16 %v19075_v19  ;;  %v9567_v25 = vunpack.i.l.bf16 %v19075_v19  ;;  %19076 = vst [vmem:[#allocation189_spill] sm:$0xff] %v15427_v15  ;;  %v15431_v28 = vsel %vm5241_vm14, %v15193_v37, %v9537_v5  ;;  %v9573_v55 = vunpack.i.h.bf16 %v19077_v45 }
 0x499   : > { %10405 = vrot.lane.b32.xlu1 %v14548_v18, %s11048_s17  ;;  %v9583_v58 = vunpack.i.h.bf16 %v19078_v33  ;;  %v9582_v13 = vunpack.i.l.bf16 %v19078_v33  ;;  %v15438_v38 = vsel %vm5241_vm14, %v15293_v23, %v9543_v62  ;;  %v15442_v19 = vsel %vm5241_vm14, %v15290_v4, %v9542_v27  ;;  %v15452_v5 = vpop.permute.xlu1 %10125  ;;  %v19094_v33 = vld [vmem:[#allocation97_spill] sm:$0xff] }
 0x49a   : > { %v15446_v15 = vsel %vm5241_vm14, %v15284_v11, %v9548_v3  ;;  %v15450_v37 = vsel %vm5241_vm14, %v15257_v47, %v9547_v36  ;;  %19079 = vst [vmem:[#allocation194_spill] sm:$0xff] %v15452_v5  ;;  %v19080_v23 = vpack.i.bf16 %v14478_v57, %v14476_v0  ;;  %v15459_v62 = vsel %vm5241_vm14, %v5229_v46, %v9552_v56  ;;  %v19087_v36 = vld [vmem:[#allocation159_spill] sm:$0xff] }
 0x49b   : > { %v15462_v4 = vsel %vm5241_vm14, %v5230_v63, %v9553_v39  ;;  %v15465_v11 = vsel %vm5241_vm14, %v5232_v29, %v9558_v32  ;;  %v15469_v47 = vsel %vm5241_vm14, %v15318_v12, %v9557_v35  ;;  %v15473_v27 = vsel %vm5241_vm14, %v14727_v20, %v9563_v34  ;;  %v19082_v29 = vld [vmem:[#allocation210_spill] sm:$0xff]  ;;  %v19083_v12 = vld [vmem:[#allocation208_spill] sm:$0xff]  ;;  %v15491_v3 = vpop.permute.xlu0 %10130  ;;  %v19089_v39 = vld [vmem:[#allocation95_spill] sm:$0xff] }
 0x49c   : > { %10410 = vrot.lane.b32.xlu0 %v19080_v23, %s11048_s17  ;;  %v15477_v0 = vsel %vm5241_vm14, %v14708_v8, %v9562_v26  ;;  %v15481_v57 = vsel %vm5241_vm14, %v14699_v16, %v9568_v7  ;;  %v15485_v46 = vsel %vm5241_vm14, %v14696_v60, %v9567_v25  ;;  %v19084_v63 = vpack.i.bf16 %v19082_v29, %v19083_v12  ;;  %v19088_v7 = vld [vmem:[#allocation158_spill] sm:$0xff]  ;;  %v19090_v35 = vld [vmem:[#allocation96_spill] sm:$0xff]  ;;  %v19102_v8 = vld [vmem:[#allocation103_spill] sm:$0xff] }
 0x49d   : > { %19081 = vst [vmem:[#allocation69_spill] sm:$0xff] %v15481_v57  ;;  %19085 = vst [vmem:[#allocation196_spill] sm:$0xff] %v15491_v3  ;;  %v15495_v20 = vsel %vm5241_vm14, %v15122_v53, %v9573_v55  ;;  %v5276_v16 = vsel %vm5274_vm15, %v19087_v36, %v9583_v58  ;;  %v5275_v60 = vsel %vm5274_vm15, %v19088_v7, %v9582_v13  ;;  %v9588_v56 = vunpack.i.h.bf16 %v19089_v39  ;;  %v15506_v25 = vpop.permute.xlu1 %10135  ;;  %v19092_v53 = vld [vmem:[#allocation211_spill] sm:$0xff]  ;;  %v19095_v13 = vld [vmem:[#allocation98_spill] sm:$0xff] }
 0x49e   : > { %10415 = vrot.lane.b32.xlu1 %v19084_v63, %s11048_s17  ;;  %19086 = vst [vmem:[#allocation70_spill] sm:$0xff] %v15495_v20  ;;  %v9587_v32 = vunpack.i.l.bf16 %v19089_v39  ;;  %v9593_v34 = vunpack.i.h.bf16 %v19090_v35  ;;  %v9592_v26 = vunpack.i.l.bf16 %v19090_v35  ;;  %19091 = vst [vmem:[#allocation71_spill] sm:$0xff] %v15506_v25  ;;  %v19093_v55 = vpack.i.bf16 %v14495_v6, %v19092_v53  ;;  %v19096_v63 = vld [vmem:[#allocation99_spill] sm:$0xff]  ;;  %v19097_v39 = vld [vmem:[#allocation100_spill] sm:$0xff] }
 0x49f   : > { %v9598_v58 = vunpack.i.h.bf16 %v19094_v33  ;;  %v9597_v23 = vunpack.i.l.bf16 %v19094_v33  ;;  %v19098_v6 = vpack.i.bf16 %v14511_v59, %v14509_v54  ;;  %v15524_v53 = vpop.permute.xlu0 %10140  ;;  %v19100_v12 = vld [vmem:[#allocation110_spill] sm:$0xff]  ;;  %v19106_v29 = vld [vmem:[#allocation104_spill] sm:$0xff]  ;;  %v19109_v3 = vpack.i.bf16 %v14527_v52, %v14525_v41  ;;  %v19112_v57 = vld [vmem:[#allocation219_spill] sm:$0xff] }
 0x4a0   : > { %10420 = vrot.lane.b32.xlu0 %v19093_v55, %s11048_s17  ;;  %v19099_v55 = vld [vmem:[#allocation101_spill] sm:$0xff]  ;;  %v9663_v20 = vunpack.i.h.bf16 %v19100_v12  ;;  %v9662_v36 = vunpack.i.l.bf16 %v19100_v12  ;;  %v19101_v7 = vld [vmem:[#allocation102_spill] sm:$0xff]  ;;  %v15586_v14 = vsel %vm5274_vm15, %v15362_v30, %v9593_v34 }
 0x4a1   : > { %v15534_v59 = vpop.permute.xlu1 %10145  ;;  %v19103_v54 = vld [vmem:[#allocation214_spill] sm:$0xff]  ;;  %v19107_v12 = vld [vmem:[#allocation105_spill] sm:$0xff]  ;;  %v15590_v45 = vsel %vm5274_vm15, %v15374_v10, %v9597_v23 }
 0x4a2   : > { %10425 = vrot.lane.b32.xlu1 %v19098_v6, %s11048_s17  ;;  %v19104_v6 = vld [vmem:[#allocation213_spill] sm:$0xff]  ;;  %v19108_v35 = vld [vmem:[#allocation106_spill] sm:$0xff]  ;;  %v15563_v25 = vsel %vm5307_vm0, %v5275_v60, %v9662_v36  ;;  %v15566_v52 = vsel %vm5307_vm0, %v5276_v16, %v9663_v20  ;;  %v19113_v60 = vpack.i.bf16 %v14541_v40, %v19112_v57  ;;  %v15581_v20 = vsel %vm5274_vm15, %v15366_v31, %v9592_v26  ;;  %v19114_v16 = vld [vmem:[#allocation111_spill] sm:$0xff] }
 0x4a3   : > { %v19105_v33 = vpack.i.bf16 %v19103_v54, %v19104_v6  ;;  %v15550_v21 = vpop.permute.xlu0 %10150  ;;  %v15558_v54 = vsel %vm5274_vm15, %v15350_v42, %v9588_v56  ;;  %v19110_v6 = vld [vmem:[#allocation107_spill] sm:$0xff]  ;;  %v9668_v36 = vunpack.i.h.bf16 %v19114_v16  ;;  %19115 = vst [vmem:[#allocation72_spill] sm:$0xff] %v15590_v45  ;;  %v15594_v42 = vsel %vm5274_vm15, %v15370_v9, %v9598_v58  ;;  %v19117_v26 = vld [vmem:[#allocation112_spill] sm:$0xff]  ;;  %v19118_v30 = vld [vmem:[#allocation222_spill] sm:$0xff] }
 0x4a4   : > { %v3124_v41 = vld [vmem:[#allocation4 + $0x1b3] sm:$0xff]  ;;  %19116 = vst [vmem:[#allocation203_spill] sm:$0xff] %v15594_v42  ;;  %v18384_v40 = vmov 0   ;;  %v9667_v57 = vunpack.i.l.bf16 %v19114_v16  ;;  %v19119_v34 = vld [vmem:[#allocation221_spill] sm:$0xff]  ;;  %v19124_v16 = vmov 0   ;;  %v19140_v9 = vld [vmem:[#allocation228_spill] sm:$0xff] }
 0x4a5   : > { %10430 = vrot.lane.b32.xlu0 %v19105_v33, %s11048_s17  ;;  %v15554_v33 = vsel %vm5274_vm15, %v15354_v44, %v9587_v32  ;;  %v10878_v44 = vld [vmem:[%s17902_s4 + $0xb8] sm:$0xff]   ;;  %v15573_v56 = vpop.permute.xlu1 %10155  ;;  %7157 = vmatprep.subr.bf16.mxu0 %v18384_v40  ;;  %v19120_v5 = vpack.i.bf16 %v19118_v30, %v19119_v34  ;;  %v19122_v58 = vld [vmem:[#allocation113_spill] sm:$0xff]  ;;  %v19123_v31 = vld [vmem:[#allocation114_spill] sm:$0xff]  ;;  %v19138_v32 = vunpack.i.h.bf16 %v19097_v39 }
 0x4a6   : > { %10435 = vrot.lane.b32.xlu1 %v19109_v3, %s11048_s17  ;;  %v3125_v3 = vld [vmem:[#allocation4 + $0x1bb] sm:$0xff]  ;;  %7158 = vmatpush1.bf16.msra.mxu0 %v10878_v44 }
 0x4a7   : > { %v15605_v10 = vpop.permute.xlu0 %10160  ;;  %v10454_v23 = vpack.i.bf16 %v3125_v3, %v3124_v41  ;;  %7159 = vmatprep.subr.bf16.mxu0 %v19124_v16  ;;  %v19125_v42 = vld [vmem:[#allocation115_spill] sm:$0xff]  ;;  %v19126_v30 = vld [vmem:[#allocation116_spill] sm:$0xff]  ;;  %v19127_v3 = vld [vmem:[#allocation225_spill] sm:$0xff] }
 0x4a8   : > { %19121 = vst [vmem:[#allocation73_spill] sm:$0xff] %v15605_v10  ;;  %v19128_v44 = vld [vmem:[#allocation224_spill] sm:$0xff]  ;;  %v19131_v10 = vunpack.i.l.bf16 %v19095_v13 }
 0x4a9   : > { %10440 = vrot.lane.b32.xlu0 %v19113_v60, %s11048_s17  ;;  %v15616_v41 = vpop.permute.xlu1 %10165  ;;  %v19129_v18 = vpack.i.bf16 %v19127_v3, %v19128_v44 }
 0x4aa   : > { %10445 = vrot.lane.b32.xlu1 %v19120_v5, %s11048_s17  ;;  %v15628_v45 = vsel %vm5274_vm15, %v15382_v22, %v19131_v10  ;;  %v19132_v5 = vunpack.i.h.bf16 %v19095_v13  ;;  %v19134_v22 = vunpack.i.l.bf16 %v19096_v63 }
 0x4ab   : > { %v15642_v40 = vpop.permute.xlu0 %10170 }
 0x4ac   : > { %v15634_v34 = vsel %vm5274_vm15, %v15378_v24, %v19132_v5  ;;  %v15648_v13 = vsel %vm5274_vm15, %v15390_v50, %v19134_v22  ;;  %v19135_v24 = vunpack.i.h.bf16 %v19096_v63  ;;  %v15668_v50 = vsel %vm5274_vm15, %v15398_v17, %v19138_v32  ;;  %v19141_v5 = vld [vmem:[#allocation226_spill] sm:$0xff]  ;;  %v19161_v22 = vld [vmem:[#allocation232_spill] sm:$0xff] }
 0x4ad   : > { %10450 = vrot.lane.b32.xlu0 %v19129_v18, %s11048_s17  ;;  %v10879_v18 = vld [vmem:[%s17902_s4 + $0xb0] sm:$0xff]   ;;  %v19142_v44 = vpack.i.bf16 %v19140_v9, %v19141_v5  ;;  %v19144_v17 = vunpack.i.h.bf16 %v19099_v55  ;;  %v15694_v9 = vsel %vm5307_vm0, %v15554_v33, %v9667_v57  ;;  %v19149_v57 = vld [vmem:[#allocation229_spill] sm:$0xff] }
 0x4ae   : > { %10455 = vrot.lane.b32.xlu1 %v10454_v23, %s11048_s17  ;;  %v15654_v10 = vsel %vm5274_vm15, %v15386_v61, %v19135_v24  ;;  %v19137_v23 = vunpack.i.l.bf16 %v19097_v39  ;;  %7160 = vmatpush1.bf16.msra.mxu0 %v10879_v18  ;;  %v15672_v24 = vpop.permute.xlu1 %10175  ;;  %v19148_v33 = vld [vmem:[#allocation230_spill] sm:$0xff]  ;;  %v19172_v5 = vld [vmem:[#allocation233_spill] sm:$0xff] }
 0x4af   : > { %v15688_v32 = vsel %vm5274_vm15, %v15406_v51, %v19144_v17  ;;  %7161 = vmatprep.subr.bf16.mxu0 %v19124_v16  ;;  %v10880_v51 = vld [vmem:[%s17902_s4 + $0xa8] sm:$0xff]   ;;  %v19150_v17 = vpack.i.bf16 %v19148_v33, %v19149_v57  ;;  %v19156_v33 = vunpack.i.h.bf16 %v19102_v8 }
 0x4b0   : > { %v15662_v60 = vsel %vm5274_vm15, %v15402_v49, %v19137_v23  ;;  %v19143_v49 = vunpack.i.l.bf16 %v19099_v55 }
 0x4b1   : > { %10460 = vrot.lane.b32.xlu0 %v19142_v44, %s11049_s18  ;;  %v15698_v44 = vsel %vm5307_vm0, %v15558_v54, %v9668_v36  ;;  %v15715_v54 = vpop.permute.xlu0 %10180  ;;  %v19151_v36 = vunpack.i.h.bf16 %v19101_v7  ;;  %v15735_v57 = vsel %vm5274_vm15, %v15446_v15, %v19156_v33  ;;  %v19164_v33 = vunpack.i.h.bf16 %v19106_v29  ;;  %v2773_v15 = vld [vmem:[#allocation4 + $0x1b] sm:$0xff] }
 0x4b2   : > { %v15682_v39 = vsel %vm5274_vm15, %v15431_v28, %v19143_v49  ;;  %v19145_v28 = vunpack.i.l.bf16 %v19101_v7  ;;  %10465 = vrot.lane.b32.xlu1 %v19150_v17, %s11049_s18  ;;  %19157 = vst [vmem:[#allocation204_spill] sm:$0xff] %v15735_v57  ;;  %v19158_v7 = vunpack.i.l.bf16 %v19106_v29  ;;  %7162 = vmatpush1.bf16.msra.mxu0 %v10880_v51  ;;  %v19166_v51 = vld [vmem:[#allocation126_spill] sm:$0xff]  ;;  %v10881_v29 = vld [vmem:[%s17902_s4 + $0xa0] sm:$0xff]   ;;  %v19171_v49 = vld [vmem:[#allocation235_spill] sm:$0xff] }
 0x4b3   : > { %7163 = vmatprep.subr.bf16.mxu0 %v19124_v16  ;;  %v2774_v17 = vld [vmem:[#allocation4 + $0x23] sm:$0xff] }
 0x4b4   : > { %v15704_v55 = vsel %vm5274_vm15, %v15442_v19, %v19145_v28  ;;  %v15721_v19 = vsel %vm5274_vm15, %v15438_v38, %v19151_v36  ;;  %v19153_v28 = vunpack.i.l.bf16 %v19102_v8  ;;  %v15741_v38 = vsel %vm5274_vm15, %v15459_v62, %v19158_v7  ;;  %v19162_v8 = vld [vmem:[#allocation231_spill] sm:$0xff] }
 0x4b5   : > { %19146 = vst [vmem:[#allocation74_spill] sm:$0xff] %v15704_v55  ;;  %19152 = vst [vmem:[#allocation75_spill] sm:$0xff] %v15721_v19  ;;  %v19163_v18 = vpack.i.bf16 %v19161_v22, %v19162_v8  ;;  %v15757_v62 = vsel %vm5274_vm15, %v15462_v4, %v19164_v33  ;;  %v9743_v7 = vunpack.i.h.bf16 %v19166_v51  ;;  %v19167_v36 = vld [vmem:[#allocation127_spill] sm:$0xff]  ;;  %v19168_v22 = vunpack.i.l.bf16 %v19107_v12  ;;  %v19177_v8 = vld [vmem:[#allocation128_spill] sm:$0xff] }
 0x4b6   : > { %v15727_v23 = vsel %vm5274_vm15, %v15450_v37, %v19153_v28  ;;  %19159 = vst [vmem:[#allocation76_spill] sm:$0xff] %v15741_v38  ;;  %v15745_v28 = vpop.permute.xlu1 %10185  ;;  %19165 = vst [vmem:[#allocation77_spill] sm:$0xff] %v15757_v62  ;;  %v9742_v37 = vunpack.i.l.bf16 %v19166_v51  ;;  %v9748_v61 = vunpack.i.h.bf16 %v19167_v36  ;;  %v9747_v51 = vunpack.i.l.bf16 %v19167_v36  ;;  %v15779_v38 = vpop.permute.xlu0 %10190  ;;  %v19178_v4 = vld [vmem:[#allocation142_spill] sm:$0xff]  ;;  %7164 = vmatpush1.bf16.msra.mxu0 %v10881_v29 }
 0x4b7   : > { %19154 = vst [vmem:[#allocation195_spill] sm:$0xff] %v15727_v23  ;;  %10470 = vrot.lane.b32.xlu0 %v19163_v18, %s11049_s18  ;;  %v15767_v18 = vsel %vm5274_vm15, %v15469_v47, %v19168_v22  ;;  %v19173_v62 = vpack.i.bf16 %v19171_v49, %v19172_v5  ;;  %19174 = vst [vmem:[#allocation205_spill] sm:$0xff] %v15779_v38  ;;  %v19175_v47 = vunpack.i.h.bf16 %v19107_v12  ;;  %v9752_v33 = vunpack.i.l.bf16 %v19177_v8  ;;  %v19181_v12 = vld [vmem:[#allocation143_spill] sm:$0xff]  ;;  %v10920_v38 = vld [vmem:[#allocation4 + $0x4b] sm:$0xff] }
 0x4b8   : > { %19169 = vst [vmem:[#allocation197_spill] sm:$0xff] %v15767_v18  ;;  %v9753_v18 = vunpack.i.h.bf16 %v19177_v8  ;;  %v9822_v63 = vunpack.i.l.bf16 %v19178_v4  ;;  %v19179_v36 = vunpack.i.l.bf16 %v19108_v35  ;;  %v9823_v49 = vunpack.i.h.bf16 %v19178_v4  ;;  %v19184_v8 = vld [vmem:[#allocation236_spill] sm:$0xff]  ;;  %7165 = vmatprep.subr.bf16.mxu0 %v19124_v16 }
 0x4b9   : > { %10475 = vrot.lane.b32.xlu1 %v19173_v62, %s11049_s18  ;;  %v15785_v22 = vsel %vm5274_vm15, %v15465_v11, %v19175_v47  ;;  %v9828_v62 = vunpack.i.h.bf16 %v19181_v12  ;;  %v9827_v11 = vunpack.i.l.bf16 %v19181_v12  ;;  %v19186_v23 = vunpack.i.h.bf16 %v19108_v35  ;;  %v10918_v35 = vld [vmem:[#allocation4 + $0x33] sm:$0xff] }
 0x4ba   : > { %19176 = vst [vmem:[#allocation78_spill] sm:$0xff] %v15785_v22  ;;  %v15794_v5 = vsel %vm5274_vm15, %v15477_v0, %v19179_v36  ;;  %v15799_v47 = vpop.permute.xlu1 %10195  ;;  %v19183_v22 = vld [vmem:[#allocation237_spill] sm:$0xff]  ;;  %v5341_v29 = vsel %vm420_vm2, %v2774_v17, %v9743_v7  ;;  %v5340_v4 = vsel %vm420_vm2, %v2773_v15, %v9742_v37  ;;  %v10917_v36 = vld [vmem:[#allocation4 + $0x3b] sm:$0xff]  ;;  %v19192_v15 = vld [vmem:[#allocation238_spill] sm:$0xff] }
 0x4bb   : > { %19180 = vst [vmem:[#allocation79_spill] sm:$0xff] %v15794_v5  ;;  %19182 = vst [vmem:[#allocation199_spill] sm:$0xff] %v15799_v47  ;;  %v19185_v57 = vpack.i.bf16 %v19183_v22, %v19184_v8  ;;  %v15809_v0 = vsel %vm5274_vm15, %v15473_v27, %v19186_v23  ;;  %v5343_v12 = vsel %vm420_vm2, %v10917_v36, %v9748_v61  ;;  %v19188_v5 = vld [vmem:[#allocation144_spill] sm:$0xff]  ;;  %v19189_v27 = vld [vmem:[#allocation166_spill] sm:$0xff]  ;;  %v15827_v61 = vpop.permute.xlu0 %10200 }
 0x4bc   : > { %19187 = vst [vmem:[#allocation198_spill] sm:$0xff] %v15809_v0  ;;  %v9832_v47 = vunpack.i.l.bf16 %v19188_v5  ;;  %v5342_v22 = vsel %vm420_vm2, %v10918_v35, %v9747_v51  ;;  %v9903_v23 = vunpack.i.h.bf16 %v19189_v27  ;;  %v9902_v8 = vunpack.i.l.bf16 %v19189_v27  ;;  %v19190_v0 = vld [vmem:[#allocation174_spill] sm:$0xff]  ;;  %v19191_v37 = vld [vmem:[#allocation239_spill] sm:$0xff]  ;;  %19194 = vst [vmem:[#allocation80_spill] sm:$0xff] %v15827_v61 }
 0x4bd   : > { %10480 = vrot.lane.b32.xlu0 %v19185_v57, %s11049_s18  ;;  %v10882_v57 = vld [vmem:[%s17902_s4 + $0x98] sm:$0xff]   ;;  %v9907_v17 = vunpack.i.l.bf16 %v19190_v0  ;;  %v19193_v7 = vpack.i.bf16 %v19191_v37, %v19192_v15  ;;  %v5344_v51 = vsel %vm420_vm2, %v10920_v38, %v9752_v33  ;;  %v5372_v35 = vsel %vm2090_vm10, %v5340_v4, %v9822_v63 }
 0x4be   : > { %v10919_v36 = vld [vmem:[#allocation4 + $0x53] sm:$0xff]  ;;  %v9908_v27 = vunpack.i.h.bf16 %v19190_v0  ;;  %7166 = vmatpush1.bf16.msra.mxu0 %v10882_v57  ;;  %v5373_v19 = vsel %vm2090_vm10, %v5341_v29, %v9823_v49  ;;  %v5374_v55 = vsel %vm2090_vm10, %v5342_v22, %v9827_v11  ;;  %v5375_v37 = vsel %vm2090_vm10, %v5343_v12, %v9828_v62  ;;  %v19201_v57 = vld [vmem:[#allocation244_spill] sm:$0xff] }
 0x4bf   : > { %10485 = vrot.lane.b32.xlu1 %v19193_v7, %s11049_s18  ;;  %v15830_v3 = vsel %vm420_vm2, %v10919_v36, %v9753_v18  ;;  %v15839_v7 = vpop.permute.xlu1 %10205  ;;  %v19196_v18 = vld [vmem:[#allocation242_spill] sm:$0xff]  ;;  %v19197_v36 = vld [vmem:[#allocation240_spill] sm:$0xff]  ;;  %7167 = vmatprep.subr.bf16.mxu0 %v19124_v16  ;;  %v15847_v63 = vsel %vm2090_vm10, %v5344_v51, %v9832_v47  ;;  %v19199_v38 = vld [vmem:[#allocation15_spill] sm:$0xff]  ;;  %v5404_v0 = vsel %vm5175_vm12, %v5372_v35, %v9902_v8  ;;  %v15860_v47 = vpop.permute.xlu0 %10210  ;;  %v10062_v8 = vunpack.i.l.bf16 %v15218_v48 }
 0x4c0   : > { %19195 = vst [vmem:[#allocation81_spill] sm:$0xff] %v15839_v7  ;;  %v19198_v61 = vpack.i.bf16 %v19196_v18, %v19197_v36  ;;  %v9983_v33 = vunpack.i.h.bf16 %v19199_v38  ;;  %v9982_v49 = vunpack.i.l.bf16 %v19199_v38  ;;  %v19200_v11 = vld [vmem:[#allocation18_spill] sm:$0xff]  ;;  %v5405_v29 = vsel %vm5175_vm12, %v5373_v19, %v9903_v23  ;;  %v19202_v22 = vld [vmem:[#allocation243_spill] sm:$0xff]  ;;  %19204 = vst [vmem:[#allocation82_spill] sm:$0xff] %v15860_v47 }
 0x4c1   : > { %v9987_v62 = vunpack.i.l.bf16 %v19200_v11  ;;  %v5406_v4 = vsel %vm5175_vm12, %v5374_v55, %v9907_v17  ;;  %v9988_v12 = vunpack.i.h.bf16 %v19200_v11  ;;  %v5407_v51 = vsel %vm5175_vm12, %v5375_v37, %v9908_v27  ;;  %v19205_v18 = vld [vmem:[#allocation180_spill] sm:$0xff]  ;;  %v10883_v55 = vld [vmem:[%s17902_s4 + $0x90] sm:$0xff]   ;;  %v19208_v37 = vld [vmem:[#allocation245_spill] sm:$0xff] }
 0x4c2   : > { %10490 = vrot.lane.b32.xlu0 %v19198_v61, %s11049_s18  ;;  %v19203_v61 = vpack.i.bf16 %v19201_v57, %v19202_v22  ;;  %v9913_v36 = vunpack.i.h.bf16 %v19205_v18  ;;  %v10063_v38 = vunpack.i.h.bf16 %v15218_v48  ;;  %v10068_v19 = vunpack.i.h.bf16 %v15234_v43  ;;  %v19207_v27 = vld [vmem:[#allocation246_spill] sm:$0xff]  ;;  %7168 = vmatpush1.bf16.msra.mxu0 %v10883_v55  ;;  %v19210_v47 = vld [vmem:[#allocation173_spill] sm:$0xff] }
 0x4c3   : > { %v10067_v23 = vunpack.i.l.bf16 %v15234_v43  ;;  %v10143_v17 = vunpack.i.h.bf16 %v15524_v53  ;;  %v10142_v35 = vunpack.i.l.bf16 %v15524_v53  ;;  %v15873_v11 = vpop.permute.xlu1 %10215  ;;  %v19209_v57 = vpack.i.bf16 %v19207_v27, %v19208_v37  ;;  %v19211_v27 = vld [vmem:[#allocation249_spill] sm:$0xff]  ;;  %v19212_v37 = vld [vmem:[#allocation247_spill] sm:$0xff]  ;;  %7169 = vmatprep.subr.bf16.mxu0 %v19124_v16  ;;  %v19215_v55 = vld [vmem:[#allocation250_spill] sm:$0xff] }
 0x4c4   : > { %10495 = vrot.lane.b32.xlu1 %v19203_v61, %s11049_s18  ;;  %19206 = vst [vmem:[#allocation83_spill] sm:$0xff] %v15873_v11  ;;  %v9912_v48 = vunpack.i.l.bf16 %v19205_v18  ;;  %v5436_v22 = vsel %vm5208_vm13, %v5404_v0, %v9982_v49  ;;  %v5437_v61 = vsel %vm5208_vm13, %v5405_v29, %v9983_v33  ;;  %v5438_v15 = vsel %vm5208_vm13, %v5406_v4, %v9987_v62  ;;  %v10221_v18 = vpop.permute.xlu0 %10220  ;;  %v10884_v29 = vld [vmem:[%s17902_s4 + $0x88] sm:$0xff]  }
 0x4c5   : > { %v5439_v43 = vsel %vm5208_vm13, %v5407_v51, %v9988_v12  ;;  %v9993_v53 = vunpack.i.h.bf16 %v19210_v47  ;;  %v10148_v11 = vunpack.i.h.bf16 %v15534_v59  ;;  %v10147_v7 = vunpack.i.l.bf16 %v15534_v59  ;;  %v19214_v51 = vld [vmem:[#allocation251_spill] sm:$0xff] }
 0x4c6   : > { %10500 = vrot.lane.b32.xlu0 %v19209_v57, %s11049_s18  ;;  %v19213_v57 = vpack.i.bf16 %v19211_v27, %v19212_v37  ;;  %v5468_v33 = vsel %vm5241_vm14, %v5436_v22, %v10062_v8  ;;  %v5469_v49 = vsel %vm5241_vm14, %v5437_v61, %v10063_v38  ;;  %v10223_v62 = vunpack.i.h.bf16 %v10221_v18  ;;  %7170 = vmatpush1.bf16.msra.mxu0 %v10884_v29  ;;  %v3157_v29 = vld [vmem:[#allocation4 + $0x1bc] sm:$0xff] }
 0x4c7   : > { %v10222_v0 = vunpack.i.l.bf16 %v10221_v18  ;;  %v5470_v59 = vsel %vm5241_vm14, %v5438_v15, %v10067_v23  ;;  %v5471_v4 = vsel %vm5241_vm14, %v5439_v43, %v10068_v19  ;;  %v10226_v12 = vpop.permute.xlu1 %10225  ;;  %v19216_v27 = vpack.i.bf16 %v19214_v51, %v19215_v55  ;;  %v19217_v19 = vld [vmem:[#allocation253_spill] sm:$0xff]  ;;  %v19218_v23 = vld [vmem:[#allocation252_spill] sm:$0xff]  ;;  %7171 = vmatprep.subr.bf16.mxu0 %v19124_v16  ;;  %v19221_v55 = vld [vmem:[#allocation163_spill] sm:$0xff] }
 0x4c8   : > { %10505 = vrot.lane.b32.xlu1 %v19213_v57, %s11049_s18  ;;  %v5500_v8 = vsel %vm5274_vm15, %v5468_v33, %v10142_v35  ;;  %v5501_v38 = vsel %vm5274_vm15, %v5469_v49, %v10143_v17  ;;  %v10228_v22 = vunpack.i.h.bf16 %v10226_v12  ;;  %v10227_v61 = vunpack.i.l.bf16 %v10226_v12  ;;  %v10231_v18 = vpop.permute.xlu0 %10230  ;;  %v10885_v12 = vld [vmem:[%s17902_s4 + $0x80] sm:$0xff]  }
 0x4c9   : > { %v5532_v37 = vsel %vm5307_vm0, %v5500_v8, %v10222_v0  ;;  %v5533_v57 = vsel %vm5307_vm0, %v5501_v38, %v10223_v62  ;;  %v9992_v15 = vunpack.i.l.bf16 %v19210_v47  ;;  %v19219_v43 = vpack.i.bf16 %v19217_v19, %v19218_v23  ;;  %v3156_v0 = vld [vmem:[#allocation4 + $0x1b4] sm:$0xff] }
 0x4ca   : > { %10510 = vrot.lane.b32.xlu0 %v19216_v27, %s11049_s18  ;;  %v6685_v51 = vpack.c.bf16 %v5533_v57, %v5532_v37  ;;  %v5502_v35 = vsel %vm5274_vm15, %v5470_v59, %v10147_v7  ;;  %v5503_v17 = vsel %vm5274_vm15, %v5471_v4, %v10148_v11  ;;  %v10073_v33 = vunpack.i.h.bf16 %v15252_v2  ;;  %v19222_v27 = vld [vmem:[#allocation254_spill] sm:$0xff]  ;;  %7172 = vmatpush1.bf16.msra.mxu0 %v10885_v12 }
 0x4cb   : > { %v10072_v49 = vunpack.i.l.bf16 %v15252_v2  ;;  %v5534_v62 = vsel %vm5307_vm0, %v5502_v35, %v10227_v61  ;;  %v5535_v47 = vsel %vm5307_vm0, %v5503_v17, %v10228_v22  ;;  %v19220_v7 = vunpack.i.h.bf16 %v19188_v5  ;;  %v15928_v2 = vpop.permute.xlu1 %10235  ;;  %7187 = vmatprep.subr.bf16.mxu0 %v19124_v16  ;;  %v10886_v16 = vld [vmem:[%s17902_s4 + $0xc0] sm:$0xff]  }
 0x4cc   : > { %10515 = vrot.lane.b32.xlu1 %v19219_v43, %s11049_s18  ;;  %v10153_v59 = vunpack.i.h.bf16 %v15550_v21  ;;  %v10152_v4 = vunpack.i.l.bf16 %v15550_v21  ;;  %v19223_v8 = vpack.i.bf16 %v19221_v55, %v19222_v27  ;;  %7028 = vmatprep.mubr.bf16.mxu1 %v6685_v51  ;;  %v6689_v38 = vpack.c.bf16 %v5535_v47, %v5534_v62  ;;  %v19225_v21 = vld [vmem:[#allocation129_spill] sm:$0xff]  ;;  %v19226_v43 = vld [vmem:[#allocation256_spill] sm:$0xff]  ;;  %v19227_v51 = vld [vmem:[#allocation162_spill] sm:$0xff] }
 0x4cd   : > { %v5377_v11 = vsel %vm2090_vm10, %v15830_v3, %v19220_v7  ;;  %v5408_v22 = vsel %vm5175_vm12, %v15847_v63, %v9912_v48  ;;  %v10233_v61 = vunpack.i.h.bf16 %v10231_v18  ;;  %v10232_v3 = vunpack.i.l.bf16 %v10231_v18  ;;  %v15947_v63 = vpop.permute.xlu0 %10240  ;;  %v19230_v62 = vld [vmem:[#allocation165_spill] sm:$0xff] }
 0x4ce   : > { %10520 = vrot.lane.b32.xlu0 %v19223_v8, %s11049_s18  ;;  %v5409_v5 = vsel %vm5175_vm12, %v5377_v11, %v9913_v36  ;;  %v19224_v37 = vpack.c.bf16 %v15566_v52, %v15563_v25  ;;  %v9757_v57 = vunpack.i.l.bf16 %v19225_v21  ;;  %v5440_v19 = vsel %vm5208_vm13, %v5408_v22, %v9992_v15  ;;  %v19229_v25 = vld [vmem:[#allocation145_spill] sm:$0xff]  ;;  %7188 = vmatpush2.bf16.msra.mxu0 %v10886_v16 }
 0x4cf   : > { %v5441_v23 = vsel %vm5208_vm13, %v5409_v5, %v9993_v53  ;;  %v19228_v35 = vpack.i.bf16 %v19226_v43, %v19227_v51  ;;  %v10534_v36 = vpack.i.bf16 %v3157_v29, %v3156_v0  ;;  %v9758_v48 = vunpack.i.h.bf16 %v19225_v21  ;;  %v15955_v15 = vpop.permute.xlu1 %10245  ;;  %v19231_v47 = vld [vmem:[#allocation257_spill] sm:$0xff] }
 0x4d0   : > { %7029 = vmatmul.mubr.bf16.vlgmr.msra.gmra.mxu1 %v19224_v37  ;;  %v9837_v52 = vunpack.i.l.bf16 %v19229_v25  ;;  %v5472_v18 = vsel %vm5241_vm14, %v5440_v19, %v10072_v49  ;;  %v5473_v17 = vsel %vm5241_vm14, %v5441_v23, %v10073_v33  ;;  %v9838_v53 = vunpack.i.h.bf16 %v19229_v25  ;;  %v19234_v49 = vld [vmem:[#allocation184_spill] sm:$0xff] }
 0x4d1   : > { %10525 = vrot.lane.b32.xlu1 %v19228_v35, %s11049_s18  ;;  %7036 = vmatprep.mubr.bf16.mxu1 %v6689_v38  ;;  %v19232_v12 = vpack.i.bf16 %v19230_v62, %v19231_v47  ;;  %v5504_v0 = vsel %vm5274_vm15, %v5472_v18, %v10152_v4  ;;  %v5505_v29 = vsel %vm5274_vm15, %v5473_v17, %v10153_v59  ;;  %v19233_v7 = vunpack.i.l.bf16 %v19117_v26  ;;  %v10921_v8 = vld [vmem:[#allocation4 + $0x63] sm:$0xff]  ;;  %v15980_v5 = vpop.permute.xlu0 %10250 }
 0x4d2   : > { %v9918_v11 = vunpack.i.h.bf16 %v19234_v49  ;;  %v9917_v55 = vunpack.i.l.bf16 %v19234_v49  ;;  %v5536_v27 = vsel %vm5307_vm0, %v5504_v0, %v10232_v3  ;;  %v5537_v4 = vsel %vm5307_vm0, %v5505_v29, %v10233_v61  ;;  %v19235_v38 = vld [vmem:[#allocation20_spill] sm:$0xff]  ;;  %v10922_v3 = vld [vmem:[#allocation4 + $0x6b] sm:$0xff]  ;;  %v19243_v29 = vld [vmem:[#allocation259_spill] sm:$0xff] }
 0x4d3   : > { %10530 = vrot.lane.b32.xlu0 %v19232_v12, %s11049_s18  ;;  %v15967_v33 = vsel %vm5307_vm0, %v15581_v20, %v19233_v7  ;;  %v5346_v59 = vsel %vm420_vm2, %v10921_v8, %v9757_v57  ;;  %v9998_v22 = vunpack.i.h.bf16 %v19235_v38  ;;  %v9997_v20 = vunpack.i.l.bf16 %v19235_v38  ;;  %v19242_v0 = vld [vmem:[#allocation260_spill] sm:$0xff]  ;;  %v19246_v49 = vld [vmem:[#allocation146_spill] sm:$0xff] }
 0x4d4   : > { %v19236_v37 = vunpack.i.h.bf16 %v19117_v26  ;;  %v5347_v61 = vsel %vm420_vm2, %v10922_v3, %v9758_v48  ;;  %v5378_v19 = vsel %vm2090_vm10, %v5346_v59, %v9837_v52  ;;  %v10078_v57 = vunpack.i.h.bf16 %v15264_v1  ;;  %v15993_v26 = vpop.permute.xlu1 %10255  ;;  %v19247_v59 = vld [vmem:[#allocation191_spill] sm:$0xff] }
 0x4d5   : > { %10535 = vrot.lane.b32.xlu1 %v10534_v36, %s11049_s18  ;;  %v10077_v23 = vunpack.i.l.bf16 %v15264_v1  ;;  %v5379_v43 = vsel %vm2090_vm10, %v5347_v61, %v9838_v53  ;;  %v10158_v51 = vunpack.i.h.bf16 %v15573_v56  ;;  %v10157_v35 = vunpack.i.l.bf16 %v15573_v56  ;;  %v19238_v36 = vld [vmem:[#allocation164_spill] sm:$0xff]  ;;  %v19241_v56 = vld [vmem:[#allocation130_spill] sm:$0xff]  ;;  %v16013_v16 = vpop.permute.xlu0 %10260  ;;  %s11055_s18 = smov [#allocation5]  }
 0x4d6   : > { %v5313_v21 = vsel %vm5307_vm0, %v15586_v14, %v19236_v37  ;;  %v19237_v14 = vld [vmem:[#allocation258_spill] sm:$0xff]  ;;  %v6693_v48 = vpack.c.bf16 %v5537_v4, %v5536_v27  ;;  %v5410_v52 = vsel %vm5175_vm12, %v5378_v19, %v9917_v55  ;;  %v5411_v18 = vsel %vm5175_vm12, %v5379_v43, %v9918_v11  ;;  %v19249_v43 = vld [vmem:[#allocation21_spill] sm:$0xff] }
 0x4d7   : > { %v19239_v25 = vpack.i.bf16 %v19237_v14, %v19238_v36  ;;  %v10238_v1 = vunpack.i.h.bf16 %v15928_v2  ;;  %v10237_v17 = vunpack.i.l.bf16 %v15928_v2  ;;  %v19240_v53 = vpack.c.bf16 %v15698_v44, %v15694_v9 }
 0x4d8   : > { %v9762_v62 = vunpack.i.l.bf16 %v19241_v56  ;;  %v5442_v47 = vsel %vm5208_vm13, %v5410_v52, %v9997_v20  ;;  %v5443_v12 = vsel %vm5208_vm13, %v5411_v18, %v9998_v22  ;;  %v19244_v7 = vpack.i.bf16 %v19242_v0, %v19243_v29  ;;  %v16026_v8 = vpop.permute.xlu1 %10265  ;;  %v19248_v20 = vld [vmem:[#allocation190_spill] sm:$0xff]  ;;  %v19255_v29 = vld [vmem:[#allocation261_spill] sm:$0xff] }
 0x4d9   : > { %10540 = vrot.lane.b32.xlu0 %v19239_v25, %s11050_s20  ;;  %7037 = vmatmul.mubr.bf16.gmra.mxu1 %v19240_v53  ;;  %v19245_v2 = vunpack.i.l.bf16 %v19110_v6  ;;  %v9763_v44 = vunpack.i.h.bf16 %v19241_v56  ;;  %v9842_v11 = vunpack.i.l.bf16 %v19246_v49  ;;  %v5474_v55 = vsel %vm5241_vm14, %v5442_v47, %v10077_v23 }
 0x4da   : > { %10545 = vrot.lane.b32.xlu1 %v19244_v7, %s11051_s22  ;;  %7044 = vmatprep.mubr.bf16.mxu1 %v6693_v48  ;;  %v5475_v27 = vsel %vm5241_vm14, %v5443_v12, %v10078_v57  ;;  %v9843_v4 = vunpack.i.h.bf16 %v19246_v49  ;;  %v6692_v38 = vpack.c.bf16 %v5313_v21, %v15967_v33  ;;  %v9923_v37 = vunpack.i.h.bf16 %v19248_v20  ;;  %v10923_v57 = vld [vmem:[#allocation4 + $0x7b] sm:$0xff]  ;;  %v16042_v21 = vpop.permute.xlu0 %10270  ;;  %v10924_v48 = vld [vmem:[#allocation4 + $0x83] sm:$0xff] }
 0x4db   : > { %v16019_v9 = vsel %vm5274_vm15, %v15485_v46, %v19245_v2  ;;  %v5506_v46 = vsel %vm5274_vm15, %v5474_v55, %v10157_v35  ;;  %v5507_v22 = vsel %vm5274_vm15, %v5475_v27, %v10158_v51  ;;  %v9922_v3 = vunpack.i.l.bf16 %v19248_v20  ;;  %v19250_v33 = vld [vmem:[#allocation215_spill] sm:$0xff]  ;;  %v19252_v35 = vld [vmem:[#allocation72_spill] sm:$0xff]  ;;  %v19259_v20 = vld [vmem:[#allocation262_spill] sm:$0xff] }
 0x4dc   : > { %v5538_v61 = vsel %vm5307_vm0, %v5506_v46, %v10237_v17  ;;  %v5539_v19 = vsel %vm5307_vm0, %v5507_v22, %v10238_v1  ;;  %v5348_v23 = vsel %vm420_vm2, %v10923_v57, %v9762_v62  ;;  %v10003_v14 = vunpack.i.h.bf16 %v19249_v43  ;;  %v19253_v1 = vld [vmem:[#allocation62_spill] sm:$0xff]  ;;  %v19254_v62 = vld [vmem:[#allocation73_spill] sm:$0xff]  ;;  %v16055_v0 = vpop.permute.xlu1 %10275  ;;  %v19256_v7 = vld [vmem:[#allocation168_spill] sm:$0xff] }
 0x4dd   : > { %10550 = vrot.lane.b32.xlu0 %v19247_v59, %s11052_s14  ;;  %v10002_v36 = vunpack.i.l.bf16 %v19249_v43  ;;  %v19251_v51 = vunpack.i.l.bf16 %v19122_v58  ;;  %v5349_v52 = vsel %vm420_vm2, %v10924_v48, %v9763_v44  ;;  %v5380_v18 = vsel %vm2090_vm10, %v5348_v23, %v9842_v11  ;;  %v19260_v57 = vld [vmem:[#allocation167_spill] sm:$0xff] }
 0x4de   : > { %10555 = vrot.lane.b32.xlu1 %v19250_v33, %s11053_s15  ;;  %v10083_v17 = vunpack.i.h.bf16 %v19253_v1  ;;  %v10082_v53 = vunpack.i.l.bf16 %v19253_v1  ;;  %v5381_v56 = vsel %vm2090_vm10, %v5349_v52, %v9843_v4  ;;  %v10163_v47 = vunpack.i.h.bf16 %v19254_v62  ;;  %v19258_v4 = vld [vmem:[#allocation131_spill] sm:$0xff] }
 0x4df   : > { %v5314_v25 = vsel %vm5307_vm0, %v19252_v35, %v19251_v51  ;;  %v10162_v12 = vunpack.i.l.bf16 %v19254_v62  ;;  %v19257_v2 = vpack.i.bf16 %v19255_v29, %v19256_v7  ;;  %v6697_v44 = vpack.c.bf16 %v5539_v19, %v5538_v61  ;;  %v16072_v61 = vpop.permute.xlu0 %10280  ;;  %v19264_v19 = vld [vmem:[#allocation147_spill] sm:$0xff]  ;;  %v19265_v35 = vld [vmem:[#allocation192_spill] sm:$0xff] }
 0x4e0   : > { %v5412_v49 = vsel %vm5175_vm12, %v5380_v18, %v9922_v3  ;;  %v5413_v11 = vsel %vm5175_vm12, %v5381_v56, %v9923_v37  ;;  %v10243_v55 = vunpack.i.h.bf16 %v15947_v63  ;;  %v10242_v27 = vunpack.i.l.bf16 %v15947_v63  ;;  %v19263_v3 = vld [vmem:[#allocation203_spill] sm:$0xff]  ;;  %v16083_v51 = vpop.permute.xlu1 %10285  ;;  %v19267_v18 = vld [vmem:[#allocation69_spill] sm:$0xff] }
 0x4e1   : > { %10560 = vrot.lane.b32.xlu0 %v19257_v2, %s11050_s20  ;;  %7045 = vmatmul.mubr.bf16.gmra.mxu1 %v6692_v38  ;;  %v9767_v59 = vunpack.i.l.bf16 %v19258_v4  ;;  %v5444_v46 = vsel %vm5208_vm13, %v5412_v49, %v10002_v36  ;;  %v5445_v22 = vsel %vm5208_vm13, %v5413_v11, %v10003_v14  ;;  %v19261_v23 = vpack.i.bf16 %v19259_v20, %v19260_v57  ;;  %v10925_v7 = vld [vmem:[#allocation4 + $0x93] sm:$0xff] }
 0x4e2   : > { %7052 = vmatprep.mubr.bf16.mxu1 %v6697_v44  ;;  %v19262_v37 = vunpack.i.h.bf16 %v19122_v58  ;;  %v9768_v38 = vunpack.i.h.bf16 %v19258_v4  ;;  %v9847_v43 = vunpack.i.l.bf16 %v19264_v19  ;;  %v5476_v36 = vsel %vm5241_vm14, %v5444_v46, %v10082_v53  ;;  %v19268_v53 = vld [vmem:[#allocation202_spill] sm:$0xff]  ;;  %v10926_v4 = vld [vmem:[#allocation4 + $0x9b] sm:$0xff] }
 0x4e3   : > { %10565 = vrot.lane.b32.xlu1 %v19261_v23, %s11051_s22  ;;  %v5477_v14 = vsel %vm5241_vm14, %v5445_v22, %v10083_v17  ;;  %v9848_v33 = vunpack.i.h.bf16 %v19264_v19  ;;  %v5508_v58 = vsel %vm5274_vm15, %v5476_v36, %v10162_v12  ;;  %v19266_v52 = vunpack.i.h.bf16 %v19110_v6  ;;  %v19269_v12 = vld [vmem:[#allocation22_spill] sm:$0xff]  ;;  %v19270_v6 = vld [vmem:[#allocation216_spill] sm:$0xff]  ;;  %v16104_v49 = vpop.permute.xlu0 %10290  ;;  %v19271_v22 = vld [vmem:[#allocation63_spill] sm:$0xff] }
 0x4e4   : > { %v5315_v63 = vsel %vm5307_vm0, %v19263_v3, %v19262_v37  ;;  %v5509_v48 = vsel %vm5274_vm15, %v5477_v14, %v10163_v47  ;;  %v9928_v56 = vunpack.i.h.bf16 %v19268_v53  ;;  %v9927_v17 = vunpack.i.l.bf16 %v19268_v53  ;;  %v16113_v37 = vpop.permute.xlu1 %10295  ;;  %v19272_v3 = vld [vmem:[#allocation263_spill] sm:$0xff] }
 0x4e5   : > { %10570 = vrot.lane.b32.xlu0 %v19265_v35, %s11052_s14  ;;  %v16093_v1 = vsel %vm5274_vm15, %v19267_v18, %v19266_v52  ;;  %v5540_v62 = vsel %vm5307_vm0, %v5508_v58, %v10242_v27  ;;  %v5541_v29 = vsel %vm5307_vm0, %v5509_v48, %v10243_v55  ;;  %v5350_v2 = vsel %vm420_vm2, %v10925_v7, %v9767_v59  ;;  %v19276_v52 = vld [vmem:[#allocation265_spill] sm:$0xff]  ;;  %v19277_v18 = vld [vmem:[#allocation264_spill] sm:$0xff] }
 0x4e6   : > { %v10008_v44 = vunpack.i.h.bf16 %v19269_v12  ;;  %v10007_v47 = vunpack.i.l.bf16 %v19269_v12  ;;  %v6696_v11 = vpack.c.bf16 %v5315_v63, %v5314_v25  ;;  %v5351_v46 = vsel %vm420_vm2, %v10926_v4, %v9768_v38  ;;  %v19273_v25 = vld [vmem:[#allocation16_spill] sm:$0xff] }
 0x4e7   : > { %10575 = vrot.lane.b32.xlu1 %v19270_v6, %s11053_s15  ;;  %v5382_v27 = vsel %vm2090_vm10, %v5350_v2, %v9847_v43  ;;  %v10088_v55 = vunpack.i.h.bf16 %v19271_v22  ;;  %v10087_v20 = vunpack.i.l.bf16 %v19271_v22  ;;  %v5383_v59 = vsel %vm2090_vm10, %v5351_v46, %v9848_v33  ;;  %v19275_v33 = vld [vmem:[#allocation132_spill] sm:$0xff]  ;;  %v19282_v6 = vld [vmem:[#allocation169_spill] sm:$0xff] }
 0x4e8   : > { %v10168_v57 = vunpack.i.h.bf16 %v15616_v41  ;;  %v10167_v23 = vunpack.i.l.bf16 %v15616_v41  ;;  %v19274_v63 = vpack.i.bf16 %v19272_v3, %v19273_v25  ;;  %v6701_v38 = vpack.c.bf16 %v5541_v29, %v5540_v62  ;;  %v10927_v25 = vld [vmem:[#allocation4 + $0xb3] sm:$0xff] }
 0x4e9   : > { %v5414_v19 = vsel %vm5175_vm12, %v5382_v27, %v9927_v17  ;;  %v5415_v43 = vsel %vm5175_vm12, %v5383_v59, %v9928_v56  ;;  %v10248_v36 = vunpack.i.h.bf16 %v15955_v15  ;;  %v10247_v14 = vunpack.i.l.bf16 %v15955_v15  ;;  %7053 = vmatmul.mubr.bf16.gmra.mxu1 %v6696_v11  ;;  %v16131_v17 = vpop.permute.xlu0 %10300  ;;  %v19279_v56 = vld [vmem:[#allocation148_spill] sm:$0xff] }
 0x4ea   : > { %10580 = vrot.lane.b32.xlu0 %v19274_v63, %s11050_s20  ;;  %v9773_v35 = vunpack.i.h.bf16 %v19275_v33  ;;  %v9772_v41 = vunpack.i.l.bf16 %v19275_v33  ;;  %v5446_v58 = vsel %vm5208_vm13, %v5414_v19, %v10007_v47  ;;  %v5447_v48 = vsel %vm5208_vm13, %v5415_v43, %v10008_v44  ;;  %7060 = vmatprep.mubr.bf16.mxu1 %v6701_v38  ;;  %v16141_v44 = vpop.permute.xlu1 %10305  ;;  %v19281_v47 = vld [vmem:[#allocation170_spill] sm:$0xff]  ;;  %v19286_v19 = vld [vmem:[#allocation297_spill] sm:$0xff] }
 0x4eb   : > { %v19278_v53 = vpack.i.bf16 %v19276_v52, %v19277_v18  ;;  %v9852_v62 = vunpack.i.l.bf16 %v19279_v56  ;;  %v5478_v15 = vsel %vm5241_vm14, %v5446_v58, %v10087_v20  ;;  %v5479_v29 = vsel %vm5241_vm14, %v5447_v48, %v10088_v55  ;;  %v19285_v55 = vld [vmem:[#allocation207_spill] sm:$0xff]  ;;  %v10928_v38 = vld [vmem:[#allocation4 + $0xab] sm:$0xff] }
 0x4ec   : > { %v19280_v7 = vunpack.i.l.bf16 %v19123_v31  ;;  %v9853_v12 = vunpack.i.h.bf16 %v19279_v56  ;;  %v19283_v11 = vpack.i.bf16 %v19281_v47, %v19282_v6  ;;  %v19284_v4 = vunpack.i.h.bf16 %v19123_v31  ;;  %v19290_v56 = vld [vmem:[#allocation267_spill] sm:$0xff]  ;;  %v19292_v47 = vld [vmem:[#allocation133_spill] sm:$0xff] }
 0x4ed   : > { %10585 = vrot.lane.b32.xlu1 %v19278_v53, %s11051_s22  ;;  %v5510_v27 = vsel %vm5274_vm15, %v5478_v15, %v10167_v23  ;;  %v5511_v22 = vsel %vm5274_vm15, %v5479_v29, %v10168_v57  ;;  %v9932_v20 = vunpack.i.l.bf16 %v19285_v55  ;;  %v5353_v63 = vsel %vm420_vm2, %v10927_v25, %v9773_v35  ;;  %v19287_v57 = vld [vmem:[#allocation217_spill] sm:$0xff]  ;;  %v16163_v43 = vpop.permute.xlu0 %10310  ;;  %v19289_v53 = vld [vmem:[#allocation266_spill] sm:$0xff] }
 0x4ee   : > { %v5316_v2 = vsel %vm5307_vm0, %v15628_v45, %v19280_v7  ;;  %10590 = vrot.lane.b32.xlu0 %v19283_v11, %s11052_s14  ;;  %v5317_v46 = vsel %vm5307_vm0, %v15634_v34, %v19284_v4  ;;  %v9933_v45 = vunpack.i.h.bf16 %v19285_v55  ;;  %v5542_v59 = vsel %vm5307_vm0, %v5510_v27, %v10247_v14  ;;  %v19288_v14 = vld [vmem:[#allocation64_spill] sm:$0xff]  ;;  %v16171_v18 = vpop.permute.xlu1 %10315 }
 0x4ef   : > { %v5543_v3 = vsel %vm5307_vm0, %v5511_v22, %v10248_v36  ;;  %v5352_v31 = vsel %vm420_vm2, %v10928_v38, %v9772_v41  ;;  %v10013_v34 = vunpack.i.h.bf16 %v19286_v19  ;;  %v10012_v23 = vunpack.i.l.bf16 %v19286_v19  ;;  %v19294_v27 = vld [vmem:[#allocation268_spill] sm:$0xff]  ;;  %v19299_v19 = vld [vmem:[#allocation171_spill] sm:$0xff] }
 0x4f0   : > { %v5384_v33 = vsel %vm2090_vm10, %v5352_v31, %v9852_v62  ;;  %v10093_v58 = vunpack.i.h.bf16 %v19288_v14  ;;  %v10092_v36 = vunpack.i.l.bf16 %v19288_v14  ;;  %v6700_v48 = vpack.c.bf16 %v5317_v46, %v5316_v2  ;;  %v19293_v46 = vld [vmem:[#allocation269_spill] sm:$0xff]  ;;  %v19298_v31 = vld [vmem:[#allocation271_spill] sm:$0xff] }
 0x4f1   : > { %10595 = vrot.lane.b32.xlu1 %v19287_v57, %s11053_s15  ;;  %v5385_v35 = vsel %vm2090_vm10, %v5353_v63, %v9853_v12  ;;  %v10173_v41 = vunpack.i.h.bf16 %v15642_v40  ;;  %v10172_v52 = vunpack.i.l.bf16 %v15642_v40  ;;  %v19291_v15 = vpack.i.bf16 %v19289_v53, %v19290_v56  ;;  %v16189_v55 = vpop.permute.xlu0 %10320  ;;  %v10929_v53 = vld [vmem:[#allocation4 + $0xcb] sm:$0xff] }
 0x4f2   : > { %v6705_v29 = vpack.c.bf16 %v5543_v3, %v5542_v59  ;;  %v5416_v62 = vsel %vm5175_vm12, %v5384_v33, %v9932_v20  ;;  %v5417_v7 = vsel %vm5175_vm12, %v5385_v35, %v9933_v45  ;;  %v10253_v2 = vunpack.i.h.bf16 %v15980_v5  ;;  %7061 = vmatmul.mubr.bf16.gmra.mxu1 %v6700_v48  ;;  %v19296_v45 = vld [vmem:[#allocation149_spill] sm:$0xff]  ;;  %v16199_v38 = vpop.permute.xlu1 %10325 }
 0x4f3   : > { %10600 = vrot.lane.b32.xlu0 %v19291_v15, %s11050_s20  ;;  %v10252_v12 = vunpack.i.l.bf16 %v15980_v5  ;;  %v9778_v6 = vunpack.i.h.bf16 %v19292_v47  ;;  %v9777_v40 = vunpack.i.l.bf16 %v19292_v47  ;;  %v5448_v11 = vsel %vm5208_vm13, %v5416_v62, %v10012_v23  ;;  %v10930_v15 = vld [vmem:[#allocation4 + $0xc3] sm:$0xff] }
 0x4f4   : > { %v5449_v4 = vsel %vm5208_vm13, %v5417_v7, %v10013_v34  ;;  %v19295_v22 = vpack.i.bf16 %v19293_v46, %v19294_v27  ;;  %7068 = vmatprep.mubr.bf16.mxu1 %v6705_v29  ;;  %v9857_v20 = vunpack.i.l.bf16 %v19296_v45  ;;  %v5480_v5 = vsel %vm5241_vm14, %v5448_v11, %v10092_v36  ;;  %v19303_v29 = vld [vmem:[#allocation306_spill] sm:$0xff]  ;;  %v19306_v27 = vld [vmem:[#allocation276_spill] sm:$0xff] }
 0x4f5   : > { %v5481_v59 = vsel %vm5241_vm14, %v5449_v4, %v10093_v58  ;;  %v19297_v3 = vunpack.i.l.bf16 %v19125_v42  ;;  %v9858_v63 = vunpack.i.h.bf16 %v19296_v45  ;;  %v19300_v34 = vpack.i.bf16 %v19298_v31, %v19299_v19  ;;  %v19302_v58 = vld [vmem:[#allocation212_spill] sm:$0xff]  ;;  %v16221_v62 = vpop.permute.xlu0 %10330 }
 0x4f6   : > { %10605 = vrot.lane.b32.xlu1 %v19295_v22, %s11051_s22  ;;  %v19301_v23 = vunpack.i.h.bf16 %v19125_v42  ;;  %v5512_v33 = vsel %vm5274_vm15, %v5480_v5, %v10172_v52  ;;  %v5513_v14 = vsel %vm5274_vm15, %v5481_v59, %v10173_v41  ;;  %v9937_v36 = vunpack.i.l.bf16 %v19302_v58  ;;  %v19304_v41 = vld [vmem:[#allocation218_spill] sm:$0xff]  ;;  %v16229_v46 = vpop.permute.xlu1 %10335  ;;  %v19307_v22 = vld [vmem:[#allocation175_spill] sm:$0xff] }
 0x4f7   : > { %v5318_v25 = vsel %vm5307_vm0, %v15648_v13, %v19297_v3  ;;  %10610 = vrot.lane.b32.xlu0 %v19300_v34, %s11052_s14  ;;  %v9938_v13 = vunpack.i.h.bf16 %v19302_v58  ;;  %v5544_v48 = vsel %vm5307_vm0, %v5512_v33, %v10252_v12  ;;  %v5545_v35 = vsel %vm5307_vm0, %v5513_v14, %v10253_v2  ;;  %v19305_v12 = vld [vmem:[#allocation193_spill] sm:$0xff]  ;;  %v19313_v58 = vld [vmem:[#allocation150_spill] sm:$0xff] }
 0x4f8   : > { %v5319_v57 = vsel %vm5307_vm0, %v15654_v10, %v19301_v23  ;;  %v5355_v56 = vsel %vm420_vm2, %v10929_v53, %v9778_v6  ;;  %v5354_v42 = vsel %vm420_vm2, %v10930_v15, %v9777_v40  ;;  %v10018_v10 = vunpack.i.h.bf16 %v19303_v29  ;;  %v19310_v23 = vld [vmem:[#allocation270_spill] sm:$0xff]  ;;  %v19315_v15 = vld [vmem:[#allocation176_spill] sm:$0xff] }
 0x4f9   : > { %v10017_v52 = vunpack.i.l.bf16 %v19303_v29  ;;  %v5386_v7 = vsel %vm2090_vm10, %v5354_v42, %v9857_v20  ;;  %v10098_v47 = vunpack.i.h.bf16 %v19305_v12  ;;  %v10097_v2 = vunpack.i.l.bf16 %v19305_v12  ;;  %v16247_v14 = vpop.permute.xlu0 %10340  ;;  %v19316_v42 = vld [vmem:[#allocation177_spill] sm:$0xff]  ;;  %v19319_v12 = vld [vmem:[#allocation220_spill] sm:$0xff] }
 0x4fa   : > { %10615 = vrot.lane.b32.xlu1 %v19304_v41, %s11053_s15  ;;  %v6704_v11 = vpack.c.bf16 %v5319_v57, %v5318_v25  ;;  %v5387_v6 = vsel %vm2090_vm10, %v5355_v56, %v9858_v63  ;;  %v10178_v40 = vunpack.i.h.bf16 %v15672_v24  ;;  %v10177_v4 = vunpack.i.l.bf16 %v15672_v24  ;;  %v19309_v63 = vld [vmem:[#allocation134_spill] sm:$0xff]  ;;  %v19311_v57 = vld [vmem:[#allocation172_spill] sm:$0xff]  ;;  %v16257_v56 = vpop.permute.xlu1 %10345 }
 0x4fb   : > { %v19308_v45 = vpack.i.bf16 %v19306_v27, %v19307_v22  ;;  %v6709_v5 = vpack.c.bf16 %v5545_v35, %v5544_v48  ;;  %v5418_v20 = vsel %vm5175_vm12, %v5386_v7, %v9937_v36  ;;  %v5419_v59 = vsel %vm5175_vm12, %v5387_v6, %v9938_v13  ;;  %v10931_v6 = vld [vmem:[#allocation4 + $0xe3] sm:$0xff]  ;;  %v10932_v22 = vld [vmem:[#allocation4 + $0xdb] sm:$0xff] }
 0x4fc   : > { %v10258_v3 = vunpack.i.h.bf16 %v15993_v26  ;;  %v10257_v25 = vunpack.i.l.bf16 %v15993_v26  ;;  %7069 = vmatmul.mubr.bf16.gmra.mxu1 %v6704_v11  ;;  %v9783_v31 = vunpack.i.h.bf16 %v19309_v63  ;;  %v9782_v24 = vunpack.i.l.bf16 %v19309_v63 }
 0x4fd   : > { %10620 = vrot.lane.b32.xlu0 %v19308_v45, %s11050_s20  ;;  %v5450_v19 = vsel %vm5208_vm13, %v5418_v20, %v10017_v52  ;;  %v5451_v34 = vsel %vm5208_vm13, %v5419_v59, %v10018_v10  ;;  %v19312_v33 = vpack.i.bf16 %v19310_v23, %v19311_v57  ;;  %7076 = vmatprep.mubr.bf16.mxu1 %v6709_v5  ;;  %v9862_v13 = vunpack.i.l.bf16 %v19313_v58  ;;  %v19320_v45 = vld [vmem:[#allocation315_spill] sm:$0xff]  ;;  %v16279_v5 = vpop.permute.xlu0 %10350  ;;  %v19322_v59 = vld [vmem:[#allocation65_spill] sm:$0xff]  ;;  %v19323_v23 = vld [vmem:[#allocation284_spill] sm:$0xff] }
 0x4fe   : > { %v5482_v26 = vsel %vm5241_vm14, %v5450_v19, %v10097_v2  ;;  %v5483_v36 = vsel %vm5241_vm14, %v5451_v34, %v10098_v47  ;;  %v19314_v48 = vunpack.i.l.bf16 %v19126_v30  ;;  %v9863_v53 = vunpack.i.h.bf16 %v19313_v58  ;;  %v16287_v34 = vpop.permute.xlu1 %10355  ;;  %v19324_v57 = vld [vmem:[#allocation178_spill] sm:$0xff] }
 0x4ff   : > { %10625 = vrot.lane.b32.xlu1 %v19312_v33, %s11051_s22  ;;  %v19317_v29 = vpack.i.bf16 %v19315_v15, %v19316_v42  ;;  %v19318_v10 = vunpack.i.h.bf16 %v19126_v30  ;;  %v5514_v41 = vsel %vm5274_vm15, %v5482_v26, %v10177_v4  ;;  %v5515_v7 = vsel %vm5274_vm15, %v5483_v36, %v10178_v40  ;;  %v19321_v40 = vld [vmem:[#allocation223_spill] sm:$0xff] }
 0x500   : > { %v5320_v35 = vsel %vm5307_vm0, %v15662_v60, %v19314_v48  ;;  %v9943_v60 = vunpack.i.h.bf16 %v19319_v12  ;;  %v9942_v47 = vunpack.i.l.bf16 %v19319_v12  ;;  %v5546_v2 = vsel %vm5307_vm0, %v5514_v41, %v10257_v25 }
 0x501   : > { %10630 = vrot.lane.b32.xlu0 %v19317_v29, %s11052_s14  ;;  %v5321_v52 = vsel %vm5307_vm0, %v15668_v50, %v19318_v10  ;;  %v5547_v11 = vsel %vm5307_vm0, %v5515_v7, %v10258_v3  ;;  %v5357_v27 = vsel %vm420_vm2, %v10931_v6, %v9783_v31  ;;  %v5356_v30 = vsel %vm420_vm2, %v10932_v22, %v9782_v24  ;;  %v19327_v29 = vld [vmem:[#allocation273_spill] sm:$0xff]  ;;  %v19328_v10 = vld [vmem:[#allocation272_spill] sm:$0xff]  ;;  %v16305_v41 = vpop.permute.xlu0 %10360  ;;  %v19331_v7 = vld [vmem:[#allocation151_spill] sm:$0xff] }
 0x502   : > { %v10023_v50 = vunpack.i.h.bf16 %v19320_v45  ;;  %v10022_v4 = vunpack.i.l.bf16 %v19320_v45  ;;  %v5388_v20 = vsel %vm2090_vm10, %v5356_v30, %v9862_v13  ;;  %v10103_v25 = vunpack.i.h.bf16 %v19322_v59  ;;  %19330 = vst [vmem:[#allocation84_spill] sm:$0xff] %v16305_v41  ;;  %v19335_v22 = vld [vmem:[#allocation289_spill] sm:$0xff]  ;;  %v19336_v30 = vld [vmem:[#allocation288_spill] sm:$0xff] }
 0x503   : > { %10635 = vrot.lane.b32.xlu1 %v19321_v40, %s11053_s15  ;;  %v10102_v3 = vunpack.i.l.bf16 %v19322_v59  ;;  %v6708_v63 = vpack.c.bf16 %v5321_v52, %v5320_v35  ;;  %v5389_v31 = vsel %vm2090_vm10, %v5357_v27, %v9863_v53  ;;  %v10183_v24 = vunpack.i.h.bf16 %v15715_v54  ;;  %v19326_v35 = vld [vmem:[#allocation135_spill] sm:$0xff]  ;;  %v16315_v27 = vpop.permute.xlu1 %10365 }
 0x504   : > { %v10182_v19 = vunpack.i.l.bf16 %v15715_v54  ;;  %v19325_v33 = vpack.i.bf16 %v19323_v23, %v19324_v57  ;;  %v6713_v58 = vpack.c.bf16 %v5547_v11, %v5546_v2  ;;  %v5420_v13 = vsel %vm5175_vm12, %v5388_v20, %v9942_v47  ;;  %v19332_v47 = vld [vmem:[#allocation117_spill] sm:$0xff]  ;;  %19334 = vst [vmem:[#allocation85_spill] sm:$0xff] %v16315_v27  ;;  %v19339_v59 = vld [vmem:[#allocation227_spill] sm:$0xff] }
 0x505   : > { %v5421_v26 = vsel %vm5175_vm12, %v5389_v31, %v9943_v60  ;;  %v10263_v36 = vunpack.i.h.bf16 %v16013_v16  ;;  %v10262_v48 = vunpack.i.l.bf16 %v16013_v16  ;;  %7077 = vmatmul.mubr.bf16.gmra.mxu1 %v6708_v63  ;;  %v9788_v53 = vunpack.i.h.bf16 %v19326_v35  ;;  %v10933_v31 = vld [vmem:[#allocation4 + $0xfb] sm:$0xff]  ;;  %v10934_v57 = vld [vmem:[#allocation4 + $0xf3] sm:$0xff]  ;;  %v19518_v27 = vld [vmem:[#allocation125_spill] sm:$0xff] }
 0x506   : > { %10640 = vrot.lane.b32.xlu0 %v19325_v33, %s11050_s20  ;;  %v9787_v54 = vunpack.i.l.bf16 %v19326_v35  ;;  %v5452_v15 = vsel %vm5208_vm13, %v5420_v13, %v10022_v4  ;;  %v5453_v42 = vsel %vm5208_vm13, %v5421_v26, %v10023_v50  ;;  %v19329_v52 = vpack.i.bf16 %v19327_v29, %v19328_v10  ;;  %7084 = vmatprep.mubr.bf16.mxu1 %v6713_v58  ;;  %v19340_v58 = vld [vmem:[#allocation323_spill] sm:$0xff]  ;;  %v19342_v13 = vld [vmem:[#allocation290_spill] sm:$0xff]  ;;  %v16339_v35 = vpop.permute.xlu0 %10370 }
 0x507   : > { %v9867_v12 = vunpack.i.l.bf16 %v19331_v7  ;;  %v5484_v16 = vsel %vm5241_vm14, %v5452_v15, %v10102_v3  ;;  %v5485_v60 = vsel %vm5241_vm14, %v5453_v42, %v10103_v25  ;;  %v19333_v2 = vunpack.i.l.bf16 %v19332_v47  ;;  %19344 = vst [vmem:[#allocation157_spill] sm:$0xff] %v16339_v35 }
 0x508   : > { %10645 = vrot.lane.b32.xlu1 %v19329_v52, %s11051_s22  ;;  %v9868_v6 = vunpack.i.h.bf16 %v19331_v7  ;;  %v19337_v45 = vpack.i.bf16 %v19335_v22, %v19336_v30  ;;  %v19338_v50 = vunpack.i.h.bf16 %v19332_v47  ;;  %v5516_v40 = vsel %vm5274_vm15, %v5484_v16, %v10182_v19  ;;  %v16347_v52 = vpop.permute.xlu1 %10375  ;;  %v19347_v7 = vld [vmem:[#allocation293_spill] sm:$0xff]  ;;  %v19348_v16 = vld [vmem:[#allocation292_spill] sm:$0xff] }
 0x509   : > { %v5322_v11 = vsel %vm5307_vm0, %v15682_v39, %v19333_v2  ;;  %v5517_v20 = vsel %vm5274_vm15, %v5485_v60, %v10183_v24  ;;  %v9948_v39 = vunpack.i.h.bf16 %v19339_v59  ;;  %v9947_v25 = vunpack.i.l.bf16 %v19339_v59  ;;  %v19341_v24 = vld [vmem:[#allocation182_spill] sm:$0xff]  ;;  %19346 = vst [vmem:[#allocation156_spill] sm:$0xff] %v16347_v52  ;;  %v19350_v22 = vld [vmem:[#allocation136_spill] sm:$0xff] }
 0x50a   : > { %10650 = vrot.lane.b32.xlu0 %v19337_v45, %s11052_s14  ;;  %v5323_v4 = vsel %vm5307_vm0, %v15688_v32, %v19338_v50  ;;  %v5548_v3 = vsel %vm5307_vm0, %v5516_v40, %v10262_v48  ;;  %v5549_v63 = vsel %vm5307_vm0, %v5517_v20, %v10263_v36  ;;  %v5359_v23 = vsel %vm420_vm2, %v10933_v31, %v9788_v53  ;;  %v19345_v36 = vld [vmem:[#allocation66_spill] sm:$0xff]  ;;  %v16365_v59 = vpop.permute.xlu0 %10380 }
 0x50b   : > { %v5358_v33 = vsel %vm420_vm2, %v10934_v57, %v9787_v54  ;;  %v10028_v32 = vunpack.i.h.bf16 %v19340_v58  ;;  %v10027_v19 = vunpack.i.l.bf16 %v19340_v58  ;;  %v19343_v26 = vpack.i.bf16 %v19341_v24, %v19342_v13  ;;  %v19352_v40 = vld [vmem:[#allocation274_spill] sm:$0xff] }
 0x50c   : > { %v5390_v48 = vsel %vm2090_vm10, %v5358_v33, %v9867_v12  ;;  %v10108_v15 = vunpack.i.h.bf16 %v19345_v36  ;;  %v10107_v53 = vunpack.i.l.bf16 %v19345_v36  ;;  %v6712_v42 = vpack.c.bf16 %v5323_v4, %v5322_v11  ;;  %v19351_v4 = vld [vmem:[#allocation275_spill] sm:$0xff]  ;;  %v16375_v58 = vpop.permute.xlu1 %10385 }
 0x50d   : > { %10655 = vrot.lane.b32.xlu1 %v19343_v26, %s11053_s15  ;;  %v5391_v54 = vsel %vm2090_vm10, %v5359_v23, %v9868_v6  ;;  %v10188_v29 = vunpack.i.h.bf16 %v15745_v28  ;;  %v10187_v10 = vunpack.i.l.bf16 %v15745_v28  ;;  %v19349_v60 = vpack.i.bf16 %v19347_v7, %v19348_v16  ;;  %v19357_v23 = vld [vmem:[#allocation74_spill] sm:$0xff]  ;;  %v19362_v26 = vld [vmem:[#allocation75_spill] sm:$0xff] }
 0x50e   : > { %v6717_v47 = vpack.c.bf16 %v5549_v63, %v5548_v3  ;;  %v5422_v12 = vsel %vm5175_vm12, %v5390_v48, %v9947_v25  ;;  %v5423_v2 = vsel %vm5175_vm12, %v5391_v54, %v9948_v39  ;;  %v10268_v11 = vunpack.i.h.bf16 %v16026_v8  ;;  %7085 = vmatmul.mubr.bf16.gmra.mxu1 %v6712_v42  ;;  %v19354_v39 = vld [vmem:[#allocation152_spill] sm:$0xff]  ;;  %v19355_v63 = vld [vmem:[#allocation118_spill] sm:$0xff] }
 0x50f   : > { %10660 = vrot.lane.b32.xlu0 %v19349_v60, %s11050_s20  ;;  %v10267_v6 = vunpack.i.l.bf16 %v16026_v8  ;;  %v9793_v30 = vunpack.i.h.bf16 %v19350_v22  ;;  %v9792_v28 = vunpack.i.l.bf16 %v19350_v22  ;;  %v5454_v45 = vsel %vm5208_vm13, %v5422_v12, %v10027_v19  ;;  %v19359_v19 = vld [vmem:[#allocation298_spill] sm:$0xff]  ;;  %v19364_v22 = vld [vmem:[#allocation185_spill] sm:$0xff] }
 0x510   : > { %v5455_v50 = vsel %vm5208_vm13, %v5423_v2, %v10028_v32  ;;  %v19353_v20 = vpack.i.bf16 %v19351_v4, %v19352_v40  ;;  %7092 = vmatprep.mubr.bf16.mxu1 %v6717_v47  ;;  %v9872_v25 = vunpack.i.l.bf16 %v19354_v39  ;;  %v5486_v8 = vsel %vm5241_vm14, %v5454_v45, %v10107_v53  ;;  %v19358_v32 = vld [vmem:[#allocation294_spill] sm:$0xff]  ;;  %v16399_v40 = vpop.permute.xlu0 %10390 }
 0x511   : > { %v5487_v3 = vsel %vm5241_vm14, %v5455_v50, %v10108_v15  ;;  %v19356_v31 = vunpack.i.l.bf16 %v19355_v63  ;;  %v9873_v33 = vunpack.i.h.bf16 %v19354_v39  ;;  %v19360_v24 = vpack.i.bf16 %v19358_v32, %v19359_v19  ;;  %v19363_v53 = vld [vmem:[#allocation234_spill] sm:$0xff]  ;;  %v19366_v50 = vld [vmem:[#allocation295_spill] sm:$0xff]  ;;  %v19371_v32 = vld [vmem:[#allocation24_spill] sm:$0xff] }
 0x512   : > { %10665 = vrot.lane.b32.xlu1 %v19353_v20, %s11051_s22  ;;  %v19361_v13 = vunpack.i.h.bf16 %v19355_v63  ;;  %v5518_v36 = vsel %vm5274_vm15, %v5486_v8, %v10187_v10  ;;  %v5519_v15 = vsel %vm5274_vm15, %v5487_v3, %v10188_v29  ;;  %v9953_v42 = vunpack.i.h.bf16 %v19363_v53  ;;  %v10935_v60 = vld [vmem:[#allocation4 + $0x113] sm:$0xff]  ;;  %v10936_v12 = vld [vmem:[#allocation4 + $0x10b] sm:$0xff] }
 0x513   : > { %v5324_v57 = vsel %vm5307_vm0, %v19357_v23, %v19356_v31  ;;  %10670 = vrot.lane.b32.xlu0 %v19360_v24, %s11052_s14  ;;  %v9952_v54 = vunpack.i.l.bf16 %v19363_v53  ;;  %v5550_v7 = vsel %vm5307_vm0, %v5518_v36, %v10267_v6  ;;  %v5551_v16 = vsel %vm5307_vm0, %v5519_v15, %v10268_v11  ;;  %v19365_v29 = vld [vmem:[#allocation299_spill] sm:$0xff]  ;;  %v19369_v8 = vld [vmem:[#allocation205_spill] sm:$0xff]  ;;  %v16407_v31 = vpop.permute.xlu1 %10395  ;;  %v19370_v23 = vld [vmem:[#allocation300_spill] sm:$0xff] }
 0x514   : > { %v5325_v48 = vsel %vm5307_vm0, %v19362_v26, %v19361_v13  ;;  %v5361_v47 = vsel %vm420_vm2, %v10935_v60, %v9793_v30  ;;  %v5360_v2 = vsel %vm420_vm2, %v10936_v12, %v9792_v28  ;;  %v10033_v45 = vunpack.i.h.bf16 %v19364_v22  ;;  %v19368_v11 = vld [vmem:[#allocation67_spill] sm:$0xff]  ;;  %v19373_v26 = vld [vmem:[#allocation137_spill] sm:$0xff]  ;;  %v19374_v60 = vld [vmem:[#allocation278_spill] sm:$0xff] }
 0x515   : > { %v10032_v10 = vunpack.i.l.bf16 %v19364_v22  ;;  %v19367_v4 = vpack.i.bf16 %v19365_v29, %v19366_v50  ;;  %v5392_v6 = vsel %vm2090_vm10, %v5360_v2, %v9872_v25  ;;  %v10113_v20 = vunpack.i.h.bf16 %v19368_v11  ;;  %v19378_v2 = vld [vmem:[#allocation119_spill] sm:$0xff] }
 0x516   : > { %v10112_v30 = vunpack.i.l.bf16 %v19368_v11  ;;  %v6716_v39 = vpack.c.bf16 %v5325_v48, %v5324_v57  ;;  %v5393_v28 = vsel %vm2090_vm10, %v5361_v47, %v9873_v33  ;;  %v10193_v3 = vunpack.i.h.bf16 %v19369_v8  ;;  %v19380_v29 = vld [vmem:[#allocation195_spill] sm:$0xff] }
 0x517   : > { %10675 = vrot.lane.b32.xlu1 %v19367_v4, %s11053_s15  ;;  %v10192_v63 = vunpack.i.l.bf16 %v19369_v8  ;;  %v19372_v19 = vpack.i.bf16 %v19370_v23, %v19371_v32  ;;  %v6721_v24 = vpack.c.bf16 %v5551_v16, %v5550_v7  ;;  %v5424_v25 = vsel %vm5175_vm12, %v5392_v6, %v9952_v54  ;;  %v19375_v7 = vld [vmem:[#allocation277_spill] sm:$0xff]  ;;  %v16425_v54 = vpop.permute.xlu0 %10400  ;;  %v16435_v50 = vpop.permute.xlu1 %10405  ;;  %v19382_v6 = vld [vmem:[#allocation302_spill] sm:$0xff] }
 0x518   : > { %v5425_v13 = vsel %vm5175_vm12, %v5393_v28, %v9953_v42  ;;  %v10273_v57 = vunpack.i.h.bf16 %v16042_v21  ;;  %v10272_v33 = vunpack.i.l.bf16 %v16042_v21  ;;  %7093 = vmatmul.mubr.bf16.gmra.mxu1 %v6716_v39  ;;  %v9798_v48 = vunpack.i.h.bf16 %v19373_v26  ;;  %v19377_v42 = vld [vmem:[#allocation153_spill] sm:$0xff]  ;;  %v19385_v28 = vld [vmem:[#allocation204_spill] sm:$0xff] }
 0x519   : > { %10680 = vrot.lane.b32.xlu0 %v19372_v19, %s11050_s20  ;;  %v9797_v36 = vunpack.i.l.bf16 %v19373_v26  ;;  %v5456_v15 = vsel %vm5208_vm13, %v5424_v25, %v10032_v10  ;;  %v5457_v53 = vsel %vm5208_vm13, %v5425_v13, %v10033_v45  ;;  %v19376_v16 = vpack.i.bf16 %v19374_v60, %v19375_v7  ;;  %7100 = vmatprep.mubr.bf16.mxu1 %v6721_v24  ;;  %v19381_v4 = vld [vmem:[#allocation301_spill] sm:$0xff]  ;;  %v19387_v60 = vld [vmem:[#allocation26_spill] sm:$0xff] }
 0x51a   : > { %v9877_v47 = vunpack.i.l.bf16 %v19377_v42  ;;  %v5488_v21 = vsel %vm5241_vm14, %v5456_v15, %v10112_v30  ;;  %v5489_v12 = vsel %vm5241_vm14, %v5457_v53, %v10113_v20  ;;  %v19379_v22 = vunpack.i.l.bf16 %v19378_v2  ;;  %v19386_v23 = vld [vmem:[#allocation241_spill] sm:$0xff] }
 0x51b   : > { %10685 = vrot.lane.b32.xlu1 %v19376_v16, %s11051_s22  ;;  %v9878_v45 = vunpack.i.h.bf16 %v19377_v42  ;;  %v19383_v11 = vpack.i.bf16 %v19381_v4, %v19382_v6  ;;  %v19384_v39 = vunpack.i.h.bf16 %v19378_v2  ;;  %v5520_v20 = vsel %vm5274_vm15, %v5488_v21, %v10192_v63  ;;  %v10937_v13 = vld [vmem:[#allocation4 + $0x12b] sm:$0xff]  ;;  %v10938_v15 = vld [vmem:[#allocation4 + $0x123] sm:$0xff]  ;;  %v19389_v16 = vld [vmem:[#allocation303_spill] sm:$0xff]  ;;  %v16459_v21 = vpop.permute.xlu0 %10410  ;;  %v16467_v6 = vpop.permute.xlu1 %10415 }
 0x51c   : > { %v5326_v10 = vsel %vm5307_vm0, %v19380_v29, %v19379_v22  ;;  %v5521_v8 = vsel %vm5274_vm15, %v5489_v12, %v10193_v3  ;;  %v9958_v32 = vunpack.i.h.bf16 %v19386_v23  ;;  %v9957_v19 = vunpack.i.l.bf16 %v19386_v23  ;;  %v19388_v3 = vld [vmem:[#allocation304_spill] sm:$0xff]  ;;  %v19392_v22 = vld [vmem:[#allocation199_spill] sm:$0xff] }
 0x51d   : > { %10690 = vrot.lane.b32.xlu0 %v19383_v11, %s11052_s14  ;;  %v5327_v30 = vsel %vm5307_vm0, %v19385_v28, %v19384_v39  ;;  %v5552_v24 = vsel %vm5307_vm0, %v5520_v20, %v10272_v33  ;;  %v5553_v25 = vsel %vm5307_vm0, %v5521_v8, %v10273_v57  ;;  %v5363_v26 = vsel %vm420_vm2, %v10937_v13, %v9798_v48  ;;  %v19391_v57 = vld [vmem:[#allocation68_spill] sm:$0xff]  ;;  %v19393_v11 = vld [vmem:[#allocation305_spill] sm:$0xff]  ;;  %v19394_v39 = vld [vmem:[#allocation19_spill] sm:$0xff] }
 0x51e   : > { %v5362_v53 = vsel %vm420_vm2, %v10938_v15, %v9797_v36  ;;  %v10038_v7 = vunpack.i.h.bf16 %v19387_v60  ;;  %v10037_v63 = vunpack.i.l.bf16 %v19387_v60  ;;  %v19390_v42 = vpack.i.bf16 %v19388_v3, %v19389_v16  ;;  %v19401_v16 = vld [vmem:[#allocation120_spill] sm:$0xff] }
 0x51f   : > { %v5394_v33 = vsel %vm2090_vm10, %v5362_v53, %v9877_v47  ;;  %v10118_v12 = vunpack.i.h.bf16 %v19391_v57  ;;  %v10117_v48 = vunpack.i.l.bf16 %v19391_v57  ;;  %v6720_v2 = vpack.c.bf16 %v5327_v30, %v5326_v10  ;;  %v19396_v30 = vld [vmem:[#allocation138_spill] sm:$0xff]  ;;  %v19397_v53 = vld [vmem:[#allocation279_spill] sm:$0xff]  ;;  %v16495_v57 = vpop.permute.xlu1 %10425 }
 0x520   : > { %10695 = vrot.lane.b32.xlu1 %v19390_v42, %s11053_s15  ;;  %v5395_v36 = vsel %vm2090_vm10, %v5363_v26, %v9878_v45  ;;  %v10198_v29 = vunpack.i.h.bf16 %v19392_v22  ;;  %v10197_v4 = vunpack.i.l.bf16 %v19392_v22  ;;  %v19395_v28 = vpack.i.bf16 %v19393_v11, %v19394_v39  ;;  %v19408_v39 = vld [vmem:[#allocation77_spill] sm:$0xff] }
 0x521   : > { %v6725_v20 = vpack.c.bf16 %v5553_v25, %v5552_v24  ;;  %v5426_v47 = vsel %vm5175_vm12, %v5394_v33, %v9957_v19  ;;  %v5427_v8 = vsel %vm5175_vm12, %v5395_v36, %v9958_v32  ;;  %v10278_v10 = vunpack.i.h.bf16 %v16055_v0  ;;  %7101 = vmatmul.mubr.bf16.gmra.mxu1 %v6720_v2  ;;  %v19398_v24 = vld [vmem:[#allocation17_spill] sm:$0xff]  ;;  %v16485_v19 = vpop.permute.xlu0 %10420  ;;  %v19400_v32 = vld [vmem:[#allocation154_spill] sm:$0xff]  ;;  %v19403_v33 = vld [vmem:[#allocation76_spill] sm:$0xff] }
 0x522   : > { %10700 = vrot.lane.b32.xlu0 %v19395_v28, %s11050_s20  ;;  %v10277_v45 = vunpack.i.l.bf16 %v16055_v0  ;;  %v9803_v23 = vunpack.i.h.bf16 %v19396_v30  ;;  %v9802_v13 = vunpack.i.l.bf16 %v19396_v30  ;;  %v5458_v26 = vsel %vm5208_vm13, %v5426_v47, %v10037_v63  ;;  %v19404_v2 = vld [vmem:[#allocation307_spill] sm:$0xff] }
 0x523   : > { %v5459_v15 = vsel %vm5208_vm13, %v5427_v8, %v10038_v7  ;;  %v19399_v25 = vpack.i.bf16 %v19397_v53, %v19398_v24  ;;  %7108 = vmatprep.mubr.bf16.mxu1 %v6725_v20  ;;  %v9882_v60 = vunpack.i.l.bf16 %v19400_v32  ;;  %v5490_v0 = vsel %vm5241_vm14, %v5458_v26, %v10117_v48  ;;  %v19405_v36 = vld [vmem:[#allocation311_spill] sm:$0xff]  ;;  %v19409_v20 = vld [vmem:[#allocation248_spill] sm:$0xff] }
 0x524   : > { %v5491_v3 = vsel %vm5241_vm14, %v5459_v15, %v10118_v12  ;;  %v19402_v42 = vunpack.i.l.bf16 %v19401_v16  ;;  %v9883_v7 = vunpack.i.h.bf16 %v19400_v32  ;;  %v19406_v22 = vpack.i.bf16 %v19404_v2, %v19405_v36  ;;  %v10939_v15 = vld [vmem:[#allocation4 + $0x143] sm:$0xff]  ;;  %v10940_v24 = vld [vmem:[#allocation4 + $0x13b] sm:$0xff] }
 0x525   : > { %10705 = vrot.lane.b32.xlu1 %v19399_v25, %s11051_s22  ;;  %v19407_v11 = vunpack.i.h.bf16 %v19401_v16  ;;  %v5522_v12 = vsel %vm5274_vm15, %v5490_v0, %v10197_v4  ;;  %v5523_v28 = vsel %vm5274_vm15, %v5491_v3, %v10198_v29  ;;  %v9963_v47 = vunpack.i.h.bf16 %v19409_v20  ;;  %v19410_v32 = vld [vmem:[#allocation27_spill] sm:$0xff]  ;;  %v19411_v29 = vld [vmem:[#allocation309_spill] sm:$0xff]  ;;  %v19412_v0 = vld [vmem:[#allocation308_spill] sm:$0xff] }
 0x526   : > { %v5328_v63 = vsel %vm5307_vm0, %v19403_v33, %v19402_v42  ;;  %10710 = vrot.lane.b32.xlu0 %v19406_v22, %s11052_s14  ;;  %v9962_v8 = vunpack.i.l.bf16 %v19409_v20  ;;  %v5554_v30 = vsel %vm5307_vm0, %v5522_v12, %v10277_v45  ;;  %v5555_v26 = vsel %vm5307_vm0, %v5523_v28, %v10278_v10  ;;  %v16519_v42 = vpop.permute.xlu0 %10430  ;;  %v19414_v10 = vld [vmem:[#allocation189_spill] sm:$0xff]  ;;  %v19415_v36 = vld [vmem:[#allocation80_spill] sm:$0xff] }
 0x527   : > { %v5329_v48 = vsel %vm5307_vm0, %v19408_v39, %v19407_v11  ;;  %v5365_v53 = vsel %vm420_vm2, %v10939_v15, %v9803_v23  ;;  %v5364_v25 = vsel %vm420_vm2, %v10940_v24, %v9802_v13  ;;  %v10043_v16 = vunpack.i.h.bf16 %v19410_v32  ;;  %v16527_v39 = vpop.permute.xlu1 %10435  ;;  %v19416_v12 = vld [vmem:[#allocation312_spill] sm:$0xff] }
 0x528   : > { %v10042_v4 = vunpack.i.l.bf16 %v19410_v32  ;;  %v19413_v3 = vpack.i.bf16 %v19411_v29, %v19412_v0  ;;  %v5396_v45 = vsel %vm2090_vm10, %v5364_v25, %v9882_v60  ;;  %v10123_v33 = vunpack.i.h.bf16 %v19414_v10  ;;  %v19417_v28 = vld [vmem:[#allocation316_spill] sm:$0xff]  ;;  %v19420_v0 = vld [vmem:[#allocation281_spill] sm:$0xff] }
 0x529   : > { %v10122_v23 = vunpack.i.l.bf16 %v19414_v10  ;;  %v6724_v2 = vpack.c.bf16 %v5329_v48, %v5328_v63  ;;  %v5397_v13 = vsel %vm2090_vm10, %v5365_v53, %v9883_v7  ;;  %v10203_v22 = vunpack.i.h.bf16 %v19415_v36  ;;  %v19419_v48 = vld [vmem:[#allocation139_spill] sm:$0xff]  ;;  %v19425_v10 = vld [vmem:[#allocation121_spill] sm:$0xff] }
 0x52a   : > { %10715 = vrot.lane.b32.xlu1 %v19413_v3, %s11053_s15  ;;  %v10202_v11 = vunpack.i.l.bf16 %v19415_v36  ;;  %v19418_v20 = vpack.i.bf16 %v19416_v12, %v19417_v28  ;;  %v6729_v15 = vpack.c.bf16 %v5555_v26, %v5554_v30  ;;  %v5428_v60 = vsel %vm5175_vm12, %v5396_v45, %v9962_v8  ;;  %v19421_v30 = vld [vmem:[#allocation280_spill] sm:$0xff]  ;;  %v16545_v8 = vpop.permute.xlu0 %10440  ;;  %v19429_v12 = vld [vmem:[#allocation313_spill] sm:$0xff] }
 0x52b   : > { %v5429_v24 = vsel %vm5175_vm12, %v5397_v13, %v9963_v47  ;;  %v10283_v63 = vunpack.i.h.bf16 %v16072_v61  ;;  %v10282_v7 = vunpack.i.l.bf16 %v16072_v61  ;;  %7109 = vmatmul.mubr.bf16.gmra.mxu1 %v6724_v2  ;;  %v9808_v53 = vunpack.i.h.bf16 %v19419_v48  ;;  %19423 = vst [vmem:[#allocation209_spill] sm:$0xff] %v16545_v8  ;;  %v19424_v47 = vld [vmem:[#allocation155_spill] sm:$0xff]  ;;  %v19427_v13 = vld [vmem:[#allocation197_spill] sm:$0xff]  ;;  %v16555_v36 = vpop.permute.xlu1 %10445 }
 0x52c   : > { %10720 = vrot.lane.b32.xlu0 %v19418_v20, %s11050_s20  ;;  %v9807_v25 = vunpack.i.l.bf16 %v19419_v48  ;;  %v5460_v32 = vsel %vm5208_vm13, %v5428_v60, %v10042_v4  ;;  %v5461_v29 = vsel %vm5208_vm13, %v5429_v24, %v10043_v16  ;;  %v19422_v26 = vpack.i.bf16 %v19420_v0, %v19421_v30  ;;  %7116 = vmatprep.mubr.bf16.mxu1 %v6729_v15  ;;  %v19430_v28 = vld [vmem:[#allocation317_spill] sm:$0xff]  ;;  %v19433_v60 = vld [vmem:[#allocation78_spill] sm:$0xff]  ;;  %v19434_v48 = vld [vmem:[#allocation255_spill] sm:$0xff] }
 0x52d   : > { %v9887_v3 = vunpack.i.l.bf16 %v19424_v47  ;;  %v5492_v61 = vsel %vm5241_vm14, %v5460_v32, %v10122_v23  ;;  %v5493_v45 = vsel %vm5241_vm14, %v5461_v29, %v10123_v33  ;;  %v19426_v2 = vunpack.i.l.bf16 %v19425_v10  ;;  %19428 = vst [vmem:[#allocation206_spill] sm:$0xff] %v16555_v36 }
 0x52e   : > { %10725 = vrot.lane.b32.xlu1 %v19422_v26, %s11051_s22  ;;  %v9888_v16 = vunpack.i.h.bf16 %v19424_v47  ;;  %v19431_v20 = vpack.i.bf16 %v19429_v12, %v19430_v28  ;;  %v19432_v15 = vunpack.i.h.bf16 %v19425_v10  ;;  %v5524_v33 = vsel %vm5274_vm15, %v5492_v61, %v10202_v11  ;;  %v10941_v26 = vld [vmem:[#allocation4 + $0x15b] sm:$0xff]  ;;  %v19437_v61 = vld [vmem:[#allocation314_spill] sm:$0xff]  ;;  %v16579_v28 = vpop.permute.xlu0 %10450 }
 0x52f   : > { %v5330_v4 = vsel %vm5307_vm0, %v19427_v13, %v19426_v2  ;;  %v5525_v24 = vsel %vm5274_vm15, %v5493_v45, %v10203_v22  ;;  %v9968_v32 = vunpack.i.h.bf16 %v19434_v48  ;;  %v9967_v29 = vunpack.i.l.bf16 %v19434_v48  ;;  %v10942_v2 = vld [vmem:[#allocation4 + $0x153] sm:$0xff]  ;;  %19439 = vst [vmem:[#allocation201_spill] sm:$0xff] %v16579_v28  ;;  %v16587_v48 = vpop.permute.xlu1 %10455 }
 0x530   : > { %10730 = vrot.lane.b32.xlu0 %v19431_v20, %s11052_s14  ;;  %v5331_v23 = vsel %vm5307_vm0, %v19433_v60, %v19432_v15  ;;  %v5556_v0 = vsel %vm5307_vm0, %v5524_v33, %v10282_v7  ;;  %v5557_v30 = vsel %vm5307_vm0, %v5525_v24, %v10283_v63  ;;  %v5367_v47 = vsel %vm420_vm2, %v10941_v26, %v9808_v53  ;;  %v19435_v13 = vld [vmem:[#allocation187_spill] sm:$0xff]  ;;  %v19436_v22 = vld [vmem:[#allocation318_spill] sm:$0xff]  ;;  %v19441_v60 = vld [vmem:[#allocation81_spill] sm:$0xff] }
 0x531   : > { %v5366_v10 = vsel %vm420_vm2, %v10942_v2, %v9807_v25  ;;  %v10048_v12 = vunpack.i.h.bf16 %v19435_v13  ;;  %v10047_v11 = vunpack.i.l.bf16 %v19435_v13  ;;  %v19438_v45 = vpack.i.bf16 %v19436_v22, %v19437_v61  ;;  %v19440_v63 = vld [vmem:[#allocation194_spill] sm:$0xff]  ;;  %19442 = vst [vmem:[#allocation200_spill] sm:$0xff] %v16587_v48  ;;  %v19443_v26 = vld [vmem:[#allocation319_spill] sm:$0xff] }
 0x532   : > { %v5398_v7 = vsel %vm2090_vm10, %v5366_v10, %v9887_v3  ;;  %v10128_v20 = vunpack.i.h.bf16 %v19440_v63  ;;  %v10127_v53 = vunpack.i.l.bf16 %v19440_v63  ;;  %v6728_v15 = vpack.c.bf16 %v5331_v23, %v5330_v4  ;;  %v19444_v2 = vld [vmem:[#allocation327_spill] sm:$0xff]  ;;  %v19446_v23 = vld [vmem:[#allocation140_spill] sm:$0xff] }
 0x533   : > { %10735 = vrot.lane.b32.xlu1 %v19438_v45, %s11053_s15  ;;  %v5399_v25 = vsel %vm2090_vm10, %v5367_v47, %v9888_v16  ;;  %v10208_v33 = vunpack.i.h.bf16 %v19441_v60  ;;  %v10207_v24 = vunpack.i.l.bf16 %v19441_v60  ;;  %v19445_v13 = vpack.i.bf16 %v19443_v26, %v19444_v2  ;;  %v19447_v60 = vld [vmem:[#allocation283_spill] sm:$0xff] }
 0x534   : > { %v6733_v22 = vpack.c.bf16 %v5557_v30, %v5556_v0  ;;  %v5430_v3 = vsel %vm5175_vm12, %v5398_v7, %v9967_v29  ;;  %v5431_v10 = vsel %vm5175_vm12, %v5399_v25, %v9968_v32  ;;  %v10288_v4 = vunpack.i.h.bf16 %v16083_v51  ;;  %7117 = vmatmul.mubr.bf16.gmra.mxu1 %v6728_v15  ;;  %v19448_v0 = vld [vmem:[#allocation282_spill] sm:$0xff]  ;;  %v16605_v29 = vpop.permute.xlu0 %10460  ;;  %v19450_v32 = vld [vmem:[#allocation160_spill] sm:$0xff]  ;;  %v19453_v2 = vld [vmem:[#allocation79_spill] sm:$0xff] }
 0x535   : > { %10740 = vrot.lane.b32.xlu0 %v19445_v13, %s11050_s20  ;;  %v10287_v16 = vunpack.i.l.bf16 %v16083_v51  ;;  %v9813_v47 = vunpack.i.h.bf16 %v19446_v23  ;;  %v9812_v61 = vunpack.i.l.bf16 %v19446_v23  ;;  %v5462_v45 = vsel %vm5208_vm13, %v5430_v3, %v10047_v11  ;;  %v19451_v25 = vld [vmem:[#allocation122_spill] sm:$0xff]  ;;  %v16615_v13 = vpop.permute.xlu1 %10465  ;;  %v19454_v3 = vld [vmem:[#allocation320_spill] sm:$0xff]  ;;  %v19493_v28 = vld [vmem:[#allocation331_spill] sm:$0xff] }
 0x536   : > { %v5463_v63 = vsel %vm5208_vm13, %v5431_v10, %v10048_v12  ;;  %v19449_v30 = vpack.i.bf16 %v19447_v60, %v19448_v0  ;;  %7124 = vmatprep.mubr.bf16.mxu1 %v6733_v22  ;;  %v9892_v7 = vunpack.i.l.bf16 %v19450_v32  ;;  %v5494_v51 = vsel %vm5241_vm14, %v5462_v45, %v10127_v53  ;;  %v19455_v10 = vld [vmem:[#allocation328_spill] sm:$0xff]  ;;  %v19458_v60 = vld [vmem:[#allocation198_spill] sm:$0xff] }
 0x537   : > { %v5495_v15 = vsel %vm5241_vm14, %v5463_v63, %v10128_v20  ;;  %v19452_v26 = vunpack.i.l.bf16 %v19451_v25  ;;  %v9893_v12 = vunpack.i.h.bf16 %v19450_v32  ;;  %v19456_v23 = vpack.i.bf16 %v19454_v3, %v19455_v10  ;;  %v19459_v63 = vld [vmem:[#allocation11_spill] sm:$0xff]  ;;  %v10944_v10 = vld [vmem:[#allocation4 + $0x16b] sm:$0xff] }
 0x538   : > { %10745 = vrot.lane.b32.xlu1 %v19449_v30, %s11051_s22  ;;  %v19457_v22 = vunpack.i.h.bf16 %v19451_v25  ;;  %v5526_v20 = vsel %vm5274_vm15, %v5494_v51, %v10207_v24  ;;  %v5527_v45 = vsel %vm5274_vm15, %v5495_v15, %v10208_v33  ;;  %v9973_v0 = vunpack.i.h.bf16 %v19459_v63  ;;  %v19461_v33 = vld [vmem:[#allocation321_spill] sm:$0xff]  ;;  %v19462_v51 = vld [vmem:[#allocation30_spill] sm:$0xff] }
 0x539   : > { %v5332_v11 = vsel %vm5307_vm0, %v19453_v2, %v19452_v26  ;;  %10750 = vrot.lane.b32.xlu0 %v19456_v23, %s11052_s14  ;;  %v9972_v30 = vunpack.i.l.bf16 %v19459_v63  ;;  %v5558_v32 = vsel %vm5307_vm0, %v5526_v20, %v10287_v16  ;;  %v5559_v26 = vsel %vm5307_vm0, %v5527_v45, %v10288_v4  ;;  %v10943_v2 = vld [vmem:[#allocation4 + $0x173] sm:$0xff]  ;;  %v19460_v23 = vld [vmem:[#allocation188_spill] sm:$0xff] }
 0x53a   : > { %v5333_v53 = vsel %vm5307_vm0, %v19458_v60, %v19457_v22  ;;  %v5369_v3 = vsel %vm420_vm2, %v10943_v2, %v9813_v47  ;;  %v5368_v25 = vsel %vm420_vm2, %v10944_v10, %v9812_v61  ;;  %v10053_v22 = vunpack.i.h.bf16 %v19460_v23  ;;  %v16639_v60 = vpop.permute.xlu0 %10470  ;;  %v19464_v4 = vld [vmem:[#allocation196_spill] sm:$0xff]  ;;  %v19465_v63 = vld [vmem:[#allocation82_spill] sm:$0xff] }
 0x53b   : > { %v10052_v24 = vunpack.i.l.bf16 %v19460_v23  ;;  %v19463_v15 = vpack.i.bf16 %v19461_v33, %v19462_v51  ;;  %v5400_v16 = vsel %vm2090_vm10, %v5368_v25, %v9892_v7  ;;  %v10133_v20 = vunpack.i.h.bf16 %v19464_v4  ;;  %v16647_v23 = vpop.permute.xlu1 %10475  ;;  %v19466_v33 = vld [vmem:[#allocation322_spill] sm:$0xff]  ;;  %v19467_v51 = vld [vmem:[#allocation329_spill] sm:$0xff] }
 0x53c   : > { %v10132_v47 = vunpack.i.l.bf16 %v19464_v4  ;;  %v6732_v45 = vpack.c.bf16 %v5333_v53, %v5332_v11  ;;  %v5401_v61 = vsel %vm2090_vm10, %v5369_v3, %v9893_v12  ;;  %v10213_v2 = vunpack.i.h.bf16 %v19465_v63  ;;  %v19469_v53 = vld [vmem:[#allocation141_spill] sm:$0xff] }
 0x53d   : > { %10755 = vrot.lane.b32.xlu1 %v19463_v15, %s11053_s15  ;;  %v10212_v10 = vunpack.i.l.bf16 %v19465_v63  ;;  %v19468_v15 = vpack.i.bf16 %v19466_v33, %v19467_v51  ;;  %v6737_v48 = vpack.c.bf16 %v5559_v26, %v5558_v32  ;;  %v5432_v7 = vsel %vm5175_vm12, %v5400_v16, %v9972_v30  ;;  %v19470_v33 = vld [vmem:[#allocation285_spill] sm:$0xff]  ;;  %v19471_v32 = vld [vmem:[#allocation179_spill] sm:$0xff] }
 0x53e   : > { %v5433_v25 = vsel %vm5175_vm12, %v5401_v61, %v9973_v0  ;;  %v10293_v11 = vunpack.i.h.bf16 %v16104_v49  ;;  %v10292_v12 = vunpack.i.l.bf16 %v16104_v49  ;;  %7125 = vmatmul.mubr.bf16.gmra.mxu1 %v6732_v45  ;;  %v9818_v3 = vunpack.i.h.bf16 %v19469_v53  ;;  %v16665_v30 = vpop.permute.xlu0 %10480  ;;  %v19473_v0 = vld [vmem:[#allocation161_spill] sm:$0xff]  ;;  %v19474_v61 = vld [vmem:[#allocation123_spill] sm:$0xff] }
 0x53f   : > { %10760 = vrot.lane.b32.xlu0 %v19468_v15, %s11050_s20  ;;  %v9817_v4 = vunpack.i.l.bf16 %v19469_v53  ;;  %v5464_v63 = vsel %vm5208_vm13, %v5432_v7, %v10052_v24  ;;  %v5465_v52 = vsel %vm5208_vm13, %v5433_v25, %v10053_v22  ;;  %v19472_v26 = vpack.i.bf16 %v19470_v33, %v19471_v32  ;;  %7132 = vmatprep.mubr.bf16.mxu1 %v6737_v48  ;;  %v16675_v15 = vpop.permute.xlu1 %10485  ;;  %v19476_v7 = vld [vmem:[#allocation324_spill] sm:$0xff]  ;;  %v19477_v25 = vld [vmem:[#allocation330_spill] sm:$0xff] }
 0x540   : > { %v9897_v16 = vunpack.i.l.bf16 %v19473_v0  ;;  %v5496_v49 = vsel %vm5241_vm14, %v5464_v63, %v10132_v47  ;;  %v5497_v45 = vsel %vm5241_vm14, %v5465_v52, %v10133_v20  ;;  %v19475_v51 = vunpack.i.l.bf16 %v19474_v61  ;;  %v19480_v63 = vld [vmem:[#allocation13_spill] sm:$0xff] }
 0x541   : > { %10765 = vrot.lane.b32.xlu1 %v19472_v26, %s11051_s22  ;;  %v9898_v22 = vunpack.i.h.bf16 %v19473_v0  ;;  %v19478_v53 = vpack.i.bf16 %v19476_v7, %v19477_v25  ;;  %v19479_v48 = vunpack.i.h.bf16 %v19474_v61  ;;  %v5528_v52 = vsel %vm5274_vm15, %v5496_v49, %v10212_v10  ;;  %v10945_v0 = vld [vmem:[#allocation4 + $0x18b] sm:$0xff]  ;;  %v10946_v7 = vld [vmem:[#allocation4 + $0x183] sm:$0xff] }
 0x542   : > { %v5334_v24 = vsel %vm5307_vm0, %v16019_v9, %v19475_v51  ;;  %v5529_v20 = vsel %vm5274_vm15, %v5497_v45, %v10213_v2  ;;  %v9978_v9 = vunpack.i.h.bf16 %v19480_v63  ;;  %v9977_v33 = vunpack.i.l.bf16 %v19480_v63  ;;  %v19481_v25 = vld [vmem:[#allocation61_spill] sm:$0xff]  ;;  %v19482_v2 = vld [vmem:[#allocation326_spill] sm:$0xff] }
 0x543   : > { %10770 = vrot.lane.b32.xlu0 %v19478_v53, %s11052_s14  ;;  %v5335_v47 = vsel %vm5307_vm0, %v16093_v1, %v19479_v48  ;;  %v5560_v32 = vsel %vm5307_vm0, %v5528_v52, %v10292_v12  ;;  %v5561_v26 = vsel %vm5307_vm0, %v5529_v20, %v10293_v11  ;;  %v5371_v51 = vsel %vm420_vm2, %v10945_v0, %v9818_v3  ;;  %v19483_v49 = vld [vmem:[#allocation325_spill] sm:$0xff]  ;;  %v16699_v53 = vpop.permute.xlu0 %10490  ;;  %v19485_v11 = vld [vmem:[#allocation71_spill] sm:$0xff] }
 0x544   : > { %v5370_v61 = vsel %vm420_vm2, %v10946_v7, %v9817_v4  ;;  %v10058_v1 = vunpack.i.h.bf16 %v19481_v25  ;;  %v10057_v10 = vunpack.i.l.bf16 %v19481_v25  ;;  %v19484_v45 = vpack.i.bf16 %v19482_v2, %v19483_v49  ;;  %v19486_v20 = vld [vmem:[#allocation83_spill] sm:$0xff]  ;;  %v16707_v7 = vpop.permute.xlu1 %10495  ;;  %v19488_v2 = vld [vmem:[#allocation28_spill] sm:$0xff] }
 0x545   : > { %v5402_v12 = vsel %vm2090_vm10, %v5370_v61, %v9897_v16  ;;  %v10138_v48 = vunpack.i.h.bf16 %v19485_v11  ;;  %v10137_v3 = vunpack.i.l.bf16 %v19485_v11  ;;  %v6736_v52 = vpack.c.bf16 %v5335_v47, %v5334_v24  ;;  %v19487_v25 = vld [vmem:[#allocation31_spill] sm:$0xff]  ;;  %v19490_v47 = vld [vmem:[#allocation25_spill] sm:$0xff]  ;;  %v19491_v11 = vld [vmem:[#allocation92_spill] sm:$0xff] }
 0x546   : > { %10775 = vrot.lane.b32.xlu1 %v19484_v45, %s11053_s15  ;;  %v5403_v4 = vsel %vm2090_vm10, %v5371_v51, %v9898_v22  ;;  %v10218_v63 = vunpack.i.h.bf16 %v19486_v20  ;;  %v10217_v0 = vunpack.i.l.bf16 %v19486_v20  ;;  %v19489_v49 = vpack.i.bf16 %v19487_v25, %v19488_v2  ;;  %v19497_v2 = vld [vmem:[#allocation108_spill] sm:$0xff] }
 0x547   : > { %v6741_v45 = vpack.c.bf16 %v5561_v26, %v5560_v32  ;;  %v5434_v16 = vsel %vm5175_vm12, %v5402_v12, %v9977_v33  ;;  %v5435_v61 = vsel %vm5175_vm12, %v5403_v4, %v9978_v9  ;;  %v10298_v24 = vunpack.i.h.bf16 %v16113_v37  ;;  %7133 = vmatmul.mubr.bf16.gmra.mxu1 %v6736_v52  ;;  %v19494_v33 = vld [vmem:[#allocation286_spill] sm:$0xff]  ;;  %v19495_v26 = vld [vmem:[#allocation287_spill] sm:$0xff]  ;;  %v16728_v12 = vpop.permute.xlu0 %10500  ;;  %v3186_v4 = vld [vmem:[#allocation4 + $0x1a0] sm:$0xff] }
 0x548   : > { %10780 = vrot.lane.b32.xlu0 %v19489_v49, %s11050_s20  ;;  %v10297_v22 = vunpack.i.l.bf16 %v16113_v37  ;;  %v9337_v51 = vunpack.i.l.bf16 %v19490_v47  ;;  %v19492_v20 = vunpack.i.l.bf16 %v19491_v11  ;;  %v5466_v25 = vsel %vm5208_vm13, %v5434_v16, %v10057_v10  ;;  %v19501_v11 = vld [vmem:[#allocation183_spill] sm:$0xff] }
 0x549   : > { %v5467_v32 = vsel %vm5208_vm13, %v5435_v61, %v10058_v1  ;;  %v19496_v9 = vpack.i.bf16 %v19494_v33, %v19495_v26  ;;  %7140 = vmatprep.mubr.bf16.mxu1 %v6741_v45  ;;  %v5498_v37 = vsel %vm5241_vm14, %v5466_v25, %v10137_v3  ;;  %v19498_v49 = vunpack.i.l.bf16 %v19497_v2  ;;  %v19500_v1 = vld [vmem:[#allocation70_spill] sm:$0xff]  ;;  %v16739_v61 = vpop.permute.xlu1 %10505  ;;  %v19504_v3 = vld [vmem:[#allocation124_spill] sm:$0xff] }
 0x54a   : > { %v5270_v35 = vsel %vm5241_vm14, %v19493_v28, %v19492_v20  ;;  %v5499_v52 = vsel %vm5241_vm14, %v5467_v32, %v10138_v48  ;;  %v19499_v10 = vunpack.i.h.bf16 %v19497_v2  ;;  %v19502_v20 = vld [vmem:[#allocation60_spill] sm:$0xff]  ;;  %v19505_v25 = vunpack.i.l.bf16 %v19504_v3 }
 0x54b   : > { %10785 = vrot.lane.b32.xlu1 %v19496_v9, %s11051_s22  ;;  %v5303_v28 = vsel %vm5274_vm15, %v5270_v35, %v19498_v49  ;;  %v19503_v45 = vpack.i.bf16 %v19501_v11, %v19502_v20  ;;  %v19506_v32 = vunpack.i.h.bf16 %v19504_v3  ;;  %v5530_v33 = vsel %vm5274_vm15, %v5498_v37, %v10217_v0  ;;  %v19507_v9 = vld [vmem:[#allocation29_spill] sm:$0xff]  ;;  %v19508_v20 = vld [vmem:[#allocation23_spill] sm:$0xff]  ;;  %v19513_v37 = vld [vmem:[#allocation186_spill] sm:$0xff] }
 0x54c   : > { %v5304_v16 = vsel %vm5274_vm15, %v19500_v1, %v19499_v10  ;;  %v5336_v48 = vsel %vm5307_vm0, %v5303_v28, %v19505_v25  ;;  %v5531_v26 = vsel %vm5274_vm15, %v5499_v52, %v10218_v63  ;;  %v9343_v2 = vunpack.i.h.bf16 %v19507_v9  ;;  %v3185_v10 = vld [vmem:[#allocation4 + $0x198] sm:$0xff]  ;;  %v19510_v28 = vld [vmem:[#allocation296_spill] sm:$0xff]  ;;  %v19511_v25 = vld [vmem:[#allocation93_spill] sm:$0xff] }
 0x54d   : > { %10790 = vrot.lane.b32.xlu0 %v19503_v45, %s11052_s14  ;;  %v5337_v35 = vsel %vm5307_vm0, %v5304_v16, %v19506_v32  ;;  %v9342_v49 = vunpack.i.l.bf16 %v19507_v9  ;;  %v5562_v1 = vsel %vm5307_vm0, %v5530_v33, %v10297_v22  ;;  %v5563_v11 = vsel %vm5307_vm0, %v5531_v26, %v10298_v24  ;;  %v19512_v63 = vld [vmem:[#allocation14_spill] sm:$0xff]  ;;  %v16767_v32 = vpop.permute.xlu0 %10510  ;;  %v19516_v33 = vld [vmem:[#allocation109_spill] sm:$0xff] }
 0x54e   : > { %v19509_v45 = vunpack.i.h.bf16 %v19508_v20  ;;  %v9578_v16 = vunpack.i.h.bf16 %v19511_v25  ;;  %v9577_v0 = vunpack.i.l.bf16 %v19511_v25  ;;  %v19514_v52 = vpack.i.bf16 %v19512_v63, %v19513_v37  ;;  %v19515_v22 = vld [vmem:[#allocation310_spill] sm:$0xff]  ;;  %v16778_v37 = vpop.permute.xlu1 %10515 }
 0x54f   : > { %v10799_v9 = vpack.i.bf16 %v3186_v4, %v3185_v10  ;;  %v5206_v24 = vsel %vm5175_vm12, %v19515_v22, %v9337_v51  ;;  %v9658_v26 = vunpack.i.h.bf16 %v19516_v33  ;;  %v9657_v20 = vunpack.i.l.bf16 %v19516_v33  ;;  %v3249_v51 = vld [vmem:[#allocation4 + $0x19a] sm:$0xff]  ;;  %v19520_v33 = vld [vmem:[#allocation181_spill] sm:$0xff] }
 0x550   : > { %v5174_v3 = vsel %vm2090_vm10, %v19510_v28, %v19509_v45  ;;  %10795 = vrot.lane.b32.xlu1 %v19514_v52, %s11053_s15  ;;  %v6740_v45 = vpack.c.bf16 %v5337_v35, %v5336_v48  ;;  %v3250_v28 = vld [vmem:[#allocation4 + $0x1a2] sm:$0xff]  ;;  %v19517_v36 = vunpack.i.h.bf16 %v19490_v47  ;;  %v9738_v8 = vunpack.i.h.bf16 %v19518_v27  ;;  %v3187_v47 = vld [vmem:[#allocation4 + $0x1b0] sm:$0xff]  ;;  %v3188_v22 = vld [vmem:[#allocation4 + $0x1b8] sm:$0xff] }
 0x551   : > { %v9737_v63 = vunpack.i.l.bf16 %v19518_v27  ;;  %10800 = vrot.lane.b32.xlu0 %v10799_v9, %s11050_s20  ;;  %v6745_v4 = vpack.c.bf16 %v5563_v11, %v5562_v1  ;;  %v3281_v10 = vld [vmem:[#allocation4 + $0x19b] sm:$0xff]  ;;  %v5239_v52 = vsel %vm5208_vm13, %v5206_v24, %v9342_v49  ;;  %v3282_v35 = vld [vmem:[#allocation4 + $0x1a3] sm:$0xff]  ;;  %v16789_v1 = vpop.permute.xlu0 %10520  ;;  %v10809_v11 = vpack.i.bf16 %v3250_v28, %v3249_v51  ;;  %v3060_v9 = vld [vmem:[#allocation4 + $0x1b1] sm:$0xff] }
 0x552   : > { %v5207_v25 = vsel %vm5175_vm12, %v5174_v3, %v19517_v36  ;;  %7141 = vmatmul.mubr.bf16.gmra.mxu1 %v6740_v45  ;;  %v5272_v3 = vsel %vm5241_vm14, %v5239_v52, %v9577_v0  ;;  %v19519_v27 = vld [vmem:[#allocation291_spill] sm:$0xff]  ;;  %v16793_v24 = vpop.permute.xlu1 %10525  ;;  %v10819_v0 = vpack.i.bf16 %v3188_v22, %v3187_v47  ;;  %v10303_v28 = vunpack.i.h.bf16 %v16131_v17  ;;  %v3189_v22 = vld [vmem:[#allocation4 + $0x1c8] sm:$0xff] }
 0x553   : > { %v5240_v48 = vsel %vm5208_vm13, %v5207_v25, %v9343_v2  ;;  %v19521_v41 = vpack.i.bf16 %v19519_v27, %v19520_v33  ;;  %7148 = vmatprep.mubr.bf16.mxu1 %v6745_v4  ;;  %v5305_v49 = vsel %vm5274_vm15, %v5272_v3, %v9657_v20  ;;  %19522 = vst [vmem:[#allocation86_spill] sm:$0xff] %v16793_v24  ;;  %v3251_v52 = vld [vmem:[#allocation4 + $0x1b2] sm:$0xff]  ;;  %v10302_v20 = vunpack.i.l.bf16 %v16131_v17  ;;  %v3284_v47 = vld [vmem:[#allocation4 + $0x1bb] sm:$0xff] }
 0x554   : > { %v5273_v36 = vsel %vm5241_vm14, %v5240_v48, %v9578_v16  ;;  %v10814_v16 = vpack.i.bf16 %v3282_v35, %v3281_v10  ;;  %v5338_v45 = vsel %vm5307_vm0, %v5305_v49, %v9737_v63  ;;  %v3252_v48 = vld [vmem:[#allocation4 + $0x1ba] sm:$0xff]  ;;  %v16805_v10 = vld [vmem:[#allocation4 + $0x84] sm:$0xff]  ;;  %v10383_v63 = vunpack.i.h.bf16 %v16365_v59  ;;  %v3190_v3 = vld [vmem:[#allocation4 + $0x1d0] sm:$0xff] }
 0x555   : > { %10805 = vrot.lane.b32.xlu1 %v19521_v41, %s11051_s22  ;;  %v5306_v2 = vsel %vm5274_vm15, %v5273_v36, %v9658_v26  ;;  %10810 = vrot.lane.b32.xlu0 %v10809_v11, %s11052_s14  ;;  %v3061_v41 = vld [vmem:[#allocation4 + $0x1b9] sm:$0xff]  ;;  %v16801_v26 = vpop.permute.xlu0 %10530  ;;  %v10463_v17 = vunpack.i.h.bf16 %v16605_v29  ;;  %v10462_v27 = vunpack.i.l.bf16 %v16605_v29  ;;  %v10829_v11 = vpack.i.bf16 %v3252_v48, %v3251_v52  ;;  %v3030_v49 = vld [vmem:[#allocation4 + $0x49] sm:$0xff] }
 0x556   : > { %v5339_v25 = vsel %vm5307_vm0, %v5306_v2, %v9738_v8  ;;  %19523 = vst [vmem:[#allocation87_spill] sm:$0xff] %v16801_v26  ;;  %v10824_v4 = vpack.i.bf16 %v3061_v41, %v3060_v9  ;;  %v3283_v51 = vld [vmem:[#allocation4 + $0x1b3] sm:$0xff]  ;;  %v16803_v36 = vld [vmem:[#allocation4 + $0x7c] sm:$0xff]  ;;  %v10382_v8 = vunpack.i.l.bf16 %v16365_v59  ;;  %v16811_v33 = vpop.permute.xlu1 %10535  ;;  %v10839_v29 = vpack.i.bf16 %v3190_v3, %v3189_v22  ;;  %v3221_v41 = vld [vmem:[#allocation4 + $0x1c9] sm:$0xff] }
 0x557   : > { %v6744_v35 = vpack.c.bf16 %v5339_v25, %v5338_v45  ;;  %19524 = vst [vmem:[#allocation88_spill] sm:$0xff] %v16811_v33  ;;  %v3031_v2 = vld [vmem:[#allocation4 + $0x51] sm:$0xff]  ;;  %v10834_v25 = vpack.i.bf16 %v3284_v47, %v3283_v51  ;;  %v10308_v9 = vunpack.i.h.bf16 %v16141_v44  ;;  %v10388_v3 = vunpack.i.h.bf16 %v16375_v58 }
 0x558   : > { %v6461_v59 = vsel %vm420_vm2, %v3031_v2, %v10303_v28  ;;  %v3253_v26 = vld [vmem:[#allocation4 + $0x1ca] sm:$0xff]  ;;  %v3254_v24 = vld [vmem:[#allocation4 + $0x1d2] sm:$0xff]  ;;  %v10307_v28 = vunpack.i.l.bf16 %v16141_v44 }
 0x559   : > { %10815 = vrot.lane.b32.xlu1 %v10814_v16, %s11053_s15  ;;  %10820 = vrot.lane.b32.xlu0 %v10819_v0, %s11050_s20  ;;  %v6460_v16 = vsel %vm420_vm2, %v3030_v49, %v10302_v20  ;;  %v10541_v45 = vpop.permute.xlu0 %10540  ;;  %v6493_v0 = vsel %vm2090_vm10, %v6461_v59, %v10383_v63  ;;  %v10387_v49 = vunpack.i.l.bf16 %v16375_v58  ;;  %v10468_v58 = vunpack.i.h.bf16 %v16615_v13 }
 0x55a   : > { %7149 = vmatmul.mubr.bf16.gmra.mxu1 %v6744_v35  ;;  %v6492_v33 = vsel %vm2090_vm10, %v6460_v16, %v10382_v8  ;;  %v10543_v52 = vunpack.i.h.bf16 %v10541_v45  ;;  %v10542_v48 = vunpack.i.l.bf16 %v10541_v45  ;;  %v3222_v35 = vld [vmem:[#allocation4 + $0x1d1] sm:$0xff]  ;;  %v10546_v51 = vpop.permute.xlu1 %10545 }
 0x55b   : > { %v6524_v20 = vsel %vm5175_vm12, %v6492_v33, %v10462_v27  ;;  %v10548_v47 = vunpack.i.h.bf16 %v10546_v51  ;;  %v10547_v22 = vunpack.i.l.bf16 %v10546_v51  ;;  %v10844_v2 = vpack.i.bf16 %v3222_v35, %v3221_v41  ;;  %v3285_v16 = vld [vmem:[#allocation4 + $0x1cb] sm:$0xff]  ;;  %v3286_v45 = vld [vmem:[#allocation4 + $0x1d3] sm:$0xff] }
 0x55c   : > { %v6556_v8 = vsel %vm5208_vm13, %v6524_v20, %v10542_v48  ;;  %v10849_v27 = vpack.i.bf16 %v3254_v24, %v3253_v26  ;;  %v10948_v48 = vld [vmem:[#allocation4 + $0x61] sm:$0xff]  ;;  %v10313_v51 = vunpack.i.h.bf16 %v16163_v43 }
 0x55d   : > { %10825 = vrot.lane.b32.xlu1 %v10824_v4, %s11051_s22  ;;  %v6525_v4 = vsel %vm5175_vm12, %v6493_v0, %v10463_v17  ;;  %10830 = vrot.lane.b32.xlu0 %v10829_v11, %s11052_s14  ;;  %v10551_v44 = vpop.permute.xlu0 %10550  ;;  %v6588_v17 = vsel %vm5241_vm14, %v6556_v8, %v10547_v22  ;;  %v10947_v0 = vld [vmem:[#allocation4 + $0x69] sm:$0xff]  ;;  %v6462_v20 = vsel %vm420_vm2, %v10948_v48, %v10307_v28 }
 0x55e   : > { %v6557_v63 = vsel %vm5208_vm13, %v6525_v4, %v10543_v52  ;;  %v10553_v11 = vunpack.i.h.bf16 %v10551_v44  ;;  %v10552_v59 = vunpack.i.l.bf16 %v10551_v44  ;;  %v6463_v52 = vsel %vm420_vm2, %v10947_v0, %v10308_v9  ;;  %v10556_v41 = vpop.permute.xlu1 %10555 }
 0x55f   : > { %v6589_v33 = vsel %vm5241_vm14, %v6557_v63, %v10548_v47  ;;  %v10558_v35 = vunpack.i.h.bf16 %v10556_v41  ;;  %v10557_v4 = vunpack.i.l.bf16 %v10556_v41  ;;  %v6494_v9 = vsel %vm2090_vm10, %v6462_v20, %v10387_v49  ;;  %v3292_v41 = vld [vmem:[#allocation4 + $0x9c] sm:$0xff] }
 0x560   : > { %v6620_v24 = vsel %vm5274_vm15, %v6588_v17, %v10552_v59  ;;  %v6621_v26 = vsel %vm5274_vm15, %v6589_v33, %v10553_v11  ;;  %v6495_v8 = vsel %vm2090_vm10, %v6463_v52, %v10388_v3  ;;  %v10854_v63 = vpack.i.bf16 %v3286_v45, %v3285_v16 }
 0x561   : > { %10835 = vrot.lane.b32.xlu1 %v10834_v25, %s11053_s15  ;;  %v10467_v25 = vunpack.i.l.bf16 %v16615_v13  ;;  %10840 = vrot.lane.b32.xlu0 %v10839_v29, %s11050_s20  ;;  %v10561_v28 = vpop.permute.xlu0 %10560  ;;  %v6652_v13 = vsel %vm5307_vm0, %v6620_v24, %v10557_v4  ;;  %v6653_v29 = vsel %vm5307_vm0, %v6621_v26, %v10558_v35  ;;  %v10312_v44 = vunpack.i.l.bf16 %v16163_v43  ;;  %v10949_v24 = vld [vmem:[#allocation4 + $0x81] sm:$0xff]  ;;  %v10950_v26 = vld [vmem:[#allocation4 + $0x79] sm:$0xff]  ;;  %s10981_s20 = sshll.u32 %s11055_s18, 4  ;;  %s10982_s20 = int_to_ptr.vmem [resolvable:$false] %s10981_s20 }
 0x562   : > { %v10563_v47 = vunpack.i.h.bf16 %v10561_v28  ;;  %v10562_v22 = vunpack.i.l.bf16 %v10561_v28  ;;  %v6527_v33 = vsel %vm5175_vm12, %v6495_v8, %v10468_v58  ;;  %v6686_v11 = vpack.c.bf16 %v6653_v29, %v6652_v13  ;;  %v10566_v49 = vpop.permute.xlu1 %10565  ;;  %v19526_v28 = vld [vmem:[#allocation33_spill] sm:$0xff] }
 0x563   : > { %v6526_v17 = vsel %vm5175_vm12, %v6494_v9, %v10467_v25  ;;  %v10568_v59 = vunpack.i.h.bf16 %v10566_v49  ;;  %v10567_v16 = vunpack.i.l.bf16 %v10566_v49  ;;  %v10393_v45 = vunpack.i.h.bf16 %v16399_v40  ;;  %v3291_v25 = vld [vmem:[#allocation4 + $0x94] sm:$0xff] }
 0x564   : > { %v6559_v3 = vsel %vm5208_vm13, %v6527_v33, %v10563_v47  ;;  %v10392_v0 = vunpack.i.l.bf16 %v16399_v40  ;;  %7190 = vmatmul.mubr.bf16.vlgmr.msra.gmra.mxu0 %v6686_v11  ;;  %v19525_v58 = vpack.c.bf16 %v16805_v10, %v16803_v36  ;;  %v6465_v40 = vsel %vm420_vm2, %v10949_v24, %v10313_v51  ;;  %v19532_v24 = vld [vmem:[#allocation34_spill] sm:$0xff] }
 0x565   : > { %10845 = vrot.lane.b32.xlu1 %v10844_v2, %s11051_s22  ;;  %10850 = vrot.lane.b32.xlu0 %v10849_v27, %s11052_s14  ;;  %v6558_v2 = vsel %vm5208_vm13, %v6526_v17, %v10562_v22  ;;  %v10571_v43 = vpop.permute.xlu0 %10570  ;;  %v6591_v48 = vsel %vm5241_vm14, %v6559_v3, %v10568_v59  ;;  %v6464_v35 = vsel %vm420_vm2, %v10950_v26, %v10312_v44  ;;  %v10473_v4 = vunpack.i.h.bf16 %v16639_v60  ;;  %v19528_v44 = vld [vmem:[#allocation35_spill] sm:$0xff]  ;;  %s10983_s22 = scalar_lea.vmem %s10982_s20, 8192 }
 0x566   : > { %v6590_v52 = vsel %vm5241_vm14, %v6558_v2, %v10567_v16  ;;  %v10573_v20 = vunpack.i.h.bf16 %v10571_v43  ;;  %v10572_v27 = vunpack.i.l.bf16 %v10571_v43  ;;  %8282 = vmatprep.mubr.msk.bf16.mxu0 %vm420_vm2, %v19525_v58  ;;  %v10472_v9 = vunpack.i.l.bf16 %v16639_v60  ;;  %v10576_v8 = vpop.permute.xlu1 %10575 }
 0x567   : > { %v10578_v36 = vunpack.i.h.bf16 %v10576_v8  ;;  %v10577_v10 = vunpack.i.l.bf16 %v10576_v8  ;;  %v10318_v51 = vunpack.i.h.bf16 %v16171_v18  ;;  %v6496_v47 = vsel %vm2090_vm10, %v6464_v35, %v10392_v0 }
 0x568   : > { %v6622_v13 = vsel %vm5274_vm15, %v6590_v52, %v10572_v27  ;;  %v6623_v29 = vsel %vm5274_vm15, %v6591_v48, %v10573_v20  ;;  %v6497_v22 = vsel %vm2090_vm10, %v6465_v40, %v10393_v45  ;;  %v19529_v60 = vmax.f32 %v19528_v44, 0.0  ;;  %v19530_v45 = vld [vmem:[#allocation32_spill] sm:$0xff]  ;;  %v19534_v44 = vld [vmem:[#allocation37_spill] sm:$0xff] }
 0x569   : > { %10855 = vrot.lane.b32.xlu1 %v10854_v63, %s11053_s15  ;;  %v19527_v63 = vmax.f32 %v19526_v28, 0.0  ;;  %v10581_v17 = vpop.permute.xlu0 %10580  ;;  %v6695_v33 = vpack.c.bf16 %v3292_v41, %v3291_v25  ;;  %v6654_v3 = vsel %vm5307_vm0, %v6622_v13, %v10577_v10  ;;  %v6655_v2 = vsel %vm5307_vm0, %v6623_v29, %v10578_v36  ;;  %v3293_v28 = vld [vmem:[#allocation4 + $0xac] sm:$0xff]  ;;  %v10951_v36 = vld [vmem:[#allocation4 + $0x99] sm:$0xff] }
 0x56a   : > { %v10583_v11 = vunpack.i.h.bf16 %v10581_v17  ;;  %v10582_v49 = vunpack.i.l.bf16 %v10581_v17  ;;  %v10317_v59 = vunpack.i.l.bf16 %v16171_v18  ;;  %v6528_v16 = vsel %vm5175_vm12, %v6496_v47, %v10472_v9  ;;  %v10586_v43 = vpop.permute.xlu1 %10585 }
 0x56b   : > { %7704 = vrot.lane.b32.xlu0 %v19527_v63, %s11053_s15  ;;  %v6529_v0 = vsel %vm5175_vm12, %v6497_v22, %v10473_v4  ;;  %v19531_v52 = vmax.f32 %v19530_v45, 0.0  ;;  %v6690_v48 = vpack.c.bf16 %v6655_v2, %v6654_v3  ;;  %v10588_v58 = vunpack.i.h.bf16 %v10586_v43  ;;  %v3294_v63 = vld [vmem:[#allocation4 + $0xb4] sm:$0xff] }
 0x56c   : > { %v6560_v20 = vsel %vm5208_vm13, %v6528_v16, %v10582_v49  ;;  %v6561_v27 = vsel %vm5208_vm13, %v6529_v0, %v10583_v11  ;;  %v10587_v25 = vunpack.i.l.bf16 %v10586_v43  ;;  %v10398_v41 = vunpack.i.h.bf16 %v16407_v31 }
 0x56d   : > { %7706 = vrot.lane.b32.xlu1 %v19529_v60, %s11053_s15  ;;  %v10397_v18 = vunpack.i.l.bf16 %v16407_v31  ;;  %v19533_v40 = vmax.f32 %v19532_v24, 0.0  ;;  %v10591_v26 = vpop.permute.xlu0 %10590  ;;  %7198 = vmatmul.mubr.bf16.gmra.mxu0 %v6690_v48  ;;  %v6593_v4 = vsel %vm5241_vm14, %v6561_v27, %v10588_v58  ;;  %v6467_v10 = vsel %vm420_vm2, %v10951_v36, %v10318_v51  ;;  %v10952_v31 = vld [vmem:[#allocation4 + $0x91] sm:$0xff] }
 0x56e   : > { %v6592_v35 = vsel %vm5241_vm14, %v6560_v20, %v10587_v25  ;;  %v10593_v9 = vunpack.i.h.bf16 %v10591_v26  ;;  %v10592_v8 = vunpack.i.l.bf16 %v10591_v26  ;;  %8283 = vmatprep.mubr.msk.bf16.mxu0 %vm420_vm2, %v6695_v33  ;;  %v6466_v13 = vsel %vm420_vm2, %v10952_v31, %v10317_v59  ;;  %v10596_v22 = vpop.permute.xlu1 %10595  ;;  %v19536_v59 = vld [vmem:[#allocation39_spill] sm:$0xff] }
 0x56f   : > { %7708 = vrot.lane.b32.xlu0 %v19531_v52, %s11053_s15  ;;  %v10478_v29 = vunpack.i.h.bf16 %v16647_v23  ;;  %v10477_v47 = vunpack.i.l.bf16 %v16647_v23  ;;  %v19535_v60 = vmax.f32 %v19534_v44, 0.0  ;;  %v10598_v17 = vunpack.i.h.bf16 %v10596_v22 }
 0x570   : > { %v10597_v11 = vunpack.i.l.bf16 %v10596_v22  ;;  %v6624_v33 = vsel %vm5274_vm15, %v6592_v35, %v10592_v8  ;;  %v6625_v49 = vsel %vm5274_vm15, %v6593_v4, %v10593_v9  ;;  %v10323_v51 = vunpack.i.h.bf16 %v16189_v55  ;;  %v19540_v8 = vld [vmem:[#allocation38_spill] sm:$0xff] }
 0x571   : > { %7710 = vrot.lane.b32.xlu1 %v19533_v40, %s11053_s15  ;;  %v6498_v3 = vsel %vm2090_vm10, %v6466_v13, %v10397_v18  ;;  %v6499_v2 = vsel %vm2090_vm10, %v6467_v10, %v10398_v41  ;;  %v19537_v23 = vmax.f32 %v19536_v59, 0.0  ;;  %v10601_v16 = vpop.permute.xlu0 %10600  ;;  %v6699_v0 = vpack.c.bf16 %v3294_v63, %v3293_v28  ;;  %v19538_v41 = vld [vmem:[#allocation36_spill] sm:$0xff]  ;;  %v10953_v22 = vld [vmem:[#allocation4 + $0xb1] sm:$0xff] }
 0x572   : > { %v10603_v43 = vunpack.i.h.bf16 %v10601_v16  ;;  %v10602_v45 = vunpack.i.l.bf16 %v10601_v16  ;;  %v6656_v52 = vsel %vm5307_vm0, %v6624_v33, %v10597_v11  ;;  %v6657_v48 = vsel %vm5307_vm0, %v6625_v49, %v10598_v17  ;;  %v10606_v25 = vpop.permute.xlu1 %10605  ;;  %v19542_v49 = vld [vmem:[#allocation41_spill] sm:$0xff] }
 0x573   : > { %7712 = vrot.lane.b32.xlu0 %v19535_v60, %s11053_s15  ;;  %v10322_v20 = vunpack.i.l.bf16 %v16189_v55  ;;  %v6530_v27 = vsel %vm5175_vm12, %v6498_v3, %v10477_v47  ;;  %v6531_v58 = vsel %vm5175_vm12, %v6499_v2, %v10478_v29  ;;  %v19539_v18 = vmax.f32 %v19538_v41, 0.0  ;;  %v3295_v29 = vld [vmem:[#allocation4 + $0xc4] sm:$0xff]  ;;  %v3296_v47 = vld [vmem:[#allocation4 + $0xcc] sm:$0xff] }
 0x574   : > { %v6694_v24 = vpack.c.bf16 %v6657_v48, %v6656_v52  ;;  %v6563_v40 = vsel %vm5208_vm13, %v6531_v58, %v10603_v43  ;;  %v6562_v26 = vsel %vm5208_vm13, %v6530_v27, %v10602_v45  ;;  %v10608_v35 = vunpack.i.h.bf16 %v10606_v25  ;;  %v19544_v45 = vld [vmem:[#allocation44_spill] sm:$0xff] }
 0x575   : > { %7714 = vrot.lane.b32.xlu1 %v19537_v23, %s11053_s15  ;;  %v10607_v4 = vunpack.i.l.bf16 %v10606_v25  ;;  %v10403_v9 = vunpack.i.h.bf16 %v16425_v54  ;;  %v10402_v55 = vunpack.i.l.bf16 %v16425_v54  ;;  %v19541_v28 = vmax.f32 %v19540_v8, 0.0  ;;  %v10611_v63 = vpop.permute.xlu0 %10610  ;;  %v10954_v54 = vld [vmem:[#allocation4 + $0xa9] sm:$0xff] }
 0x576   : > { %7206 = vmatmul.mubr.bf16.gmra.mxu0 %v6694_v24  ;;  %v6595_v10 = vsel %vm5241_vm14, %v6563_v40, %v10608_v35  ;;  %v10613_v31 = vunpack.i.h.bf16 %v10611_v63  ;;  %v10612_v13 = vunpack.i.l.bf16 %v10611_v63  ;;  %v6469_v44 = vsel %vm420_vm2, %v10953_v22, %v10323_v51  ;;  %v10616_v33 = vpop.permute.xlu1 %10615 }
 0x577   : > { %7716 = vrot.lane.b32.xlu0 %v19539_v18, %s11053_s15  ;;  %v6594_v36 = vsel %vm5241_vm14, %v6562_v26, %v10607_v4  ;;  %8284 = vmatprep.mubr.msk.bf16.mxu0 %vm420_vm2, %v6699_v0  ;;  %v6468_v60 = vsel %vm420_vm2, %v10954_v54, %v10322_v20  ;;  %v10483_v17 = vunpack.i.h.bf16 %v16665_v30  ;;  %v10482_v11 = vunpack.i.l.bf16 %v16665_v30  ;;  %v19546_v26 = vld [vmem:[#allocation40_spill] sm:$0xff] }
 0x578   : > { %v19543_v3 = vmax.f32 %v19542_v49, 0.0  ;;  %v10618_v2 = vunpack.i.h.bf16 %v10616_v33  ;;  %v10617_v59 = vunpack.i.l.bf16 %v10616_v33  ;;  %v6626_v23 = vsel %vm5274_vm15, %v6594_v36, %v10612_v13  ;;  %v19548_v36 = vld [vmem:[#allocation42_spill] sm:$0xff]  ;;  %v3298_v54 = vld [vmem:[#allocation4 + $0xe4] sm:$0xff] }
 0x579   : > { %7718 = vrot.lane.b32.xlu1 %v19541_v28, %s11053_s15  ;;  %v6627_v16 = vsel %vm5274_vm15, %v6595_v10, %v10613_v31  ;;  %v10328_v51 = vunpack.i.h.bf16 %v16199_v38  ;;  %v6500_v0 = vsel %vm2090_vm10, %v6468_v60, %v10402_v55  ;;  %v6501_v43 = vsel %vm2090_vm10, %v6469_v44, %v10403_v9  ;;  %v10621_v52 = vpop.permute.xlu0 %10620  ;;  %v3297_v44 = vld [vmem:[#allocation4 + $0xdc] sm:$0xff]  ;;  %v10955_v60 = vld [vmem:[#allocation4 + $0xc9] sm:$0xff] }
 0x57a   : > { %v19545_v30 = vmax.f32 %v19544_v45, 0.0  ;;  %v6703_v48 = vpack.c.bf16 %v3296_v47, %v3295_v29  ;;  %v10623_v20 = vunpack.i.h.bf16 %v10621_v52  ;;  %v10622_v27 = vunpack.i.l.bf16 %v10621_v52  ;;  %v10626_v40 = vpop.permute.xlu1 %10625  ;;  %v19552_v52 = vld [vmem:[#allocation52_spill] sm:$0xff] }
 0x57b   : > { %7720 = vrot.lane.b32.xlu0 %v19543_v3, %s11053_s15  ;;  %v6658_v58 = vsel %vm5307_vm0, %v6626_v23, %v10617_v59  ;;  %v6659_v25 = vsel %vm5307_vm0, %v6627_v16, %v10618_v2  ;;  %v10327_v41 = vunpack.i.l.bf16 %v16199_v38  ;;  %v6532_v18 = vsel %vm5175_vm12, %v6500_v0, %v10482_v11  ;;  %v19550_v2 = vld [vmem:[#allocation48_spill] sm:$0xff] }
 0x57c   : > { %v6533_v24 = vsel %vm5175_vm12, %v6501_v43, %v10483_v17  ;;  %v19547_v35 = vmax.f32 %v19546_v26, 0.0  ;;  %v6698_v4 = vpack.c.bf16 %v6659_v25, %v6658_v58  ;;  %v6564_v9 = vsel %vm5208_vm13, %v6532_v18, %v10622_v27 }
 0x57d   : > { %7722 = vrot.lane.b32.xlu1 %v19545_v30, %s11053_s15  ;;  %v6565_v55 = vsel %vm5208_vm13, %v6533_v24, %v10623_v20  ;;  %v10628_v8 = vunpack.i.h.bf16 %v10626_v40  ;;  %v10627_v28 = vunpack.i.l.bf16 %v10626_v40  ;;  %v10408_v63 = vunpack.i.h.bf16 %v16435_v50  ;;  %v10631_v31 = vpop.permute.xlu0 %10630 }
 0x57e   : > { %v10407_v38 = vunpack.i.l.bf16 %v16435_v50  ;;  %v19549_v10 = vmax.f32 %v19548_v36, 0.0  ;;  %7214 = vmatmul.mubr.bf16.gmra.mxu0 %v6698_v4  ;;  %v10633_v47 = vunpack.i.h.bf16 %v10631_v31  ;;  %v10632_v22 = vunpack.i.l.bf16 %v10631_v31  ;;  %v10956_v50 = vld [vmem:[#allocation4 + $0xc1] sm:$0xff]  ;;  %v10636_v3 = vpop.permute.xlu1 %10635  ;;  %v19556_v36 = vld [vmem:[#allocation50_spill] sm:$0xff] }
 0x57f   : > { %7724 = vrot.lane.b32.xlu0 %v19547_v35, %s11053_s15  ;;  %v6596_v13 = vsel %vm5241_vm14, %v6564_v9, %v10627_v28  ;;  %v6597_v29 = vsel %vm5241_vm14, %v6565_v55, %v10628_v8  ;;  %8285 = vmatprep.mubr.msk.bf16.mxu0 %vm420_vm2, %v6703_v48  ;;  %v6471_v17 = vsel %vm420_vm2, %v10955_v60, %v10328_v51  ;;  %v10488_v33 = vunpack.i.h.bf16 %v16675_v15  ;;  %v19554_v35 = vld [vmem:[#allocation46_spill] sm:$0xff]  ;;  %v10957_v60 = vld [vmem:[#allocation4 + $0xe1] sm:$0xff] }
 0x580   : > { %v6470_v11 = vsel %vm420_vm2, %v10956_v50, %v10327_v41  ;;  %v10487_v49 = vunpack.i.l.bf16 %v16675_v15  ;;  %v19551_v59 = vmax.f32 %v19550_v2, 0.0  ;;  %v10638_v23 = vunpack.i.h.bf16 %v10636_v3 }
 0x581   : > { %7726 = vrot.lane.b32.xlu1 %v19549_v10, %s11053_s15  ;;  %v10637_v16 = vunpack.i.l.bf16 %v10636_v3  ;;  %v6628_v0 = vsel %vm5274_vm15, %v6596_v13, %v10632_v22  ;;  %v6629_v43 = vsel %vm5274_vm15, %v6597_v29, %v10633_v47  ;;  %v10333_v51 = vunpack.i.h.bf16 %v16221_v62  ;;  %v10641_v48 = vpop.permute.xlu0 %10640  ;;  %v19558_v3 = vld [vmem:[#allocation56_spill] sm:$0xff] }
 0x582   : > { %v6502_v45 = vsel %vm2090_vm10, %v6470_v11, %v10407_v38  ;;  %v6503_v30 = vsel %vm2090_vm10, %v6471_v17, %v10408_v63  ;;  %v19553_v15 = vmax.f32 %v19552_v52, 0.0  ;;  %v6707_v20 = vpack.c.bf16 %v3298_v54, %v3297_v44  ;;  %v10646_v26 = vpop.permute.xlu1 %10645  ;;  %v3299_v44 = vld [vmem:[#allocation4 + $0xf4] sm:$0xff]  ;;  %v3300_v54 = vld [vmem:[#allocation4 + $0xfc] sm:$0xff] }
 0x583   : > { %7728 = vrot.lane.b32.xlu0 %v19551_v59, %s11053_s15  ;;  %v10643_v27 = vunpack.i.h.bf16 %v10641_v48  ;;  %v10642_v58 = vunpack.i.l.bf16 %v10641_v48  ;;  %v6660_v25 = vsel %vm5307_vm0, %v6628_v0, %v10637_v16  ;;  %v6661_v41 = vsel %vm5307_vm0, %v6629_v43, %v10638_v23 }
 0x584   : > { %v10332_v18 = vunpack.i.l.bf16 %v16221_v62  ;;  %v6534_v24 = vsel %vm5175_vm12, %v6502_v45, %v10487_v49  ;;  %v6535_v40 = vsel %vm5175_vm12, %v6503_v30, %v10488_v33  ;;  %v19555_v4 = vmax.f32 %v19554_v35, 0.0  ;;  %v19560_v30 = vld [vmem:[#allocation8_spill] sm:$0xff] }
 0x585   : > { %7730 = vrot.lane.b32.xlu1 %v19553_v15, %s11053_s15  ;;  %v6702_v9 = vpack.c.bf16 %v6661_v41, %v6660_v25  ;;  %v6567_v55 = vsel %vm5208_vm13, %v6535_v40, %v10643_v27  ;;  %v6566_v8 = vsel %vm5208_vm13, %v6534_v24, %v10642_v58  ;;  %v10648_v28 = vunpack.i.h.bf16 %v10646_v26  ;;  %v10651_v31 = vpop.permute.xlu0 %10650  ;;  %v19562_v40 = vld [vmem:[#allocation54_spill] sm:$0xff] }
 0x586   : > { %v10647_v63 = vunpack.i.l.bf16 %v10646_v26  ;;  %v10413_v38 = vunpack.i.h.bf16 %v16459_v21  ;;  %v10412_v62 = vunpack.i.l.bf16 %v16459_v21  ;;  %v19557_v10 = vmax.f32 %v19556_v36, 0.0  ;;  %v10958_v21 = vld [vmem:[#allocation4 + $0xd9] sm:$0xff]  ;;  %v10656_v49 = vpop.permute.xlu1 %10655 }
 0x587   : > { %7732 = vrot.lane.b32.xlu0 %v19555_v4, %s11053_s15  ;;  %7222 = vmatmul.mubr.bf16.gmra.mxu0 %v6702_v9  ;;  %v6599_v29 = vsel %vm5241_vm14, %v6567_v55, %v10648_v28  ;;  %v10653_v47 = vunpack.i.h.bf16 %v10651_v31  ;;  %v10652_v22 = vunpack.i.l.bf16 %v10651_v31  ;;  %v6473_v17 = vsel %vm420_vm2, %v10957_v60, %v10333_v51 }
 0x588   : > { %v6598_v13 = vsel %vm5241_vm14, %v6566_v8, %v10647_v63  ;;  %8286 = vmatprep.mubr.msk.bf16.mxu0 %vm420_vm2, %v6707_v20  ;;  %v6472_v50 = vsel %vm420_vm2, %v10958_v21, %v10332_v18  ;;  %v10493_v11 = vunpack.i.h.bf16 %v16699_v53  ;;  %v10492_v33 = vunpack.i.l.bf16 %v16699_v53  ;;  %v19564_v63 = vld [vmem:[#allocation58_spill] sm:$0xff] }
 0x589   : > { %7734 = vrot.lane.b32.xlu1 %v19557_v10, %s11053_s15  ;;  %v19559_v2 = vmax.f32 %v19558_v3, 0.0  ;;  %v10658_v59 = vunpack.i.h.bf16 %v10656_v49  ;;  %v10657_v23 = vunpack.i.l.bf16 %v10656_v49  ;;  %v6630_v16 = vsel %vm5274_vm15, %v6598_v13, %v10652_v22  ;;  %v10661_v52 = vpop.permute.xlu0 %10660  ;;  %v10959_v22 = vld [vmem:[#allocation4 + $0xf9] sm:$0xff] }
 0x58a   : > { %v6631_v0 = vsel %vm5274_vm15, %v6599_v29, %v10653_v47  ;;  %v10338_v43 = vunpack.i.h.bf16 %v16229_v46  ;;  %v6504_v51 = vsel %vm2090_vm10, %v6472_v50, %v10412_v62  ;;  %v6505_v45 = vsel %vm2090_vm10, %v6473_v17, %v10413_v38  ;;  %v10666_v24 = vpop.permute.xlu1 %10665  ;;  %v3301_v29 = vld [vmem:[#allocation4 + $0x10c] sm:$0xff]  ;;  %v3302_v47 = vld [vmem:[#allocation4 + $0x114] sm:$0xff] }
 0x58b   : > { %7736 = vrot.lane.b32.xlu0 %v19559_v2, %s11053_s15  ;;  %v19561_v53 = vmax.f32 %v19560_v30, 0.0  ;;  %v6711_v15 = vpack.c.bf16 %v3300_v54, %v3299_v44  ;;  %v10663_v48 = vunpack.i.h.bf16 %v10661_v52  ;;  %v10662_v20 = vunpack.i.l.bf16 %v10661_v52  ;;  %v19566_v50 = vld [vmem:[#allocation45_spill] sm:$0xff] }
 0x58c   : > { %v6662_v27 = vsel %vm5307_vm0, %v6630_v16, %v10657_v23  ;;  %v6663_v58 = vsel %vm5307_vm0, %v6631_v0, %v10658_v59  ;;  %v10337_v25 = vunpack.i.l.bf16 %v16229_v46  ;;  %v6536_v41 = vsel %vm5175_vm12, %v6504_v51, %v10492_v33  ;;  %v19568_v0 = vld [vmem:[#allocation49_spill] sm:$0xff] }
 0x58d   : > { %7738 = vrot.lane.b32.xlu1 %v19561_v53, %s11053_s15  ;;  %v6537_v18 = vsel %vm5175_vm12, %v6505_v45, %v10493_v11  ;;  %v19563_v26 = vmax.f32 %v19562_v40, 0.0  ;;  %v6706_v35 = vpack.c.bf16 %v6663_v58, %v6662_v27  ;;  %v6568_v4 = vsel %vm5208_vm13, %v6536_v41, %v10662_v20  ;;  %v10671_v62 = vpop.permute.xlu0 %10670  ;;  %v19570_v58 = vld [vmem:[#allocation43_spill] sm:$0xff] }
 0x58e   : > { %v6569_v9 = vsel %vm5208_vm13, %v6537_v18, %v10663_v48  ;;  %v10668_v55 = vunpack.i.h.bf16 %v10666_v24  ;;  %v10667_v8 = vunpack.i.l.bf16 %v10666_v24  ;;  %v10418_v28 = vunpack.i.h.bf16 %v16467_v6  ;;  %v10676_v21 = vpop.permute.xlu1 %10675 }
 0x58f   : > { %7740 = vrot.lane.b32.xlu0 %v19563_v26, %s11053_s15  ;;  %v10417_v46 = vunpack.i.l.bf16 %v16467_v6  ;;  %v19565_v38 = vmax.f32 %v19564_v63, 0.0  ;;  %7230 = vmatmul.mubr.bf16.gmra.mxu0 %v6706_v35  ;;  %v10673_v31 = vunpack.i.h.bf16 %v10671_v62  ;;  %v10672_v13 = vunpack.i.l.bf16 %v10671_v62  ;;  %v10960_v6 = vld [vmem:[#allocation4 + $0xf1] sm:$0xff] }
 0x590   : > { %v6600_v36 = vsel %vm5241_vm14, %v6568_v4, %v10667_v8  ;;  %v6601_v10 = vsel %vm5241_vm14, %v6569_v9, %v10668_v55  ;;  %8287 = vmatprep.mubr.msk.bf16.mxu0 %vm420_vm2, %v6711_v15  ;;  %v6475_v44 = vsel %vm420_vm2, %v10959_v22, %v10338_v43  ;;  %v6474_v54 = vsel %vm420_vm2, %v10960_v6, %v10337_v25  ;;  %v19572_v4 = vld [vmem:[#allocation47_spill] sm:$0xff]  ;;  %v3304_v62 = vld [vmem:[#allocation4 + $0x12c] sm:$0xff] }
 0x591   : > { %7742 = vrot.lane.b32.xlu1 %v19565_v38, %s11053_s15  ;;  %v10498_v60 = vunpack.i.h.bf16 %v16707_v7  ;;  %v10497_v17 = vunpack.i.l.bf16 %v16707_v7  ;;  %v19567_v11 = vmax.f32 %v19566_v50, 0.0  ;;  %v10678_v33 = vunpack.i.h.bf16 %v10676_v21  ;;  %v10681_v43 = vpop.permute.xlu0 %10680  ;;  %v3303_v38 = vld [vmem:[#allocation4 + $0x124] sm:$0xff] }
 0x592   : > { %v10677_v49 = vunpack.i.l.bf16 %v10676_v21  ;;  %v6632_v3 = vsel %vm5274_vm15, %v6600_v36, %v10672_v13  ;;  %v6633_v2 = vsel %vm5274_vm15, %v6601_v10, %v10673_v31  ;;  %v10343_v59 = vunpack.i.h.bf16 %v16247_v14  ;;  %v10686_v27 = vpop.permute.xlu1 %10685  ;;  %v10961_v36 = vld [vmem:[#allocation4 + $0x111] sm:$0xff]  ;;  %v19574_v22 = vld [vmem:[#allocation53_spill] sm:$0xff] }
 0x593   : > { %7744 = vrot.lane.b32.xlu0 %v19567_v11, %s11053_s15  ;;  %v6506_v23 = vsel %vm2090_vm10, %v6474_v54, %v10417_v46  ;;  %v6507_v16 = vsel %vm2090_vm10, %v6475_v44, %v10418_v28  ;;  %v19569_v7 = vmax.f32 %v19568_v0, 0.0  ;;  %v6715_v51 = vpack.c.bf16 %v3302_v47, %v3301_v29 }
 0x594   : > { %v10683_v45 = vunpack.i.h.bf16 %v10681_v43  ;;  %v10682_v30 = vunpack.i.l.bf16 %v10681_v43  ;;  %v6664_v53 = vsel %vm5307_vm0, %v6632_v3, %v10677_v49  ;;  %v6665_v52 = vsel %vm5307_vm0, %v6633_v2, %v10678_v33  ;;  %v19576_v33 = vld [vmem:[#allocation57_spill] sm:$0xff] }
 0x595   : > { %7746 = vrot.lane.b32.xlu1 %v19569_v7, %s11053_s15  ;;  %v10342_v15 = vunpack.i.l.bf16 %v16247_v14  ;;  %v6538_v48 = vsel %vm5175_vm12, %v6506_v23, %v10497_v17  ;;  %v6539_v20 = vsel %vm5175_vm12, %v6507_v16, %v10498_v60  ;;  %v19571_v25 = vmax.f32 %v19570_v58, 0.0  ;;  %v10691_v55 = vpop.permute.xlu0 %10690  ;;  %v19580_v58 = vld [vmem:[#allocation55_spill] sm:$0xff] }
 0x596   : > { %v6710_v41 = vpack.c.bf16 %v6665_v52, %v6664_v53  ;;  %v6571_v18 = vsel %vm5208_vm13, %v6539_v20, %v10683_v45  ;;  %v6570_v24 = vsel %vm5208_vm13, %v6538_v48, %v10682_v30  ;;  %v10688_v40 = vunpack.i.h.bf16 %v10686_v27  ;;  %v10696_v47 = vpop.permute.xlu1 %10695  ;;  %v19578_v45 = vld [vmem:[#allocation51_spill] sm:$0xff] }
 0x597   : > { %7748 = vrot.lane.b32.xlu0 %v19571_v25, %s11053_s15  ;;  %v10687_v26 = vunpack.i.l.bf16 %v10686_v27  ;;  %v10423_v35 = vunpack.i.h.bf16 %v16485_v19  ;;  %v10422_v14 = vunpack.i.l.bf16 %v16485_v19  ;;  %v19573_v9 = vmax.f32 %v19572_v4, 0.0  ;;  %v10962_v19 = vld [vmem:[#allocation4 + $0x109] sm:$0xff] }
 0x598   : > { %7238 = vmatmul.mubr.bf16.gmra.mxu0 %v6710_v41  ;;  %v6603_v28 = vsel %vm5241_vm14, %v6571_v18, %v10688_v40  ;;  %v10693_v46 = vunpack.i.h.bf16 %v10691_v55  ;;  %v10692_v63 = vunpack.i.l.bf16 %v10691_v55  ;;  %v6477_v10 = vsel %vm420_vm2, %v10961_v36, %v10343_v59  ;;  %v10963_v4 = vld [vmem:[#allocation4 + $0x129] sm:$0xff] }
 0x599   : > { %7750 = vrot.lane.b32.xlu1 %v19573_v9, %s11053_s15  ;;  %v6602_v8 = vsel %vm5241_vm14, %v6570_v24, %v10687_v26  ;;  %8288 = vmatprep.mubr.msk.bf16.mxu0 %vm420_vm2, %v6715_v51  ;;  %v6476_v31 = vsel %vm420_vm2, %v10962_v19, %v10342_v15  ;;  %v10503_v13 = vunpack.i.h.bf16 %v16728_v12  ;;  %v10502_v29 = vunpack.i.l.bf16 %v16728_v12  ;;  %v10701_v49 = vpop.permute.xlu0 %10700 }
 0x59a   : > { %v19575_v44 = vmax.f32 %v19574_v22, 0.0  ;;  %v10698_v6 = vunpack.i.h.bf16 %v10696_v47  ;;  %v10697_v54 = vunpack.i.l.bf16 %v10696_v47  ;;  %v6634_v60 = vsel %vm5274_vm15, %v6602_v8, %v10692_v63  ;;  %v10706_v51 = vpop.permute.xlu1 %10705  ;;  %v19582_v63 = vld [vmem:[#allocation10_spill] sm:$0xff]  ;;  %v17104_v47 = vpop.f32.mrf.mxu1 }
 0x59b   : > { %v6635_v17 = vsel %vm5274_vm15, %v6603_v28, %v10693_v46  ;;  %v10348_v21 = vunpack.i.h.bf16 %v16257_v56  ;;  %v6508_v50 = vsel %vm2090_vm10, %v6476_v31, %v10422_v14  ;;  %v6509_v11 = vsel %vm2090_vm10, %v6477_v10, %v10423_v35  ;;  %v3305_v35 = vld [vmem:[#allocation4 + $0x13c] sm:$0xff]  ;;  %v3306_v14 = vld [vmem:[#allocation4 + $0x144] sm:$0xff] }
 0x59c   : > { %7752 = vrot.lane.b32.xlu0 %v19575_v44, %s11053_s15  ;;  %v19577_v12 = vmax.f32 %v19576_v33, 0.0  ;;  %v6719_v3 = vpack.c.bf16 %v3304_v62, %v3303_v38  ;;  %v10703_v2 = vunpack.i.h.bf16 %v10701_v49  ;;  %v10702_v59 = vunpack.i.l.bf16 %v10701_v49  ;;  %v19586_v49 = vld [vmem:[#allocation59_spill] sm:$0xff] }
 0x59d   : > { %v6666_v23 = vsel %vm5307_vm0, %v6634_v60, %v10697_v54  ;;  %v6667_v16 = vsel %vm5307_vm0, %v6635_v17, %v10698_v6  ;;  %v10347_v0 = vunpack.i.l.bf16 %v16257_v56  ;;  %v6540_v7 = vsel %vm5175_vm12, %v6508_v50, %v10502_v29  ;;  %v10711_v41 = vpop.permute.xlu0 %10710 }
 0x59e   : > { %7754 = vrot.lane.b32.xlu1 %v19577_v12, %s11053_s15  ;;  %v6541_v43 = vsel %vm5175_vm12, %v6509_v11, %v10503_v13  ;;  %v19579_v30 = vmax.f32 %v19578_v45, 0.0  ;;  %v6714_v53 = vpack.c.bf16 %v6667_v16, %v6666_v23  ;;  %v6572_v52 = vsel %vm5208_vm13, %v6540_v7, %v10702_v59  ;;  %v10716_v46 = vpop.permute.xlu1 %10715 }
 0x59f   : > { %v6573_v15 = vsel %vm5208_vm13, %v6541_v43, %v10703_v2  ;;  %v10708_v48 = vunpack.i.h.bf16 %v10706_v51  ;;  %v10707_v20 = vunpack.i.l.bf16 %v10706_v51  ;;  %v10428_v27 = vunpack.i.h.bf16 %v16495_v57  ;;  %v17121_v43 = vpop.f32.mrf.mxu1  ;;  %v19588_v51 = vld [vmem:[#allocation9_spill] sm:$0xff] }
 0x5a0   : > { %7756 = vrot.lane.b32.xlu0 %v19579_v30, %s11053_s15  ;;  %v10427_v56 = vunpack.i.l.bf16 %v16495_v57  ;;  %v19581_v25 = vmax.f32 %v19580_v58, 0.0  ;;  %7246 = vmatmul.mubr.bf16.gmra.mxu0 %v6714_v53  ;;  %v10713_v40 = vunpack.i.h.bf16 %v10711_v41  ;;  %v10712_v26 = vunpack.i.l.bf16 %v10711_v41  ;;  %v10964_v57 = vld [vmem:[#allocation4 + $0x121] sm:$0xff]  ;;  %v10966_v58 = vld [vmem:[#allocation4 + $0x139] sm:$0xff] }
 0x5a1   : > { %v6604_v18 = vsel %vm5241_vm14, %v6572_v52, %v10707_v20  ;;  %v6605_v24 = vsel %vm5241_vm14, %v6573_v15, %v10708_v48  ;;  %8289 = vmatprep.mubr.msk.bf16.mxu0 %vm420_vm2, %v6719_v3  ;;  %v6479_v9 = vsel %vm420_vm2, %v10963_v4, %v10348_v21  ;;  %v6478_v55 = vsel %vm420_vm2, %v10964_v57, %v10347_v0  ;;  %v10721_v44 = vpop.permute.xlu0 %10720  ;;  %v3307_v20 = vld [vmem:[#allocation4 + $0x154] sm:$0xff] }
 0x5a2   : > { %7758 = vrot.lane.b32.xlu1 %v19581_v25, %s11053_s15  ;;  %v10508_v8 = vunpack.i.h.bf16 %v16739_v61  ;;  %v10507_v28 = vunpack.i.l.bf16 %v16739_v61  ;;  %v19583_v38 = vmax.f32 %v19582_v63, 0.0  ;;  %v10718_v62 = vunpack.i.h.bf16 %v10716_v46  ;;  %v19584_v61 = vld [vmem:[#allocation12_spill] sm:$0xff]  ;;  %v10726_v12 = vpop.permute.xlu1 %10725 }
 0x5a3   : > { %v10717_v36 = vunpack.i.l.bf16 %v10716_v46  ;;  %v6636_v10 = vsel %vm5274_vm15, %v6604_v18, %v10712_v26  ;;  %v6637_v19 = vsel %vm5274_vm15, %v6605_v24, %v10713_v40  ;;  %v10353_v31 = vunpack.i.h.bf16 %v16279_v5 }
 0x5a4   : > { %7760 = vrot.lane.b32.xlu0 %v19583_v38, %s11053_s15  ;;  %v6510_v13 = vsel %vm2090_vm10, %v6478_v55, %v10427_v56  ;;  %v6511_v29 = vsel %vm2090_vm10, %v6479_v9, %v10428_v27  ;;  %v19585_v22 = vmax.f32 %v19584_v61, 0.0  ;;  %v6723_v6 = vpack.c.bf16 %v3306_v14, %v3305_v35  ;;  %v3308_v27 = vld [vmem:[#allocation4 + $0x15c] sm:$0xff]  ;;  %v17138_v55 = vpop.f32.mrf.mxu1 }
 0x5a5   : > { %v10723_v54 = vunpack.i.h.bf16 %v10721_v44  ;;  %v10722_v60 = vunpack.i.l.bf16 %v10721_v44  ;;  %v6668_v17 = vsel %vm5307_vm0, %v6636_v10, %v10717_v36  ;;  %v6669_v21 = vsel %vm5307_vm0, %v6637_v19, %v10718_v62  ;;  %v10731_v30 = vpop.permute.xlu0 %10730  ;;  %v10965_v56 = vld [vmem:[#allocation4 + $0x141] sm:$0xff] }
 0x5a6   : > { %7762 = vrot.lane.b32.xlu1 %v19585_v22, %s11053_s15  ;;  %v10352_v50 = vunpack.i.l.bf16 %v16279_v5  ;;  %v6542_v11 = vsel %vm5175_vm12, %v6510_v13, %v10507_v28  ;;  %v6543_v33 = vsel %vm5175_vm12, %v6511_v29, %v10508_v8  ;;  %v19587_v3 = vmax.f32 %v19586_v49, 0.0  ;;  %v10736_v24 = vpop.permute.xlu1 %10735 }
 0x5a7   : > { %v6718_v2 = vpack.c.bf16 %v6669_v21, %v6668_v17  ;;  %v6575_v59 = vsel %vm5208_vm13, %v6543_v33, %v10723_v54  ;;  %v6574_v23 = vsel %vm5208_vm13, %v6542_v11, %v10722_v60  ;;  %v10728_v16 = vunpack.i.h.bf16 %v10726_v12  ;;  %v17149_v54 = vpop.f32.mrf.mxu1  ;;  %v3309_v11 = vld [vmem:[#allocation4 + $0x16c] sm:$0xff]  ;;  %v3310_v33 = vld [vmem:[#allocation4 + $0x174] sm:$0xff] }
 0x5a8   : > { %7764 = vrot.lane.b32.xlu0 %v19587_v3, %s11053_s15  ;;  %v10727_v0 = vunpack.i.l.bf16 %v10726_v12  ;;  %v10433_v7 = vunpack.i.h.bf16 %v16519_v42  ;;  %v10432_v5 = vunpack.i.l.bf16 %v16519_v42  ;;  %v19589_v45 = vmax.f32 %v19588_v51, 0.0  ;;  %v10967_v12 = vld [vmem:[#allocation4 + $0x159] sm:$0xff]  ;;  %v10968_v3 = vld [vmem:[#allocation4 + $0x151] sm:$0xff] }
 0x5a9   : > { %7254 = vmatmul.mubr.bf16.gmra.mxu0 %v6718_v2  ;;  %v6607_v52 = vsel %vm5241_vm14, %v6575_v59, %v10728_v16  ;;  %v10733_v15 = vunpack.i.h.bf16 %v10731_v30  ;;  %v10732_v48 = vunpack.i.l.bf16 %v10731_v30  ;;  %v6481_v42 = vsel %vm420_vm2, %v10965_v56, %v10353_v31  ;;  %v10741_v8 = vpop.permute.xlu0 %10740  ;;  %v19590_v51 = vld [vmem:[#allocation84_spill] sm:$0xff] }
 0x5aa   : > { %7766 = vrot.lane.b32.xlu1 %v19589_v45, %s11053_s15  ;;  %v6606_v53 = vsel %vm5241_vm14, %v6574_v23, %v10727_v0  ;;  %8290 = vmatprep.mubr.msk.bf16.mxu0 %vm420_vm2, %v6723_v6  ;;  %v6480_v25 = vsel %vm420_vm2, %v10966_v58, %v10352_v50  ;;  %v10513_v41 = vunpack.i.h.bf16 %v16767_v32  ;;  %v10512_v18 = vunpack.i.l.bf16 %v16767_v32  ;;  %v10746_v19 = vpop.permute.xlu1 %10745 }
 0x5ab   : > { %v10738_v40 = vunpack.i.h.bf16 %v10736_v24  ;;  %v10737_v26 = vunpack.i.l.bf16 %v10736_v24  ;;  %v6638_v35 = vsel %vm5274_vm15, %v6606_v53, %v10732_v48  ;;  %v6639_v14 = vsel %vm5274_vm15, %v6607_v52, %v10733_v15  ;;  %v17163_v52 = vpop.f32.mrf.mxu1 }
 0x5ac   : > { %v10358_v4 = vunpack.i.h.bf16 %v16287_v34  ;;  %v6512_v9 = vsel %vm2090_vm10, %v6480_v25, %v10432_v5  ;;  %v6513_v57 = vsel %vm2090_vm10, %v6481_v42, %v10433_v7  ;;  %v6727_v28 = vpack.c.bf16 %v3308_v27, %v3307_v20 }
 0x5ad   : > { %v10743_v46 = vunpack.i.h.bf16 %v10741_v8  ;;  %v10742_v63 = vunpack.i.l.bf16 %v10741_v8  ;;  %v6670_v32 = vsel %vm5307_vm0, %v6638_v35, %v10737_v26  ;;  %v6671_v38 = vsel %vm5307_vm0, %v6639_v14, %v10738_v40  ;;  %v10751_v60 = vpop.permute.xlu0 %10750  ;;  %v19591_v14 = vld [vmem:[#allocation209_spill] sm:$0xff] }
 0x5ae   : > { %v10357_v62 = vunpack.i.l.bf16 %v16287_v34  ;;  %v6544_v36 = vsel %vm5175_vm12, %v6512_v9, %v10512_v18  ;;  %v6545_v10 = vsel %vm5175_vm12, %v6513_v57, %v10513_v41  ;;  %v6722_v31 = vpack.c.bf16 %v6671_v38, %v6670_v32  ;;  %v17174_v57 = vpop.f32.mrf.mxu1  ;;  %v3311_v38 = vld [vmem:[#allocation4 + $0x184] sm:$0xff] }
 0x5af   : > { %v6576_v13 = vsel %vm5208_vm13, %v6544_v36, %v10742_v63  ;;  %v6577_v29 = vsel %vm5208_vm13, %v6545_v10, %v10743_v46  ;;  %v10748_v61 = vunpack.i.h.bf16 %v10746_v19  ;;  %v10747_v22 = vunpack.i.l.bf16 %v10746_v19  ;;  %v10756_v23 = vpop.permute.xlu1 %10755  ;;  %v10969_v36 = vld [vmem:[#allocation4 + $0x171] sm:$0xff]  ;;  %v10970_v19 = vld [vmem:[#allocation4 + $0x169] sm:$0xff] }
 0x5b0   : > { %v10438_v44 = vunpack.i.h.bf16 %v16527_v39  ;;  %v10437_v6 = vunpack.i.l.bf16 %v16527_v39  ;;  %v10753_v21 = vunpack.i.h.bf16 %v10751_v60  ;;  %v10752_v50 = vunpack.i.l.bf16 %v10751_v60 }
 0x5b1   : > { %7262 = vmatmul.mubr.bf16.gmra.mxu0 %v6722_v31  ;;  %v6608_v34 = vsel %vm5241_vm14, %v6576_v13, %v10747_v22  ;;  %v6609_v17 = vsel %vm5241_vm14, %v6577_v29, %v10748_v61  ;;  %v6483_v49 = vsel %vm420_vm2, %v10967_v12, %v10358_v4  ;;  %v6482_v39 = vsel %vm420_vm2, %v10968_v3, %v10357_v62  ;;  %v10761_v15 = vpop.permute.xlu0 %10760  ;;  %v3312_v62 = vld [vmem:[#allocation4 + $0x18c] sm:$0xff] }
 0x5b2   : > { %8291 = vmatprep.mubr.msk.bf16.mxu0 %vm420_vm2, %v6727_v28  ;;  %v10518_v2 = vunpack.i.h.bf16 %v16778_v37  ;;  %v10517_v59 = vunpack.i.l.bf16 %v16778_v37  ;;  %v10758_v16 = vunpack.i.h.bf16 %v10756_v23  ;;  %v10757_v0 = vunpack.i.l.bf16 %v10756_v23 }
 0x5b3   : > { %v6640_v7 = vsel %vm5274_vm15, %v6608_v34, %v10752_v50  ;;  %v6641_v5 = vsel %vm5274_vm15, %v6609_v17, %v10753_v21  ;;  %v10363_v45 = vunpack.i.h.bf16 %v19590_v51  ;;  %v6514_v30 = vsel %vm2090_vm10, %v6482_v39, %v10437_v6  ;;  %v10766_v41 = vpop.permute.xlu1 %10765  ;;  %v19592_v34 = vld [vmem:[#allocation85_spill] sm:$0xff] }
 0x5b4   : > { %v6515_v53 = vsel %vm2090_vm10, %v6483_v49, %v10438_v44  ;;  %v6731_v48 = vpack.c.bf16 %v3310_v33, %v3309_v11  ;;  %v10763_v20 = vunpack.i.h.bf16 %v10761_v15  ;;  %v10762_v27 = vunpack.i.l.bf16 %v10761_v15  ;;  %v17188_v11 = vpop.f32.mrf.mxu1 }
 0x5b5   : > { %v6672_v37 = vsel %vm5307_vm0, %v6640_v7, %v10757_v0  ;;  %v6673_v56 = vsel %vm5307_vm0, %v6641_v5, %v10758_v16  ;;  %v10362_v42 = vunpack.i.l.bf16 %v19590_v51  ;;  %v6546_v58 = vsel %vm5175_vm12, %v6514_v30, %v10517_v59  ;;  %v10771_v8 = vpop.permute.xlu0 %10770  ;;  %v19593_v30 = vld [vmem:[#allocation206_spill] sm:$0xff] }
 0x5b6   : > { %v6547_v25 = vsel %vm5175_vm12, %v6515_v53, %v10518_v2  ;;  %v6726_v18 = vpack.c.bf16 %v6673_v56, %v6672_v37  ;;  %v6578_v40 = vsel %vm5208_vm13, %v6546_v58, %v10762_v27  ;;  %v10768_v26 = vunpack.i.h.bf16 %v10766_v41  ;;  %v3313_v58 = vld [vmem:[#allocation4 + $0x19c] sm:$0xff] }
 0x5b7   : > { %v6579_v24 = vsel %vm5208_vm13, %v6547_v25, %v10763_v20  ;;  %v10767_v35 = vunpack.i.l.bf16 %v10766_v41  ;;  %v10443_v4 = vunpack.i.h.bf16 %v19591_v14  ;;  %v10442_v9 = vunpack.i.l.bf16 %v19591_v14  ;;  %v3314_v25 = vld [vmem:[#allocation4 + $0x1a4] sm:$0xff] }
 0x5b8   : > { %v6611_v46 = vsel %vm5241_vm14, %v6579_v24, %v10768_v26  ;;  %v10773_v63 = vunpack.i.h.bf16 %v10771_v8  ;;  %v10772_v32 = vunpack.i.l.bf16 %v10771_v8  ;;  %v6485_v10 = vsel %vm420_vm2, %v10969_v36, %v10363_v45  ;;  %v10776_v61 = vpop.permute.xlu1 %10775  ;;  %v10971_v41 = vld [vmem:[#allocation4 + $0x189] sm:$0xff]  ;;  %v10972_v24 = vld [vmem:[#allocation4 + $0x181] sm:$0xff] }
 0x5b9   : > { %7270 = vmatmul.mubr.bf16.gmra.mxu0 %v6726_v18  ;;  %v6610_v28 = vsel %vm5241_vm14, %v6578_v40, %v10767_v35  ;;  %v6484_v31 = vsel %vm420_vm2, %v10970_v19, %v10362_v42  ;;  %v10523_v13 = vunpack.i.h.bf16 %v16789_v1  ;;  %v10522_v29 = vunpack.i.l.bf16 %v16789_v1  ;;  %v19594_v26 = vld [vmem:[#allocation86_spill] sm:$0xff] }
 0x5ba   : > { %8292 = vmatprep.mubr.msk.bf16.mxu0 %vm420_vm2, %v6731_v48  ;;  %v10778_v22 = vunpack.i.h.bf16 %v10776_v61  ;;  %v10777_v44 = vunpack.i.l.bf16 %v10776_v61  ;;  %v6642_v6 = vsel %vm5274_vm15, %v6610_v28, %v10772_v32  ;;  %v6643_v60 = vsel %vm5274_vm15, %v6611_v46, %v10773_v63  ;;  %v10781_v33 = vpop.permute.xlu0 %10780  ;;  %v17199_v48 = vpop.f32.mrf.mxu1  ;;  %v19595_v63 = vld [vmem:[#allocation157_spill] sm:$0xff] }
 0x5bb   : > { %v10368_v17 = vunpack.i.h.bf16 %v19592_v34  ;;  %v6516_v21 = vsel %vm2090_vm10, %v6484_v31, %v10442_v9  ;;  %v6517_v50 = vsel %vm2090_vm10, %v6485_v10, %v10443_v4  ;;  %v6735_v12 = vpack.c.bf16 %v3312_v62, %v3311_v38 }
 0x5bc   : > { %v10783_v49 = vunpack.i.h.bf16 %v10781_v33  ;;  %v10782_v3 = vunpack.i.l.bf16 %v10781_v33  ;;  %v6674_v1 = vsel %vm5307_vm0, %v6642_v6, %v10777_v44  ;;  %v6675_v39 = vsel %vm5307_vm0, %v6643_v60, %v10778_v22  ;;  %v17213_v36 = vpop.f32.mrf.mxu1 }
 0x5bd   : > { %v10367_v2 = vunpack.i.l.bf16 %v19592_v34  ;;  %v6548_v59 = vsel %vm5175_vm12, %v6516_v21, %v10522_v29  ;;  %v6549_v23 = vsel %vm5175_vm12, %v6517_v50, %v10523_v13  ;;  %v10786_v16 = vpop.permute.xlu1 %10785  ;;  %v6730_v0 = vpack.c.bf16 %v6675_v39, %v6674_v1 }
 0x5be   : > { %v6580_v7 = vsel %vm5208_vm13, %v6548_v59, %v10782_v3  ;;  %v6581_v5 = vsel %vm5208_vm13, %v6549_v23, %v10783_v49  ;;  %v10788_v51 = vunpack.i.h.bf16 %v10786_v16  ;;  %v10787_v45 = vunpack.i.l.bf16 %v10786_v16  ;;  %v17224_v1 = vpop.f32.mrf.mxu1 }
 0x5bf   : > { %v10448_v53 = vunpack.i.h.bf16 %v19593_v30  ;;  %v10447_v15 = vunpack.i.l.bf16 %v19593_v30  ;;  %v10791_v20 = vpop.permute.xlu0 %10790  ;;  %v6487_v18 = vsel %vm420_vm2, %v10971_v41, %v10368_v17  ;;  %v6486_v40 = vsel %vm420_vm2, %v10972_v24, %v10367_v2 }
 0x5c0   : > { %v6612_v27 = vsel %vm5241_vm14, %v6580_v7, %v10787_v45  ;;  %v6613_v37 = vsel %vm5241_vm14, %v6581_v5, %v10788_v51  ;;  %v10793_v56 = vunpack.i.h.bf16 %v10791_v20  ;;  %v10792_v42 = vunpack.i.l.bf16 %v10791_v20  ;;  %v3316_v7 = vld [vmem:[#allocation4 + $0x1bc] sm:$0xff] }
 0x5c1   : > { %7278 = vmatmul.mubr.bf16.gmra.mxu0 %v6730_v0  ;;  %v10528_v35 = vunpack.i.h.bf16 %v19594_v26  ;;  %v10527_v14 = vunpack.i.l.bf16 %v19594_v26  ;;  %v10373_v32 = vunpack.i.h.bf16 %v19595_v63  ;;  %v6518_v38 = vsel %vm2090_vm10, %v6486_v40, %v10447_v15  ;;  %v3315_v0 = vld [vmem:[#allocation4 + $0x1b4] sm:$0xff]  ;;  %v10973_v5 = vld [vmem:[#allocation4 + $0x1a1] sm:$0xff]  ;;  %v17238_v40 = vpop.f32.mrf.mxu1 }
 0x5c2   : > { %8293 = vmatprep.mubr.msk.bf16.mxu0 %vm420_vm2, %v6735_v12  ;;  %v10796_v4 = vpop.permute.xlu1 %10795  ;;  %v6644_v28 = vsel %vm5274_vm15, %v6612_v27, %v10792_v42  ;;  %v6645_v46 = vsel %vm5274_vm15, %v6613_v37, %v10793_v56  ;;  %v6519_v62 = vsel %vm2090_vm10, %v6487_v18, %v10448_v53  ;;  %v6739_v19 = vpack.c.bf16 %v3314_v25, %v3313_v58  ;;  %v19596_v12 = vld [vmem:[#allocation201_spill] sm:$0xff]  ;;  %v10974_v45 = vld [vmem:[#allocation4 + $0x199] sm:$0xff] }
 0x5c3   : > { %v10798_v9 = vunpack.i.h.bf16 %v10796_v4  ;;  %v10797_v8 = vunpack.i.l.bf16 %v10796_v4  ;;  %v10801_v10 = vpop.permute.xlu0 %10800  ;;  %v10372_v22 = vunpack.i.l.bf16 %v19595_v63  ;;  %v6550_v44 = vsel %vm5175_vm12, %v6518_v38, %v10527_v14  ;;  %v19597_v53 = vld [vmem:[#allocation87_spill] sm:$0xff]  ;;  %v19598_v25 = vld [vmem:[#allocation156_spill] sm:$0xff] }
 0x5c4   : > { %v10803_v31 = vunpack.i.h.bf16 %v10801_v10  ;;  %v10802_v13 = vunpack.i.l.bf16 %v10801_v10  ;;  %v6551_v6 = vsel %vm5175_vm12, %v6519_v62, %v10528_v35  ;;  %v10453_v49 = vunpack.i.h.bf16 %v19596_v12 }
 0x5c5   : > { %v6676_v29 = vsel %vm5307_vm0, %v6644_v28, %v10797_v8  ;;  %v6677_v61 = vsel %vm5307_vm0, %v6645_v46, %v10798_v9  ;;  %v10452_v3 = vunpack.i.l.bf16 %v19596_v12  ;;  %v6489_v51 = vsel %vm420_vm2, %v10973_v5, %v10373_v32 }
 0x5c6   : > { %v6734_v34 = vpack.c.bf16 %v6677_v61, %v6676_v29  ;;  %v6583_v17 = vsel %vm5208_vm13, %v6551_v6, %v10803_v31  ;;  %v6582_v21 = vsel %vm5208_vm13, %v6550_v44, %v10802_v13  ;;  %v6488_v30 = vsel %vm420_vm2, %v10974_v45, %v10372_v22  ;;  %v19599_v13 = vld [vmem:[#allocation200_spill] sm:$0xff]  ;;  %v17249_v22 = vpop.f32.mrf.mxu1 }
 0x5c7   : > { %v10806_v60 = vpop.permute.xlu1 %10805  ;;  %v10811_v39 = vpop.permute.xlu0 %10810  ;;  %v10533_v15 = vunpack.i.h.bf16 %v19597_v53  ;;  %v10532_v20 = vunpack.i.l.bf16 %v19597_v53  ;;  %v10378_v41 = vunpack.i.h.bf16 %v19598_v25  ;;  %v6520_v18 = vsel %vm2090_vm10, %v6488_v30, %v10452_v3 }
 0x5c8   : > { %v10808_v50 = vunpack.i.h.bf16 %v10806_v60  ;;  %v10807_v33 = vunpack.i.l.bf16 %v10806_v60  ;;  %v10813_v23 = vunpack.i.h.bf16 %v10811_v39  ;;  %v10812_v16 = vunpack.i.l.bf16 %v10811_v39  ;;  %v19600_v39 = vld [vmem:[#allocation88_spill] sm:$0xff]  ;;  %v17262_v30 = vpop.f32.mrf.mxu1 }
 0x5c9   : > { %7286 = vmatmul.mubr.bf16.gmra.mxu0 %v6734_v34  ;;  %v6521_v24 = vsel %vm2090_vm10, %v6489_v51, %v10453_v49  ;;  %v6743_v35 = vpack.c.bf16 %v3316_v7, %v3315_v0  ;;  %v10377_v28 = vunpack.i.l.bf16 %v19598_v25  ;;  %v6552_v46 = vsel %vm5175_vm12, %v6520_v18, %v10532_v20  ;;  %v10976_v49 = vld [vmem:[#allocation4 + $0x1b1] sm:$0xff] }
 0x5ca   : > { %v6614_v2 = vsel %vm5241_vm14, %v6582_v21, %v10807_v33  ;;  %v6615_v59 = vsel %vm5241_vm14, %v6583_v17, %v10808_v50  ;;  %8294 = vmatprep.mubr.msk.bf16.mxu0 %vm420_vm2, %v6739_v19  ;;  %v6553_v63 = vsel %vm5175_vm12, %v6521_v24, %v10533_v15  ;;  %v10458_v29 = vunpack.i.h.bf16 %v19599_v13  ;;  %v3317_v21 = vld [vmem:[#allocation4 + $0x1cc] sm:$0xff]  ;;  %v3318_v50 = vld [vmem:[#allocation4 + $0x1d4] sm:$0xff] }
 0x5cb   : > { %v10816_v27 = vpop.permute.xlu1 %10815  ;;  %v6646_v42 = vsel %vm5274_vm15, %v6614_v2, %v10812_v16  ;;  %v6647_v58 = vsel %vm5274_vm15, %v6615_v59, %v10813_v23  ;;  %v10821_v26 = vpop.permute.xlu0 %10820  ;;  %v10457_v61 = vunpack.i.l.bf16 %v19599_v13  ;;  %v10975_v33 = vld [vmem:[#allocation4 + $0x1b9] sm:$0xff]  ;;  %v6490_v3 = vsel %vm420_vm2, %v10976_v49, %v10377_v28 }
 0x5cc   : > { %v10818_v37 = vunpack.i.h.bf16 %v10816_v27  ;;  %v10817_v56 = vunpack.i.l.bf16 %v10816_v27  ;;  %v10823_v14 = vunpack.i.h.bf16 %v10821_v26  ;;  %v10822_v4 = vunpack.i.l.bf16 %v10821_v26 }
 0x5cd   : > { %v6491_v12 = vsel %vm420_vm2, %v10975_v33, %v10378_v41  ;;  %v10538_v2 = vunpack.i.h.bf16 %v19600_v39  ;;  %v10537_v59 = vunpack.i.l.bf16 %v19600_v39  ;;  %v6522_v51 = vsel %vm2090_vm10, %v6490_v3, %v10457_v61 }
 0x5ce   : > { %v6678_v9 = vsel %vm5307_vm0, %v6646_v42, %v10817_v56  ;;  %v6679_v8 = vsel %vm5307_vm0, %v6647_v58, %v10818_v37  ;;  %v6584_v62 = vsel %vm5208_vm13, %v6552_v46, %v10822_v4  ;;  %v6585_v10 = vsel %vm5208_vm13, %v6553_v63, %v10823_v14  ;;  %v17270_v14 = vpop.f32.mrf.mxu1 }
 0x5cf   : > { %v10826_v32 = vpop.permute.xlu1 %10825  ;;  %v6738_v38 = vpack.c.bf16 %v6679_v8, %v6678_v9  ;;  %v10831_v44 = vpop.permute.xlu0 %10830  ;;  %v6523_v45 = vsel %vm2090_vm10, %v6491_v12, %v10458_v29  ;;  %v6747_v15 = vpack.c.bf16 %v3318_v50, %v3317_v21  ;;  %v6554_v42 = vsel %vm5175_vm12, %v6522_v51, %v10537_v59 }
 0x5d0   : > { %v10828_v19 = vunpack.i.h.bf16 %v10826_v32  ;;  %v10827_v31 = vunpack.i.l.bf16 %v10826_v32  ;;  %v10833_v34 = vunpack.i.h.bf16 %v10831_v44  ;;  %v10832_v17 = vunpack.i.l.bf16 %v10831_v44 }
 0x5d1   : > { %7294 = vmatmul.mubr.bf16.gmra.mxu0 %v6738_v38  ;;  %v6555_v58 = vsel %vm5175_vm12, %v6523_v45, %v10538_v2  ;;  %v17324_v45 = vld [vmem:[%s17903_s5] ss:$0 sm:$0xff] }
 0x5d2   : > { %v6616_v6 = vsel %vm5241_vm14, %v6584_v62, %v10827_v31  ;;  %v6617_v60 = vsel %vm5241_vm14, %v6585_v10, %v10828_v19  ;;  %8295 = vmatprep.mubr.msk.bf16.mxu0 %vm420_vm2, %v6743_v35  ;;  %v17277_v19 = vpop.f32.mrf.mxu1 }
 0x5d3   : > { %v10836_v23 = vpop.permute.xlu1 %10835  ;;  %v6648_v7 = vsel %vm5274_vm15, %v6616_v6, %v10832_v17  ;;  %v6649_v5 = vsel %vm5274_vm15, %v6617_v60, %v10833_v34  ;;  %v10841_v53 = vpop.permute.xlu0 %10840 }
 0x5d4   : > { %v10838_v16 = vunpack.i.h.bf16 %v10836_v23  ;;  %v10837_v0 = vunpack.i.l.bf16 %v10836_v23  ;;  %v10843_v20 = vunpack.i.h.bf16 %v10841_v53  ;;  %v10842_v27 = vunpack.i.l.bf16 %v10841_v53  ;;  %v17281_v61 = vpop.f32.mrf.mxu1 }
 0x5d6   : > { %v6680_v37 = vsel %vm5307_vm0, %v6648_v7, %v10837_v0  ;;  %v6681_v56 = vsel %vm5307_vm0, %v6649_v5, %v10838_v16  ;;  %v6587_v18 = vsel %vm5208_vm13, %v6555_v58, %v10843_v20  ;;  %v6586_v24 = vsel %vm5208_vm13, %v6554_v42, %v10842_v27  ;;  %v17283_v44 = vpop.f32.mrf.mxu1 }
 0x5d7   : > { %v10846_v25 = vpop.permute.xlu1 %10845  ;;  %v6742_v41 = vpack.c.bf16 %v6681_v56, %v6680_v37  ;;  %v10851_v4 = vpop.permute.xlu0 %10850  ;;  %v8343_v7 = vadd.f32 %v17121_v43, %v17104_v47  ;;  %v8346_v27 = vadd.f32 %v17149_v54, %v17138_v55 }
 0x5d8   : > { %v10848_v26 = vunpack.i.h.bf16 %v10846_v25  ;;  %v10847_v35 = vunpack.i.l.bf16 %v10846_v25  ;;  %v10853_v28 = vunpack.i.h.bf16 %v10851_v4  ;;  %v10852_v46 = vunpack.i.l.bf16 %v10851_v4  ;;  %v17285_v6 = vpop.f32.mrf.mxu1 }
 0x5d9   : > { %7302 = vmatmul.mubr.bf16.gmra.mxu0 %v6742_v41  ;;  %v8349_v25 = vadd.f32 %v17174_v57, %v17163_v52  ;;  %v8352_v4 = vadd.f32 %v17199_v48, %v17188_v11 }
 0x5da   : > { %v6618_v9 = vsel %vm5241_vm14, %v6586_v24, %v10847_v35  ;;  %v6619_v8 = vsel %vm5241_vm14, %v6587_v18, %v10848_v26  ;;  %8296 = vmatprep.mubr.msk.bf16.mxu0 %vm420_vm2, %v6747_v15  ;;  %v17287_v60 = vpop.f32.mrf.mxu1  ;;  %v17329_v15 = vld [vmem:[%s17904_s6] ss:$0 sm:$0xff] }
 0x5db   : > { %v10856_v63 = vpop.permute.xlu1 %10855  ;;  %v6650_v32 = vsel %vm5274_vm15, %v6618_v9, %v10852_v46  ;;  %v6651_v38 = vsel %vm5274_vm15, %v6619_v8, %v10853_v28 }
 0x5dc   : > { %v10858_v62 = vunpack.i.h.bf16 %v10856_v63  ;;  %v10857_v10 = vunpack.i.l.bf16 %v10856_v63  ;;  %v17289_v34 = vpop.f32.mrf.mxu1 }
 0x5de   : > { %v6682_v31 = vsel %vm5307_vm0, %v6650_v32, %v10857_v10  ;;  %v6683_v13 = vsel %vm5307_vm0, %v6651_v38, %v10858_v62  ;;  %v17291_v17 = vpop.f32.mrf.mxu1  ;;  %v8355_v32 = vadd.f32 %v17224_v1, %v17213_v36 }
 0x5df   : > { %v6746_v29 = vpack.c.bf16 %v6683_v13, %v6682_v31 }
 0x5e0   : > { %v17293_v21 = vpop.f32.mrf.mxu1 }
 0x5e1   : > { %7310 = vmatmul.mubr.bf16.gmra.mxu0 %v6746_v29  ;;  %v8358_v29 = vadd.f32 %v17249_v22, %v17238_v40 }
 0x5e2   : > { %v17295_v50 = vpop.f32.mrf.mxu1 }
 0x5e4   : > { %v17297_v33 = vpop.f32.mrf.mxu1 }
 0x5e6   : > { %v17299_v12 = vpop.f32.mrf.mxu1 }
 0x5e8   : > { %v17301_v49 = vpop.f32.mrf.mxu1 }
 0x5ea   : > { %v17303_v3 = vpop.f32.mrf.mxu1 }
 0x5ec   : > { %v17305_v39 = vpop.f32.mrf.mxu1 }
 0x5ee   : > { %v17307_v2 = vpop.f32.mrf.mxu1 }
 0x5f0   : > { %v17309_v59 = vpop.f32.mrf.mxu1 }
 0x5f2   : > { %v17311_v23 = vpop.f32.mrf.mxu1 }
 0x5f4   : > { %v17313_v16 = vpop.f32.mrf.mxu1 }
 0x5f6   : > { %v17315_v0 = vpop.f32.mrf.mxu1 }
 0x5f8   : > { %v17319_v5 = vpop.f32.mrf.mxu1 }
 0x5fa   : > { %v17334_v43 = vpop.f32.mrf.mxu1 }
 0x5fc   : > { %v17340_v24 = vpop.f32.mrf.mxu1 }
 0x5fe   : > { %v17347_v28 = vpop.f32.mrf.mxu1 }
 0x600   : > { %v17354_v10 = vpop.f32.mrf.mxu1 }
 0x624   : > { %v7191_v51 = vpop.f32.mrf.mxu0 }
 0x625   : > { %v7192_v53 = vadd.f32 %v8343_v7, %v7191_v51 }
 0x626   : > { %v7193_v20 = vpop.f32.mrf.mxu0 }
 0x627   : > { %v7325_v47 = vmul.f32 %v17324_v45, %v7192_v53  ;;  %v17361_v53 = vpop.f32.mrf.mxu1 }
 0x628   : > { %v7194_v37 = vpop.f32.mrf.mxu0 }
 0x629   : > { %v7364_v56 = vadd.f32 %v17329_v15, %v7325_v47  ;;  %v7195_v42 = vadd.f32 %v8346_v27, %v7194_v37  ;;  %v8361_v47 = vadd.f32 %v17270_v14, %v17262_v30 }
 0x62a   : > { %v7196_v58 = vpop.f32.mrf.mxu0 }
 0x62b   : > { %v7396_v41 = vmax.f32 %v7364_v56, 0.0  ;;  %v7326_v18 = vmul.f32 %v17324_v45, %v7195_v42  ;;  %v17368_v42 = vpop.f32.mrf.mxu1 }
 0x62d   : > { %v7199_v26 = vpop.f32.mrf.mxu0  ;;  %v7365_v55 = vadd.f32 %v17329_v15, %v7326_v18  ;;  %7832 = vrot.lane.b32.xlu0 %v7396_v41, %s11042_s19  ;;  %v8364_v41 = vadd.f32 %v17281_v61, %v17277_v19 }
 0x62e   : > { %v7200_v54 = vadd.f32 %v8349_v25, %v7199_v26 }
 0x62f   : > { %v7201_v35 = vpop.f32.mrf.mxu0  ;;  %v7397_v9 = vmax.f32 %v7365_v55, 0.0  ;;  %v17375_v55 = vpop.f32.mrf.mxu1 }
 0x630   : > { %v7327_v8 = vmul.f32 %v17324_v45, %v7200_v54 }
 0x631   : > { %v7202_v52 = vpop.f32.mrf.mxu0  ;;  %7834 = vrot.lane.b32.xlu1 %v7397_v9, %s11042_s19 }
 0x632   : > { %v7366_v57 = vadd.f32 %v17329_v15, %v7327_v8  ;;  %v7203_v46 = vadd.f32 %v8352_v4, %v7202_v52  ;;  %v8367_v4 = vadd.f32 %v17285_v6, %v17283_v44  ;;  %v17382_v52 = vpop.f32.mrf.mxu1 }
 0x633   : > { %v7204_v63 = vpop.f32.mrf.mxu0 }
 0x634   : > { %v7398_v38 = vmax.f32 %v7366_v57, 0.0  ;;  %v7328_v62 = vmul.f32 %v17324_v45, %v7203_v46  ;;  %v8370_v63 = vadd.f32 %v17289_v34, %v17287_v60 }
 0x636   : > { %v7207_v11 = vpop.f32.mrf.mxu0  ;;  %v7367_v48 = vadd.f32 %v17329_v15, %v7328_v62  ;;  %7836 = vrot.lane.b32.xlu0 %v7398_v38, %s11042_s19  ;;  %v17389_v62 = vpop.f32.mrf.mxu1 }
 0x637   : > { %v7208_v31 = vadd.f32 %v8355_v32, %v7207_v11 }
 0x638   : > { %v7209_v13 = vpop.f32.mrf.mxu0  ;;  %v7399_v7 = vmax.f32 %v7367_v48, 0.0 }
 0x639   : > { %v7329_v51 = vmul.f32 %v17324_v45, %v7208_v31  ;;  %v8373_v31 = vadd.f32 %v17293_v21, %v17291_v17 }
 0x63a   : > { %v7210_v36 = vpop.f32.mrf.mxu0  ;;  %7838 = vrot.lane.b32.xlu1 %v7399_v7, %s11042_s19  ;;  %v17396_v7 = vpop.f32.mrf.mxu1 }
 0x63b   : > { %v7368_v1 = vadd.f32 %v17329_v15, %v7329_v51  ;;  %v7211_v20 = vadd.f32 %v8358_v29, %v7210_v36 }
 0x63c   : > { %v7212_v27 = vpop.f32.mrf.mxu0 }
 0x63d   : > { %v7400_v37 = vmax.f32 %v7368_v1, 0.0  ;;  %v7330_v56 = vmul.f32 %v17324_v45, %v7211_v20  ;;  %v8376_v1 = vadd.f32 %v17297_v33, %v17295_v50 }
 0x63e   : > { %v7215_v40 = vpop.f32.mrf.mxu0 }
 0x63f   : > { %v7369_v22 = vadd.f32 %v17329_v15, %v7330_v56  ;;  %v7216_v58 = vadd.f32 %v8361_v47, %v7215_v40  ;;  %7840 = vrot.lane.b32.xlu0 %v7400_v37, %s11042_s19  ;;  %v17403_v47 = vpop.f32.mrf.mxu1  ;;  %v8379_v40 = vadd.f32 %v17301_v49, %v17299_v12 }
 0x640   : > { %v7217_v25 = vpop.f32.mrf.mxu0 }
 0x641   : > { %v7401_v18 = vmax.f32 %v7369_v22, 0.0  ;;  %v7331_v26 = vmul.f32 %v17324_v45, %v7216_v58  ;;  %v17410_v25 = vpop.f32.mrf.mxu1 }
 0x642   : > { %v7218_v30 = vpop.f32.mrf.mxu0 }
 0x643   : > { %v7370_v14 = vadd.f32 %v17329_v15, %v7331_v26  ;;  %v7219_v54 = vadd.f32 %v8364_v41, %v7218_v30  ;;  %7842 = vrot.lane.b32.xlu1 %v7401_v18, %s11042_s19  ;;  %v8382_v26 = vadd.f32 %v17305_v39, %v17303_v3 }
 0x644   : > { %v7220_v35 = vpop.f32.mrf.mxu0 }
 0x645   : > { %v7402_v9 = vmax.f32 %v7370_v14, 0.0  ;;  %v7332_v8 = vmul.f32 %v17324_v45, %v7219_v54  ;;  %v17417_v54 = vpop.f32.mrf.mxu1 }
 0x647   : > { %v7223_v19 = vpop.f32.mrf.mxu0  ;;  %v7371_v61 = vadd.f32 %v17329_v15, %v7332_v8  ;;  %7844 = vrot.lane.b32.xlu0 %v7402_v9, %s11042_s19  ;;  %v8385_v9 = vadd.f32 %v17309_v59, %v17307_v2 }
 0x648   : > { %v7224_v57 = vadd.f32 %v8367_v4, %v7223_v19 }
 0x649   : > { %v7225_v46 = vpop.f32.mrf.mxu0  ;;  %v7403_v32 = vmax.f32 %v7371_v61, 0.0  ;;  %v17424_v61 = vpop.f32.mrf.mxu1 }
 0x64a   : > { %v7333_v38 = vmul.f32 %v17324_v45, %v7224_v57 }
 0x64b   : > { %v7226_v44 = vpop.f32.mrf.mxu0  ;;  %7846 = vrot.lane.b32.xlu1 %v7403_v32, %s11042_s19 }
 0x64c   : > { %v7372_v6 = vadd.f32 %v17329_v15, %v7333_v38  ;;  %v7227_v11 = vadd.f32 %v8370_v63, %v7226_v44  ;;  %v8388_v63 = vadd.f32 %v17313_v16, %v17311_v23  ;;  %v17431_v44 = vpop.f32.mrf.mxu1 }
 0x64d   : > { %v7228_v48 = vpop.f32.mrf.mxu0 }
 0x64e   : > { %v7404_v13 = vmax.f32 %v7372_v6, 0.0  ;;  %v7334_v29 = vmul.f32 %v17324_v45, %v7227_v11  ;;  %v8391_v48 = vadd.f32 %v17319_v5, %v17315_v0 }
 0x64f   : > { %v7231_v60 = vpop.f32.mrf.mxu0 }
 0x650   : > { %v7373_v34 = vadd.f32 %v17329_v15, %v7334_v29  ;;  %v7232_v51 = vadd.f32 %v8373_v31, %v7231_v60  ;;  %7848 = vrot.lane.b32.xlu0 %v7404_v13, %s11042_s19  ;;  %v17438_v29 = vpop.f32.mrf.mxu1 }
 0x651   : > { %v7233_v36 = vpop.f32.mrf.mxu0 }
 0x652   : > { %v7405_v20 = vmax.f32 %v7373_v34, 0.0  ;;  %v7335_v27 = vmul.f32 %v17324_v45, %v7232_v51  ;;  %v8394_v51 = vadd.f32 %v17340_v24, %v17334_v43 }
 0x653   : > { %v7234_v17 = vpop.f32.mrf.mxu0 }
 0x654   : > { %v7374_v21 = vadd.f32 %v17329_v15, %v7335_v27  ;;  %v7235_v37 = vadd.f32 %v8376_v1, %v7234_v17  ;;  %7850 = vrot.lane.b32.xlu1 %v7405_v20, %s11042_s19  ;;  %v17445_v20 = vpop.f32.mrf.mxu1 }
 0x655   : > { %v7236_v56 = vpop.f32.mrf.mxu0 }
 0x656   : > { %v7406_v22 = vmax.f32 %v7374_v21, 0.0  ;;  %v7336_v58 = vmul.f32 %v17324_v45, %v7235_v37  ;;  %v8397_v21 = vadd.f32 %v17354_v10, %v17347_v28 }
 0x658   : > { %v7239_v50 = vpop.f32.mrf.mxu0  ;;  %v7375_v33 = vadd.f32 %v17329_v15, %v7336_v58  ;;  %7852 = vrot.lane.b32.xlu0 %v7406_v22, %s11042_s19 }
 0x659   : > { %v7240_v41 = vadd.f32 %v8379_v40, %v7239_v50  ;;  %v17452_v40 = vpop.f32.mrf.mxu1  ;;  %v8400_v50 = vadd.f32 %v17368_v42, %v17361_v53 }
 0x65a   : > { %v7241_v18 = vpop.f32.mrf.mxu0  ;;  %v7407_v30 = vmax.f32 %v7375_v33, 0.0 }
 0x65b   : > { %v7337_v14 = vmul.f32 %v17324_v45, %v7240_v41  ;;  %v17459_v18 = vpop.f32.mrf.mxu1 }
 0x65c   : > { %v7242_v12 = vpop.f32.mrf.mxu0  ;;  %7854 = vrot.lane.b32.xlu1 %v7407_v30, %s11042_s19 }
 0x65d   : > { %v7376_v49 = vadd.f32 %v17329_v15, %v7337_v14  ;;  %v7243_v35 = vadd.f32 %v8382_v26, %v7242_v12  ;;  %v8403_v14 = vadd.f32 %v17382_v52, %v17375_v55 }
 0x65e   : > { %v7244_v4 = vpop.f32.mrf.mxu0 }
 0x65f   : > { %v7408_v8 = vmax.f32 %v7376_v49, 0.0  ;;  %v7338_v19 = vmul.f32 %v17324_v45, %v7243_v35  ;;  %v8420_v35 = vpop.f32.mrf.mxu1 }
 0x660   : > { %v7247_v3 = vpop.f32.mrf.mxu0 }
 0x661   : > { %v7377_v39 = vadd.f32 %v17329_v15, %v7338_v19  ;;  %v7248_v57 = vadd.f32 %v8385_v9, %v7247_v3  ;;  %7856 = vrot.lane.b32.xlu0 %v7408_v8, %s11042_s19  ;;  %v8406_v8 = vadd.f32 %v17396_v7, %v17389_v62  ;;  %v17476_v62 = vpop.permute.xlu0 %7704 }
 0x662   : > { %v7249_v46 = vpop.f32.mrf.mxu0 }
 0x663   : > { %v7409_v32 = vmax.f32 %v7377_v39, 0.0  ;;  %v7339_v38 = vmul.f32 %v17324_v45, %v7248_v57  ;;  %v8422_v39 = vpop.f32.mrf.mxu1 }
 0x664   : > { %v7250_v2 = vpop.f32.mrf.mxu0 }
 0x665   : > { %v7378_v59 = vadd.f32 %v17329_v15, %v7339_v38  ;;  %v7251_v6 = vadd.f32 %v8388_v63, %v7250_v2  ;;  %7858 = vrot.lane.b32.xlu1 %v7409_v32, %s11042_s19  ;;  %v8409_v63 = vadd.f32 %v17410_v25, %v17403_v47  ;;  %v8423_v2 = vpop.f32.mrf.mxu1 }
 0x666   : > { %v7252_v11 = vpop.f32.mrf.mxu0 }
 0x667   : > { %v7410_v31 = vmax.f32 %v7378_v59, 0.0  ;;  %v7340_v13 = vmul.f32 %v17324_v45, %v7251_v6  ;;  %v8425_v47 = vpop.f32.mrf.mxu1 }
 0x669   : > { %v7255_v23 = vpop.f32.mrf.mxu0  ;;  %v7379_v16 = vadd.f32 %v17329_v15, %v7340_v13  ;;  %7860 = vrot.lane.b32.xlu0 %v7410_v31, %s11042_s19 }
 0x66a   : > { %v7256_v60 = vadd.f32 %v8391_v48, %v7255_v23  ;;  %v8412_v48 = vadd.f32 %v17424_v61, %v17417_v54  ;;  %v17483_v23 = vpop.permute.xlu1 %7706  ;;  %v8426_v61 = vpop.f32.mrf.mxu1 }
 0x66b   : > { %v7257_v34 = vpop.f32.mrf.mxu0  ;;  %v7411_v36 = vmax.f32 %v7379_v16, 0.0 }
 0x66c   : > { %v7341_v1 = vmul.f32 %v17324_v45, %v7256_v60 }
 0x66d   : > { %v7258_v0 = vpop.f32.mrf.mxu0  ;;  %7862 = vrot.lane.b32.xlu1 %v7411_v36, %s11042_s19  ;;  %v8415_v36 = vadd.f32 %v17438_v29, %v17431_v44  ;;  %v8428_v44 = vpop.f32.mrf.mxu1 }
 0x66e   : > { %v7380_v5 = vadd.f32 %v17329_v15, %v7341_v1  ;;  %v7259_v27 = vadd.f32 %v8394_v51, %v7258_v0  ;;  %v17487_v51 = vpop.permute.xlu0 %7708 }
 0x66f   : > { %v7260_v17 = vpop.f32.mrf.mxu0 }
 0x670   : > { %v7412_v37 = vmax.f32 %v7380_v5, 0.0  ;;  %v7342_v56 = vmul.f32 %v17324_v45, %v7259_v27 }
 0x671   : > { %v7263_v43 = vpop.f32.mrf.mxu0 }
 0x672   : > { %v7381_v24 = vadd.f32 %v17329_v15, %v7342_v56  ;;  %v7264_v22 = vadd.f32 %v8397_v21, %v7263_v43  ;;  %7864 = vrot.lane.b32.xlu0 %v7412_v37, %s11042_s19  ;;  %v17494_v21 = vpop.permute.xlu1 %7710  ;;  %v8418_v37 = vadd.f32 %v17452_v40, %v17445_v20 }
 0x673   : > { %v7265_v58 = vpop.f32.mrf.mxu0 }
 0x674   : > { %v7413_v33 = vmax.f32 %v7381_v24, 0.0  ;;  %v7343_v41 = vmul.f32 %v17324_v45, %v7264_v22  ;;  %v17499_v24 = vpop.permute.xlu0 %7712 }
 0x675   : > { %v7266_v28 = vpop.f32.mrf.mxu0 }
 0x676   : > { %v7382_v10 = vadd.f32 %v17329_v15, %v7343_v41  ;;  %v7267_v26 = vadd.f32 %v8400_v50, %v7266_v28  ;;  %7866 = vrot.lane.b32.xlu1 %v7413_v33, %s11042_s19  ;;  %v8421_v33 = vadd.f32 %v8420_v35, %v17459_v18  ;;  %v17505_v40 = vpop.permute.xlu1 %7714 }
 0x677   : > { %v7268_v30 = vpop.f32.mrf.mxu0 }
 0x678   : > { %v7414_v12 = vmax.f32 %v7382_v10, 0.0  ;;  %v7344_v49 = vmul.f32 %v17324_v45, %v7267_v26  ;;  %v8429_v10 = vpop.f32.mrf.mxu1 }
 0x679   : > { %v7271_v53 = vpop.f32.mrf.mxu0 }
 0x67a   : > { %v7383_v42 = vadd.f32 %v17329_v15, %v7344_v49  ;;  %v7272_v4 = vadd.f32 %v8403_v14, %v7271_v53  ;;  %7868 = vrot.lane.b32.xlu0 %v7414_v12, %s11042_s19  ;;  %v17509_v12 = vpop.permute.xlu0 %7716  ;;  %v8424_v49 = vadd.f32 %v8423_v2, %v8422_v39  ;;  %v8431_v18 = vpop.f32.mrf.mxu1 }
 0x67b   : > { %v7273_v9 = vpop.f32.mrf.mxu0 }
 0x67c   : > { %v7415_v19 = vmax.f32 %v7383_v42, 0.0  ;;  %v7345_v3 = vmul.f32 %v17324_v45, %v7272_v4 }
 0x67d   : > { %v7274_v57 = vpop.f32.mrf.mxu0 }
 0x67e   : > { %v7384_v55 = vadd.f32 %v17329_v15, %v7345_v3  ;;  %v7275_v52 = vadd.f32 %v8406_v8, %v7274_v57  ;;  %7870 = vrot.lane.b32.xlu1 %v7415_v19, %s11042_s19  ;;  %v17514_v19 = vpop.permute.xlu1 %7718  ;;  %v8427_v3 = vadd.f32 %v8426_v61, %v8425_v47  ;;  %v17517_v39 = vpop.permute.xlu0 %7720 }
 0x67f   : > { %v7276_v46 = vpop.f32.mrf.mxu0 }
 0x680   : > { %v7416_v32 = vmax.f32 %v7384_v55, 0.0  ;;  %v7346_v38 = vmul.f32 %v17324_v45, %v7275_v52  ;;  %v8432_v52 = vpop.f32.mrf.mxu1 }
 0x681   : > { %v7279_v59 = vpop.f32.mrf.mxu0 }
 0x682   : > { %v7385_v7 = vadd.f32 %v17329_v15, %v7346_v38  ;;  %v7280_v6 = vadd.f32 %v8409_v63, %v7279_v59  ;;  %7872 = vrot.lane.b32.xlu0 %v7416_v32, %s11042_s19  ;;  %v7428_v38 = vld [vmem:[#allocation3] sm:$0xff]  ;;  %v7430_v59 = vld [vmem:[#allocation3 + $0x18] sm:$0xff] }
 0x683   : > { %v7281_v11 = vpop.f32.mrf.mxu0 }
 0x684   : > { %v7417_v31 = vmax.f32 %v7385_v7, 0.0  ;;  %v7347_v13 = vmul.f32 %v17324_v45, %v7280_v6  ;;  %v7464_v7 = vld [vmem:[#allocation3 + $0x1] sm:$0xff]  ;;  %v7466_v6 = vld [vmem:[#allocation3 + $0x19] sm:$0xff]  ;;  %v8430_v11 = vadd.f32 %v8429_v10, %v8428_v44  ;;  %v8433_v44 = vadd.f32 %v8432_v52, %v8431_v18 }
 0x685   : > { %v7282_v25 = vpop.f32.mrf.mxu0  ;;  %v7502_v61 = vmax.f32 %v7430_v59, %v7466_v6  ;;  %v7539_v18 = vld [vmem:[#allocation3 + $0x22] sm:$0xff]  ;;  %v7471_v59 = vld [vmem:[#allocation3 + $0x51] sm:$0xff] }
 0x686   : > { %v7386_v16 = vadd.f32 %v17329_v15, %v7347_v13  ;;  %v7283_v60 = vadd.f32 %v8412_v48, %v7282_v25  ;;  %7874 = vrot.lane.b32.xlu1 %v7417_v31, %s11042_s19  ;;  %v8434_v13 = vpop.f32.mrf.mxu1  ;;  %v7432_v25 = vld [vmem:[#allocation3 + $0x30] sm:$0xff] }
 0x687   : > { %v7284_v34 = vpop.f32.mrf.mxu0 }
 0x688   : > { %v7418_v1 = vmax.f32 %v7386_v16, 0.0  ;;  %v7348_v54 = vmul.f32 %v17324_v45, %v7283_v60  ;;  %v7468_v16 = vld [vmem:[#allocation3 + $0x31] sm:$0xff]  ;;  %v7429_v60 = vld [vmem:[#allocation3 + $0x8] sm:$0xff]  ;;  %v17522_v34 = vpop.permute.xlu1 %7722 }
 0x689   : > { %v7287_v0 = vpop.f32.mrf.mxu0 }
 0x68a   : > { %v7387_v5 = vadd.f32 %v17329_v15, %v7348_v54  ;;  %v7288_v27 = vadd.f32 %v8415_v36, %v7287_v0  ;;  %7876 = vrot.lane.b32.xlu0 %v7418_v1, %s11042_s19  ;;  %v7500_v54 = vmax.f32 %v7428_v38, %v7464_v7  ;;  %v7431_v0 = vld [vmem:[#allocation3 + $0x20] sm:$0xff] }
 0x68b   : > { %v7289_v17 = vpop.f32.mrf.mxu0 }
 0x68c   : > { %v7419_v56 = vmax.f32 %v7387_v5, 0.0  ;;  %v7349_v43 = vmul.f32 %v17324_v45, %v7288_v27  ;;  %v7465_v5 = vld [vmem:[#allocation3 + $0x9] sm:$0xff]  ;;  %v7467_v27 = vld [vmem:[#allocation3 + $0x21] sm:$0xff] }
 0x68d   : > { %v7290_v29 = vpop.f32.mrf.mxu0  ;;  %v7501_v10 = vmax.f32 %v7429_v60, %v7465_v5  ;;  %v7542_v60 = vld [vmem:[#allocation3 + $0x4a] sm:$0xff]  ;;  %v7543_v5 = vld [vmem:[#allocation3 + $0x52] sm:$0xff] }
 0x68e   : > { %v7388_v22 = vadd.f32 %v17329_v15, %v7349_v43  ;;  %v7291_v58 = vadd.f32 %v8418_v37, %v7290_v29  ;;  %7878 = vrot.lane.b32.xlu1 %v7419_v56, %s11042_s19  ;;  %v7536_v37 = vld [vmem:[#allocation3 + $0x2] sm:$0xff]  ;;  %v7538_v56 = vld [vmem:[#allocation3 + $0x1a] sm:$0xff]  ;;  %v17526_v43 = vpop.permute.xlu0 %7724 }
 0x68f   : > { %v7292_v50 = vpop.f32.mrf.mxu0 }
 0x690   : > { %v7420_v41 = vmax.f32 %v7388_v22, 0.0  ;;  %v7350_v28 = vmul.f32 %v17324_v45, %v7291_v58  ;;  %v8435_v58 = vpop.f32.mrf.mxu1 }
 0x691   : > { %v7295_v20 = vpop.f32.mrf.mxu0 }
 0x692   : > { %v7389_v26 = vadd.f32 %v17329_v15, %v7350_v28  ;;  %v7296_v30 = vadd.f32 %v8421_v33, %v7295_v20  ;;  %7880 = vrot.lane.b32.xlu0 %v7420_v41, %s11042_s19  ;;  %v7504_v33 = vmax.f32 %v7432_v25, %v7468_v16  ;;  %v7540_v41 = vld [vmem:[#allocation3 + $0x32] sm:$0xff]  ;;  %v7503_v20 = vmax.f32 %v7431_v0, %v7467_v27  ;;  %v17534_v7 = vpop.permute.xlu0 %7728  ;;  %v7472_v25 = vld [vmem:[#allocation3 + $0x61] sm:$0xff] }
 0x693   : > { %v7297_v14 = vpop.f32.mrf.mxu0  ;;  %v7433_v28 = vld [vmem:[#allocation3 + $0x38] sm:$0xff] }
 0x694   : > { %v7421_v53 = vmax.f32 %v7389_v26, 0.0  ;;  %v7351_v42 = vmul.f32 %v17324_v45, %v7296_v30  ;;  %v7572_v14 = vmax.f32 %v7500_v54, %v7536_v37  ;;  %v7575_v38 = vmax.f32 %v7503_v20, %v7539_v18  ;;  %v7475_v18 = vld [vmem:[#allocation3 + $0x81] sm:$0xff] }
 0x695   : > { %v7298_v35 = vpop.f32.mrf.mxu0 }
 0x696   : > { %v7390_v4 = vadd.f32 %v17329_v15, %v7351_v42  ;;  %v7299_v9 = vadd.f32 %v8424_v49, %v7298_v35  ;;  %7882 = vrot.lane.b32.xlu1 %v7421_v53, %s11042_s19  ;;  %v7574_v49 = vmax.f32 %v7502_v61, %v7538_v56  ;;  %v7469_v53 = vld [vmem:[#allocation3 + $0x39] sm:$0xff]  ;;  %v7537_v42 = vld [vmem:[#allocation3 + $0xa] sm:$0xff] }
 0x697   : > { %v7300_v8 = vpop.f32.mrf.mxu0 }
 0x698   : > { %v7422_v57 = vmax.f32 %v7390_v4, 0.0  ;;  %v7352_v55 = vmul.f32 %v17324_v45, %v7299_v9  ;;  %v7434_v4 = vld [vmem:[#allocation3 + $0x48] sm:$0xff]  ;;  %v17531_v8 = vpop.permute.xlu1 %7726 }
 0x699   : > { %v7303_v46 = vpop.f32.mrf.mxu0  ;;  %v7470_v9 = vld [vmem:[#allocation3 + $0x49] sm:$0xff] }
 0x69a   : > { %v7391_v63 = vadd.f32 %v17329_v15, %v7352_v55  ;;  %v7304_v32 = vadd.f32 %v8427_v3, %v7303_v46  ;;  %7884 = vrot.lane.b32.xlu0 %v7422_v57, %s11042_s19  ;;  %v8436_v3 = vadd.f32 %v8435_v58, %v8434_v13  ;;  %v7576_v46 = vmax.f32 %v7504_v33, %v7540_v41  ;;  %v7437_v58 = vld [vmem:[#allocation3 + $0x68] sm:$0xff]  ;;  %v7438_v33 = vld [vmem:[#allocation3 + $0x78] sm:$0xff] }
 0x69b   : > { %v7305_v2 = vpop.f32.mrf.mxu0  ;;  %v7506_v13 = vmax.f32 %v7434_v4, %v7470_v9  ;;  %v7474_v41 = vld [vmem:[#allocation3 + $0x79] sm:$0xff]  ;;  %v7476_v4 = vld [vmem:[#allocation3 + $0x91] sm:$0xff] }
 0x69c   : > { %v7423_v48 = vmax.f32 %v7391_v63, 0.0  ;;  %v7353_v31 = vmul.f32 %v17324_v45, %v7304_v32  ;;  %v7505_v63 = vmax.f32 %v7433_v28, %v7469_v53  ;;  %v7573_v32 = vmax.f32 %v7501_v10, %v7537_v42  ;;  %v7435_v2 = vld [vmem:[#allocation3 + $0x50] sm:$0xff]  ;;  %v7439_v53 = vld [vmem:[#allocation3 + $0x80] sm:$0xff] }
 0x69d   : > { %v7306_v47 = vpop.f32.mrf.mxu0  ;;  %v7507_v54 = vmax.f32 %v7435_v2, %v7471_v59  ;;  %v7510_v42 = vmax.f32 %v7438_v33, %v7474_v41  ;;  %v7545_v9 = vld [vmem:[#allocation3 + $0x6a] sm:$0xff] }
 0x69e   : > { %v7392_v36 = vadd.f32 %v17329_v15, %v7353_v31  ;;  %v7307_v1 = vadd.f32 %v8430_v11, %v7306_v47  ;;  %7886 = vrot.lane.b32.xlu1 %v7423_v48, %s11042_s19  ;;  %v7608_v48 = vmax.f32 %v7572_v14, %v7574_v49  ;;  %v7541_v31 = vld [vmem:[#allocation3 + $0x3a] sm:$0xff]  ;;  %v7609_v0 = vmax.f32 %v7573_v32, %v7575_v38 }
 0x69f   : > { %v7308_v17 = vpop.f32.mrf.mxu0  ;;  %v7436_v47 = vld [vmem:[#allocation3 + $0x60] sm:$0xff]  ;;  %v7577_v61 = vmax.f32 %v7505_v63, %v7541_v31  ;;  %v7579_v10 = vmax.f32 %v7507_v54, %v7543_v5  ;;  %v7511_v32 = vmax.f32 %v7439_v53, %v7475_v18  ;;  %v7441_v31 = vld [vmem:[#allocation3 + $0x98] sm:$0xff] }
 0x6a0   : > { %v7424_v29 = vmax.f32 %v7392_v36, 0.0  ;;  %v7354_v22 = vmul.f32 %v17324_v45, %v7307_v1  ;;  %v7508_v27 = vmax.f32 %v7436_v47, %v7472_v25  ;;  %v17539_v17 = vpop.permute.xlu1 %7730  ;;  %v7640_v56 = vmax.f32 %v7608_v48, %v7576_v46  ;;  %v7548_v48 = vld [vmem:[#allocation3 + $0x92] sm:$0xff]  ;;  %v7442_v47 = vld [vmem:[#allocation3 + $0xa8] sm:$0xff] }
 0x6a1   : > { %v7311_v50 = vpop.f32.mrf.mxu0  ;;  %v7611_v20 = vmax.f32 %v7575_v38, %v7577_v61  ;;  %v7613_v63 = vmax.f32 %v7577_v61, %v7579_v10  ;;  %v7478_v25 = vld [vmem:[#allocation3 + $0xa9] sm:$0xff]  ;;  %v7482_v18 = vld [vmem:[#allocation3 + $0xd9] sm:$0xff] }
 0x6a2   : > { %v7393_v26 = vadd.f32 %v17329_v15, %v7354_v22  ;;  %v7312_v30 = vadd.f32 %v8433_v44, %v7311_v50  ;;  %7888 = vrot.lane.b32.xlu0 %v7424_v29, %s11042_s19  ;;  %v7578_v44 = vmax.f32 %v7506_v13, %v7542_v60  ;;  %v7610_v29 = vmax.f32 %v7574_v49, %v7576_v46  ;;  %v7544_v22 = vld [vmem:[#allocation3 + $0x62] sm:$0xff]  ;;  %v7477_v13 = vld [vmem:[#allocation3 + $0x99] sm:$0xff] }
 0x6a3   : > { %v7313_v35 = vpop.f32.mrf.mxu0  ;;  %v7473_v50 = vld [vmem:[#allocation3 + $0x69] sm:$0xff]  ;;  %v7513_v54 = vmax.f32 %v7441_v31, %v7477_v13  ;;  %v7483_v31 = vld [vmem:[#allocation3 + $0xe1] sm:$0xff] }
 0x6a4   : > { %v7425_v57 = vmax.f32 %v7393_v26, 0.0  ;;  %v7355_v55 = vmul.f32 %v17324_v45, %v7312_v30  ;;  %v7641_v26 = vmax.f32 %v7609_v0, %v7577_v61  ;;  %v7580_v30 = vmax.f32 %v7508_v27, %v7544_v22  ;;  %v7440_v35 = vld [vmem:[#allocation3 + $0x90] sm:$0xff]  ;;  %v7444_v22 = vld [vmem:[#allocation3 + $0xc0] sm:$0xff] }
 0x6a5   : > { %v7314_v52 = vpop.f32.mrf.mxu0  ;;  %v7612_v14 = vmax.f32 %v7576_v46, %v7578_v44  ;;  %v7509_v49 = vmax.f32 %v7437_v58, %v7473_v50  ;;  %v7547_v46 = vld [vmem:[#allocation3 + $0x82] sm:$0xff]  ;;  %v7512_v38 = vmax.f32 %v7440_v35, %v7476_v4  ;;  %v7443_v61 = vld [vmem:[#allocation3 + $0xb0] sm:$0xff] }
 0x6a6   : > { %v7394_v6 = vadd.f32 %v17329_v15, %v7355_v55  ;;  %v7315_v11 = vadd.f32 %v8436_v3, %v7314_v52  ;;  %7890 = vrot.lane.b32.xlu1 %v7425_v57, %s11042_s19  ;;  %v7546_v3 = vld [vmem:[#allocation3 + $0x7a] sm:$0xff]  ;;  %v17547_v57 = vpop.permute.xlu1 %7734  ;;  %v7643_v55 = vmax.f32 %v7611_v20, %v7579_v10  ;;  %v7583_v60 = vmax.f32 %v7511_v32, %v7547_v46  ;;  %v7479_v0 = vld [vmem:[#allocation3 + $0xb1] sm:$0xff]  ;;  %v7552_v35 = vld [vmem:[#allocation3 + $0xc2] sm:$0xff] }
 0x6a7   : > { %v7316_v16 = vpop.f32.mrf.mxu0  ;;  %v7644_v52 = vmax.f32 %v7612_v14, %v7580_v30  ;;  %v7581_v59 = vmax.f32 %v7509_v49, %v7545_v9  ;;  %v7480_v58 = vld [vmem:[#allocation3 + $0xc1] sm:$0xff]  ;;  %v7515_v33 = vmax.f32 %v7443_v61, %v7479_v0  ;;  %v7481_v49 = vld [vmem:[#allocation3 + $0xc9] sm:$0xff]  ;;  %v7449_v61 = vld [vmem:[#allocation3 + $0xf8] sm:$0xff] }
 0x6a8   : > { %v7426_v36 = vmax.f32 %v7394_v6, 0.0  ;;  %v7356_v1 = vmul.f32 %v17324_v45, %v7315_v11  ;;  %v17543_v45 = vpop.permute.xlu0 %7732  ;;  %v7582_v6 = vmax.f32 %v7510_v42, %v7546_v3  ;;  %v7614_v11 = vmax.f32 %v7578_v44, %v7580_v30  ;;  %v7446_v42 = vld [vmem:[#allocation3 + $0xd8] sm:$0xff]  ;;  %v7448_v13 = vld [vmem:[#allocation3 + $0xf0] sm:$0xff] }
 0x6a9   : > { %v7615_v16 = vmax.f32 %v7579_v10, %v7581_v59  ;;  %v7645_v27 = vmax.f32 %v7613_v63, %v7581_v59  ;;  %v7617_v20 = vmax.f32 %v7581_v59, %v7583_v60  ;;  %v7518_v63 = vmax.f32 %v7446_v42, %v7482_v18  ;;  %v7485_v0 = vld [vmem:[#allocation3 + $0xf9] sm:$0xff]  ;;  %v7451_v42 = vld [vmem:[#allocation3 + $0x110] sm:$0xff] }
 0x6aa   : > { %v7395_v37 = vadd.f32 %v17329_v15, %v7356_v1  ;;  %7892 = vrot.lane.b32.xlu0 %v7426_v36, %s11042_s19  ;;  %v7642_v15 = vmax.f32 %v7610_v29, %v7578_v44  ;;  %v7584_v36 = vmax.f32 %v7512_v38, %v7548_v48  ;;  %v7616_v1 = vmax.f32 %v7580_v30, %v7582_v6  ;;  %v17553_v5 = vpop.permute.xlu1 %7738  ;;  %v7550_v29 = vld [vmem:[#allocation3 + $0xaa] sm:$0xff]  ;;  %v7447_v48 = vld [vmem:[#allocation3 + $0xe0] sm:$0xff] }
 0x6ab   : > { %v7514_v44 = vmax.f32 %v7442_v47, %v7478_v25  ;;  %v7647_v41 = vmax.f32 %v7615_v16, %v7583_v60  ;;  %v7445_v30 = vld [vmem:[#allocation3 + $0xc8] sm:$0xff]  ;;  %v7484_v47 = vld [vmem:[#allocation3 + $0xf1] sm:$0xff] }
 0x6ac   : > { %v7427_v28 = vmax.f32 %v7395_v37, 0.0  ;;  %v17549_v2 = vpop.permute.xlu0 %7736  ;;  %v7646_v37 = vmax.f32 %v7614_v11, %v7582_v6  ;;  %v7618_v53 = vmax.f32 %v7582_v6, %v7584_v36  ;;  %v7553_v6 = vld [vmem:[#allocation3 + $0xca] sm:$0xff]  ;;  %v7554_v11 = vld [vmem:[#allocation3 + $0xda] sm:$0xff] }
 0x6ad   : > { %v7586_v14 = vmax.f32 %v7514_v44, %v7550_v29  ;;  %v7450_v44 = vld [vmem:[#allocation3 + $0x108] sm:$0xff]  ;;  %v7487_v18 = vld [vmem:[#allocation3 + $0x111] sm:$0xff] }
 0x6ae   : > { %7894 = vrot.lane.b32.xlu1 %v7427_v28, %s11042_s19  ;;  %7960 = vrot.lane.b32.xlu0 %v7640_v56, %s11046_s23  ;;  %v7549_v56 = vld [vmem:[#allocation3 + $0x9a] sm:$0xff]  ;;  %v7648_v28 = vmax.f32 %v7616_v1, %v7584_v36  ;;  %v17561_v4 = vpop.permute.xlu1 %7742  ;;  %v7590_v1 = vmax.f32 %v7518_v63, %v7554_v11  ;;  %v7486_v29 = vld [vmem:[#allocation3 + $0x109] sm:$0xff] }
 0x6af   : > { %v7585_v10 = vmax.f32 %v7513_v54, %v7549_v56  ;;  %v7650_v46 = vmax.f32 %v7618_v53, %v7586_v14  ;;  %v7620_v59 = vmax.f32 %v7584_v36, %v7586_v14  ;;  %v7520_v56 = vmax.f32 %v7448_v13, %v7484_v47  ;;  %v7453_v13 = vld [vmem:[#allocation3 + $0x128] sm:$0xff] }
 0x6b0   : > { %v17557_v50 = vpop.permute.xlu0 %7740  ;;  %v7489_v47 = vld [vmem:[#allocation3 + $0x129] sm:$0xff] }
 0x6b1   : > { %v7619_v3 = vmax.f32 %v7583_v60, %v7585_v10 }
 0x6b2   : > { %7962 = vrot.lane.b32.xlu1 %v7641_v26, %s11046_s23  ;;  %7964 = vrot.lane.b32.xlu0 %v7642_v15, %s11046_s23  ;;  %v7551_v26 = vld [vmem:[#allocation3 + $0xb2] sm:$0xff]  ;;  %v7516_v15 = vmax.f32 %v7444_v22, %v7480_v58  ;;  %v7555_v22 = vld [vmem:[#allocation3 + $0xe2] sm:$0xff] }
 0x6b3   : > { %v7587_v9 = vmax.f32 %v7515_v33, %v7551_v26  ;;  %v7556_v58 = vld [vmem:[#allocation3 + $0xf2] sm:$0xff]  ;;  %v7557_v26 = vld [vmem:[#allocation3 + $0xfa] sm:$0xff] }
 0x6b4   : > { %v17563_v32 = vpop.permute.xlu0 %7744  ;;  %v7588_v38 = vmax.f32 %v7516_v15, %v7552_v35  ;;  %v7592_v53 = vmax.f32 %v7520_v56, %v7556_v58  ;;  %v7452_v35 = vld [vmem:[#allocation3 + $0x120] sm:$0xff]  ;;  %v7561_v58 = vld [vmem:[#allocation3 + $0x12a] sm:$0xff] }
 0x6b5   : > { %v7651_v25 = vmax.f32 %v7619_v3, %v7587_v9  ;;  %v7621_v60 = vmax.f32 %v7585_v10, %v7587_v9  ;;  %v7488_v3 = vld [vmem:[#allocation3 + $0x121] sm:$0xff] }
 0x6b6   : > { %7966 = vrot.lane.b32.xlu1 %v7643_v55, %s11046_s23  ;;  %7968 = vrot.lane.b32.xlu0 %v7644_v52, %s11046_s23  ;;  %v7649_v55 = vmax.f32 %v7617_v20, %v7585_v10  ;;  %v7517_v52 = vmax.f32 %v7445_v30, %v7481_v49  ;;  %v7622_v54 = vmax.f32 %v7586_v14, %v7588_v38  ;;  %v7558_v49 = vld [vmem:[#allocation3 + $0x10a] sm:$0xff]  ;;  %v7491_v56 = vld [vmem:[#allocation3 + $0x141] sm:$0xff] }
 0x6b7   : > { %v7652_v36 = vmax.f32 %v7620_v59, %v7588_v38  ;;  %v7522_v30 = vmax.f32 %v7450_v44, %v7486_v29  ;;  %v7624_v15 = vmax.f32 %v7588_v38, %v7590_v1  ;;  %v7523_v59 = vmax.f32 %v7451_v42, %v7487_v18  ;;  %v7563_v42 = vld [vmem:[#allocation3 + $0x142] sm:$0xff] }
 0x6b8   : > { %v7589_v16 = vmax.f32 %v7517_v52, %v7553_v6  ;;  %v17571_v33 = vpop.permute.xlu0 %7748  ;;  %v7654_v10 = vmax.f32 %v7622_v54, %v7590_v1  ;;  %v7490_v54 = vld [vmem:[#allocation3 + $0x139] sm:$0xff] }
 0x6b9   : > { %v7656_v38 = vmax.f32 %v7624_v15, %v7592_v53 }
 0x6ba   : > { %7970 = vrot.lane.b32.xlu1 %v7645_v27, %s11046_s23  ;;  %7972 = vrot.lane.b32.xlu0 %v7646_v37, %s11046_s23  ;;  %v17567_v27 = vpop.permute.xlu1 %7746  ;;  %v7519_v37 = vmax.f32 %v7447_v48, %v7483_v31  ;;  %v7623_v20 = vmax.f32 %v7587_v9, %v7589_v16  ;;  %v7626_v9 = vmax.f32 %v7590_v1, %v7592_v53  ;;  %v7559_v48 = vld [vmem:[#allocation3 + $0x112] sm:$0xff] }
 0x6bb   : > { %v7524_v31 = vmax.f32 %v7452_v35, %v7488_v3 }
 0x6bc   : > { %v7591_v14 = vmax.f32 %v7519_v37, %v7555_v22  ;;  %v17577_v6 = vpop.permute.xlu0 %7752  ;;  %v7455_v37 = vld [vmem:[#allocation3 + $0x140] sm:$0xff] }
 0x6be   : > { %7974 = vrot.lane.b32.xlu1 %v7647_v41, %s11046_s23  ;;  %7976 = vrot.lane.b32.xlu0 %v7648_v28, %s11046_s23  ;;  %v7521_v41 = vmax.f32 %v7449_v61, %v7485_v0  ;;  %v7653_v28 = vmax.f32 %v7621_v60, %v7589_v16  ;;  %v7625_v63 = vmax.f32 %v7589_v16, %v7591_v14  ;;  %v7454_v60 = vld [vmem:[#allocation3 + $0x138] sm:$0xff] }
 0x6bf   : > { %v7655_v11 = vmax.f32 %v7623_v20, %v7591_v14  ;;  %v7595_v0 = vmax.f32 %v7523_v59, %v7559_v48  ;;  %v7562_v20 = vld [vmem:[#allocation3 + $0x13a] sm:$0xff] }
 0x6c0   : > { %v7593_v52 = vmax.f32 %v7521_v41, %v7557_v26  ;;  %v7526_v41 = vmax.f32 %v7454_v60, %v7490_v54  ;;  %v17585_v26 = vpop.permute.xlu0 %7756  ;;  %v7493_v59 = vld [vmem:[#allocation3 + $0x159] sm:$0xff]  ;;  %v7459_v60 = vld [vmem:[#allocation3 + $0x170] sm:$0xff] }
 0x6c2   : > { %7978 = vrot.lane.b32.xlu1 %v7649_v55, %s11046_s23  ;;  %7980 = vrot.lane.b32.xlu0 %v7650_v46, %s11046_s23  ;;  %v17575_v55 = vpop.permute.xlu1 %7750  ;;  %v7594_v46 = vmax.f32 %v7522_v30, %v7558_v49  ;;  %v7657_v61 = vmax.f32 %v7625_v63, %v7593_v52  ;;  %v7627_v1 = vmax.f32 %v7591_v14, %v7593_v52  ;;  %v7564_v63 = vld [vmem:[#allocation3 + $0x152] sm:$0xff] }
 0x6c3   : > { %v7527_v30 = vmax.f32 %v7455_v37, %v7491_v56  ;;  %v7629_v49 = vmax.f32 %v7593_v52, %v7595_v0  ;;  %v7598_v3 = vmax.f32 %v7526_v41, %v7562_v20  ;;  %v7496_v37 = vld [vmem:[#allocation3 + $0x181] sm:$0xff] }
 0x6c4   : > { %v7658_v16 = vmax.f32 %v7626_v9, %v7594_v46  ;;  %v7628_v22 = vmax.f32 %v7592_v53, %v7594_v46  ;;  %v7659_v14 = vmax.f32 %v7627_v1, %v7595_v0  ;;  %v7457_v9 = vld [vmem:[#allocation3 + $0x158] sm:$0xff]  ;;  %v17591_v54 = vpop.permute.xlu0 %7760 }
 0x6c5   : > { %v7495_v1 = vld [vmem:[#allocation3 + $0x171] sm:$0xff]  ;;  %v7565_v56 = vld [vmem:[#allocation3 + $0x15a] sm:$0xff] }
 0x6c6   : > { %7982 = vrot.lane.b32.xlu1 %v7651_v25, %s11046_s23  ;;  %7984 = vrot.lane.b32.xlu0 %v7652_v36, %s11046_s23  ;;  %v7560_v25 = vld [vmem:[#allocation3 + $0x122] sm:$0xff]  ;;  %v7525_v36 = vmax.f32 %v7453_v13, %v7489_v47  ;;  %v17581_v44 = vpop.permute.xlu1 %7754 }
 0x6c7   : > { %v7596_v29 = vmax.f32 %v7524_v31, %v7560_v25  ;;  %v7599_v31 = vmax.f32 %v7527_v30, %v7563_v42  ;;  %v7568_v42 = vld [vmem:[#allocation3 + $0x182] sm:$0xff] }
 0x6c8   : > { %v7597_v15 = vmax.f32 %v7525_v36, %v7561_v58  ;;  %v7460_v36 = vld [vmem:[#allocation3 + $0x180] sm:$0xff] }
 0x6c9   : > { %v7660_v35 = vmax.f32 %v7628_v22, %v7596_v29  ;;  %v7630_v53 = vmax.f32 %v7594_v46, %v7596_v29  ;;  %v7632_v25 = vmax.f32 %v7596_v29, %v7598_v3  ;;  %v7566_v22 = vld [vmem:[#allocation3 + $0x16a] sm:$0xff]  ;;  %v7567_v29 = vld [vmem:[#allocation3 + $0x172] sm:$0xff] }
 0x6ca   : > { %7986 = vrot.lane.b32.xlu1 %v7653_v28, %s11046_s23  ;;  %7988 = vrot.lane.b32.xlu0 %v7654_v10, %s11046_s23  ;;  %v7456_v28 = vld [vmem:[#allocation3 + $0x150] sm:$0xff]  ;;  %v17589_v48 = vpop.permute.xlu1 %7758  ;;  %v7631_v13 = vmax.f32 %v7595_v0, %v7597_v15  ;;  %v7661_v47 = vmax.f32 %v7629_v49, %v7597_v15  ;;  %v7633_v41 = vmax.f32 %v7597_v15, %v7599_v31 }
 0x6cb   : > { %v7492_v10 = vld [vmem:[#allocation3 + $0x151] sm:$0xff]  ;;  %v7662_v46 = vmax.f32 %v7630_v53, %v7598_v3 }
 0x6cc   : > { %v7528_v18 = vmax.f32 %v7456_v28, %v7492_v10  ;;  %v7663_v58 = vmax.f32 %v7631_v13, %v7599_v31  ;;  %v7531_v28 = vmax.f32 %v7459_v60, %v7495_v1  ;;  %v7532_v10 = vmax.f32 %v7460_v36, %v7496_v37  ;;  %v7462_v53 = vld [vmem:[#allocation3 + $0x198] sm:$0xff]  ;;  %v7569_v60 = vld [vmem:[#allocation3 + $0x18a] sm:$0xff] }
 0x6ce   : > { %7990 = vrot.lane.b32.xlu1 %v7655_v11, %s11046_s23  ;;  %7992 = vrot.lane.b32.xlu0 %v7656_v38, %s11046_s23  ;;  %v7458_v11 = vld [vmem:[#allocation3 + $0x168] sm:$0xff]  ;;  %v7600_v52 = vmax.f32 %v7528_v18, %v7564_v63  ;;  %v17595_v20 = vpop.permute.xlu1 %7762  ;;  %v7498_v63 = vld [vmem:[#allocation3 + $0x199] sm:$0xff] }
 0x6cf   : > { %v7494_v38 = vld [vmem:[#allocation3 + $0x169] sm:$0xff]  ;;  %19601 = vst [vmem:[#allocation89_spill] sm:$0xff] %v17595_v20 }
 0x6d0   : > { %v7664_v0 = vmax.f32 %v7632_v25, %v7600_v52  ;;  %v7634_v49 = vmax.f32 %v7598_v3, %v7600_v52  ;;  %v7461_v18 = vld [vmem:[#allocation3 + $0x188] sm:$0xff]  ;;  %v7534_v3 = vmax.f32 %v7462_v53, %v7498_v63 }
 0x6d2   : > { %7994 = vrot.lane.b32.xlu1 %v7657_v61, %s11046_s23  ;;  %7996 = vrot.lane.b32.xlu0 %v7658_v16, %s11046_s23  ;;  %v7529_v61 = vmax.f32 %v7457_v9, %v7493_v59  ;;  %v7530_v16 = vmax.f32 %v7458_v11, %v7494_v38  ;;  %v17599_v9 = vpop.permute.xlu0 %7764  ;;  %v7603_v59 = vmax.f32 %v7531_v28, %v7567_v29  ;;  %v17603_v1 = vpop.permute.xlu1 %7766 }
 0x6d3   : > { %19602 = vst [vmem:[#allocation90_spill] sm:$0xff] %v17599_v9  ;;  %v7604_v11 = vmax.f32 %v7532_v10, %v7568_v42  ;;  %19603 = vst [vmem:[#allocation91_spill] sm:$0xff] %v17603_v1 }
 0x6d4   : > { %v7601_v30 = vmax.f32 %v7529_v61, %v7565_v56  ;;  %v7463_v61 = vld [vmem:[#allocation3 + $0x1a0] sm:$0xff] }
 0x6d6   : > { %7998 = vrot.lane.b32.xlu1 %v7659_v14, %s11046_s23  ;;  %8000 = vrot.lane.b32.xlu0 %v7660_v35, %s11046_s23  ;;  %v7602_v14 = vmax.f32 %v7530_v16, %v7566_v22  ;;  %v7497_v35 = vld [vmem:[#allocation3 + $0x189] sm:$0xff]  ;;  %v7635_v15 = vmax.f32 %v7599_v31, %v7601_v30  ;;  %v7499_v16 = vld [vmem:[#allocation3 + $0x1a1] sm:$0xff]  ;;  %v7833_v36 = vpop.permute.xlu0 %7832  ;;  %v7637_v22 = vmax.f32 %v7601_v30, %v7603_v59  ;;  %v7835_v28 = vpop.permute.xlu1 %7834 }
 0x6d7   : > { %v7533_v13 = vmax.f32 %v7461_v18, %v7497_v35 }
 0x6d8   : > { %v7636_v38 = vmax.f32 %v7600_v52, %v7602_v14  ;;  %v7666_v25 = vmax.f32 %v7634_v49, %v7602_v14  ;;  %v7667_v37 = vmax.f32 %v7635_v15, %v7603_v59 }
 0x6d9   : > { %v7605_v56 = vmax.f32 %v7533_v13, %v7569_v60 }
 0x6da   : > { %8002 = vrot.lane.b32.xlu1 %v7661_v47, %s11046_s23  ;;  %8004 = vrot.lane.b32.xlu0 %v7662_v46, %s11046_s23  ;;  %v7665_v47 = vmax.f32 %v7633_v41, %v7601_v30  ;;  %v7570_v46 = vld [vmem:[#allocation3 + $0x19a] sm:$0xff]  ;;  %v7668_v31 = vmax.f32 %v7636_v38, %v7604_v11  ;;  %v7571_v41 = vld [vmem:[#allocation3 + $0x1a2] sm:$0xff]  ;;  %v7837_v29 = vpop.permute.xlu0 %7836  ;;  %v7839_v35 = vpop.permute.xlu1 %7838 }
 0x6db   : > { %v7606_v52 = vmax.f32 %v7534_v3, %v7570_v46  ;;  %v7669_v10 = vmax.f32 %v7637_v22, %v7605_v56  ;;  %v7639_v18 = vmax.f32 %v7603_v59, %v7605_v56 }
 0x6de   : > { %8006 = vrot.lane.b32.xlu1 %v7663_v58, %s11046_s23  ;;  %8008 = vrot.lane.b32.xlu0 %v7664_v0, %s11046_s23  ;;  %v7638_v58 = vmax.f32 %v7602_v14, %v7604_v11  ;;  %v7535_v0 = vmax.f32 %v7463_v61, %v7499_v16  ;;  %v7841_v30 = vpop.permute.xlu0 %7840  ;;  %v7843_v14 = vpop.permute.xlu1 %7842 }
 0x6e0   : > { %v7670_v49 = vmax.f32 %v7638_v58, %v7606_v52  ;;  %v7607_v42 = vmax.f32 %v7535_v0, %v7571_v41 }
 0x6e2   : > { %8010 = vrot.lane.b32.xlu1 %v7665_v47, %s11046_s23  ;;  %8012 = vrot.lane.b32.xlu0 %v7666_v25, %s11046_s23  ;;  %v7671_v53 = vmax.f32 %v7639_v18, %v7607_v42  ;;  %v7845_v63 = vpop.permute.xlu0 %7844  ;;  %v7847_v15 = vpop.permute.xlu1 %7846 }
 0x6e6   : > { %8014 = vrot.lane.b32.xlu1 %v7667_v37, %s11046_s23  ;;  %8016 = vrot.lane.b32.xlu0 %v7668_v31, %s11046_s23  ;;  %v7849_v11 = vpop.permute.xlu0 %7848  ;;  %v17612_v38 = vpop.permute.xlu1 %7850 }
 0x6ea   : > { %8018 = vrot.lane.b32.xlu1 %v7669_v10, %s11046_s23  ;;  %8020 = vrot.lane.b32.xlu0 %v7670_v49, %s11046_s23  ;;  %v17614_v13 = vpop.permute.xlu0 %7852  ;;  %v17616_v47 = vpop.permute.xlu1 %7854 }
 0x6ee   : > { %8022 = vrot.lane.b32.xlu1 %v7671_v53, %s11046_s23  ;;  %v17618_v59 = vpop.permute.xlu0 %7856  ;;  %v17620_v25 = vpop.permute.xlu1 %7858  ;;  %s269_s23 = sand.u32 1, %s11029_s25   ;;  %v8056_v53 = vsel %vm1893_vm4, %v17476_v62, %v7833_v36  ;;  %v8058_v62 = vsel %vm1893_vm4, %v17487_v51, %v7837_v29 }
 0x6ef   : > { %s8232_s15 = sshll.u32 %s269_s23, 8  ;;  %s17857_s28 = scalar_lea.sflag [#allocation6], %s269_s23 }
 0x6f0   : > { %s17664_s17 = scalar_lea.vmem [#allocation5], %s8232_s15 }
 0x6f1   : > { %s8166_s29 = sshll.u32 %s17664_s17, 4  ;;  %s17850_s29 = int_to_ptr.vmem [resolvable:$true] %s8166_s29 }
 0x6f2   : > { %v17622_v60 = vpop.permute.xlu0 %7860  ;;  %v17624_v3 = vpop.permute.xlu1 %7862  ;;  %s10977_s13 = scalar_lea.vmem %s17850_s29, 4096  ;;  %p10984_p0 = scmp.lt.s32.totalorder %s17850_s29, %s10982_s20 }
 0x6f3   : > { %p10978_p11 = scmp.ne.s32.totalorder %s17850_s29, %s10977_s13  ;;  %p10985_p1 = scmp.lt.s32.totalorder %s10983_s22, %s10977_s13 }
 0x6f5   : > { %p10979_p12 = pnand %p10978_p11, %p11135_p5  ;;  %p10986_p2 = por %p10985_p1, %p10984_p0 }
 0x6f6   : > { %v17626_v46 = vpop.permute.xlu0 %7864  ;;  %v17628_v61 = vpop.permute.xlu1 %7866 }
 0x6f7   : > { %p10980_p13 = pneg %p10979_p12 }
 0x6f9   : > { %p10987_p3 = pnand %p10986_p2, %p10980_p13 }
 0x6fa   : > { %v17630_v16 = vpop.permute.xlu0 %7868  ;;  %v17632_v37 = vpop.permute.xlu1 %7870 }
 0x6fe   : > { %v17634_v31 = vpop.permute.xlu0 %7872  ;;  %v17636_v56 = vpop.permute.xlu1 %7874 }
 0x702   : > { %v17638_v22 = vpop.permute.xlu0 %7876  ;;  %v17640_v52 = vpop.permute.xlu1 %7878 }
 0x706   : > { %v17642_v58 = vpop.permute.xlu0 %7880 }
 0x708   : > { %v17644_v0 = vpop.permute.xlu1 %7882 }
 0x70c   : > { %v17646_v41 = vpop.permute.xlu0 %7884 }
 0x710   : > { %v17648_v10 = vpop.permute.xlu1 %7886 }
 0x714   : > { %v17650_v49 = vpop.permute.xlu0 %7888 }
 0x718   : > { %v17653_v42 = vpop.permute.xlu1 %7890 }
 0x719   : > { %19604 = vst [vmem:[#allocation94_spill] sm:$0xff] %v17653_v42 }
 0x71c   : > { %v17655_v18 = vpop.permute.xlu0 %7892 }
 0x71d   : > { %19605 = vst [vmem:[#allocation210_spill] sm:$0xff] %v17655_v18  ;;  %v8057_v18 = vsel %vm1893_vm4, %v17483_v23, %v7835_v28  ;;  %v8060_v23 = vsel %vm1893_vm4, %v17499_v24, %v7841_v30 }
 0x720   : > { %v17661_v1 = vpop.permute.xlu1 %7894  ;;  %v7961_v9 = vpop.permute.xlu0 %7960 }
 0x721   : > { %19606 = vst [vmem:[#allocation208_spill] sm:$0xff] %v17661_v1  ;;  %v8088_v20 = vsel %vm2024_vm8, %v8056_v53, %v7961_v9  ;;  %v8063_v53 = vsel %vm1893_vm4, %v17514_v19, %v7847_v15  ;;  %v8066_v19 = vsel %vm1893_vm4, %v17526_v43, %v17614_v13  ;;  %v8068_v43 = vsel %vm1893_vm4, %v17534_v7, %v17618_v59 }
 0x722   : > { %8120 = vst.msk [vmem:[%s17664_s17] sm:$0xff] %vm2057_vm9, %v8088_v20  ;;  %v8059_v20 = vsel %vm1893_vm4, %v17494_v21, %v7839_v35  ;;  %v8062_v21 = vsel %vm1893_vm4, %v17509_v12, %v7845_v63  ;;  %v8070_v7 = vsel %vm1893_vm4, %v17543_v45, %v17622_v60  ;;  %v8072_v45 = vsel %vm1893_vm4, %v17549_v2, %v17626_v46 }
 0x723   : > { %v8074_v2 = vsel %vm1893_vm4, %v17557_v50, %v17630_v16  ;;  %v8076_v50 = vsel %vm1893_vm4, %v17563_v32, %v17634_v31  ;;  %v8078_v32 = vsel %vm1893_vm4, %v17571_v33, %v17638_v22  ;;  %v8080_v33 = vsel %vm1893_vm4, %v17577_v6, %v17642_v58 }
 0x724   : > { %v7963_v36 = vpop.permute.xlu1 %7962  ;;  %v7965_v1 = vpop.permute.xlu0 %7964  ;;  %v8082_v6 = vsel %vm1893_vm4, %v17585_v26, %v17646_v41  ;;  %v8084_v26 = vsel %vm1893_vm4, %v17591_v54, %v17650_v49 }
 0x725   : > { %v8089_v42 = vsel %vm2024_vm8, %v8057_v18, %v7963_v36  ;;  %v8090_v9 = vsel %vm2024_vm8, %v8058_v62, %v7965_v1  ;;  %v8061_v1 = vsel %vm1893_vm4, %v17505_v40, %v7843_v14  ;;  %v8064_v40 = vsel %vm1893_vm4, %v17517_v39, %v7849_v11 }
 0x726   : > { %8121 = vst.msk [vmem:[%s17664_s17 + $0x8] sm:$0xff] %vm2057_vm9, %v8089_v42  ;;  %8122 = vst.msk [vmem:[%s17664_s17 + $0x10] sm:$0xff] %vm2057_vm9, %v8090_v9  ;;  %v8065_v36 = vsel %vm1893_vm4, %v17522_v34, %v17612_v38  ;;  %v8067_v34 = vsel %vm1893_vm4, %v17531_v8, %v17616_v47  ;;  %v8069_v8 = vsel %vm1893_vm4, %v17539_v17, %v17620_v25 }
 0x727   : > { %v8071_v17 = vsel %vm1893_vm4, %v17547_v57, %v17624_v3  ;;  %v8073_v57 = vsel %vm1893_vm4, %v17553_v5, %v17628_v61  ;;  %v8075_v5 = vsel %vm1893_vm4, %v17561_v4, %v17632_v37  ;;  %v8077_v4 = vsel %vm1893_vm4, %v17567_v27, %v17636_v56 }
 0x728   : > { %v7967_v28 = vpop.permute.xlu1 %7966  ;;  %v7969_v51 = vpop.permute.xlu0 %7968  ;;  %v8079_v27 = vsel %vm1893_vm4, %v17575_v55, %v17640_v52  ;;  %v8081_v55 = vsel %vm1893_vm4, %v17581_v44, %v17644_v0  ;;  %v8083_v44 = vsel %vm1893_vm4, %v17589_v48, %v17648_v10  ;;  %v19609_v10 = vld [vmem:[#allocation210_spill] sm:$0xff] }
 0x729   : > { %v8091_v29 = vsel %vm2024_vm8, %v8059_v20, %v7967_v28  ;;  %v8092_v18 = vsel %vm2024_vm8, %v8060_v23, %v7969_v51 }
 0x72a   : > { %8123 = vst.msk [vmem:[%s17664_s17 + $0x18] sm:$0xff] %vm2057_vm9, %v8091_v29  ;;  %8124 = vst.msk [vmem:[%s17664_s17 + $0x20] sm:$0xff] %vm2057_vm9, %v8092_v18 }
 0x72c   : > { %v7971_v35 = vpop.permute.xlu1 %7970  ;;  %v7973_v24 = vpop.permute.xlu0 %7972 }
 0x72d   : > { %v8093_v30 = vsel %vm2024_vm8, %v8061_v1, %v7971_v35  ;;  %v8094_v42 = vsel %vm2024_vm8, %v8062_v21, %v7973_v24 }
 0x72e   : > { %8125 = vst.msk [vmem:[%s17664_s17 + $0x28] sm:$0xff] %vm2057_vm9, %v8093_v30  ;;  %8126 = vst.msk [vmem:[%s17664_s17 + $0x30] sm:$0xff] %vm2057_vm9, %v8094_v42 }
 0x730   : > { %v7975_v14 = vpop.permute.xlu1 %7974  ;;  %v7977_v12 = vpop.permute.xlu0 %7976 }
 0x731   : > { %v8095_v63 = vsel %vm2024_vm8, %v8063_v53, %v7975_v14  ;;  %v8096_v62 = vsel %vm2024_vm8, %v8064_v40, %v7977_v12 }
 0x732   : > { %8127 = vst.msk [vmem:[%s17664_s17 + $0x38] sm:$0xff] %vm2057_vm9, %v8095_v63  ;;  %8128 = vst.msk [vmem:[%s17664_s17 + $0x40] sm:$0xff] %vm2057_vm9, %v8096_v62 }
 0x734   : > { %v7979_v39 = vpop.permute.xlu1 %7978  ;;  %v7981_v15 = vpop.permute.xlu0 %7980 }
 0x735   : > { %v8097_v11 = vsel %vm2024_vm8, %v8065_v36, %v7979_v39  ;;  %v8098_v9 = vsel %vm2024_vm8, %v8066_v19, %v7981_v15  ;;  %v19607_v36 = vld [vmem:[#allocation94_spill] sm:$0xff]  ;;  %v19608_v19 = vld [vmem:[#allocation89_spill] sm:$0xff] }
 0x736   : > { %8129 = vst.msk [vmem:[%s17664_s17 + $0x48] sm:$0xff] %vm2057_vm9, %v8097_v11  ;;  %8130 = vst.msk [vmem:[%s17664_s17 + $0x50] sm:$0xff] %vm2057_vm9, %v8098_v9  ;;  %v8085_v48 = vsel %vm1893_vm4, %v19608_v19, %v19607_v36  ;;  %v19610_v39 = vld [vmem:[#allocation90_spill] sm:$0xff] }
 0x737   : > { %v8086_v54 = vsel %vm1893_vm4, %v19610_v39, %v19609_v10 }
 0x738   : > { %v7983_v38 = vpop.permute.xlu1 %7982  ;;  %v7985_v13 = vpop.permute.xlu0 %7984 }
 0x739   : > { %v8099_v20 = vsel %vm2024_vm8, %v8067_v34, %v7983_v38  ;;  %v8100_v23 = vsel %vm2024_vm8, %v8068_v43, %v7985_v13  ;;  %v19611_v34 = vld [vmem:[#allocation208_spill] sm:$0xff]  ;;  %v19612_v43 = vld [vmem:[#allocation91_spill] sm:$0xff] }
 0x73a   : > { %8131 = vst.msk [vmem:[%s17664_s17 + $0x58] sm:$0xff] %vm2057_vm9, %v8099_v20  ;;  %8132 = vst.msk [vmem:[%s17664_s17 + $0x60] sm:$0xff] %vm2057_vm9, %v8100_v23  ;;  %v8087_v38 = vsel %vm1893_vm4, %v19612_v43, %v19611_v34 }
 0x73c   : > { %v7987_v47 = vpop.permute.xlu1 %7986  ;;  %v7989_v59 = vpop.permute.xlu0 %7988 }
 0x73d   : > { %v8101_v28 = vsel %vm2024_vm8, %v8069_v8, %v7987_v47  ;;  %v8102_v51 = vsel %vm2024_vm8, %v8070_v7, %v7989_v59 }
 0x73e   : > { %8133 = vst.msk [vmem:[%s17664_s17 + $0x68] sm:$0xff] %vm2057_vm9, %v8101_v28  ;;  %8134 = vst.msk [vmem:[%s17664_s17 + $0x70] sm:$0xff] %vm2057_vm9, %v8102_v51 }
 0x740   : > { %v7991_v25 = vpop.permute.xlu1 %7990  ;;  %v7993_v60 = vpop.permute.xlu0 %7992 }
 0x741   : > { %v8103_v29 = vsel %vm2024_vm8, %v8071_v17, %v7991_v25  ;;  %v8104_v18 = vsel %vm2024_vm8, %v8072_v45, %v7993_v60 }
 0x742   : > { %8135 = vst.msk [vmem:[%s17664_s17 + $0x78] sm:$0xff] %vm2057_vm9, %v8103_v29  ;;  %8136 = vst.msk [vmem:[%s17664_s17 + $0x80] sm:$0xff] %vm2057_vm9, %v8104_v18 }
 0x744   : > { %v7995_v3 = vpop.permute.xlu1 %7994  ;;  %v7997_v46 = vpop.permute.xlu0 %7996 }
 0x745   : > { %v8105_v1 = vsel %vm2024_vm8, %v8073_v57, %v7995_v3  ;;  %v8106_v21 = vsel %vm2024_vm8, %v8074_v2, %v7997_v46 }
 0x746   : > { %8137 = vst.msk [vmem:[%s17664_s17 + $0x88] sm:$0xff] %vm2057_vm9, %v8105_v1  ;;  %8138 = vst.msk [vmem:[%s17664_s17 + $0x90] sm:$0xff] %vm2057_vm9, %v8106_v21 }
 0x748   : > { %v7999_v61 = vpop.permute.xlu1 %7998  ;;  %v8001_v16 = vpop.permute.xlu0 %8000 }
 0x749   : > { %v8107_v35 = vsel %vm2024_vm8, %v8075_v5, %v7999_v61  ;;  %v8108_v24 = vsel %vm2024_vm8, %v8076_v50, %v8001_v16 }
 0x74a   : > { %8139 = vst.msk [vmem:[%s17664_s17 + $0x98] sm:$0xff] %vm2057_vm9, %v8107_v35  ;;  %8140 = vst.msk [vmem:[%s17664_s17 + $0xa0] sm:$0xff] %vm2057_vm9, %v8108_v24 }
 0x74c   : > { %v8003_v37 = vpop.permute.xlu1 %8002  ;;  %v8005_v31 = vpop.permute.xlu0 %8004 }
 0x74d   : > { %v8109_v30 = vsel %vm2024_vm8, %v8077_v4, %v8003_v37  ;;  %v8110_v42 = vsel %vm2024_vm8, %v8078_v32, %v8005_v31 }
 0x74e   : > { %8141 = vst.msk [vmem:[%s17664_s17 + $0xa8] sm:$0xff] %vm2057_vm9, %v8109_v30  ;;  %8142 = vst.msk [vmem:[%s17664_s17 + $0xb0] sm:$0xff] %vm2057_vm9, %v8110_v42 }
 0x750   : > { %v8007_v56 = vpop.permute.xlu1 %8006  ;;  %v8009_v22 = vpop.permute.xlu0 %8008 }
 0x751   : > { %v8111_v53 = vsel %vm2024_vm8, %v8079_v27, %v8007_v56  ;;  %v8112_v40 = vsel %vm2024_vm8, %v8080_v33, %v8009_v22 }
 0x752   : > { %8143 = vst.msk [vmem:[%s17664_s17 + $0xb8] sm:$0xff] %vm2057_vm9, %v8111_v53  ;;  %8144 = vst.msk [vmem:[%s17664_s17 + $0xc0] sm:$0xff] %vm2057_vm9, %v8112_v40 }
 0x754   : > { %v8011_v52 = vpop.permute.xlu1 %8010  ;;  %v8013_v58 = vpop.permute.xlu0 %8012 }
 0x755   : > { %v8113_v14 = vsel %vm2024_vm8, %v8081_v55, %v8011_v52  ;;  %v8114_v12 = vsel %vm2024_vm8, %v8082_v6, %v8013_v58 }
 0x756   : > { %8145 = vst.msk [vmem:[%s17664_s17 + $0xc8] sm:$0xff] %vm2057_vm9, %v8113_v14  ;;  %8146 = vst.msk [vmem:[%s17664_s17 + $0xd0] sm:$0xff] %vm2057_vm9, %v8114_v12 }
 0x758   : > { %v8015_v0 = vpop.permute.xlu1 %8014  ;;  %v8017_v41 = vpop.permute.xlu0 %8016 }
 0x759   : > { %v8115_v63 = vsel %vm2024_vm8, %v8083_v44, %v8015_v0  ;;  %v8116_v62 = vsel %vm2024_vm8, %v8084_v26, %v8017_v41 }
 0x75a   : > { %8147 = vst.msk [vmem:[%s17664_s17 + $0xd8] sm:$0xff] %vm2057_vm9, %v8115_v63  ;;  %8148 = vst.msk [vmem:[%s17664_s17 + $0xe0] sm:$0xff] %vm2057_vm9, %v8116_v62 }
 0x75c   : > { %v8019_v49 = vpop.permute.xlu1 %8018  ;;  %v8021_v15 = vpop.permute.xlu0 %8020 }
 0x75d   : > { %v8117_v11 = vsel %vm2024_vm8, %v8085_v48, %v8019_v49  ;;  %v8118_v9 = vsel %vm2024_vm8, %v8086_v54, %v8021_v15 }
 0x75e   : > { %8149 = vst.msk [vmem:[%s17664_s17 + $0xe8] sm:$0xff] %vm2057_vm9, %v8117_v11  ;;  %8150 = vst.msk [vmem:[%s17664_s17 + $0xf0] sm:$0xff] %vm2057_vm9, %v8118_v9 }
 0x760   : > { %v8023_v13 = vpop.permute.xlu1 %8022 }
 0x761   : > { %v8119_v20 = vsel %vm2024_vm8, %v8087_v38, %v8023_v13 }
 0x762   : > { %8151 = vst.msk [vmem:[%s17664_s17 + $0xf8] sm:$0xff] %vm2057_vm9, %v8119_v20 }
 0x763   : > { %10990 = shalt.err (!%p10987_p3)
}
 0x764   : > { %s10991_s14 = scalar_lea.hbm %s17845_s9, 4096  ;;  %s10995_s17 = scalar_lea.hbm %s17905_s7, 8192 }
 0x765   : > { %p10992_p4 = scmp.ne.s32.totalorder %s17845_s9, %s10991_s14  ;;  %p10996_p9 = scmp.lt.s32.totalorder %s17845_s9, %s17905_s7 }
 0x766   : > { %p10997_p10 = scmp.lt.s32.totalorder %s10995_s17, %s10991_s14 }
 0x767   : > { %p10993_p7 = pnand %p10992_p4, %p11135_p5 }
 0x768   : > { %p10998_p11 = por %p10997_p10, %p10996_p9 }
 0x769   : > { %p10994_p8 = pneg %p10993_p7 }
 0x76b   : > { %p10999_p12 = pnand %p10998_p11, %p10994_p8 }
 0x76d   : > { %11002 = shalt.err (!%p10999_p12)
}
 0x76e   : > { %s11056_s8 = smov 128  }
 0x76f   : > { %8483 = dma.vmem_to_hbm [thread:$0]  (%p11135_p5), %s17850_s29, 4096, %s17845_s9, %s17857_s28, %s11056_s8, %s11056_s8, %s11042_s19  }
 0x770 PF: > { %p8489_p13 = scmp.ge.s32.totalorder %s11037_s27, 2  ;;  %s8181_s13 = sand.u32 1, %s11025_s24  }
 0x771   : > { %s8182_s18 = scalar_lea.sflag [#allocation6], %s8181_s13 }
 0x772   : > { %p8486_p0 = pnand %p8489_p13, %p11139_p6 }
 0x774   : > { %p8487_p1 = pneg %p8486_p0 }
 0x776   : > { %11020 = dma.done.wait (%p8487_p1), %s8182_s18, 4096  }
 0x777   : > { %11022 = vsyncadd (%p8487_p1), %s8182_s18, 4294963200  ;;  %p17_p2 = scmp.ge.s32.totalorder %s11122_s30, 4   ;;  %s19613_s24 = smov %s11029_s25 }
 0x778   : > { %s19614_s25 = smov %s11033_s26  ;;  %s19615_s26 = smov %s11133_s10 }
 0x779   : > { %s19616_s27 = smov %s11122_s30  ;;  %19 = sbr.rel (!%p17_p2) target bundleno = 3 (0x3), region = 90 }
 0x77e   :  { %8187 = vsyncpa [#allocation6], 1 }
 0x77f   :  { %8189 = vsyncpa [#allocation6 + $0x1], 1 }

</bundles_post_ra>
